<compile_context>
chip_gen: v5e
topology: v5e:2x2
jax: 0.10.0
libtpu: 0.0.40
codegen_flags: <defaults>
</compile_context>

<pallas_src>
import functools
import math

import jax
import jax.numpy as jnp
from jax.experimental import pallas as pl
from jax.experimental.pallas import tpu as pltpu

_VMEM_LIMIT = 32 * 1024 * 1024  # explicit scoped-VMEM cap (safe on v5e/v6e/v7x)


def _gelu(x):
    # exact (erf-based) GELU == torch.nn.GELU() default
    return 0.5 * x * (1.0 + jax.lax.erf(x * 0.7071067811865476))


def _cparams(*sems):
    return pltpu.CompilerParams(dimension_semantics=sems,
                                vmem_limit_bytes=_VMEM_LIMIT)


def _h_tile(hp, wp, c, bytes_per_elem=4, budget_bytes=2 * 1024 * 1024):
    """Largest divisor of `hp` whose (double-buffered) H strip fits a VMEM budget."""
    per_row = max(1, 4 * wp * c * bytes_per_elem)
    max_rows = max(1, budget_bytes // per_row)
    if max_rows >= hp:
        return hp
    best = 1
    for d in range(1, hp + 1):
        if hp % d == 0 and d <= max_rows:
            best = d
    return best


# --------------------------------------------------------------------------- #
# Kernel 1: fused MaxPool2d(2) + LayerNorm(norm1) + x4-branch 1x1 conv + GELU  #
# --------------------------------------------------------------------------- #

def _pool_ln_pw_kernel(x_ref, lnw_ref, lnb_ref, pww_ref, pwb_ref,
                       h_ref, a4_ref, *, c, eps):
    """x_ref block: (1, 2*TH, Wp, 2*C).  The W-direction 2x2 pair is pre-folded
    into the lane axis (free contiguous reshape in the wrapper), so pooling is
    just lane slices + a leading-dim split -- x is read from HBM exactly once."""
    _, TH, Wp, C = h_ref.shape
    x2 = x_ref[0]                                      # (2*TH, Wp, 2*C)
    mw = jnp.maximum(x2[:, :, :C], x2[:, :, C:])       # max over W pairs
    mw = mw.reshape(TH, 2, Wp, C)                      # split row pairs (leading dims only)
    pooled = jnp.maximum(mw[:, 0], mw[:, 1])           # (TH, Wp, C)

    xf = pooled.astype(jnp.float32)
    mu = jnp.mean(xf, axis=-1, keepdims=True)
    xc = xf - mu
    var = jnp.mean(xc * xc, axis=-1, keepdims=True)
    h = xc * jax.lax.rsqrt(var + eps)
    h = h * lnw_ref[...].astype(jnp.float32) + lnb_ref[...].astype(jnp.float32)
    h_ref[0] = h.astype(h_ref.dtype)

    # x4 branch 1x1 conv + GELU fused here so h is not re-read from HBM.
    h4 = h[:, :, 3 * c:]                               # (TH, Wp, c)
    pww = pww_ref[...].astype(jnp.float32)
    if c <= 32:
        # tiny channel count: VPU multiply-accumulate (MXU would be ~idle)
        acc = jnp.zeros((TH, Wp, c), jnp.float32)
        for ci in range(c):
            acc = acc + h4[:, :, ci:ci + 1] * pww[ci:ci + 1, :]
    else:
        # production channel counts: feed the MXU directly (no operand upcasts)
        acc = jnp.dot(h4.reshape(TH * Wp, c), pww,
                      preferred_element_type=jnp.float32).reshape(TH, Wp, c)
    acc = acc + pwb_ref[...].astype(jnp.float32)
    a4_ref[0] = _gelu(acc).astype(a4_ref.dtype)


def pool_ln_pw(x, ln_w, ln_b, pw_w, pw_b, *, c, eps=1e-6):
    """x: (B,H,W,C) -> (h=(B,H/2,W/2,C) post-norm1, a4=(B,H/2,W/2,c) x4-branch)."""
    B, H, W, C = x.shape
    Hp, Wp = H // 2, W // 2
    xr = x.reshape(B, H, Wp, 2 * C)          # contiguous regroup: metadata only
    TH = _h_tile(Hp, Wp, C)
    nH = Hp // TH
    kern = functools.partial(_pool_ln_pw_kernel, c=c, eps=eps)
    return pl.pallas_call(
        kern,
        out_shape=(jax.ShapeDtypeStruct((B, Hp, Wp, C), x.dtype),
                   jax.ShapeDtypeStruct((B, Hp, Wp, c), x.dtype)),
        grid=(B, nH),
        in_specs=[pl.BlockSpec((1, 2 * TH, Wp, 2 * C), lambda b, i: (b, i, 0, 0)),
                  pl.BlockSpec((1, C), lambda b, i: (0, 0)),
                  pl.BlockSpec((1, C), lambda b, i: (0, 0)),
                  pl.BlockSpec((c, c), lambda b, i: (0, 0)),
                  pl.BlockSpec((1, c), lambda b, i: (0, 0))],
        out_specs=(pl.BlockSpec((1, TH, Wp, C), lambda b, i: (b, i, 0, 0)),
                   pl.BlockSpec((1, TH, Wp, c), lambda b, i: (b, i, 0, 0))),
        compiler_params=_cparams("parallel", "parallel"),
    )(xr, ln_w.reshape(1, C), ln_b.reshape(1, C), pw_w, pw_b.reshape(1, c))


# --------------------------------------------------------------------------- #
# Kernel 2/4: depthwise 3x3 conv (padding=1), optional fused GELU              #
# --------------------------------------------------------------------------- #

def _dwconv3x3_kernel(x_ref, w_ref, b_ref, o_ref, *, H, W, gelu_out):
    xp = x_ref[0].astype(jnp.float32)      # (H+2, W+2, C), zero padded
    w = w_ref[...].astype(jnp.float32)     # (3, 3, C)
    C = xp.shape[-1]
    acc = jnp.zeros((H, W, C), jnp.float32)
    for kh in range(3):
        for kw in range(3):
            acc = acc + xp[kh:kh + H, kw:kw + W, :] * w[kh, kw, :]
    acc = acc + b_ref[0]
    if gelu_out:
        acc = _gelu(acc)
    o_ref[0] = acc.astype(o_ref.dtype)


def dwconv3x3(x, taps, bias, gelu_out=False):
    """Depthwise 3x3 conv, padding=1. x: (B,H,W,C); taps: (3,3,C); bias: (C,)."""
    B, H, W, C = x.shape
    # TODO(synk): handle the 1-px zero border inside the kernel (masked taps /
    # halo H-strips) to remove this HBM pad copy and allow spatial tiling on v7x.
    xp = jnp.pad(x, ((0, 0), (1, 1), (1, 1), (0, 0)))
    return pl.pallas_call(
        functools.partial(_dwconv3x3_kernel, H=H, W=W, gelu_out=gelu_out),
        out_shape=jax.ShapeDtypeStruct((B, H, W, C), x.dtype),
        grid=(B,),
        in_specs=[pl.BlockSpec((1, H + 2, W + 2, C), lambda b: (b, 0, 0, 0)),
                  pl.BlockSpec((3, 3, C), lambda b: (0, 0, 0)),
                  pl.BlockSpec((1, C), lambda b: (0, 0))],
        out_specs=pl.BlockSpec((1, H, W, C), lambda b: (b, 0, 0, 0)),
        compiler_params=_cparams("parallel"),
    )(xp, taps, bias.reshape(1, C))


# --------------------------------------------------------------------------- #
# Kernel 3: fused Hadamard products (x1/x2/x3) + concat + LayerNorm(norm2)     #
# --------------------------------------------------------------------------- #

def _branch_ln_kernel(h_ref, d4_ref, mxy_ref, fzx_ref, fzy_ref, w_ref, b_ref,
                      o_ref, *, c, eps):
    """zx / zy multipliers arrive as (TH,1,c) / (1,Wp,c) and broadcast in-register
    (no (Hp,Wp,c) broadcast_to materialized in HBM).  The whole x1..x4 slice /
    multiply / concat / norm2 chain is one read + one write of the activation."""
    h = h_ref[0].astype(jnp.float32)                   # (TH, Wp, C)
    y1 = h[:, :, 0 * c:1 * c] * mxy_ref[...].astype(jnp.float32)
    y2 = h[:, :, 1 * c:2 * c] * fzx_ref[...].astype(jnp.float32)
    y3 = h[:, :, 2 * c:3 * c] * fzy_ref[...].astype(jnp.float32)
    y4 = d4_ref[0].astype(jnp.float32)
    y = jnp.concatenate([y1, y2, y3, y4], axis=-1)     # (TH, Wp, C)
    mu = jnp.mean(y, axis=-1, keepdims=True)
    yc = y - mu
    var = jnp.mean(yc * yc, axis=-1, keepdims=True)
    o = yc * jax.lax.rsqrt(var + eps)
    o = o * w_ref[...].astype(jnp.float32) + b_ref[...].astype(jnp.float32)
    o_ref[0] = o.astype(o_ref.dtype)


def branch_mul_ln(h, d4, m_xy, fzx, fzy, ln_w, ln_b, *, c, eps=1e-6):
    B, Hp, Wp, C = h.shape
    TH = _h_tile(Hp, Wp, C)
    nH = Hp // TH
    kern = functools.partial(_branch_ln_kernel, c=c, eps=eps)
    return pl.pallas_call(
        kern,
        out_shape=jax.ShapeDtypeStruct((B, Hp, Wp, C), h.dtype),
        grid=(B, nH),
        in_specs=[pl.BlockSpec((1, TH, Wp, C), lambda b, i: (b, i, 0, 0)),
                  pl.BlockSpec((1, TH, Wp, c), lambda b, i: (b, i, 0, 0)),
                  pl.BlockSpec((TH, Wp, c), lambda b, i: (i, 0, 0)),
                  pl.BlockSpec((TH, 1, c), lambda b, i: (i, 0, 0)),
                  pl.BlockSpec((1, Wp, c), lambda b, i: (0, 0, 0)),
                  pl.BlockSpec((1, C), lambda b, i: (0, 0)),
                  pl.BlockSpec((1, C), lambda b, i: (0, 0))],
        out_specs=pl.BlockSpec((1, TH, Wp, C), lambda b, i: (b, i, 0, 0)),
        compiler_params=_cparams("parallel", "parallel"),
    )(h, d4, m_xy, fzx, fzy, ln_w.reshape(1, C), ln_b.reshape(1, C))


# --------------------------------------------------------------------------- #
# Kernel 5: fused ldw 1x1 conv + GroupNorm(4) + GELU                           #
# --------------------------------------------------------------------------- #

def _pw_gn_gelu_kernel(x_ref, w_ref, b_ref, gw_ref, gb_ref, gmask_ref, o_ref,
                       *, num_groups, eps):
    """One batch element: y = x @ w + b, then GroupNorm(num_groups) + GELU.
    Group stats are built from two full-lane-width row reductions (sum, sum^2)
    and mixed into per-channel vectors with tiny group masks (no per-group
    concatenate, no per-pixel per-group reductions)."""
    Cout = w_ref.shape[1]
    cs = Cout // num_groups
    y = jnp.dot(x_ref[0], w_ref[...], preferred_element_type=jnp.float32)
    y = y + b_ref[...].astype(jnp.float32)             # (HW, Cout)
    s1 = jnp.sum(y, axis=0, keepdims=True)             # (1, Cout)
    s2 = jnp.sum(y * y, axis=0, keepdims=True)
    mean = jnp.zeros_like(s1)
    ex2 = jnp.zeros_like(s1)
    for g in range(num_groups):                        # num_groups == 4, static
        sl = slice(g * cs, (g + 1) * cs)
        mg = gmask_ref[g:g + 1, :]                     # (1, Cout): 1/(cs*H*W) on group g
        mean = mean + jnp.sum(s1[:, sl]) * mg
        ex2 = ex2 + jnp.sum(s2[:, sl]) * mg
    var = jnp.maximum(ex2 - mean * mean, 0.0)
    yn = (y - mean) * jax.lax.rsqrt(var + eps)
    o = _gelu(yn * gw_ref[...].astype(jnp.float32) + gb_ref[...].astype(jnp.float32))
    o_ref[0] = o.astype(o_ref.dtype)


def pw_groupnorm_gelu(x, w, b, gn_w, gn_b, num_groups=4, eps=1e-5):
    """1x1 conv (Cin->Cout) + GroupNorm(num_groups, Cout) + GELU. x: (B,H,W,Cin)."""
    B, H, W, Cin = x.shape
    Cout = w.shape[1]
    cs = Cout // num_groups
    gid = jnp.arange(Cout, dtype=jnp.int32) // cs
    gmask = (gid[None, :] == jnp.arange(num_groups, dtype=jnp.int32)[:, None])
    gmask = gmask.astype(jnp.float32) / float(cs * H * W)
    xf = x.reshape(B, H * W, Cin)                      # contiguous regroup (free)
    out = pl.pallas_call(
        functools.partial(_pw_gn_gelu_kernel, num_groups=num_groups, eps=eps),
        out_shape=jax.ShapeDtypeStruct((B, H * W, Cout), x.dtype),
        grid=(B,),
        in_specs=[pl.BlockSpec((1, H * W, Cin), lambda b: (b, 0, 0)),
                  pl.BlockSpec((Cin, Cout), lambda b: (0, 0)),
                  pl.BlockSpec((1, Cout), lambda b: (0, 0)),
                  pl.BlockSpec((1, Cout), lambda b: (0, 0)),
                  pl.BlockSpec((1, Cout), lambda b: (0, 0)),
                  pl.BlockSpec((num_groups, Cout), lambda b: (0, 0))],
        out_specs=pl.BlockSpec((1, H * W, Cout), lambda b: (b, 0, 0)),
        compiler_params=_cparams("parallel"),
    )(xf, w, b.reshape(1, Cout), gn_w.reshape(1, Cout), gn_b.reshape(1, Cout), gmask)
    return out.reshape(B, H, W, Cout)


# --------------------------------------------------------------------------- #
# Plain-JAX glue: weight re-layouts, bilinear interp, kilobyte-scale branches  #
# --------------------------------------------------------------------------- #

def _dw2d_taps(w):      # torch Conv2d depthwise (C,1,3,3) -> (3,3,C)
    return jnp.transpose(w[:, 0], (1, 2, 0))


def _pw2d_mat(w):       # torch Conv2d (Cout,Cin,1,1) -> (Cin,Cout)
    return jnp.transpose(w[:, :, 0, 0], (1, 0))


def _pw1d_mat(w):       # torch Conv1d (Cout,Cin,1) -> (Cin,Cout)
    return jnp.transpose(w[:, :, 0], (1, 0))


def _interp_axis(in_size, out_size):
    if out_size == 1:
        src = jnp.zeros((1,), jnp.float32)
    else:
        src = jnp.arange(out_size, dtype=jnp.float32) * ((in_size - 1) / (out_size - 1))
    lo = jnp.clip(jnp.floor(src).astype(jnp.int32), 0, in_size - 1)
    hi = jnp.clip(lo + 1, 0, in_size - 1)
    frac = src - lo.astype(jnp.float32)
    return lo, hi, frac


def bilinear_align_corners(p, out_h, out_w):
    """F.interpolate(p, size=(out_h,out_w), mode='bilinear', align_corners=True).
    p: (N, C, Hin, Win) -- tiny parameter grids, plain XLA is the right tool."""
    lo_h, hi_h, fh = _interp_axis(p.shape[2], out_h)
    lo_w, hi_w, fw = _interp_axis(p.shape[3], out_w)
    top = (p[:, :, lo_h, :] * (1.0 - fh)[None, None, :, None]
           + p[:, :, hi_h, :] * fh[None, None, :, None])
    out = (top[:, :, :, lo_w] * (1.0 - fw)[None, None, None, :]
           + top[:, :, :, hi_w] * fw[None, None, None, :])
    return out


def _dwconv3x3_ref(x_hwc, taps, bias):
    """Plain-JAX depthwise 3x3 (padding=1) for the kilobyte-scale param grids."""
    H, W, C = x_hwc.shape
    xp = jnp.pad(x_hwc.astype(jnp.float32), ((1, 1), (1, 1), (0, 0)))
    acc = jnp.zeros((H, W, C), jnp.float32)
    for kh in range(3):
        for kw in range(3):
            acc = acc + xp[kh:kh + H, kw:kw + W, :] * taps[kh, kw].astype(jnp.float32)
    return acc + bias.astype(jnp.float32)


def _xy_multiplier(P, Hp, Wp, c, dtype):
    """conv_xy(interp(params_xy)) -> (Hp, Wp, c) Hadamard multiplier."""
    pxy = bilinear_align_corners(P["params_xy"].astype(jnp.float32), Hp, Wp)[0]
    pxy = jnp.transpose(pxy, (1, 2, 0))                           # (Hp, Wp, c)
    t = _gelu(_dwconv3x3_ref(pxy, _dw2d_taps(P["convxy_dw_w"]), P["convxy_dw_b"]))
    m = jnp.dot(t.reshape(Hp * Wp, c), _pw2d_mat(P["convxy_pw_w"]).astype(jnp.float32))
    m = m + P["convxy_pw_b"].astype(jnp.float32)
    return m.reshape(Hp, Wp, c).astype(dtype)


def _conv1d_branch_ref(p_cl, dw_w, dw_b, pw_w, pw_b):
    """conv_zx / conv_zy: depthwise Conv1d(k=3,pad=1) -> GELU -> 1x1.  p_cl: (c, L)."""
    _, L = p_cl.shape
    x = jnp.transpose(p_cl, (1, 0)).astype(jnp.float32)           # (L, c)
    xp = jnp.pad(x, ((1, 1), (0, 0)))
    taps = jnp.transpose(dw_w[:, 0, :], (1, 0)).astype(jnp.float32)  # (3, c)
    t = (xp[0:L] * taps[0] + xp[1:L + 1] * taps[1] + xp[2:L + 2] * taps[2]
         + dw_b.astype(jnp.float32))
    t = _gelu(t)
    return jnp.dot(t, _pw1d_mat(pw_w).astype(jnp.float32)) + pw_b.astype(jnp.float32)


# --------------------------------------------------------------------------- #
# SingleDown / PostPosEmbed forward                                            #
# --------------------------------------------------------------------------- #

def single_down(x, P):
    """SingleDown forward in NHWC: (B, H, W, Cin) -> (B, H/2, W/2, Cout)."""
    B, H, W, Cin = x.shape
    c = Cin // 4
    Hp, Wp = H // 2, W // 2
    dt = x.dtype

    # -- kilobyte-scale learned-parameter branches: plain XLA (no kernel launches)
    m_xy = _xy_multiplier(P, Hp, Wp, c, dt)                                   # (Hp, Wp, c)
    pzx = bilinear_align_corners(P["params_zx"].astype(jnp.float32), c, Hp)[0, 0]
    fzx = _conv1d_branch_ref(pzx, P["convzx_dw_w"], P["convzx_dw_b"],
                             P["convzx_pw_w"], P["convzx_pw_b"])
    fzx = fzx.reshape(Hp, 1, c).astype(dt)     # broadcast over W inside the kernel
    pzy = bilinear_align_corners(P["params_zy"].astype(jnp.float32), c, Wp)[0, 0]
    fzy = _conv1d_branch_ref(pzy, P["convzy_dw_w"], P["convzy_dw_b"],
                             P["convzy_pw_w"], P["convzy_pw_b"])
    fzy = fzy.reshape(1, Wp, c).astype(dt)     # broadcast over H inside the kernel

    # -- fused MaxPool2d(2) + norm1 + x4-branch 1x1 conv + GELU
    h, a4 = pool_ln_pw(x, P["ln1_w"], P["ln1_b"],
                       _pw2d_mat(P["dw_pw_w"]), P["dw_pw_b"], c=c, eps=1e-6)
    # -- x4 branch depthwise 3x3
    d4 = dwconv3x3(a4, _dw2d_taps(P["dw_dw_w"]), P["dw_dw_b"], gelu_out=False)
    # -- fused Hadamard products + concat + norm2
    y = branch_mul_ln(h, d4, m_xy, fzx, fzy, P["ln2_w"], P["ln2_b"], c=c, eps=1e-6)
    # -- ldw: depthwise 3x3 + GELU, then 1x1 fused with GroupNorm(4) + GELU
    g = dwconv3x3(y, _dw2d_taps(P["ldw_dw_w"]), P["ldw_dw_b"], gelu_out=True)
    out = pw_groupnorm_gelu(g, _pw2d_mat(P["ldw_pw_w"]), P["ldw_pw_b"],
                            P["gn_w"], P["gn_b"], num_groups=4, eps=1e-5)
    return out


def post_pos_embed(x_bhwc, blocks):
    """PostPosEmbed.forward: (B, H, W, embed_dim) -> (B, H', W', embed_dim).
    Torch permutes BHWC->BCHW around the SingleDown stack; our kernels are NHWC
    end-to-end so the two boundary permutes cancel out."""
    x = x_bhwc
    for P in blocks:
        x = single_down(x, P)
    return x


# --------------------------------------------------------------------------- #
# Parameter init                                                               #
# --------------------------------------------------------------------------- #

def init_params(key, cin, cout, dtype=jnp.float32):
    c = cin // 4
    ks = jax.random.split(key, 20)
    rn = lambda k, shape: 0.1 * jax.random.normal(k, shape, dtype)
    return dict(
        ln1_w=jnp.ones((cin,), dtype), ln1_b=jnp.zeros((cin,), dtype),
        ln2_w=jnp.ones((cin,), dtype), ln2_b=jnp.zeros((cin,), dtype),
        params_xy=jnp.ones((1, c, 8, 8), dtype),        # nn.init.ones_
        params_zx=jnp.ones((1, 1, c, 8), dtype),
        params_zy=jnp.ones((1, 1, c, 8), dtype),
        convxy_dw_w=rn(ks[0], (c, 1, 3, 3)), convxy_dw_b=rn(ks[1], (c,)),
        convxy_pw_w=rn(ks[2], (c, c, 1, 1)), convxy_pw_b=rn(ks[3], (c,)),
        convzx_dw_w=rn(ks[4], (c, 1, 3)),    convzx_dw_b=rn(ks[5], (c,)),
        convzx_pw_w=rn(ks[6], (c, c, 1)),    convzx_pw_b=rn(ks[7], (c,)),
        convzy_dw_w=rn(ks[8], (c, 1, 3)),    convzy_dw_b=rn(ks[9], (c,)),
        convzy_pw_w=rn(ks[10], (c, c, 1)),   convzy_pw_b=rn(ks[11], (c,)),
        dw_pw_w=rn(ks[12], (c, c, 1, 1)),    dw_pw_b=rn(ks[13], (c,)),
        dw_dw_w=rn(ks[14], (c, 1, 3, 3)),    dw_dw_b=rn(ks[15], (c,)),
        ldw_dw_w=rn(ks[16], (cin, 1, 3, 3)), ldw_dw_b=rn(ks[17], (cin,)),
        ldw_pw_w=rn(ks[18], (cout, cin, 1, 1)), ldw_pw_b=rn(ks[19], (cout,)),
        gn_w=jnp.ones((cout,), dtype), gn_b=jnp.zeros((cout,), dtype),
    )


def init_post_pos_embed(key, embed_dim, ori_feature_size, new_feature_size,
                        dtype=jnp.float32):
    downtimes = int(math.log2(ori_feature_size // new_feature_size))
    keys = jax.random.split(key, max(downtimes, 1))
    return [init_params(keys[i], embed_dim, embed_dim, dtype)
            for i in range(downtimes)]


if __name__ == "__main__":
    B, D = 2, 8            # embed_dim divisible by 4 (chunk + GroupNorm(4))
    ORI, NEW = 16, 4       # downtimes = log2(16 // 4) = 2 SingleDown blocks
    key = jax.random.PRNGKey(0)
    kx, kp = jax.random.split(key)
    x = jax.random.normal(kx, (B, ORI, ORI, D), jnp.float32)   # (B, H, W, embed_dim)
    blocks = init_post_pos_embed(kp, D, ORI, NEW)

    y = jax.jit(post_pos_embed)(x, blocks)
    jax.block_until_ready(y)
    assert y.shape == (B, NEW, NEW, D), y.shape
    print("KERNEL_OK")
</pallas_src>

<mosaic_0001>
module attributes {stable_mosaic.version = 11 : i64} {
  func.func @_pool_ln_pw_kernel(%arg0: i32, %arg1: i32, %arg2: memref<1x16x8x16xf32, #tpu.memory_space<vmem>>, %arg3: memref<1x8xf32, #tpu.memory_space<vmem>>, %arg4: memref<1x8xf32, #tpu.memory_space<vmem>>, %arg5: memref<2x2xf32, #tpu.memory_space<vmem>>, %arg6: memref<1x2xf32, #tpu.memory_space<vmem>>, %arg7: memref<1x8x8x8xf32, #tpu.memory_space<vmem>>, %arg8: memref<1x8x8x2xf32, #tpu.memory_space<vmem>>) attributes {dimension_semantics = [#tpu.dimension_semantics<parallel>, #tpu.dimension_semantics<parallel>], iteration_bounds = array<i64: 2, 1>, scalar_prefetch = 0 : i64, scratch_operands = 0 : i64, tpu.core_type = #tpu.core_type<tc>, window_params = [{transform_indices = @transform_0, window_bounds = array<i64: 1, 16, 8, 16>}, {pipeline_mode = #tpu.pipeline_mode<synchronous>, transform_indices = @transform_1, window_bounds = array<i64: 1, 8>}, {pipeline_mode = #tpu.pipeline_mode<synchronous>, transform_indices = @transform_2, window_bounds = array<i64: 1, 8>}, {pipeline_mode = #tpu.pipeline_mode<synchronous>, transform_indices = @transform_3, window_bounds = array<i64: 2, 2>}, {pipeline_mode = #tpu.pipeline_mode<synchronous>, transform_indices = @transform_4, window_bounds = array<i64: 1, 2>}, {transform_indices = @transform_5, window_bounds = array<i64: 1, 8, 8, 8>}, {transform_indices = @transform_6, window_bounds = array<i64: 1, 8, 8, 2>}]} {
    %c0 = arith.constant 0 : index
    %c0_0 = arith.constant 0 : index
    %c0_1 = arith.constant 0 : index
    %c0_2 = arith.constant 0 : index
    %0 = vector.load %arg2[%c0, %c0_0, %c0_1, %c0_2] : memref<1x16x8x16xf32, #tpu.memory_space<vmem>>, vector<1x16x8x16xf32>
    %1 = vector.shape_cast %0 : vector<1x16x8x16xf32> to vector<16x8x16xf32>
    %2 = vector.extract_strided_slice %1 {offsets = [0, 0, 0], sizes = [16, 8, 8], strides = [1, 1, 1]} : vector<16x8x16xf32> to vector<16x8x8xf32>
    %3 = vector.extract_strided_slice %1 {offsets = [0, 0, 8], sizes = [16, 8, 8], strides = [1, 1, 1]} : vector<16x8x16xf32> to vector<16x8x8xf32>
    %4 = arith.maximumf %2, %3 : vector<16x8x8xf32>
    %5 = vector.shape_cast %4 : vector<16x8x8xf32> to vector<8x2x8x8xf32>
    %6 = vector.extract_strided_slice %5 {offsets = [0, 0, 0, 0], sizes = [8, 1, 8, 8], strides = [1, 1, 1, 1]} : vector<8x2x8x8xf32> to vector<8x1x8x8xf32>
    %7 = vector.shape_cast %6 : vector<8x1x8x8xf32> to vector<8x8x8xf32>
    %8 = vector.extract_strided_slice %5 {offsets = [0, 1, 0, 0], sizes = [8, 1, 8, 8], strides = [1, 1, 1, 1]} : vector<8x2x8x8xf32> to vector<8x1x8x8xf32>
    %9 = vector.shape_cast %8 : vector<8x1x8x8xf32> to vector<8x8x8xf32>
    %10 = arith.maximumf %7, %9 : vector<8x8x8xf32>
    %cst = arith.constant dense<0.000000e+00> : vector<8x8xf32>
    %11 = vector.multi_reduction <add>, %10, %cst [2] : vector<8x8x8xf32> to vector<8x8xf32>
    %12 = vector.shape_cast %11 : vector<8x8xf32> to vector<8x8x1xf32>
    %cst_3 = arith.constant 8.000000e+00 : f32
    %13 = vector.broadcast %cst_3 : f32 to vector<8x8x1xf32>
    %14 = arith.divf %12, %13 : vector<8x8x1xf32>
    %15 = vector.broadcast %14 : vector<8x8x1xf32> to vector<8x8x8xf32>
    %16 = arith.subf %10, %15 : vector<8x8x8xf32>
    %17 = arith.mulf %16, %16 : vector<8x8x8xf32>
    %cst_4 = arith.constant dense<0.000000e+00> : vector<8x8xf32>
    %18 = vector.multi_reduction <add>, %17, %cst_4 [2] : vector<8x8x8xf32> to vector<8x8xf32>
    %19 = vector.shape_cast %18 : vector<8x8xf32> to vector<8x8x1xf32>
    %cst_5 = arith.constant 8.000000e+00 : f32
    %20 = vector.broadcast %cst_5 : f32 to vector<8x8x1xf32>
    %21 = arith.divf %19, %20 : vector<8x8x1xf32>
    %cst_6 = arith.constant 9.99999997E-7 : f32
    %22 = vector.broadcast %cst_6 : f32 to vector<8x8x1xf32>
    %23 = arith.addf %21, %22 : vector<8x8x1xf32>
    %24 = math.rsqrt %23 : vector<8x8x1xf32>
    %25 = vector.broadcast %24 : vector<8x8x1xf32> to vector<8x8x8xf32>
    %26 = arith.mulf %16, %25 : vector<8x8x8xf32>
    %c0_7 = arith.constant 0 : index
    %c0_8 = arith.constant 0 : index
    %27 = vector.load %arg3[%c0_7, %c0_8] : memref<1x8xf32, #tpu.memory_space<vmem>>, vector<1x8xf32>
    %28 = vector.shape_cast %27 : vector<1x8xf32> to vector<1x1x8xf32>
    %29 = vector.broadcast %28 : vector<1x1x8xf32> to vector<8x8x8xf32>
    %30 = arith.mulf %26, %29 : vector<8x8x8xf32>
    %c0_9 = arith.constant 0 : index
    %c0_10 = arith.constant 0 : index
    %31 = vector.load %arg4[%c0_9, %c0_10] : memref<1x8xf32, #tpu.memory_space<vmem>>, vector<1x8xf32>
    %32 = vector.shape_cast %31 : vector<1x8xf32> to vector<1x1x8xf32>
    %33 = vector.broadcast %32 : vector<1x1x8xf32> to vector<8x8x8xf32>
    %34 = arith.addf %30, %33 : vector<8x8x8xf32>
    %c0_11 = arith.constant 0 : index
    %c0_12 = arith.constant 0 : index
    %c0_13 = arith.constant 0 : index
    %c0_14 = arith.constant 0 : index
    %35 = vector.load %arg7[%c0_11, %c0_12, %c0_13, %c0_14] : memref<1x8x8x8xf32, #tpu.memory_space<vmem>>, vector<1x8x8x8xf32>
    %36 = vector.shape_cast %35 : vector<1x8x8x8xf32> to vector<8x8x8xf32>
    %37 = vector.shape_cast %34 : vector<8x8x8xf32> to vector<1x8x8x8xf32>
    tpu.vector_store %arg7[%c0_11, %c0_12, %c0_13, %c0_14], %37 {strides = array<i32>} : memref<1x8x8x8xf32, #tpu.memory_space<vmem>>, vector<1x8x8x8xf32>,
    %38 = vector.extract_strided_slice %34 {offsets = [0, 0, 6], sizes = [8, 8, 2], strides = [1, 1, 1]} : vector<8x8x8xf32> to vector<8x8x2xf32>
    %c0_15 = arith.constant 0 : index
    %c0_16 = arith.constant 0 : index
    %39 = vector.load %arg5[%c0_15, %c0_16] : memref<2x2xf32, #tpu.memory_space<vmem>>, vector<2x2xf32>
    %cst_17 = arith.constant 0.000000e+00 : f32
    %40 = vector.broadcast %cst_17 : f32 to vector<8x8x2xf32>
    %41 = vector.extract_strided_slice %38 {offsets = [0, 0, 0], sizes = [8, 8, 1], strides = [1, 1, 1]} : vector<8x8x2xf32> to vector<8x8x1xf32>
    %42 = vector.extract_strided_slice %39 {offsets = [0, 0], sizes = [1, 2], strides = [1, 1]} : vector<2x2xf32> to vector<1x2xf32>
    %43 = vector.shape_cast %42 : vector<1x2xf32> to vector<1x1x2xf32>
    %44 = vector.broadcast %41 : vector<8x8x1xf32> to vector<8x8x2xf32>
    %45 = vector.broadcast %43 : vector<1x1x2xf32> to vector<8x8x2xf32>
    %46 = arith.mulf %44, %45 : vector<8x8x2xf32>
    %47 = arith.addf %40, %46 : vector<8x8x2xf32>
    %48 = vector.extract_strided_slice %38 {offsets = [0, 0, 1], sizes = [8, 8, 1], strides = [1, 1, 1]} : vector<8x8x2xf32> to vector<8x8x1xf32>
    %49 = vector.extract_strided_slice %39 {offsets = [1, 0], sizes = [1, 2], strides = [1, 1]} : vector<2x2xf32> to vector<1x2xf32>
    %50 = vector.shape_cast %49 : vector<1x2xf32> to vector<1x1x2xf32>
    %51 = vector.broadcast %48 : vector<8x8x1xf32> to vector<8x8x2xf32>
    %52 = vector.broadcast %50 : vector<1x1x2xf32> to vector<8x8x2xf32>
    %53 = arith.mulf %51, %52 : vector<8x8x2xf32>
    %54 = arith.addf %47, %53 : vector<8x8x2xf32>
    %c0_18 = arith.constant 0 : index
    %c0_19 = arith.constant 0 : index
    %55 = vector.load %arg6[%c0_18, %c0_19] : memref<1x2xf32, #tpu.memory_space<vmem>>, vector<1x2xf32>
    %56 = vector.shape_cast %55 : vector<1x2xf32> to vector<1x1x2xf32>
    %57 = vector.broadcast %56 : vector<1x1x2xf32> to vector<8x8x2xf32>
    %58 = arith.addf %54, %57 : vector<8x8x2xf32>
    %cst_20 = arith.constant 5.000000e-01 : f32
    %59 = vector.broadcast %cst_20 : f32 to vector<8x8x2xf32>
    %60 = arith.mulf %59, %58 : vector<8x8x2xf32>
    %cst_21 = arith.constant 0.707106769 : f32
    %61 = vector.broadcast %cst_21 : f32 to vector<8x8x2xf32>
    %62 = arith.mulf %58, %61 : vector<8x8x2xf32>
    %63 = math.erf %62 : vector<8x8x2xf32>
    %cst_22 = arith.constant 1.000000e+00 : f32
    %64 = vector.broadcast %cst_22 : f32 to vector<8x8x2xf32>
    %65 = arith.addf %64, %63 : vector<8x8x2xf32>
    %66 = arith.mulf %60, %65 : vector<8x8x2xf32>
    %c0_23 = arith.constant 0 : index
    %c0_24 = arith.constant 0 : index
    %c0_25 = arith.constant 0 : index
    %c0_26 = arith.constant 0 : index
    %67 = vector.load %arg8[%c0_23, %c0_24, %c0_25, %c0_26] : memref<1x8x8x2xf32, #tpu.memory_space<vmem>>, vector<1x8x8x2xf32>
    %68 = vector.shape_cast %67 : vector<1x8x8x2xf32> to vector<8x8x2xf32>
    %69 = vector.shape_cast %66 : vector<8x8x2xf32> to vector<1x8x8x2xf32>
    tpu.vector_store %arg8[%c0_23, %c0_24, %c0_25, %c0_26], %69 {strides = array<i32>} : memref<1x8x8x2xf32, #tpu.memory_space<vmem>>, vector<1x8x8x2xf32>,
    return
  }
  func.func @transform_0(%arg0: i32, %arg1: i32) -> (i32, i32, i32, i32) {
    %c0_i32 = arith.constant 0 : i32
    %c0_i32_0 = arith.constant 0 : i32
    %c0_i32_1 = arith.constant 0 : i32
    return %arg0, %arg1, %c0_i32, %c0_i32_0 : i32, i32, i32, i32
  }
  func.func @transform_1(%arg0: i32, %arg1: i32) -> (i32, i32) {
    %c0_i32 = arith.constant 0 : i32
    %c0_i32_0 = arith.constant 0 : i32
    %c0_i32_1 = arith.constant 0 : i32
    return %c0_i32, %c0_i32_0 : i32, i32
  }
  func.func @transform_2(%arg0: i32, %arg1: i32) -> (i32, i32) {
    %c0_i32 = arith.constant 0 : i32
    %c0_i32_0 = arith.constant 0 : i32
    %c0_i32_1 = arith.constant 0 : i32
    return %c0_i32, %c0_i32_0 : i32, i32
  }
  func.func @transform_3(%arg0: i32, %arg1: i32) -> (i32, i32) {
    %c0_i32 = arith.constant 0 : i32
    %c0_i32_0 = arith.constant 0 : i32
    %c0_i32_1 = arith.constant 0 : i32
    return %c0_i32, %c0_i32_0 : i32, i32
  }
  func.func @transform_4(%arg0: i32, %arg1: i32) -> (i32, i32) {
    %c0_i32 = arith.constant 0 : i32
    %c0_i32_0 = arith.constant 0 : i32
    %c0_i32_1 = arith.constant 0 : i32
    return %c0_i32, %c0_i32_0 : i32, i32
  }
  func.func @transform_5(%arg0: i32, %arg1: i32) -> (i32, i32, i32, i32) {
    %c0_i32 = arith.constant 0 : i32
    %c0_i32_0 = arith.constant 0 : i32
    %c0_i32_1 = arith.constant 0 : i32
    return %arg0, %arg1, %c0_i32, %c0_i32_0 : i32, i32, i32, i32
  }
  func.func @transform_6(%arg0: i32, %arg1: i32) -> (i32, i32, i32, i32) {
    %c0_i32 = arith.constant 0 : i32
    %c0_i32_0 = arith.constant 0 : i32
    %c0_i32_1 = arith.constant 0 : i32
    return %arg0, %arg1, %c0_i32, %c0_i32_0 : i32, i32, i32, i32
  }
}

module attributes {stable_mosaic.version = 11 : i64} {
  func.func @_dwconv3x3_kernel(%arg0: i32, %arg1: memref<1x10x10x2xf32, #tpu.memory_space<vmem>>, %arg2: memref<3x3x2xf32, #tpu.memory_space<vmem>>, %arg3: memref<1x2xf32, #tpu.memory_space<vmem>>, %arg4: memref<1x8x8x2xf32, #tpu.memory_space<vmem>>) attributes {dimension_semantics = [#tpu.dimension_semantics<parallel>], iteration_bounds = array<i64: 2>, scalar_prefetch = 0 : i64, scratch_operands = 0 : i64, tpu.core_type = #tpu.core_type<tc>, window_params = [{transform_indices = @transform_0, window_bounds = array<i64: 1, 10, 10, 2>}, {pipeline_mode = #tpu.pipeline_mode<synchronous>, transform_indices = @transform_1, window_bounds = array<i64: 3, 3, 2>}, {pipeline_mode = #tpu.pipeline_mode<synchronous>, transform_indices = @transform_2, window_bounds = array<i64: 1, 2>}, {transform_indices = @transform_3, window_bounds = array<i64: 1, 8, 8, 2>}]} {
    %c0 = arith.constant 0 : index
    %c0_0 = arith.constant 0 : index
    %c0_1 = arith.constant 0 : index
    %c0_2 = arith.constant 0 : index
    %0 = vector.load %arg1[%c0, %c0_0, %c0_1, %c0_2] : memref<1x10x10x2xf32, #tpu.memory_space<vmem>>, vector<1x10x10x2xf32>
    %1 = vector.shape_cast %0 : vector<1x10x10x2xf32> to vector<10x10x2xf32>
    %c0_3 = arith.constant 0 : index
    %c0_4 = arith.constant 0 : index
    %c0_5 = arith.constant 0 : index
    %2 = vector.load %arg2[%c0_3, %c0_4, %c0_5] : memref<3x3x2xf32, #tpu.memory_space<vmem>>, vector<3x3x2xf32>
    %cst = arith.constant 0.000000e+00 : f32
    %3 = vector.broadcast %cst : f32 to vector<8x8x2xf32>
    %4 = vector.extract_strided_slice %1 {offsets = [0, 0, 0], sizes = [8, 8, 2], strides = [1, 1, 1]} : vector<10x10x2xf32> to vector<8x8x2xf32>
    %5 = vector.extract_strided_slice %2 {offsets = [0, 0, 0], sizes = [1, 1, 2], strides = [1, 1, 1]} : vector<3x3x2xf32> to vector<1x1x2xf32>
    %6 = vector.shape_cast %5 : vector<1x1x2xf32> to vector<2xf32>
    %7 = vector.shape_cast %6 : vector<2xf32> to vector<1x1x2xf32>
    %8 = vector.broadcast %7 : vector<1x1x2xf32> to vector<8x8x2xf32>
    %9 = arith.mulf %4, %8 : vector<8x8x2xf32>
    %10 = arith.addf %3, %9 : vector<8x8x2xf32>
    %11 = vector.extract_strided_slice %1 {offsets = [0, 1, 0], sizes = [8, 8, 2], strides = [1, 1, 1]} : vector<10x10x2xf32> to vector<8x8x2xf32>
    %12 = vector.extract_strided_slice %2 {offsets = [0, 1, 0], sizes = [1, 1, 2], strides = [1, 1, 1]} : vector<3x3x2xf32> to vector<1x1x2xf32>
    %13 = vector.shape_cast %12 : vector<1x1x2xf32> to vector<2xf32>
    %14 = vector.shape_cast %13 : vector<2xf32> to vector<1x1x2xf32>
    %15 = vector.broadcast %14 : vector<1x1x2xf32> to vector<8x8x2xf32>
    %16 = arith.mulf %11, %15 : vector<8x8x2xf32>
    %17 = arith.addf %10, %16 : vector<8x8x2xf32>
    %18 = vector.extract_strided_slice %1 {offsets = [0, 2, 0], sizes = [8, 8, 2], strides = [1, 1, 1]} : vector<10x10x2xf32> to vector<8x8x2xf32>
    %19 = vector.extract_strided_slice %2 {offsets = [0, 2, 0], sizes = [1, 1, 2], strides = [1, 1, 1]} : vector<3x3x2xf32> to vector<1x1x2xf32>
    %20 = vector.shape_cast %19 : vector<1x1x2xf32> to vector<2xf32>
    %21 = vector.shape_cast %20 : vector<2xf32> to vector<1x1x2xf32>
    %22 = vector.broadcast %21 : vector<1x1x2xf32> to vector<8x8x2xf32>
    %23 = arith.mulf %18, %22 : vector<8x8x2xf32>
    %24 = arith.addf %17, %23 : vector<8x8x2xf32>
    %25 = vector.extract_strided_slice %1 {offsets = [1, 0, 0], sizes = [8, 8, 2], strides = [1, 1, 1]} : vector<10x10x2xf32> to vector<8x8x2xf32>
    %26 = vector.extract_strided_slice %2 {offsets = [1, 0, 0], sizes = [1, 1, 2], strides = [1, 1, 1]} : vector<3x3x2xf32> to vector<1x1x2xf32>
    %27 = vector.shape_cast %26 : vector<1x1x2xf32> to vector<2xf32>
    %28 = vector.shape_cast %27 : vector<2xf32> to vector<1x1x2xf32>
    %29 = vector.broadcast %28 : vector<1x1x2xf32> to vector<8x8x2xf32>
    %30 = arith.mulf %25, %29 : vector<8x8x2xf32>
    %31 = arith.addf %24, %30 : vector<8x8x2xf32>
    %32 = vector.extract_strided_slice %1 {offsets = [1, 1, 0], sizes = [8, 8, 2], strides = [1, 1, 1]} : vector<10x10x2xf32> to vector<8x8x2xf32>
    %33 = vector.extract_strided_slice %2 {offsets = [1, 1, 0], sizes = [1, 1, 2], strides = [1, 1, 1]} : vector<3x3x2xf32> to vector<1x1x2xf32>
    %34 = vector.shape_cast %33 : vector<1x1x2xf32> to vector<2xf32>
    %35 = vector.shape_cast %34 : vector<2xf32> to vector<1x1x2xf32>
    %36 = vector.broadcast %35 : vector<1x1x2xf32> to vector<8x8x2xf32>
    %37 = arith.mulf %32, %36 : vector<8x8x2xf32>
    %38 = arith.addf %31, %37 : vector<8x8x2xf32>
    %39 = vector.extract_strided_slice %1 {offsets = [1, 2, 0], sizes = [8, 8, 2], strides = [1, 1, 1]} : vector<10x10x2xf32> to vector<8x8x2xf32>
    %40 = vector.extract_strided_slice %2 {offsets = [1, 2, 0], sizes = [1, 1, 2], strides = [1, 1, 1]} : vector<3x3x2xf32> to vector<1x1x2xf32>
    %41 = vector.shape_cast %40 : vector<1x1x2xf32> to vector<2xf32>
    %42 = vector.shape_cast %41 : vector<2xf32> to vector<1x1x2xf32>
    %43 = vector.broadcast %42 : vector<1x1x2xf32> to vector<8x8x2xf32>
    %44 = arith.mulf %39, %43 : vector<8x8x2xf32>
    %45 = arith.addf %38, %44 : vector<8x8x2xf32>
    %46 = vector.extract_strided_slice %1 {offsets = [2, 0, 0], sizes = [8, 8, 2], strides = [1, 1, 1]} : vector<10x10x2xf32> to vector<8x8x2xf32>
    %47 = vector.extract_strided_slice %2 {offsets = [2, 0, 0], sizes = [1, 1, 2], strides = [1, 1, 1]} : vector<3x3x2xf32> to vector<1x1x2xf32>
    %48 = vector.shape_cast %47 : vector<1x1x2xf32> to vector<2xf32>
    %49 = vector.shape_cast %48 : vector<2xf32> to vector<1x1x2xf32>
    %50 = vector.broadcast %49 : vector<1x1x2xf32> to vector<8x8x2xf32>
    %51 = arith.mulf %46, %50 : vector<8x8x2xf32>
    %52 = arith.addf %45, %51 : vector<8x8x2xf32>
    %53 = vector.extract_strided_slice %1 {offsets = [2, 1, 0], sizes = [8, 8, 2], strides = [1, 1, 1]} : vector<10x10x2xf32> to vector<8x8x2xf32>
    %54 = vector.extract_strided_slice %2 {offsets = [2, 1, 0], sizes = [1, 1, 2], strides = [1, 1, 1]} : vector<3x3x2xf32> to vector<1x1x2xf32>
    %55 = vector.shape_cast %54 : vector<1x1x2xf32> to vector<2xf32>
    %56 = vector.shape_cast %55 : vector<2xf32> to vector<1x1x2xf32>
    %57 = vector.broadcast %56 : vector<1x1x2xf32> to vector<8x8x2xf32>
    %58 = arith.mulf %53, %57 : vector<8x8x2xf32>
    %59 = arith.addf %52, %58 : vector<8x8x2xf32>
    %60 = vector.extract_strided_slice %1 {offsets = [2, 2, 0], sizes = [8, 8, 2], strides = [1, 1, 1]} : vector<10x10x2xf32> to vector<8x8x2xf32>
    %61 = vector.extract_strided_slice %2 {offsets = [2, 2, 0], sizes = [1, 1, 2], strides = [1, 1, 1]} : vector<3x3x2xf32> to vector<1x1x2xf32>
    %62 = vector.shape_cast %61 : vector<1x1x2xf32> to vector<2xf32>
    %63 = vector.shape_cast %62 : vector<2xf32> to vector<1x1x2xf32>
    %64 = vector.broadcast %63 : vector<1x1x2xf32> to vector<8x8x2xf32>
    %65 = arith.mulf %60, %64 : vector<8x8x2xf32>
    %66 = arith.addf %59, %65 : vector<8x8x2xf32>
    %c0_6 = arith.constant 0 : index
    %c0_7 = arith.constant 0 : index
    %67 = vector.load %arg3[%c0_6, %c0_7] : memref<1x2xf32, #tpu.memory_space<vmem>>, vector<1x2xf32>
    %68 = vector.shape_cast %67 : vector<1x2xf32> to vector<2xf32>
    %69 = vector.shape_cast %68 : vector<2xf32> to vector<1x1x2xf32>
    %70 = vector.broadcast %69 : vector<1x1x2xf32> to vector<8x8x2xf32>
    %71 = arith.addf %66, %70 : vector<8x8x2xf32>
    %c0_8 = arith.constant 0 : index
    %c0_9 = arith.constant 0 : index
    %c0_10 = arith.constant 0 : index
    %c0_11 = arith.constant 0 : index
    %72 = vector.load %arg4[%c0_8, %c0_9, %c0_10, %c0_11] : memref<1x8x8x2xf32, #tpu.memory_space<vmem>>, vector<1x8x8x2xf32>
    %73 = vector.shape_cast %72 : vector<1x8x8x2xf32> to vector<8x8x2xf32>
    %74 = vector.shape_cast %71 : vector<8x8x2xf32> to vector<1x8x8x2xf32>
    tpu.vector_store %arg4[%c0_8, %c0_9, %c0_10, %c0_11], %74 {strides = array<i32>} : memref<1x8x8x2xf32, #tpu.memory_space<vmem>>, vector<1x8x8x2xf32>,
    return
  }
  func.func @transform_0(%arg0: i32) -> (i32, i32, i32, i32) {
    %c0_i32 = arith.constant 0 : i32
    %c0_i32_0 = arith.constant 0 : i32
    %c0_i32_1 = arith.constant 0 : i32
    %c0_i32_2 = arith.constant 0 : i32
    return %arg0, %c0_i32, %c0_i32_0, %c0_i32_1 : i32, i32, i32, i32
  }
  func.func @transform_1(%arg0: i32) -> (i32, i32, i32) {
    %c0_i32 = arith.constant 0 : i32
    %c0_i32_0 = arith.constant 0 : i32
    %c0_i32_1 = arith.constant 0 : i32
    %c0_i32_2 = arith.constant 0 : i32
    return %c0_i32, %c0_i32_0, %c0_i32_1 : i32, i32, i32
  }
  func.func @transform_2(%arg0: i32) -> (i32, i32) {
    %c0_i32 = arith.constant 0 : i32
    %c0_i32_0 = arith.constant 0 : i32
    %c0_i32_1 = arith.constant 0 : i32
    return %c0_i32, %c0_i32_0 : i32, i32
  }
  func.func @transform_3(%arg0: i32) -> (i32, i32, i32, i32) {
    %c0_i32 = arith.constant 0 : i32
    %c0_i32_0 = arith.constant 0 : i32
    %c0_i32_1 = arith.constant 0 : i32
    %c0_i32_2 = arith.constant 0 : i32
    return %arg0, %c0_i32, %c0_i32_0, %c0_i32_1 : i32, i32, i32, i32
  }
}

module attributes {stable_mosaic.version = 11 : i64} {
  func.func @_branch_ln_kernel(%arg0: i32, %arg1: i32, %arg2: memref<1x8x8x8xf32, #tpu.memory_space<vmem>>, %arg3: memref<1x8x8x2xf32, #tpu.memory_space<vmem>>, %arg4: memref<8x8x2xf32, #tpu.memory_space<vmem>>, %arg5: memref<8x1x2xf32, #tpu.memory_space<vmem>>, %arg6: memref<1x8x2xf32, #tpu.memory_space<vmem>>, %arg7: memref<1x8xf32, #tpu.memory_space<vmem>>, %arg8: memref<1x8xf32, #tpu.memory_space<vmem>>, %arg9: memref<1x8x8x8xf32, #tpu.memory_space<vmem>>) attributes {dimension_semantics = [#tpu.dimension_semantics<parallel>, #tpu.dimension_semantics<parallel>], iteration_bounds = array<i64: 2, 1>, scalar_prefetch = 0 : i64, scratch_operands = 0 : i64, tpu.core_type = #tpu.core_type<tc>, window_params = [{transform_indices = @transform_0, window_bounds = array<i64: 1, 8, 8, 8>}, {transform_indices = @transform_1, window_bounds = array<i64: 1, 8, 8, 2>}, {transform_indices = @transform_2, window_bounds = array<i64: 8, 8, 2>}, {transform_indices = @transform_3, window_bounds = array<i64: 8, 1, 2>}, {pipeline_mode = #tpu.pipeline_mode<synchronous>, transform_indices = @transform_4, window_bounds = array<i64: 1, 8, 2>}, {pipeline_mode = #tpu.pipeline_mode<synchronous>, transform_indices = @transform_5, window_bounds = array<i64: 1, 8>}, {pipeline_mode = #tpu.pipeline_mode<synchronous>, transform_indices = @transform_6, window_bounds = array<i64: 1, 8>}, {transform_indices = @transform_7, window_bounds = array<i64: 1, 8, 8, 8>}]} {
    %c0 = arith.constant 0 : index
    %c0_0 = arith.constant 0 : index
    %c0_1 = arith.constant 0 : index
    %c0_2 = arith.constant 0 : index
    %0 = vector.load %arg2[%c0, %c0_0, %c0_1, %c0_2] : memref<1x8x8x8xf32, #tpu.memory_space<vmem>>, vector<1x8x8x8xf32>
    %1 = vector.shape_cast %0 : vector<1x8x8x8xf32> to vector<8x8x8xf32>
    %2 = vector.extract_strided_slice %1 {offsets = [0, 0, 0], sizes = [8, 8, 2], strides = [1, 1, 1]} : vector<8x8x8xf32> to vector<8x8x2xf32>
    %c0_3 = arith.constant 0 : index
    %c0_4 = arith.constant 0 : index
    %c0_5 = arith.constant 0 : index
    %3 = vector.load %arg4[%c0_3, %c0_4, %c0_5] : memref<8x8x2xf32, #tpu.memory_space<vmem>>, vector<8x8x2xf32>
    %4 = arith.mulf %2, %3 : vector<8x8x2xf32>
    %5 = vector.extract_strided_slice %1 {offsets = [0, 0, 2], sizes = [8, 8, 2], strides = [1, 1, 1]} : vector<8x8x8xf32> to vector<8x8x2xf32>
    %c0_6 = arith.constant 0 : index
    %c0_7 = arith.constant 0 : index
    %c0_8 = arith.constant 0 : index
    %6 = vector.load %arg5[%c0_6, %c0_7, %c0_8] : memref<8x1x2xf32, #tpu.memory_space<vmem>>, vector<8x1x2xf32>
    %7 = vector.broadcast %6 : vector<8x1x2xf32> to vector<8x8x2xf32>
    %8 = arith.mulf %5, %7 : vector<8x8x2xf32>
    %9 = vector.extract_strided_slice %1 {offsets = [0, 0, 4], sizes = [8, 8, 2], strides = [1, 1, 1]} : vector<8x8x8xf32> to vector<8x8x2xf32>
    %c0_9 = arith.constant 0 : index
    %c0_10 = arith.constant 0 : index
    %c0_11 = arith.constant 0 : index
    %10 = vector.load %arg6[%c0_9, %c0_10, %c0_11] : memref<1x8x2xf32, #tpu.memory_space<vmem>>, vector<1x8x2xf32>
    %11 = vector.broadcast %10 : vector<1x8x2xf32> to vector<8x8x2xf32>
    %12 = arith.mulf %9, %11 : vector<8x8x2xf32>
    %c0_12 = arith.constant 0 : index
    %c0_13 = arith.constant 0 : index
    %c0_14 = arith.constant 0 : index
    %c0_15 = arith.constant 0 : index
    %13 = vector.load %arg3[%c0_12, %c0_13, %c0_14, %c0_15] : memref<1x8x8x2xf32, #tpu.memory_space<vmem>>, vector<1x8x8x2xf32>
    %14 = vector.shape_cast %13 : vector<1x8x8x2xf32> to vector<8x8x2xf32>
    %15 = tpu.concatenate %4, %8, %12, %14 in 2 : vector<8x8x2xf32>, vector<8x8x2xf32>, vector<8x8x2xf32>, vector<8x8x2xf32> -> vector<8x8x8xf32>
    %cst = arith.constant dense<0.000000e+00> : vector<8x8xf32>
    %16 = vector.multi_reduction <add>, %15, %cst [2] : vector<8x8x8xf32> to vector<8x8xf32>
    %17 = vector.shape_cast %16 : vector<8x8xf32> to vector<8x8x1xf32>
    %cst_16 = arith.constant 8.000000e+00 : f32
    %18 = vector.broadcast %cst_16 : f32 to vector<8x8x1xf32>
    %19 = arith.divf %17, %18 : vector<8x8x1xf32>
    %20 = vector.broadcast %19 : vector<8x8x1xf32> to vector<8x8x8xf32>
    %21 = arith.subf %15, %20 : vector<8x8x8xf32>
    %22 = arith.mulf %21, %21 : vector<8x8x8xf32>
    %cst_17 = arith.constant dense<0.000000e+00> : vector<8x8xf32>
    %23 = vector.multi_reduction <add>, %22, %cst_17 [2] : vector<8x8x8xf32> to vector<8x8xf32>
    %24 = vector.shape_cast %23 : vector<8x8xf32> to vector<8x8x1xf32>
    %cst_18 = arith.constant 8.000000e+00 : f32
    %25 = vector.broadcast %cst_18 : f32 to vector<8x8x1xf32>
    %26 = arith.divf %24, %25 : vector<8x8x1xf32>
    %cst_19 = arith.constant 9.99999997E-7 : f32
    %27 = vector.broadcast %cst_19 : f32 to vector<8x8x1xf32>
    %28 = arith.addf %26, %27 : vector<8x8x1xf32>
    %29 = math.rsqrt %28 : vector<8x8x1xf32>
    %30 = vector.broadcast %29 : vector<8x8x1xf32> to vector<8x8x8xf32>
    %31 = arith.mulf %21, %30 : vector<8x8x8xf32>
    %c0_20 = arith.constant 0 : index
    %c0_21 = arith.constant 0 : index
    %32 = vector.load %arg7[%c0_20, %c0_21] : memref<1x8xf32, #tpu.memory_space<vmem>>, vector<1x8xf32>
    %33 = vector.shape_cast %32 : vector<1x8xf32> to vector<1x1x8xf32>
    %34 = vector.broadcast %33 : vector<1x1x8xf32> to vector<8x8x8xf32>
    %35 = arith.mulf %31, %34 : vector<8x8x8xf32>
    %c0_22 = arith.constant 0 : index
    %c0_23 = arith.constant 0 : index
    %36 = vector.load %arg8[%c0_22, %c0_23] : memref<1x8xf32, #tpu.memory_space<vmem>>, vector<1x8xf32>
    %37 = vector.shape_cast %36 : vector<1x8xf32> to vector<1x1x8xf32>
    %38 = vector.broadcast %37 : vector<1x1x8xf32> to vector<8x8x8xf32>
    %39 = arith.addf %35, %38 : vector<8x8x8xf32>
    %c0_24 = arith.constant 0 : index
    %c0_25 = arith.constant 0 : index
    %c0_26 = arith.constant 0 : index
    %c0_27 = arith.constant 0 : index
    %40 = vector.load %arg9[%c0_24, %c0_25, %c0_26, %c0_27] : memref<1x8x8x8xf32, #tpu.memory_space<vmem>>, vector<1x8x8x8xf32>
    %41 = vector.shape_cast %40 : vector<1x8x8x8xf32> to vector<8x8x8xf32>
    %42 = vector.shape_cast %39 : vector<8x8x8xf32> to vector<1x8x8x8xf32>
    tpu.vector_store %arg9[%c0_24, %c0_25, %c0_26, %c0_27], %42 {strides = array<i32>} : memref<1x8x8x8xf32, #tpu.memory_space<vmem>>, vector<1x8x8x8xf32>,
    return
  }
  func.func @transform_0(%arg0: i32, %arg1: i32) -> (i32, i32, i32, i32) {
    %c0_i32 = arith.constant 0 : i32
    %c0_i32_0 = arith.constant 0 : i32
    %c0_i32_1 = arith.constant 0 : i32
    return %arg0, %arg1, %c0_i32, %c0_i32_0 : i32, i32, i32, i32
  }
  func.func @transform_1(%arg0: i32, %arg1: i32) -> (i32, i32, i32, i32) {
    %c0_i32 = arith.constant 0 : i32
    %c0_i32_0 = arith.constant 0 : i32
    %c0_i32_1 = arith.constant 0 : i32
    return %arg0, %arg1, %c0_i32, %c0_i32_0 : i32, i32, i32, i32
  }
  func.func @transform_2(%arg0: i32, %arg1: i32) -> (i32, i32, i32) {
    %c0_i32 = arith.constant 0 : i32
    %c0_i32_0 = arith.constant 0 : i32
    %c0_i32_1 = arith.constant 0 : i32
    return %arg1, %c0_i32, %c0_i32_0 : i32, i32, i32
  }
  func.func @transform_3(%arg0: i32, %arg1: i32) -> (i32, i32, i32) {
    %c0_i32 = arith.constant 0 : i32
    %c0_i32_0 = arith.constant 0 : i32
    %c0_i32_1 = arith.constant 0 : i32
    return %arg1, %c0_i32, %c0_i32_0 : i32, i32, i32
  }
  func.func @transform_4(%arg0: i32, %arg1: i32) -> (i32, i32, i32) {
    %c0_i32 = arith.constant 0 : i32
    %c0_i32_0 = arith.constant 0 : i32
    %c0_i32_1 = arith.constant 0 : i32
    %c0_i32_2 = arith.constant 0 : i32
    return %c0_i32, %c0_i32_0, %c0_i32_1 : i32, i32, i32
  }
  func.func @transform_5(%arg0: i32, %arg1: i32) -> (i32, i32) {
    %c0_i32 = arith.constant 0 : i32
    %c0_i32_0 = arith.constant 0 : i32
    %c0_i32_1 = arith.constant 0 : i32
    return %c0_i32, %c0_i32_0 : i32, i32
  }
  func.func @transform_6(%arg0: i32, %arg1: i32) -> (i32, i32) {
    %c0_i32 = arith.constant 0 : i32
    %c0_i32_0 = arith.constant 0 : i32
    %c0_i32_1 = arith.constant 0 : i32
    return %c0_i32, %c0_i32_0 : i32, i32
  }
  func.func @transform_7(%arg0: i32, %arg1: i32) -> (i32, i32, i32, i32) {
    %c0_i32 = arith.constant 0 : i32
    %c0_i32_0 = arith.constant 0 : i32
    %c0_i32_1 = arith.constant 0 : i32
    return %arg0, %arg1, %c0_i32, %c0_i32_0 : i32, i32, i32, i32
  }
}

module attributes {stable_mosaic.version = 11 : i64} {
  func.func @_dwconv3x3_kernel(%arg0: i32, %arg1: memref<1x10x10x8xf32, #tpu.memory_space<vmem>>, %arg2: memref<3x3x8xf32, #tpu.memory_space<vmem>>, %arg3: memref<1x8xf32, #tpu.memory_space<vmem>>, %arg4: memref<1x8x8x8xf32, #tpu.memory_space<vmem>>) attributes {dimension_semantics = [#tpu.dimension_semantics<parallel>], iteration_bounds = array<i64: 2>, scalar_prefetch = 0 : i64, scratch_operands = 0 : i64, tpu.core_type = #tpu.core_type<tc>, window_params = [{transform_indices = @transform_0, window_bounds = array<i64: 1, 10, 10, 8>}, {pipeline_mode = #tpu.pipeline_mode<synchronous>, transform_indices = @transform_1, window_bounds = array<i64: 3, 3, 8>}, {pipeline_mode = #tpu.pipeline_mode<synchronous>, transform_indices = @transform_2, window_bounds = array<i64: 1, 8>}, {transform_indices = @transform_3, window_bounds = array<i64: 1, 8, 8, 8>}]} {
    %c0 = arith.constant 0 : index
    %c0_0 = arith.constant 0 : index
    %c0_1 = arith.constant 0 : index
    %c0_2 = arith.constant 0 : index
    %0 = vector.load %arg1[%c0, %c0_0, %c0_1, %c0_2] : memref<1x10x10x8xf32, #tpu.memory_space<vmem>>, vector<1x10x10x8xf32>
    %1 = vector.shape_cast %0 : vector<1x10x10x8xf32> to vector<10x10x8xf32>
    %c0_3 = arith.constant 0 : index
    %c0_4 = arith.constant 0 : index
    %c0_5 = arith.constant 0 : index
    %2 = vector.load %arg2[%c0_3, %c0_4, %c0_5] : memref<3x3x8xf32, #tpu.memory_space<vmem>>, vector<3x3x8xf32>
    %cst = arith.constant 0.000000e+00 : f32
    %3 = vector.broadcast %cst : f32 to vector<8x8x8xf32>
    %4 = vector.extract_strided_slice %1 {offsets = [0, 0, 0], sizes = [8, 8, 8], strides = [1, 1, 1]} : vector<10x10x8xf32> to vector<8x8x8xf32>
    %5 = vector.extract_strided_slice %2 {offsets = [0, 0, 0], sizes = [1, 1, 8], strides = [1, 1, 1]} : vector<3x3x8xf32> to vector<1x1x8xf32>
    %6 = vector.shape_cast %5 : vector<1x1x8xf32> to vector<8xf32>
    %7 = vector.shape_cast %6 : vector<8xf32> to vector<1x1x8xf32>
    %8 = vector.broadcast %7 : vector<1x1x8xf32> to vector<8x8x8xf32>
    %9 = arith.mulf %4, %8 : vector<8x8x8xf32>
    %10 = arith.addf %3, %9 : vector<8x8x8xf32>
    %11 = vector.extract_strided_slice %1 {offsets = [0, 1, 0], sizes = [8, 8, 8], strides = [1, 1, 1]} : vector<10x10x8xf32> to vector<8x8x8xf32>
    %12 = vector.extract_strided_slice %2 {offsets = [0, 1, 0], sizes = [1, 1, 8], strides = [1, 1, 1]} : vector<3x3x8xf32> to vector<1x1x8xf32>
    %13 = vector.shape_cast %12 : vector<1x1x8xf32> to vector<8xf32>
    %14 = vector.shape_cast %13 : vector<8xf32> to vector<1x1x8xf32>
    %15 = vector.broadcast %14 : vector<1x1x8xf32> to vector<8x8x8xf32>
    %16 = arith.mulf %11, %15 : vector<8x8x8xf32>
    %17 = arith.addf %10, %16 : vector<8x8x8xf32>
    %18 = vector.extract_strided_slice %1 {offsets = [0, 2, 0], sizes = [8, 8, 8], strides = [1, 1, 1]} : vector<10x10x8xf32> to vector<8x8x8xf32>
    %19 = vector.extract_strided_slice %2 {offsets = [0, 2, 0], sizes = [1, 1, 8], strides = [1, 1, 1]} : vector<3x3x8xf32> to vector<1x1x8xf32>
    %20 = vector.shape_cast %19 : vector<1x1x8xf32> to vector<8xf32>
    %21 = vector.shape_cast %20 : vector<8xf32> to vector<1x1x8xf32>
    %22 = vector.broadcast %21 : vector<1x1x8xf32> to vector<8x8x8xf32>
    %23 = arith.mulf %18, %22 : vector<8x8x8xf32>
    %24 = arith.addf %17, %23 : vector<8x8x8xf32>
    %25 = vector.extract_strided_slice %1 {offsets = [1, 0, 0], sizes = [8, 8, 8], strides = [1, 1, 1]} : vector<10x10x8xf32> to vector<8x8x8xf32>
    %26 = vector.extract_strided_slice %2 {offsets = [1, 0, 0], sizes = [1, 1, 8], strides = [1, 1, 1]} : vector<3x3x8xf32> to vector<1x1x8xf32>
    %27 = vector.shape_cast %26 : vector<1x1x8xf32> to vector<8xf32>
    %28 = vector.shape_cast %27 : vector<8xf32> to vector<1x1x8xf32>
    %29 = vector.broadcast %28 : vector<1x1x8xf32> to vector<8x8x8xf32>
    %30 = arith.mulf %25, %29 : vector<8x8x8xf32>
    %31 = arith.addf %24, %30 : vector<8x8x8xf32>
    %32 = vector.extract_strided_slice %1 {offsets = [1, 1, 0], sizes = [8, 8, 8], strides = [1, 1, 1]} : vector<10x10x8xf32> to vector<8x8x8xf32>
    %33 = vector.extract_strided_slice %2 {offsets = [1, 1, 0], sizes = [1, 1, 8], strides = [1, 1, 1]} : vector<3x3x8xf32> to vector<1x1x8xf32>
    %34 = vector.shape_cast %33 : vector<1x1x8xf32> to vector<8xf32>
    %35 = vector.shape_cast %34 : vector<8xf32> to vector<1x1x8xf32>
    %36 = vector.broadcast %35 : vector<1x1x8xf32> to vector<8x8x8xf32>
    %37 = arith.mulf %32, %36 : vector<8x8x8xf32>
    %38 = arith.addf %31, %37 : vector<8x8x8xf32>
    %39 = vector.extract_strided_slice %1 {offsets = [1, 2, 0], sizes = [8, 8, 8], strides = [1, 1, 1]} : vector<10x10x8xf32> to vector<8x8x8xf32>
    %40 = vector.extract_strided_slice %2 {offsets = [1, 2, 0], sizes = [1, 1, 8], strides = [1, 1, 1]} : vector<3x3x8xf32> to vector<1x1x8xf32>
    %41 = vector.shape_cast %40 : vector<1x1x8xf32> to vector<8xf32>
    %42 = vector.shape_cast %41 : vector<8xf32> to vector<1x1x8xf32>
    %43 = vector.broadcast %42 : vector<1x1x8xf32> to vector<8x8x8xf32>
    %44 = arith.mulf %39, %43 : vector<8x8x8xf32>
    %45 = arith.addf %38, %44 : vector<8x8x8xf32>
    %46 = vector.extract_strided_slice %1 {offsets = [2, 0, 0], sizes = [8, 8, 8], strides = [1, 1, 1]} : vector<10x10x8xf32> to vector<8x8x8xf32>
    %47 = vector.extract_strided_slice %2 {offsets = [2, 0, 0], sizes = [1, 1, 8], strides = [1, 1, 1]} : vector<3x3x8xf32> to vector<1x1x8xf32>
    %48 = vector.shape_cast %47 : vector<1x1x8xf32> to vector<8xf32>
    %49 = vector.shape_cast %48 : vector<8xf32> to vector<1x1x8xf32>
    %50 = vector.broadcast %49 : vector<1x1x8xf32> to vector<8x8x8xf32>
    %51 = arith.mulf %46, %50 : vector<8x8x8xf32>
    %52 = arith.addf %45, %51 : vector<8x8x8xf32>
    %53 = vector.extract_strided_slice %1 {offsets = [2, 1, 0], sizes = [8, 8, 8], strides = [1, 1, 1]} : vector<10x10x8xf32> to vector<8x8x8xf32>
    %54 = vector.extract_strided_slice %2 {offsets = [2, 1, 0], sizes = [1, 1, 8], strides = [1, 1, 1]} : vector<3x3x8xf32> to vector<1x1x8xf32>
    %55 = vector.shape_cast %54 : vector<1x1x8xf32> to vector<8xf32>
    %56 = vector.shape_cast %55 : vector<8xf32> to vector<1x1x8xf32>
    %57 = vector.broadcast %56 : vector<1x1x8xf32> to vector<8x8x8xf32>
    %58 = arith.mulf %53, %57 : vector<8x8x8xf32>
    %59 = arith.addf %52, %58 : vector<8x8x8xf32>
    %60 = vector.extract_strided_slice %1 {offsets = [2, 2, 0], sizes = [8, 8, 8], strides = [1, 1, 1]} : vector<10x10x8xf32> to vector<8x8x8xf32>
    %61 = vector.extract_strided_slice %2 {offsets = [2, 2, 0], sizes = [1, 1, 8], strides = [1, 1, 1]} : vector<3x3x8xf32> to vector<1x1x8xf32>
    %62 = vector.shape_cast %61 : vector<1x1x8xf32> to vector<8xf32>
    %63 = vector.shape_cast %62 : vector<8xf32> to vector<1x1x8xf32>
    %64 = vector.broadcast %63 : vector<1x1x8xf32> to vector<8x8x8xf32>
    %65 = arith.mulf %60, %64 : vector<8x8x8xf32>
    %66 = arith.addf %59, %65 : vector<8x8x8xf32>
    %c0_6 = arith.constant 0 : index
    %c0_7 = arith.constant 0 : index
    %67 = vector.load %arg3[%c0_6, %c0_7] : memref<1x8xf32, #tpu.memory_space<vmem>>, vector<1x8xf32>
    %68 = vector.shape_cast %67 : vector<1x8xf32> to vector<8xf32>
    %69 = vector.shape_cast %68 : vector<8xf32> to vector<1x1x8xf32>
    %70 = vector.broadcast %69 : vector<1x1x8xf32> to vector<8x8x8xf32>
    %71 = arith.addf %66, %70 : vector<8x8x8xf32>
    %cst_8 = arith.constant 5.000000e-01 : f32
    %72 = vector.broadcast %cst_8 : f32 to vector<8x8x8xf32>
    %73 = arith.mulf %72, %71 : vector<8x8x8xf32>
    %cst_9 = arith.constant 0.707106769 : f32
    %74 = vector.broadcast %cst_9 : f32 to vector<8x8x8xf32>
    %75 = arith.mulf %71, %74 : vector<8x8x8xf32>
    %76 = math.erf %75 : vector<8x8x8xf32>
    %cst_10 = arith.constant 1.000000e+00 : f32
    %77 = vector.broadcast %cst_10 : f32 to vector<8x8x8xf32>
    %78 = arith.addf %77, %76 : vector<8x8x8xf32>
    %79 = arith.mulf %73, %78 : vector<8x8x8xf32>
    %c0_11 = arith.constant 0 : index
    %c0_12 = arith.constant 0 : index
    %c0_13 = arith.constant 0 : index
    %c0_14 = arith.constant 0 : index
    %80 = vector.load %arg4[%c0_11, %c0_12, %c0_13, %c0_14] : memref<1x8x8x8xf32, #tpu.memory_space<vmem>>, vector<1x8x8x8xf32>
    %81 = vector.shape_cast %80 : vector<1x8x8x8xf32> to vector<8x8x8xf32>
    %82 = vector.shape_cast %79 : vector<8x8x8xf32> to vector<1x8x8x8xf32>
    tpu.vector_store %arg4[%c0_11, %c0_12, %c0_13, %c0_14], %82 {strides = array<i32>} : memref<1x8x8x8xf32, #tpu.memory_space<vmem>>, vector<1x8x8x8xf32>,
    return
  }
  func.func @transform_0(%arg0: i32) -> (i32, i32, i32, i32) {
    %c0_i32 = arith.constant 0 : i32
    %c0_i32_0 = arith.constant 0 : i32
    %c0_i32_1 = arith.constant 0 : i32
    %c0_i32_2 = arith.constant 0 : i32
    return %arg0, %c0_i32, %c0_i32_0, %c0_i32_1 : i32, i32, i32, i32
  }
  func.func @transform_1(%arg0: i32) -> (i32, i32, i32) {
    %c0_i32 = arith.constant 0 : i32
    %c0_i32_0 = arith.constant 0 : i32
    %c0_i32_1 = arith.constant 0 : i32
    %c0_i32_2 = arith.constant 0 : i32
    return %c0_i32, %c0_i32_0, %c0_i32_1 : i32, i32, i32
  }
  func.func @transform_2(%arg0: i32) -> (i32, i32) {
    %c0_i32 = arith.constant 0 : i32
    %c0_i32_0 = arith.constant 0 : i32
    %c0_i32_1 = arith.constant 0 : i32
    return %c0_i32, %c0_i32_0 : i32, i32
  }
  func.func @transform_3(%arg0: i32) -> (i32, i32, i32, i32) {
    %c0_i32 = arith.constant 0 : i32
    %c0_i32_0 = arith.constant 0 : i32
    %c0_i32_1 = arith.constant 0 : i32
    %c0_i32_2 = arith.constant 0 : i32
    return %arg0, %c0_i32, %c0_i32_0, %c0_i32_1 : i32, i32, i32, i32
  }
}

module attributes {stable_mosaic.version = 11 : i64} {
  func.func @_pool_ln_pw_kernel(%arg0: i32, %arg1: i32, %arg2: memref<1x8x4x16xf32, #tpu.memory_space<vmem>>, %arg3: memref<1x8xf32, #tpu.memory_space<vmem>>, %arg4: memref<1x8xf32, #tpu.memory_space<vmem>>, %arg5: memref<2x2xf32, #tpu.memory_space<vmem>>, %arg6: memref<1x2xf32, #tpu.memory_space<vmem>>, %arg7: memref<1x4x4x8xf32, #tpu.memory_space<vmem>>, %arg8: memref<1x4x4x2xf32, #tpu.memory_space<vmem>>) attributes {dimension_semantics = [#tpu.dimension_semantics<parallel>, #tpu.dimension_semantics<parallel>], iteration_bounds = array<i64: 2, 1>, scalar_prefetch = 0 : i64, scratch_operands = 0 : i64, tpu.core_type = #tpu.core_type<tc>, window_params = [{transform_indices = @transform_0, window_bounds = array<i64: 1, 8, 4, 16>}, {pipeline_mode = #tpu.pipeline_mode<synchronous>, transform_indices = @transform_1, window_bounds = array<i64: 1, 8>}, {pipeline_mode = #tpu.pipeline_mode<synchronous>, transform_indices = @transform_2, window_bounds = array<i64: 1, 8>}, {pipeline_mode = #tpu.pipeline_mode<synchronous>, transform_indices = @transform_3, window_bounds = array<i64: 2, 2>}, {pipeline_mode = #tpu.pipeline_mode<synchronous>, transform_indices = @transform_4, window_bounds = array<i64: 1, 2>}, {transform_indices = @transform_5, window_bounds = array<i64: 1, 4, 4, 8>}, {transform_indices = @transform_6, window_bounds = array<i64: 1, 4, 4, 2>}]} {
    %c0 = arith.constant 0 : index
    %c0_0 = arith.constant 0 : index
    %c0_1 = arith.constant 0 : index
    %c0_2 = arith.constant 0 : index
    %0 = vector.load %arg2[%c0, %c0_0, %c0_1, %c0_2] : memref<1x8x4x16xf32, #tpu.memory_space<vmem>>, vector<1x8x4x16xf32>
    %1 = vector.shape_cast %0 : vector<1x8x4x16xf32> to vector<8x4x16xf32>
    %2 = vector.extract_strided_slice %1 {offsets = [0, 0, 0], sizes = [8, 4, 8], strides = [1, 1, 1]} : vector<8x4x16xf32> to vector<8x4x8xf32>
    %3 = vector.extract_strided_slice %1 {offsets = [0, 0, 8], sizes = [8, 4, 8], strides = [1, 1, 1]} : vector<8x4x16xf32> to vector<8x4x8xf32>
    %4 = arith.maximumf %2, %3 : vector<8x4x8xf32>
    %5 = vector.shape_cast %4 : vector<8x4x8xf32> to vector<4x2x4x8xf32>
    %6 = vector.extract_strided_slice %5 {offsets = [0, 0, 0, 0], sizes = [4, 1, 4, 8], strides = [1, 1, 1, 1]} : vector<4x2x4x8xf32> to vector<4x1x4x8xf32>
    %7 = vector.shape_cast %6 : vector<4x1x4x8xf32> to vector<4x4x8xf32>
    %8 = vector.extract_strided_slice %5 {offsets = [0, 1, 0, 0], sizes = [4, 1, 4, 8], strides = [1, 1, 1, 1]} : vector<4x2x4x8xf32> to vector<4x1x4x8xf32>
    %9 = vector.shape_cast %8 : vector<4x1x4x8xf32> to vector<4x4x8xf32>
    %10 = arith.maximumf %7, %9 : vector<4x4x8xf32>
    %cst = arith.constant dense<0.000000e+00> : vector<4x4xf32>
    %11 = vector.multi_reduction <add>, %10, %cst [2] : vector<4x4x8xf32> to vector<4x4xf32>
    %12 = vector.shape_cast %11 : vector<4x4xf32> to vector<4x4x1xf32>
    %cst_3 = arith.constant 8.000000e+00 : f32
    %13 = vector.broadcast %cst_3 : f32 to vector<4x4x1xf32>
    %14 = arith.divf %12, %13 : vector<4x4x1xf32>
    %15 = vector.broadcast %14 : vector<4x4x1xf32> to vector<4x4x8xf32>
    %16 = arith.subf %10, %15 : vector<4x4x8xf32>
    %17 = arith.mulf %16, %16 : vector<4x4x8xf32>
    %cst_4 = arith.constant dense<0.000000e+00> : vector<4x4xf32>
    %18 = vector.multi_reduction <add>, %17, %cst_4 [2] : vector<4x4x8xf32> to vector<4x4xf32>
    %19 = vector.shape_cast %18 : vector<4x4xf32> to vector<4x4x1xf32>
    %cst_5 = arith.constant 8.000000e+00 : f32
    %20 = vector.broadcast %cst_5 : f32 to vector<4x4x1xf32>
    %21 = arith.divf %19, %20 : vector<4x4x1xf32>
    %cst_6 = arith.constant 9.99999997E-7 : f32
    %22 = vector.broadcast %cst_6 : f32 to vector<4x4x1xf32>
    %23 = arith.addf %21, %22 : vector<4x4x1xf32>
    %24 = math.rsqrt %23 : vector<4x4x1xf32>
    %25 = vector.broadcast %24 : vector<4x4x1xf32> to vector<4x4x8xf32>
    %26 = arith.mulf %16, %25 : vector<4x4x8xf32>
    %c0_7 = arith.constant 0 : index
    %c0_8 = arith.constant 0 : index
    %27 = vector.load %arg3[%c0_7, %c0_8] : memref<1x8xf32, #tpu.memory_space<vmem>>, vector<1x8xf32>
    %28 = vector.shape_cast %27 : vector<1x8xf32> to vector<1x1x8xf32>
    %29 = vector.broadcast %28 : vector<1x1x8xf32> to vector<4x4x8xf32>
    %30 = arith.mulf %26, %29 : vector<4x4x8xf32>
    %c0_9 = arith.constant 0 : index
    %c0_10 = arith.constant 0 : index
    %31 = vector.load %arg4[%c0_9, %c0_10] : memref<1x8xf32, #tpu.memory_space<vmem>>, vector<1x8xf32>
    %32 = vector.shape_cast %31 : vector<1x8xf32> to vector<1x1x8xf32>
    %33 = vector.broadcast %32 : vector<1x1x8xf32> to vector<4x4x8xf32>
    %34 = arith.addf %30, %33 : vector<4x4x8xf32>
    %c0_11 = arith.constant 0 : index
    %c0_12 = arith.constant 0 : index
    %c0_13 = arith.constant 0 : index
    %c0_14 = arith.constant 0 : index
    %35 = vector.load %arg7[%c0_11, %c0_12, %c0_13, %c0_14] : memref<1x4x4x8xf32, #tpu.memory_space<vmem>>, vector<1x4x4x8xf32>
    %36 = vector.shape_cast %35 : vector<1x4x4x8xf32> to vector<4x4x8xf32>
    %37 = vector.shape_cast %34 : vector<4x4x8xf32> to vector<1x4x4x8xf32>
    tpu.vector_store %arg7[%c0_11, %c0_12, %c0_13, %c0_14], %37 {strides = array<i32>} : memref<1x4x4x8xf32, #tpu.memory_space<vmem>>, vector<1x4x4x8xf32>,
    %38 = vector.extract_strided_slice %34 {offsets = [0, 0, 6], sizes = [4, 4, 2], strides = [1, 1, 1]} : vector<4x4x8xf32> to vector<4x4x2xf32>
    %c0_15 = arith.constant 0 : index
    %c0_16 = arith.constant 0 : index
    %39 = vector.load %arg5[%c0_15, %c0_16] : memref<2x2xf32, #tpu.memory_space<vmem>>, vector<2x2xf32>
    %cst_17 = arith.constant 0.000000e+00 : f32
    %40 = vector.broadcast %cst_17 : f32 to vector<4x4x2xf32>
    %41 = vector.extract_strided_slice %38 {offsets = [0, 0, 0], sizes = [4, 4, 1], strides = [1, 1, 1]} : vector<4x4x2xf32> to vector<4x4x1xf32>
    %42 = vector.extract_strided_slice %39 {offsets = [0, 0], sizes = [1, 2], strides = [1, 1]} : vector<2x2xf32> to vector<1x2xf32>
    %43 = vector.shape_cast %42 : vector<1x2xf32> to vector<1x1x2xf32>
    %44 = vector.broadcast %41 : vector<4x4x1xf32> to vector<4x4x2xf32>
    %45 = vector.broadcast %43 : vector<1x1x2xf32> to vector<4x4x2xf32>
    %46 = arith.mulf %44, %45 : vector<4x4x2xf32>
    %47 = arith.addf %40, %46 : vector<4x4x2xf32>
    %48 = vector.extract_strided_slice %38 {offsets = [0, 0, 1], sizes = [4, 4, 1], strides = [1, 1, 1]} : vector<4x4x2xf32> to vector<4x4x1xf32>
    %49 = vector.extract_strided_slice %39 {offsets = [1, 0], sizes = [1, 2], strides = [1, 1]} : vector<2x2xf32> to vector<1x2xf32>
    %50 = vector.shape_cast %49 : vector<1x2xf32> to vector<1x1x2xf32>
    %51 = vector.broadcast %48 : vector<4x4x1xf32> to vector<4x4x2xf32>
    %52 = vector.broadcast %50 : vector<1x1x2xf32> to vector<4x4x2xf32>
    %53 = arith.mulf %51, %52 : vector<4x4x2xf32>
    %54 = arith.addf %47, %53 : vector<4x4x2xf32>
    %c0_18 = arith.constant 0 : index
    %c0_19 = arith.constant 0 : index
    %55 = vector.load %arg6[%c0_18, %c0_19] : memref<1x2xf32, #tpu.memory_space<vmem>>, vector<1x2xf32>
    %56 = vector.shape_cast %55 : vector<1x2xf32> to vector<1x1x2xf32>
    %57 = vector.broadcast %56 : vector<1x1x2xf32> to vector<4x4x2xf32>
    %58 = arith.addf %54, %57 : vector<4x4x2xf32>
    %cst_20 = arith.constant 5.000000e-01 : f32
    %59 = vector.broadcast %cst_20 : f32 to vector<4x4x2xf32>
    %60 = arith.mulf %59, %58 : vector<4x4x2xf32>
    %cst_21 = arith.constant 0.707106769 : f32
    %61 = vector.broadcast %cst_21 : f32 to vector<4x4x2xf32>
    %62 = arith.mulf %58, %61 : vector<4x4x2xf32>
    %63 = math.erf %62 : vector<4x4x2xf32>
    %cst_22 = arith.constant 1.000000e+00 : f32
    %64 = vector.broadcast %cst_22 : f32 to vector<4x4x2xf32>
    %65 = arith.addf %64, %63 : vector<4x4x2xf32>
    %66 = arith.mulf %60, %65 : vector<4x4x2xf32>
    %c0_23 = arith.constant 0 : index
    %c0_24 = arith.constant 0 : index
    %c0_25 = arith.constant 0 : index
    %c0_26 = arith.constant 0 : index
    %67 = vector.load %arg8[%c0_23, %c0_24, %c0_25, %c0_26] : memref<1x4x4x2xf32, #tpu.memory_space<vmem>>, vector<1x4x4x2xf32>
    %68 = vector.shape_cast %67 : vector<1x4x4x2xf32> to vector<4x4x2xf32>
    %69 = vector.shape_cast %66 : vector<4x4x2xf32> to vector<1x4x4x2xf32>
    tpu.vector_store %arg8[%c0_23, %c0_24, %c0_25, %c0_26], %69 {strides = array<i32>} : memref<1x4x4x2xf32, #tpu.memory_space<vmem>>, vector<1x4x4x2xf32>,
    return
  }
  func.func @transform_0(%arg0: i32, %arg1: i32) -> (i32, i32, i32, i32) {
    %c0_i32 = arith.constant 0 : i32
    %c0_i32_0 = arith.constant 0 : i32
    %c0_i32_1 = arith.constant 0 : i32
    return %arg0, %arg1, %c0_i32, %c0_i32_0 : i32, i32, i32, i32
  }
  func.func @transform_1(%arg0: i32, %arg1: i32) -> (i32, i32) {
    %c0_i32 = arith.constant 0 : i32
    %c0_i32_0 = arith.constant 0 : i32
    %c0_i32_1 = arith.constant 0 : i32
    return %c0_i32, %c0_i32_0 : i32, i32
  }
  func.func @transform_2(%arg0: i32, %arg1: i32) -> (i32, i32) {
    %c0_i32 = arith.constant 0 : i32
    %c0_i32_0 = arith.constant 0 : i32
    %c0_i32_1 = arith.constant 0 : i32
    return %c0_i32, %c0_i32_0 : i32, i32
  }
  func.func @transform_3(%arg0: i32, %arg1: i32) -> (i32, i32) {
    %c0_i32 = arith.constant 0 : i32
    %c0_i32_0 = arith.constant 0 : i32
    %c0_i32_1 = arith.constant 0 : i32
    return %c0_i32, %c0_i32_0 : i32, i32
  }
  func.func @transform_4(%arg0: i32, %arg1: i32) -> (i32, i32) {
    %c0_i32 = arith.constant 0 : i32
    %c0_i32_0 = arith.constant 0 : i32
    %c0_i32_1 = arith.constant 0 : i32
    return %c0_i32, %c0_i32_0 : i32, i32
  }
  func.func @transform_5(%arg0: i32, %arg1: i32) -> (i32, i32, i32, i32) {
    %c0_i32 = arith.constant 0 : i32
    %c0_i32_0 = arith.constant 0 : i32
    %c0_i32_1 = arith.constant 0 : i32
    return %arg0, %arg1, %c0_i32, %c0_i32_0 : i32, i32, i32, i32
  }
  func.func @transform_6(%arg0: i32, %arg1: i32) -> (i32, i32, i32, i32) {
    %c0_i32 = arith.constant 0 : i32
    %c0_i32_0 = arith.constant 0 : i32
    %c0_i32_1 = arith.constant 0 : i32
    return %arg0, %arg1, %c0_i32, %c0_i32_0 : i32, i32, i32, i32
  }
}

module attributes {stable_mosaic.version = 11 : i64} {
  func.func @_pw_gn_gelu_kernel(%arg0: i32, %arg1: memref<1x64x8xf32, #tpu.memory_space<vmem>>, %arg2: memref<8x8xf32, #tpu.memory_space<vmem>>, %arg3: memref<1x8xf32, #tpu.memory_space<vmem>>, %arg4: memref<1x8xf32, #tpu.memory_space<vmem>>, %arg5: memref<1x8xf32, #tpu.memory_space<vmem>>, %arg6: memref<4x8xf32, #tpu.memory_space<vmem>>, %arg7: memref<1x64x8xf32, #tpu.memory_space<vmem>>) attributes {dimension_semantics = [#tpu.dimension_semantics<parallel>], iteration_bounds = array<i64: 2>, scalar_prefetch = 0 : i64, scratch_operands = 0 : i64, tpu.core_type = #tpu.core_type<tc>, window_params = [{transform_indices = @transform_0, window_bounds = array<i64: 1, 64, 8>}, {pipeline_mode = #tpu.pipeline_mode<synchronous>, transform_indices = @transform_1, window_bounds = array<i64: 8, 8>}, {pipeline_mode = #tpu.pipeline_mode<synchronous>, transform_indices = @transform_2, window_bounds = array<i64: 1, 8>}, {pipeline_mode = #tpu.pipeline_mode<synchronous>, transform_indices = @transform_3, window_bounds = array<i64: 1, 8>}, {pipeline_mode = #tpu.pipeline_mode<synchronous>, transform_indices = @transform_4, window_bounds = array<i64: 1, 8>}, {pipeline_mode = #tpu.pipeline_mode<synchronous>, transform_indices = @transform_5, window_bounds = array<i64: 4, 8>}, {transform_indices = @transform_6, window_bounds = array<i64: 1, 64, 8>}]} {
    %c0 = arith.constant 0 : index
    %c0_0 = arith.constant 0 : index
    %c0_1 = arith.constant 0 : index
    %0 = vector.load %arg1[%c0, %c0_0, %c0_1] : memref<1x64x8xf32, #tpu.memory_space<vmem>>, vector<1x64x8xf32>
    %1 = vector.shape_cast %0 : vector<1x64x8xf32> to vector<64x8xf32>
    %c0_2 = arith.constant 0 : index
    %c0_3 = arith.constant 0 : index
    %2 = vector.load %arg2[%c0_2, %c0_3] : memref<8x8xf32, #tpu.memory_space<vmem>>, vector<8x8xf32>
    %cst = arith.constant dense<0.000000e+00> : vector<64x8xf32>
    %3 = tpu.matmul %1, %2, %cst {dimension_numbers = #tpu.dot_dimension_numbers<[1], [0], [0], [1], [0, 0, 1, 1], [], []>} : vector<64x8xf32>, vector<8x8xf32>, vector<64x8xf32> -> vector<64x8xf32>
    %c0_4 = arith.constant 0 : index
    %c0_5 = arith.constant 0 : index
    %4 = vector.load %arg3[%c0_4, %c0_5] : memref<1x8xf32, #tpu.memory_space<vmem>>, vector<1x8xf32>
    %5 = vector.broadcast %4 : vector<1x8xf32> to vector<64x8xf32>
    %6 = arith.addf %3, %5 : vector<64x8xf32>
    %cst_6 = arith.constant dense<0.000000e+00> : vector<8xf32>
    %7 = vector.multi_reduction <add>, %6, %cst_6 [0] : vector<64x8xf32> to vector<8xf32>
    %8 = vector.shape_cast %7 : vector<8xf32> to vector<1x8xf32>
    %9 = arith.mulf %6, %6 : vector<64x8xf32>
    %cst_7 = arith.constant dense<0.000000e+00> : vector<8xf32>
    %10 = vector.multi_reduction <add>, %9, %cst_7 [0] : vector<64x8xf32> to vector<8xf32>
    %11 = vector.shape_cast %10 : vector<8xf32> to vector<1x8xf32>
    %cst_8 = arith.constant 0.000000e+00 : f32
    %12 = vector.broadcast %cst_8 : f32 to vector<1x8xf32>
    %cst_9 = arith.constant 0.000000e+00 : f32
    %13 = vector.broadcast %cst_9 : f32 to vector<1x8xf32>
    %c0_10 = arith.constant 0 : index
    %c0_11 = arith.constant 0 : index
    %14 = vector.load %arg6[%c0_10, %c0_11] : memref<4x8xf32, #tpu.memory_space<vmem>>, vector<1x8xf32>
    %15 = vector.extract_strided_slice %8 {offsets = [0, 0], sizes = [1, 2], strides = [1, 1]} : vector<1x8xf32> to vector<1x2xf32>
    %16 = vector.shape_cast %15 : vector<1x2xf32> to vector<1x1x2xf32>
    %cst_12 = arith.constant dense<0.000000e+00> : vector<1xf32>
    %17 = vector.multi_reduction <add>, %16, %cst_12 [1, 2] : vector<1x1x2xf32> to vector<1xf32>
    %18 = vector.shape_cast %17 : vector<1xf32> to vector<1x1x1xf32>
    %19 = vector.extract %18[0, 0, 0] : f32 from vector<1x1x1xf32>
    %20 = vector.broadcast %19 : f32 to vector<1x8xf32>
    %21 = arith.mulf %20, %14 : vector<1x8xf32>
    %22 = arith.addf %12, %21 : vector<1x8xf32>
    %23 = vector.extract_strided_slice %11 {offsets = [0, 0], sizes = [1, 2], strides = [1, 1]} : vector<1x8xf32> to vector<1x2xf32>
    %24 = vector.shape_cast %23 : vector<1x2xf32> to vector<1x1x2xf32>
    %cst_13 = arith.constant dense<0.000000e+00> : vector<1xf32>
    %25 = vector.multi_reduction <add>, %24, %cst_13 [1, 2] : vector<1x1x2xf32> to vector<1xf32>
    %26 = vector.shape_cast %25 : vector<1xf32> to vector<1x1x1xf32>
    %27 = vector.extract %26[0, 0, 0] : f32 from vector<1x1x1xf32>
    %28 = vector.broadcast %27 : f32 to vector<1x8xf32>
    %29 = arith.mulf %28, %14 : vector<1x8xf32>
    %30 = arith.addf %13, %29 : vector<1x8xf32>
    %c1 = arith.constant 1 : index
    %c0_14 = arith.constant 0 : index
    %31 = vector.load %arg6[%c1, %c0_14] : memref<4x8xf32, #tpu.memory_space<vmem>>, vector<1x8xf32>
    %32 = vector.extract_strided_slice %8 {offsets = [0, 2], sizes = [1, 2], strides = [1, 1]} : vector<1x8xf32> to vector<1x2xf32>
    %33 = vector.shape_cast %32 : vector<1x2xf32> to vector<1x1x2xf32>
    %cst_15 = arith.constant dense<0.000000e+00> : vector<1xf32>
    %34 = vector.multi_reduction <add>, %33, %cst_15 [1, 2] : vector<1x1x2xf32> to vector<1xf32>
    %35 = vector.shape_cast %34 : vector<1xf32> to vector<1x1x1xf32>
    %36 = vector.extract %35[0, 0, 0] : f32 from vector<1x1x1xf32>
    %37 = vector.broadcast %36 : f32 to vector<1x8xf32>
    %38 = arith.mulf %37, %31 : vector<1x8xf32>
    %39 = arith.addf %22, %38 : vector<1x8xf32>
    %40 = vector.extract_strided_slice %11 {offsets = [0, 2], sizes = [1, 2], strides = [1, 1]} : vector<1x8xf32> to vector<1x2xf32>
    %41 = vector.shape_cast %40 : vector<1x2xf32> to vector<1x1x2xf32>
    %cst_16 = arith.constant dense<0.000000e+00> : vector<1xf32>
    %42 = vector.multi_reduction <add>, %41, %cst_16 [1, 2] : vector<1x1x2xf32> to vector<1xf32>
    %43 = vector.shape_cast %42 : vector<1xf32> to vector<1x1x1xf32>
    %44 = vector.extract %43[0, 0, 0] : f32 from vector<1x1x1xf32>
    %45 = vector.broadcast %44 : f32 to vector<1x8xf32>
    %46 = arith.mulf %45, %31 : vector<1x8xf32>
    %47 = arith.addf %30, %46 : vector<1x8xf32>
    %c2 = arith.constant 2 : index
    %c0_17 = arith.constant 0 : index
    %48 = vector.load %arg6[%c2, %c0_17] : memref<4x8xf32, #tpu.memory_space<vmem>>, vector<1x8xf32>
    %49 = vector.extract_strided_slice %8 {offsets = [0, 4], sizes = [1, 2], strides = [1, 1]} : vector<1x8xf32> to vector<1x2xf32>
    %50 = vector.shape_cast %49 : vector<1x2xf32> to vector<1x1x2xf32>
    %cst_18 = arith.constant dense<0.000000e+00> : vector<1xf32>
    %51 = vector.multi_reduction <add>, %50, %cst_18 [1, 2] : vector<1x1x2xf32> to vector<1xf32>
    %52 = vector.shape_cast %51 : vector<1xf32> to vector<1x1x1xf32>
    %53 = vector.extract %52[0, 0, 0] : f32 from vector<1x1x1xf32>
    %54 = vector.broadcast %53 : f32 to vector<1x8xf32>
    %55 = arith.mulf %54, %48 : vector<1x8xf32>
    %56 = arith.addf %39, %55 : vector<1x8xf32>
    %57 = vector.extract_strided_slice %11 {offsets = [0, 4], sizes = [1, 2], strides = [1, 1]} : vector<1x8xf32> to vector<1x2xf32>
    %58 = vector.shape_cast %57 : vector<1x2xf32> to vector<1x1x2xf32>
    %cst_19 = arith.constant dense<0.000000e+00> : vector<1xf32>
    %59 = vector.multi_reduction <add>, %58, %cst_19 [1, 2] : vector<1x1x2xf32> to vector<1xf32>
    %60 = vector.shape_cast %59 : vector<1xf32> to vector<1x1x1xf32>
    %61 = vector.extract %60[0, 0, 0] : f32 from vector<1x1x1xf32>
    %62 = vector.broadcast %61 : f32 to vector<1x8xf32>
    %63 = arith.mulf %62, %48 : vector<1x8xf32>
    %64 = arith.addf %47, %63 : vector<1x8xf32>
    %c3 = arith.constant 3 : index
    %c0_20 = arith.constant 0 : index
    %65 = vector.load %arg6[%c3, %c0_20] : memref<4x8xf32, #tpu.memory_space<vmem>>, vector<1x8xf32>
    %66 = vector.extract_strided_slice %8 {offsets = [0, 6], sizes = [1, 2], strides = [1, 1]} : vector<1x8xf32> to vector<1x2xf32>
    %67 = vector.shape_cast %66 : vector<1x2xf32> to vector<1x1x2xf32>
    %cst_21 = arith.constant dense<0.000000e+00> : vector<1xf32>
    %68 = vector.multi_reduction <add>, %67, %cst_21 [1, 2] : vector<1x1x2xf32> to vector<1xf32>
    %69 = vector.shape_cast %68 : vector<1xf32> to vector<1x1x1xf32>
    %70 = vector.extract %69[0, 0, 0] : f32 from vector<1x1x1xf32>
    %71 = vector.broadcast %70 : f32 to vector<1x8xf32>
    %72 = arith.mulf %71, %65 : vector<1x8xf32>
    %73 = arith.addf %56, %72 : vector<1x8xf32>
    %74 = vector.extract_strided_slice %11 {offsets = [0, 6], sizes = [1, 2], strides = [1, 1]} : vector<1x8xf32> to vector<1x2xf32>
    %75 = vector.shape_cast %74 : vector<1x2xf32> to vector<1x1x2xf32>
    %cst_22 = arith.constant dense<0.000000e+00> : vector<1xf32>
    %76 = vector.multi_reduction <add>, %75, %cst_22 [1, 2] : vector<1x1x2xf32> to vector<1xf32>
    %77 = vector.shape_cast %76 : vector<1xf32> to vector<1x1x1xf32>
    %78 = vector.extract %77[0, 0, 0] : f32 from vector<1x1x1xf32>
    %79 = vector.broadcast %78 : f32 to vector<1x8xf32>
    %80 = arith.mulf %79, %65 : vector<1x8xf32>
    %81 = arith.addf %64, %80 : vector<1x8xf32>
    %82 = arith.mulf %73, %73 : vector<1x8xf32>
    %83 = arith.subf %81, %82 : vector<1x8xf32>
    %cst_23 = arith.constant 0.000000e+00 : f32
    %84 = vector.broadcast %cst_23 : f32 to vector<1x8xf32>
    %85 = arith.maximumf %83, %84 : vector<1x8xf32>
    %86 = vector.broadcast %73 : vector<1x8xf32> to vector<64x8xf32>
    %87 = arith.subf %6, %86 : vector<64x8xf32>
    %cst_24 = arith.constant 9.99999974E-6 : f32
    %88 = vector.broadcast %cst_24 : f32 to vector<1x8xf32>
    %89 = arith.addf %85, %88 : vector<1x8xf32>
    %90 = math.rsqrt %89 : vector<1x8xf32>
    %91 = vector.broadcast %90 : vector<1x8xf32> to vector<64x8xf32>
    %92 = arith.mulf %87, %91 : vector<64x8xf32>
    %c0_25 = arith.constant 0 : index
    %c0_26 = arith.constant 0 : index
    %93 = vector.load %arg4[%c0_25, %c0_26] : memref<1x8xf32, #tpu.memory_space<vmem>>, vector<1x8xf32>
    %94 = vector.broadcast %93 : vector<1x8xf32> to vector<64x8xf32>
    %95 = arith.mulf %92, %94 : vector<64x8xf32>
    %c0_27 = arith.constant 0 : index
    %c0_28 = arith.constant 0 : index
    %96 = vector.load %arg5[%c0_27, %c0_28] : memref<1x8xf32, #tpu.memory_space<vmem>>, vector<1x8xf32>
    %97 = vector.broadcast %96 : vector<1x8xf32> to vector<64x8xf32>
    %98 = arith.addf %95, %97 : vector<64x8xf32>
    %cst_29 = arith.constant 5.000000e-01 : f32
    %99 = vector.broadcast %cst_29 : f32 to vector<64x8xf32>
    %100 = arith.mulf %99, %98 : vector<64x8xf32>
    %cst_30 = arith.constant 0.707106769 : f32
    %101 = vector.broadcast %cst_30 : f32 to vector<64x8xf32>
    %102 = arith.mulf %98, %101 : vector<64x8xf32>
    %103 = math.erf %102 : vector<64x8xf32>
    %cst_31 = arith.constant 1.000000e+00 : f32
    %104 = vector.broadcast %cst_31 : f32 to vector<64x8xf32>
    %105 = arith.addf %104, %103 : vector<64x8xf32>
    %106 = arith.mulf %100, %105 : vector<64x8xf32>
    %c0_32 = arith.constant 0 : index
    %c0_33 = arith.constant 0 : index
    %c0_34 = arith.constant 0 : index
    %107 = vector.load %arg7[%c0_32, %c0_33, %c0_34] : memref<1x64x8xf32, #tpu.memory_space<vmem>>, vector<1x64x8xf32>
    %108 = vector.shape_cast %107 : vector<1x64x8xf32> to vector<64x8xf32>
    %109 = vector.shape_cast %106 : vector<64x8xf32> to vector<1x64x8xf32>
    tpu.vector_store %arg7[%c0_32, %c0_33, %c0_34], %109 {strides = array<i32>} : memref<1x64x8xf32, #tpu.memory_space<vmem>>, vector<1x64x8xf32>,
    return
  }
  func.func @transform_0(%arg0: i32) -> (i32, i32, i32) {
    %c0_i32 = arith.constant 0 : i32
    %c0_i32_0 = arith.constant 0 : i32
    %c0_i32_1 = arith.constant 0 : i32
    return %arg0, %c0_i32, %c0_i32_0 : i32, i32, i32
  }
  func.func @transform_1(%arg0: i32) -> (i32, i32) {
    %c0_i32 = arith.constant 0 : i32
    %c0_i32_0 = arith.constant 0 : i32
    %c0_i32_1 = arith.constant 0 : i32
    return %c0_i32, %c0_i32_0 : i32, i32
  }
  func.func @transform_2(%arg0: i32) -> (i32, i32) {
    %c0_i32 = arith.constant 0 : i32
    %c0_i32_0 = arith.constant 0 : i32
    %c0_i32_1 = arith.constant 0 : i32
    return %c0_i32, %c0_i32_0 : i32, i32
  }
  func.func @transform_3(%arg0: i32) -> (i32, i32) {
    %c0_i32 = arith.constant 0 : i32
    %c0_i32_0 = arith.constant 0 : i32
    %c0_i32_1 = arith.constant 0 : i32
    return %c0_i32, %c0_i32_0 : i32, i32
  }
  func.func @transform_4(%arg0: i32) -> (i32, i32) {
    %c0_i32 = arith.constant 0 : i32
    %c0_i32_0 = arith.constant 0 : i32
    %c0_i32_1 = arith.constant 0 : i32
    return %c0_i32, %c0_i32_0 : i32, i32
  }
  func.func @transform_5(%arg0: i32) -> (i32, i32) {
    %c0_i32 = arith.constant 0 : i32
    %c0_i32_0 = arith.constant 0 : i32
    %c0_i32_1 = arith.constant 0 : i32
    return %c0_i32, %c0_i32_0 : i32, i32
  }
  func.func @transform_6(%arg0: i32) -> (i32, i32, i32) {
    %c0_i32 = arith.constant 0 : i32
    %c0_i32_0 = arith.constant 0 : i32
    %c0_i32_1 = arith.constant 0 : i32
    return %arg0, %c0_i32, %c0_i32_0 : i32, i32, i32
  }
}

module attributes {stable_mosaic.version = 11 : i64} {
  func.func @_dwconv3x3_kernel(%arg0: i32, %arg1: memref<1x6x6x2xf32, #tpu.memory_space<vmem>>, %arg2: memref<3x3x2xf32, #tpu.memory_space<vmem>>, %arg3: memref<1x2xf32, #tpu.memory_space<vmem>>, %arg4: memref<1x4x4x2xf32, #tpu.memory_space<vmem>>) attributes {dimension_semantics = [#tpu.dimension_semantics<parallel>], iteration_bounds = array<i64: 2>, scalar_prefetch = 0 : i64, scratch_operands = 0 : i64, tpu.core_type = #tpu.core_type<tc>, window_params = [{transform_indices = @transform_0, window_bounds = array<i64: 1, 6, 6, 2>}, {pipeline_mode = #tpu.pipeline_mode<synchronous>, transform_indices = @transform_1, window_bounds = array<i64: 3, 3, 2>}, {pipeline_mode = #tpu.pipeline_mode<synchronous>, transform_indices = @transform_2, window_bounds = array<i64: 1, 2>}, {transform_indices = @transform_3, window_bounds = array<i64: 1, 4, 4, 2>}]} {
    %c0 = arith.constant 0 : index
    %c0_0 = arith.constant 0 : index
    %c0_1 = arith.constant 0 : index
    %c0_2 = arith.constant 0 : index
    %0 = vector.load %arg1[%c0, %c0_0, %c0_1, %c0_2] : memref<1x6x6x2xf32, #tpu.memory_space<vmem>>, vector<1x6x6x2xf32>
    %1 = vector.shape_cast %0 : vector<1x6x6x2xf32> to vector<6x6x2xf32>
    %c0_3 = arith.constant 0 : index
    %c0_4 = arith.constant 0 : index
    %c0_5 = arith.constant 0 : index
    %2 = vector.load %arg2[%c0_3, %c0_4, %c0_5] : memref<3x3x2xf32, #tpu.memory_space<vmem>>, vector<3x3x2xf32>
    %cst = arith.constant 0.000000e+00 : f32
    %3 = vector.broadcast %cst : f32 to vector<4x4x2xf32>
    %4 = vector.extract_strided_slice %1 {offsets = [0, 0, 0], sizes = [4, 4, 2], strides = [1, 1, 1]} : vector<6x6x2xf32> to vector<4x4x2xf32>
    %5 = vector.extract_strided_slice %2 {offsets = [0, 0, 0], sizes = [1, 1, 2], strides = [1, 1, 1]} : vector<3x3x2xf32> to vector<1x1x2xf32>
    %6 = vector.shape_cast %5 : vector<1x1x2xf32> to vector<2xf32>
    %7 = vector.shape_cast %6 : vector<2xf32> to vector<1x1x2xf32>
    %8 = vector.broadcast %7 : vector<1x1x2xf32> to vector<4x4x2xf32>
    %9 = arith.mulf %4, %8 : vector<4x4x2xf32>
    %10 = arith.addf %3, %9 : vector<4x4x2xf32>
    %11 = vector.extract_strided_slice %1 {offsets = [0, 1, 0], sizes = [4, 4, 2], strides = [1, 1, 1]} : vector<6x6x2xf32> to vector<4x4x2xf32>
    %12 = vector.extract_strided_slice %2 {offsets = [0, 1, 0], sizes = [1, 1, 2], strides = [1, 1, 1]} : vector<3x3x2xf32> to vector<1x1x2xf32>
    %13 = vector.shape_cast %12 : vector<1x1x2xf32> to vector<2xf32>
    %14 = vector.shape_cast %13 : vector<2xf32> to vector<1x1x2xf32>
    %15 = vector.broadcast %14 : vector<1x1x2xf32> to vector<4x4x2xf32>
    %16 = arith.mulf %11, %15 : vector<4x4x2xf32>
    %17 = arith.addf %10, %16 : vector<4x4x2xf32>
    %18 = vector.extract_strided_slice %1 {offsets = [0, 2, 0], sizes = [4, 4, 2], strides = [1, 1, 1]} : vector<6x6x2xf32> to vector<4x4x2xf32>
    %19 = vector.extract_strided_slice %2 {offsets = [0, 2, 0], sizes = [1, 1, 2], strides = [1, 1, 1]} : vector<3x3x2xf32> to vector<1x1x2xf32>
    %20 = vector.shape_cast %19 : vector<1x1x2xf32> to vector<2xf32>
    %21 = vector.shape_cast %20 : vector<2xf32> to vector<1x1x2xf32>
    %22 = vector.broadcast %21 : vector<1x1x2xf32> to vector<4x4x2xf32>
    %23 = arith.mulf %18, %22 : vector<4x4x2xf32>
    %24 = arith.addf %17, %23 : vector<4x4x2xf32>
    %25 = vector.extract_strided_slice %1 {offsets = [1, 0, 0], sizes = [4, 4, 2], strides = [1, 1, 1]} : vector<6x6x2xf32> to vector<4x4x2xf32>
    %26 = vector.extract_strided_slice %2 {offsets = [1, 0, 0], sizes = [1, 1, 2], strides = [1, 1, 1]} : vector<3x3x2xf32> to vector<1x1x2xf32>
    %27 = vector.shape_cast %26 : vector<1x1x2xf32> to vector<2xf32>
    %28 = vector.shape_cast %27 : vector<2xf32> to vector<1x1x2xf32>
    %29 = vector.broadcast %28 : vector<1x1x2xf32> to vector<4x4x2xf32>
    %30 = arith.mulf %25, %29 : vector<4x4x2xf32>
    %31 = arith.addf %24, %30 : vector<4x4x2xf32>
    %32 = vector.extract_strided_slice %1 {offsets = [1, 1, 0], sizes = [4, 4, 2], strides = [1, 1, 1]} : vector<6x6x2xf32> to vector<4x4x2xf32>
    %33 = vector.extract_strided_slice %2 {offsets = [1, 1, 0], sizes = [1, 1, 2], strides = [1, 1, 1]} : vector<3x3x2xf32> to vector<1x1x2xf32>
    %34 = vector.shape_cast %33 : vector<1x1x2xf32> to vector<2xf32>
    %35 = vector.shape_cast %34 : vector<2xf32> to vector<1x1x2xf32>
    %36 = vector.broadcast %35 : vector<1x1x2xf32> to vector<4x4x2xf32>
    %37 = arith.mulf %32, %36 : vector<4x4x2xf32>
    %38 = arith.addf %31, %37 : vector<4x4x2xf32>
    %39 = vector.extract_strided_slice %1 {offsets = [1, 2, 0], sizes = [4, 4, 2], strides = [1, 1, 1]} : vector<6x6x2xf32> to vector<4x4x2xf32>
    %40 = vector.extract_strided_slice %2 {offsets = [1, 2, 0], sizes = [1, 1, 2], strides = [1, 1, 1]} : vector<3x3x2xf32> to vector<1x1x2xf32>
    %41 = vector.shape_cast %40 : vector<1x1x2xf32> to vector<2xf32>
    %42 = vector.shape_cast %41 : vector<2xf32> to vector<1x1x2xf32>
    %43 = vector.broadcast %42 : vector<1x1x2xf32> to vector<4x4x2xf32>
    %44 = arith.mulf %39, %43 : vector<4x4x2xf32>
    %45 = arith.addf %38, %44 : vector<4x4x2xf32>
    %46 = vector.extract_strided_slice %1 {offsets = [2, 0, 0], sizes = [4, 4, 2], strides = [1, 1, 1]} : vector<6x6x2xf32> to vector<4x4x2xf32>
    %47 = vector.extract_strided_slice %2 {offsets = [2, 0, 0], sizes = [1, 1, 2], strides = [1, 1, 1]} : vector<3x3x2xf32> to vector<1x1x2xf32>
    %48 = vector.shape_cast %47 : vector<1x1x2xf32> to vector<2xf32>
    %49 = vector.shape_cast %48 : vector<2xf32> to vector<1x1x2xf32>
    %50 = vector.broadcast %49 : vector<1x1x2xf32> to vector<4x4x2xf32>
    %51 = arith.mulf %46, %50 : vector<4x4x2xf32>
    %52 = arith.addf %45, %51 : vector<4x4x2xf32>
    %53 = vector.extract_strided_slice %1 {offsets = [2, 1, 0], sizes = [4, 4, 2], strides = [1, 1, 1]} : vector<6x6x2xf32> to vector<4x4x2xf32>
    %54 = vector.extract_strided_slice %2 {offsets = [2, 1, 0], sizes = [1, 1, 2], strides = [1, 1, 1]} : vector<3x3x2xf32> to vector<1x1x2xf32>
    %55 = vector.shape_cast %54 : vector<1x1x2xf32> to vector<2xf32>
    %56 = vector.shape_cast %55 : vector<2xf32> to vector<1x1x2xf32>
    %57 = vector.broadcast %56 : vector<1x1x2xf32> to vector<4x4x2xf32>
    %58 = arith.mulf %53, %57 : vector<4x4x2xf32>
    %59 = arith.addf %52, %58 : vector<4x4x2xf32>
    %60 = vector.extract_strided_slice %1 {offsets = [2, 2, 0], sizes = [4, 4, 2], strides = [1, 1, 1]} : vector<6x6x2xf32> to vector<4x4x2xf32>
    %61 = vector.extract_strided_slice %2 {offsets = [2, 2, 0], sizes = [1, 1, 2], strides = [1, 1, 1]} : vector<3x3x2xf32> to vector<1x1x2xf32>
    %62 = vector.shape_cast %61 : vector<1x1x2xf32> to vector<2xf32>
    %63 = vector.shape_cast %62 : vector<2xf32> to vector<1x1x2xf32>
    %64 = vector.broadcast %63 : vector<1x1x2xf32> to vector<4x4x2xf32>
    %65 = arith.mulf %60, %64 : vector<4x4x2xf32>
    %66 = arith.addf %59, %65 : vector<4x4x2xf32>
    %c0_6 = arith.constant 0 : index
    %c0_7 = arith.constant 0 : index
    %67 = vector.load %arg3[%c0_6, %c0_7] : memref<1x2xf32, #tpu.memory_space<vmem>>, vector<1x2xf32>
    %68 = vector.shape_cast %67 : vector<1x2xf32> to vector<2xf32>
    %69 = vector.shape_cast %68 : vector<2xf32> to vector<1x1x2xf32>
    %70 = vector.broadcast %69 : vector<1x1x2xf32> to vector<4x4x2xf32>
    %71 = arith.addf %66, %70 : vector<4x4x2xf32>
    %c0_8 = arith.constant 0 : index
    %c0_9 = arith.constant 0 : index
    %c0_10 = arith.constant 0 : index
    %c0_11 = arith.constant 0 : index
    %72 = vector.load %arg4[%c0_8, %c0_9, %c0_10, %c0_11] : memref<1x4x4x2xf32, #tpu.memory_space<vmem>>, vector<1x4x4x2xf32>
    %73 = vector.shape_cast %72 : vector<1x4x4x2xf32> to vector<4x4x2xf32>
    %74 = vector.shape_cast %71 : vector<4x4x2xf32> to vector<1x4x4x2xf32>
    tpu.vector_store %arg4[%c0_8, %c0_9, %c0_10, %c0_11], %74 {strides = array<i32>} : memref<1x4x4x2xf32, #tpu.memory_space<vmem>>, vector<1x4x4x2xf32>,
    return
  }
  func.func @transform_0(%arg0: i32) -> (i32, i32, i32, i32) {
    %c0_i32 = arith.constant 0 : i32
    %c0_i32_0 = arith.constant 0 : i32
    %c0_i32_1 = arith.constant 0 : i32
    %c0_i32_2 = arith.constant 0 : i32
    return %arg0, %c0_i32, %c0_i32_0, %c0_i32_1 : i32, i32, i32, i32
  }
  func.func @transform_1(%arg0: i32) -> (i32, i32, i32) {
    %c0_i32 = arith.constant 0 : i32
    %c0_i32_0 = arith.constant 0 : i32
    %c0_i32_1 = arith.constant 0 : i32
    %c0_i32_2 = arith.constant 0 : i32
    return %c0_i32, %c0_i32_0, %c0_i32_1 : i32, i32, i32
  }
  func.func @transform_2(%arg0: i32) -> (i32, i32) {
    %c0_i32 = arith.constant 0 : i32
    %c0_i32_0 = arith.constant 0 : i32
    %c0_i32_1 = arith.constant 0 : i32
    return %c0_i32, %c0_i32_0 : i32, i32
  }
  func.func @transform_3(%arg0: i32) -> (i32, i32, i32, i32) {
    %c0_i32 = arith.constant 0 : i32
    %c0_i32_0 = arith.constant 0 : i32
    %c0_i32_1 = arith.constant 0 : i32
    %c0_i32_2 = arith.constant 0 : i32
    return %arg0, %c0_i32, %c0_i32_0, %c0_i32_1 : i32, i32, i32, i32
  }
}

module attributes {stable_mosaic.version = 11 : i64} {
  func.func @_branch_ln_kernel(%arg0: i32, %arg1: i32, %arg2: memref<1x4x4x8xf32, #tpu.memory_space<vmem>>, %arg3: memref<1x4x4x2xf32, #tpu.memory_space<vmem>>, %arg4: memref<4x4x2xf32, #tpu.memory_space<vmem>>, %arg5: memref<4x1x2xf32, #tpu.memory_space<vmem>>, %arg6: memref<1x4x2xf32, #tpu.memory_space<vmem>>, %arg7: memref<1x8xf32, #tpu.memory_space<vmem>>, %arg8: memref<1x8xf32, #tpu.memory_space<vmem>>, %arg9: memref<1x4x4x8xf32, #tpu.memory_space<vmem>>) attributes {dimension_semantics = [#tpu.dimension_semantics<parallel>, #tpu.dimension_semantics<parallel>], iteration_bounds = array<i64: 2, 1>, scalar_prefetch = 0 : i64, scratch_operands = 0 : i64, tpu.core_type = #tpu.core_type<tc>, window_params = [{transform_indices = @transform_0, window_bounds = array<i64: 1, 4, 4, 8>}, {transform_indices = @transform_1, window_bounds = array<i64: 1, 4, 4, 2>}, {transform_indices = @transform_2, window_bounds = array<i64: 4, 4, 2>}, {transform_indices = @transform_3, window_bounds = array<i64: 4, 1, 2>}, {pipeline_mode = #tpu.pipeline_mode<synchronous>, transform_indices = @transform_4, window_bounds = array<i64: 1, 4, 2>}, {pipeline_mode = #tpu.pipeline_mode<synchronous>, transform_indices = @transform_5, window_bounds = array<i64: 1, 8>}, {pipeline_mode = #tpu.pipeline_mode<synchronous>, transform_indices = @transform_6, window_bounds = array<i64: 1, 8>}, {transform_indices = @transform_7, window_bounds = array<i64: 1, 4, 4, 8>}]} {
    %c0 = arith.constant 0 : index
    %c0_0 = arith.constant 0 : index
    %c0_1 = arith.constant 0 : index
    %c0_2 = arith.constant 0 : index
    %0 = vector.load %arg2[%c0, %c0_0, %c0_1, %c0_2] : memref<1x4x4x8xf32, #tpu.memory_space<vmem>>, vector<1x4x4x8xf32>
    %1 = vector.shape_cast %0 : vector<1x4x4x8xf32> to vector<4x4x8xf32>
    %2 = vector.extract_strided_slice %1 {offsets = [0, 0, 0], sizes = [4, 4, 2], strides = [1, 1, 1]} : vector<4x4x8xf32> to vector<4x4x2xf32>
    %c0_3 = arith.constant 0 : index
    %c0_4 = arith.constant 0 : index
    %c0_5 = arith.constant 0 : index
    %3 = vector.load %arg4[%c0_3, %c0_4, %c0_5] : memref<4x4x2xf32, #tpu.memory_space<vmem>>, vector<4x4x2xf32>
    %4 = arith.mulf %2, %3 : vector<4x4x2xf32>
    %5 = vector.extract_strided_slice %1 {offsets = [0, 0, 2], sizes = [4, 4, 2], strides = [1, 1, 1]} : vector<4x4x8xf32> to vector<4x4x2xf32>
    %c0_6 = arith.constant 0 : index
    %c0_7 = arith.constant 0 : index
    %c0_8 = arith.constant 0 : index
    %6 = vector.load %arg5[%c0_6, %c0_7, %c0_8] : memref<4x1x2xf32, #tpu.memory_space<vmem>>, vector<4x1x2xf32>
    %7 = vector.broadcast %6 : vector<4x1x2xf32> to vector<4x4x2xf32>
    %8 = arith.mulf %5, %7 : vector<4x4x2xf32>
    %9 = vector.extract_strided_slice %1 {offsets = [0, 0, 4], sizes = [4, 4, 2], strides = [1, 1, 1]} : vector<4x4x8xf32> to vector<4x4x2xf32>
    %c0_9 = arith.constant 0 : index
    %c0_10 = arith.constant 0 : index
    %c0_11 = arith.constant 0 : index
    %10 = vector.load %arg6[%c0_9, %c0_10, %c0_11] : memref<1x4x2xf32, #tpu.memory_space<vmem>>, vector<1x4x2xf32>
    %11 = vector.broadcast %10 : vector<1x4x2xf32> to vector<4x4x2xf32>
    %12 = arith.mulf %9, %11 : vector<4x4x2xf32>
    %c0_12 = arith.constant 0 : index
    %c0_13 = arith.constant 0 : index
    %c0_14 = arith.constant 0 : index
    %c0_15 = arith.constant 0 : index
    %13 = vector.load %arg3[%c0_12, %c0_13, %c0_14, %c0_15] : memref<1x4x4x2xf32, #tpu.memory_space<vmem>>, vector<1x4x4x2xf32>
    %14 = vector.shape_cast %13 : vector<1x4x4x2xf32> to vector<4x4x2xf32>
    %15 = tpu.concatenate %4, %8, %12, %14 in 2 : vector<4x4x2xf32>, vector<4x4x2xf32>, vector<4x4x2xf32>, vector<4x4x2xf32> -> vector<4x4x8xf32>
    %cst = arith.constant dense<0.000000e+00> : vector<4x4xf32>
    %16 = vector.multi_reduction <add>, %15, %cst [2] : vector<4x4x8xf32> to vector<4x4xf32>
    %17 = vector.shape_cast %16 : vector<4x4xf32> to vector<4x4x1xf32>
    %cst_16 = arith.constant 8.000000e+00 : f32
    %18 = vector.broadcast %cst_16 : f32 to vector<4x4x1xf32>
    %19 = arith.divf %17, %18 : vector<4x4x1xf32>
    %20 = vector.broadcast %19 : vector<4x4x1xf32> to vector<4x4x8xf32>
    %21 = arith.subf %15, %20 : vector<4x4x8xf32>
    %22 = arith.mulf %21, %21 : vector<4x4x8xf32>
    %cst_17 = arith.constant dense<0.000000e+00> : vector<4x4xf32>
    %23 = vector.multi_reduction <add>, %22, %cst_17 [2] : vector<4x4x8xf32> to vector<4x4xf32>
    %24 = vector.shape_cast %23 : vector<4x4xf32> to vector<4x4x1xf32>
    %cst_18 = arith.constant 8.000000e+00 : f32
    %25 = vector.broadcast %cst_18 : f32 to vector<4x4x1xf32>
    %26 = arith.divf %24, %25 : vector<4x4x1xf32>
    %cst_19 = arith.constant 9.99999997E-7 : f32
    %27 = vector.broadcast %cst_19 : f32 to vector<4x4x1xf32>
    %28 = arith.addf %26, %27 : vector<4x4x1xf32>
    %29 = math.rsqrt %28 : vector<4x4x1xf32>
    %30 = vector.broadcast %29 : vector<4x4x1xf32> to vector<4x4x8xf32>
    %31 = arith.mulf %21, %30 : vector<4x4x8xf32>
    %c0_20 = arith.constant 0 : index
    %c0_21 = arith.constant 0 : index
    %32 = vector.load %arg7[%c0_20, %c0_21] : memref<1x8xf32, #tpu.memory_space<vmem>>, vector<1x8xf32>
    %33 = vector.shape_cast %32 : vector<1x8xf32> to vector<1x1x8xf32>
    %34 = vector.broadcast %33 : vector<1x1x8xf32> to vector<4x4x8xf32>
    %35 = arith.mulf %31, %34 : vector<4x4x8xf32>
    %c0_22 = arith.constant 0 : index
    %c0_23 = arith.constant 0 : index
    %36 = vector.load %arg8[%c0_22, %c0_23] : memref<1x8xf32, #tpu.memory_space<vmem>>, vector<1x8xf32>
    %37 = vector.shape_cast %36 : vector<1x8xf32> to vector<1x1x8xf32>
    %38 = vector.broadcast %37 : vector<1x1x8xf32> to vector<4x4x8xf32>
    %39 = arith.addf %35, %38 : vector<4x4x8xf32>
    %c0_24 = arith.constant 0 : index
    %c0_25 = arith.constant 0 : index
    %c0_26 = arith.constant 0 : index
    %c0_27 = arith.constant 0 : index
    %40 = vector.load %arg9[%c0_24, %c0_25, %c0_26, %c0_27] : memref<1x4x4x8xf32, #tpu.memory_space<vmem>>, vector<1x4x4x8xf32>
    %41 = vector.shape_cast %40 : vector<1x4x4x8xf32> to vector<4x4x8xf32>
    %42 = vector.shape_cast %39 : vector<4x4x8xf32> to vector<1x4x4x8xf32>
    tpu.vector_store %arg9[%c0_24, %c0_25, %c0_26, %c0_27], %42 {strides = array<i32>} : memref<1x4x4x8xf32, #tpu.memory_space<vmem>>, vector<1x4x4x8xf32>,
    return
  }
  func.func @transform_0(%arg0: i32, %arg1: i32) -> (i32, i32, i32, i32) {
    %c0_i32 = arith.constant 0 : i32
    %c0_i32_0 = arith.constant 0 : i32
    %c0_i32_1 = arith.constant 0 : i32
    return %arg0, %arg1, %c0_i32, %c0_i32_0 : i32, i32, i32, i32
  }
  func.func @transform_1(%arg0: i32, %arg1: i32) -> (i32, i32, i32, i32) {
    %c0_i32 = arith.constant 0 : i32
    %c0_i32_0 = arith.constant 0 : i32
    %c0_i32_1 = arith.constant 0 : i32
    return %arg0, %arg1, %c0_i32, %c0_i32_0 : i32, i32, i32, i32
  }
  func.func @transform_2(%arg0: i32, %arg1: i32) -> (i32, i32, i32) {
    %c0_i32 = arith.constant 0 : i32
    %c0_i32_0 = arith.constant 0 : i32
    %c0_i32_1 = arith.constant 0 : i32
    return %arg1, %c0_i32, %c0_i32_0 : i32, i32, i32
  }
  func.func @transform_3(%arg0: i32, %arg1: i32) -> (i32, i32, i32) {
    %c0_i32 = arith.constant 0 : i32
    %c0_i32_0 = arith.constant 0 : i32
    %c0_i32_1 = arith.constant 0 : i32
    return %arg1, %c0_i32, %c0_i32_0 : i32, i32, i32
  }
  func.func @transform_4(%arg0: i32, %arg1: i32) -> (i32, i32, i32) {
    %c0_i32 = arith.constant 0 : i32
    %c0_i32_0 = arith.constant 0 : i32
    %c0_i32_1 = arith.constant 0 : i32
    %c0_i32_2 = arith.constant 0 : i32
    return %c0_i32, %c0_i32_0, %c0_i32_1 : i32, i32, i32
  }
  func.func @transform_5(%arg0: i32, %arg1: i32) -> (i32, i32) {
    %c0_i32 = arith.constant 0 : i32
    %c0_i32_0 = arith.constant 0 : i32
    %c0_i32_1 = arith.constant 0 : i32
    return %c0_i32, %c0_i32_0 : i32, i32
  }
  func.func @transform_6(%arg0: i32, %arg1: i32) -> (i32, i32) {
    %c0_i32 = arith.constant 0 : i32
    %c0_i32_0 = arith.constant 0 : i32
    %c0_i32_1 = arith.constant 0 : i32
    return %c0_i32, %c0_i32_0 : i32, i32
  }
  func.func @transform_7(%arg0: i32, %arg1: i32) -> (i32, i32, i32, i32) {
    %c0_i32 = arith.constant 0 : i32
    %c0_i32_0 = arith.constant 0 : i32
    %c0_i32_1 = arith.constant 0 : i32
    return %arg0, %arg1, %c0_i32, %c0_i32_0 : i32, i32, i32, i32
  }
}

module attributes {stable_mosaic.version = 11 : i64} {
  func.func @_pw_gn_gelu_kernel(%arg0: i32, %arg1: memref<1x16x8xf32, #tpu.memory_space<vmem>>, %arg2: memref<8x8xf32, #tpu.memory_space<vmem>>, %arg3: memref<1x8xf32, #tpu.memory_space<vmem>>, %arg4: memref<1x8xf32, #tpu.memory_space<vmem>>, %arg5: memref<1x8xf32, #tpu.memory_space<vmem>>, %arg6: memref<4x8xf32, #tpu.memory_space<vmem>>, %arg7: memref<1x16x8xf32, #tpu.memory_space<vmem>>) attributes {dimension_semantics = [#tpu.dimension_semantics<parallel>], iteration_bounds = array<i64: 2>, scalar_prefetch = 0 : i64, scratch_operands = 0 : i64, tpu.core_type = #tpu.core_type<tc>, window_params = [{transform_indices = @transform_0, window_bounds = array<i64: 1, 16, 8>}, {pipeline_mode = #tpu.pipeline_mode<synchronous>, transform_indices = @transform_1, window_bounds = array<i64: 8, 8>}, {pipeline_mode = #tpu.pipeline_mode<synchronous>, transform_indices = @transform_2, window_bounds = array<i64: 1, 8>}, {pipeline_mode = #tpu.pipeline_mode<synchronous>, transform_indices = @transform_3, window_bounds = array<i64: 1, 8>}, {pipeline_mode = #tpu.pipeline_mode<synchronous>, transform_indices = @transform_4, window_bounds = array<i64: 1, 8>}, {pipeline_mode = #tpu.pipeline_mode<synchronous>, transform_indices = @transform_5, window_bounds = array<i64: 4, 8>}, {transform_indices = @transform_6, window_bounds = array<i64: 1, 16, 8>}]} {
    %c0 = arith.constant 0 : index
    %c0_0 = arith.constant 0 : index
    %c0_1 = arith.constant 0 : index
    %0 = vector.load %arg1[%c0, %c0_0, %c0_1] : memref<1x16x8xf32, #tpu.memory_space<vmem>>, vector<1x16x8xf32>
    %1 = vector.shape_cast %0 : vector<1x16x8xf32> to vector<16x8xf32>
    %c0_2 = arith.constant 0 : index
    %c0_3 = arith.constant 0 : index
    %2 = vector.load %arg2[%c0_2, %c0_3] : memref<8x8xf32, #tpu.memory_space<vmem>>, vector<8x8xf32>
    %cst = arith.constant dense<0.000000e+00> : vector<16x8xf32>
    %3 = tpu.matmul %1, %2, %cst {dimension_numbers = #tpu.dot_dimension_numbers<[1], [0], [0], [1], [0, 0, 1, 1], [], []>} : vector<16x8xf32>, vector<8x8xf32>, vector<16x8xf32> -> vector<16x8xf32>
    %c0_4 = arith.constant 0 : index
    %c0_5 = arith.constant 0 : index
    %4 = vector.load %arg3[%c0_4, %c0_5] : memref<1x8xf32, #tpu.memory_space<vmem>>, vector<1x8xf32>
    %5 = vector.broadcast %4 : vector<1x8xf32> to vector<16x8xf32>
    %6 = arith.addf %3, %5 : vector<16x8xf32>
    %cst_6 = arith.constant dense<0.000000e+00> : vector<8xf32>
    %7 = vector.multi_reduction <add>, %6, %cst_6 [0] : vector<16x8xf32> to vector<8xf32>
    %8 = vector.shape_cast %7 : vector<8xf32> to vector<1x8xf32>
    %9 = arith.mulf %6, %6 : vector<16x8xf32>
    %cst_7 = arith.constant dense<0.000000e+00> : vector<8xf32>
    %10 = vector.multi_reduction <add>, %9, %cst_7 [0] : vector<16x8xf32> to vector<8xf32>
    %11 = vector.shape_cast %10 : vector<8xf32> to vector<1x8xf32>
    %cst_8 = arith.constant 0.000000e+00 : f32
    %12 = vector.broadcast %cst_8 : f32 to vector<1x8xf32>
    %cst_9 = arith.constant 0.000000e+00 : f32
    %13 = vector.broadcast %cst_9 : f32 to vector<1x8xf32>
    %c0_10 = arith.constant 0 : index
    %c0_11 = arith.constant 0 : index
    %14 = vector.load %arg6[%c0_10, %c0_11] : memref<4x8xf32, #tpu.memory_space<vmem>>, vector<1x8xf32>
    %15 = vector.extract_strided_slice %8 {offsets = [0, 0], sizes = [1, 2], strides = [1, 1]} : vector<1x8xf32> to vector<1x2xf32>
    %16 = vector.shape_cast %15 : vector<1x2xf32> to vector<1x1x2xf32>
    %cst_12 = arith.constant dense<0.000000e+00> : vector<1xf32>
    %17 = vector.multi_reduction <add>, %16, %cst_12 [1, 2] : vector<1x1x2xf32> to vector<1xf32>
    %18 = vector.shape_cast %17 : vector<1xf32> to vector<1x1x1xf32>
    %19 = vector.extract %18[0, 0, 0] : f32 from vector<1x1x1xf32>
    %20 = vector.broadcast %19 : f32 to vector<1x8xf32>
    %21 = arith.mulf %20, %14 : vector<1x8xf32>
    %22 = arith.addf %12, %21 : vector<1x8xf32>
    %23 = vector.extract_strided_slice %11 {offsets = [0, 0], sizes = [1, 2], strides = [1, 1]} : vector<1x8xf32> to vector<1x2xf32>
    %24 = vector.shape_cast %23 : vector<1x2xf32> to vector<1x1x2xf32>
    %cst_13 = arith.constant dense<0.000000e+00> : vector<1xf32>
    %25 = vector.multi_reduction <add>, %24, %cst_13 [1, 2] : vector<1x1x2xf32> to vector<1xf32>
    %26 = vector.shape_cast %25 : vector<1xf32> to vector<1x1x1xf32>
    %27 = vector.extract %26[0, 0, 0] : f32 from vector<1x1x1xf32>
    %28 = vector.broadcast %27 : f32 to vector<1x8xf32>
    %29 = arith.mulf %28, %14 : vector<1x8xf32>
    %30 = arith.addf %13, %29 : vector<1x8xf32>
    %c1 = arith.constant 1 : index
    %c0_14 = arith.constant 0 : index
    %31 = vector.load %arg6[%c1, %c0_14] : memref<4x8xf32, #tpu.memory_space<vmem>>, vector<1x8xf32>
    %32 = vector.extract_strided_slice %8 {offsets = [0, 2], sizes = [1, 2], strides = [1, 1]} : vector<1x8xf32> to vector<1x2xf32>
    %33 = vector.shape_cast %32 : vector<1x2xf32> to vector<1x1x2xf32>
    %cst_15 = arith.constant dense<0.000000e+00> : vector<1xf32>
    %34 = vector.multi_reduction <add>, %33, %cst_15 [1, 2] : vector<1x1x2xf32> to vector<1xf32>
    %35 = vector.shape_cast %34 : vector<1xf32> to vector<1x1x1xf32>
    %36 = vector.extract %35[0, 0, 0] : f32 from vector<1x1x1xf32>
    %37 = vector.broadcast %36 : f32 to vector<1x8xf32>
    %38 = arith.mulf %37, %31 : vector<1x8xf32>
    %39 = arith.addf %22, %38 : vector<1x8xf32>
    %40 = vector.extract_strided_slice %11 {offsets = [0, 2], sizes = [1, 2], strides = [1, 1]} : vector<1x8xf32> to vector<1x2xf32>
    %41 = vector.shape_cast %40 : vector<1x2xf32> to vector<1x1x2xf32>
    %cst_16 = arith.constant dense<0.000000e+00> : vector<1xf32>
    %42 = vector.multi_reduction <add>, %41, %cst_16 [1, 2] : vector<1x1x2xf32> to vector<1xf32>
    %43 = vector.shape_cast %42 : vector<1xf32> to vector<1x1x1xf32>
    %44 = vector.extract %43[0, 0, 0] : f32 from vector<1x1x1xf32>
    %45 = vector.broadcast %44 : f32 to vector<1x8xf32>
    %46 = arith.mulf %45, %31 : vector<1x8xf32>
    %47 = arith.addf %30, %46 : vector<1x8xf32>
    %c2 = arith.constant 2 : index
    %c0_17 = arith.constant 0 : index
    %48 = vector.load %arg6[%c2, %c0_17] : memref<4x8xf32, #tpu.memory_space<vmem>>, vector<1x8xf32>
    %49 = vector.extract_strided_slice %8 {offsets = [0, 4], sizes = [1, 2], strides = [1, 1]} : vector<1x8xf32> to vector<1x2xf32>
    %50 = vector.shape_cast %49 : vector<1x2xf32> to vector<1x1x2xf32>
    %cst_18 = arith.constant dense<0.000000e+00> : vector<1xf32>
    %51 = vector.multi_reduction <add>, %50, %cst_18 [1, 2] : vector<1x1x2xf32> to vector<1xf32>
    %52 = vector.shape_cast %51 : vector<1xf32> to vector<1x1x1xf32>
    %53 = vector.extract %52[0, 0, 0] : f32 from vector<1x1x1xf32>
    %54 = vector.broadcast %53 : f32 to vector<1x8xf32>
    %55 = arith.mulf %54, %48 : vector<1x8xf32>
    %56 = arith.addf %39, %55 : vector<1x8xf32>
    %57 = vector.extract_strided_slice %11 {offsets = [0, 4], sizes = [1, 2], strides = [1, 1]} : vector<1x8xf32> to vector<1x2xf32>
    %58 = vector.shape_cast %57 : vector<1x2xf32> to vector<1x1x2xf32>
    %cst_19 = arith.constant dense<0.000000e+00> : vector<1xf32>
    %59 = vector.multi_reduction <add>, %58, %cst_19 [1, 2] : vector<1x1x2xf32> to vector<1xf32>
    %60 = vector.shape_cast %59 : vector<1xf32> to vector<1x1x1xf32>
    %61 = vector.extract %60[0, 0, 0] : f32 from vector<1x1x1xf32>
    %62 = vector.broadcast %61 : f32 to vector<1x8xf32>
    %63 = arith.mulf %62, %48 : vector<1x8xf32>
    %64 = arith.addf %47, %63 : vector<1x8xf32>
    %c3 = arith.constant 3 : index
    %c0_20 = arith.constant 0 : index
    %65 = vector.load %arg6[%c3, %c0_20] : memref<4x8xf32, #tpu.memory_space<vmem>>, vector<1x8xf32>
    %66 = vector.extract_strided_slice %8 {offsets = [0, 6], sizes = [1, 2], strides = [1, 1]} : vector<1x8xf32> to vector<1x2xf32>
    %67 = vector.shape_cast %66 : vector<1x2xf32> to vector<1x1x2xf32>
    %cst_21 = arith.constant dense<0.000000e+00> : vector<1xf32>
    %68 = vector.multi_reduction <add>, %67, %cst_21 [1, 2] : vector<1x1x2xf32> to vector<1xf32>
    %69 = vector.shape_cast %68 : vector<1xf32> to vector<1x1x1xf32>
    %70 = vector.extract %69[0, 0, 0] : f32 from vector<1x1x1xf32>
    %71 = vector.broadcast %70 : f32 to vector<1x8xf32>
    %72 = arith.mulf %71, %65 : vector<1x8xf32>
    %73 = arith.addf %56, %72 : vector<1x8xf32>
    %74 = vector.extract_strided_slice %11 {offsets = [0, 6], sizes = [1, 2], strides = [1, 1]} : vector<1x8xf32> to vector<1x2xf32>
    %75 = vector.shape_cast %74 : vector<1x2xf32> to vector<1x1x2xf32>
    %cst_22 = arith.constant dense<0.000000e+00> : vector<1xf32>
    %76 = vector.multi_reduction <add>, %75, %cst_22 [1, 2] : vector<1x1x2xf32> to vector<1xf32>
    %77 = vector.shape_cast %76 : vector<1xf32> to vector<1x1x1xf32>
    %78 = vector.extract %77[0, 0, 0] : f32 from vector<1x1x1xf32>
    %79 = vector.broadcast %78 : f32 to vector<1x8xf32>
    %80 = arith.mulf %79, %65 : vector<1x8xf32>
    %81 = arith.addf %64, %80 : vector<1x8xf32>
    %82 = arith.mulf %73, %73 : vector<1x8xf32>
    %83 = arith.subf %81, %82 : vector<1x8xf32>
    %cst_23 = arith.constant 0.000000e+00 : f32
    %84 = vector.broadcast %cst_23 : f32 to vector<1x8xf32>
    %85 = arith.maximumf %83, %84 : vector<1x8xf32>
    %86 = vector.broadcast %73 : vector<1x8xf32> to vector<16x8xf32>
    %87 = arith.subf %6, %86 : vector<16x8xf32>
    %cst_24 = arith.constant 9.99999974E-6 : f32
    %88 = vector.broadcast %cst_24 : f32 to vector<1x8xf32>
    %89 = arith.addf %85, %88 : vector<1x8xf32>
    %90 = math.rsqrt %89 : vector<1x8xf32>
    %91 = vector.broadcast %90 : vector<1x8xf32> to vector<16x8xf32>
    %92 = arith.mulf %87, %91 : vector<16x8xf32>
    %c0_25 = arith.constant 0 : index
    %c0_26 = arith.constant 0 : index
    %93 = vector.load %arg4[%c0_25, %c0_26] : memref<1x8xf32, #tpu.memory_space<vmem>>, vector<1x8xf32>
    %94 = vector.broadcast %93 : vector<1x8xf32> to vector<16x8xf32>
    %95 = arith.mulf %92, %94 : vector<16x8xf32>
    %c0_27 = arith.constant 0 : index
    %c0_28 = arith.constant 0 : index
    %96 = vector.load %arg5[%c0_27, %c0_28] : memref<1x8xf32, #tpu.memory_space<vmem>>, vector<1x8xf32>
    %97 = vector.broadcast %96 : vector<1x8xf32> to vector<16x8xf32>
    %98 = arith.addf %95, %97 : vector<16x8xf32>
    %cst_29 = arith.constant 5.000000e-01 : f32
    %99 = vector.broadcast %cst_29 : f32 to vector<16x8xf32>
    %100 = arith.mulf %99, %98 : vector<16x8xf32>
    %cst_30 = arith.constant 0.707106769 : f32
    %101 = vector.broadcast %cst_30 : f32 to vector<16x8xf32>
    %102 = arith.mulf %98, %101 : vector<16x8xf32>
    %103 = math.erf %102 : vector<16x8xf32>
    %cst_31 = arith.constant 1.000000e+00 : f32
    %104 = vector.broadcast %cst_31 : f32 to vector<16x8xf32>
    %105 = arith.addf %104, %103 : vector<16x8xf32>
    %106 = arith.mulf %100, %105 : vector<16x8xf32>
    %c0_32 = arith.constant 0 : index
    %c0_33 = arith.constant 0 : index
    %c0_34 = arith.constant 0 : index
    %107 = vector.load %arg7[%c0_32, %c0_33, %c0_34] : memref<1x16x8xf32, #tpu.memory_space<vmem>>, vector<1x16x8xf32>
    %108 = vector.shape_cast %107 : vector<1x16x8xf32> to vector<16x8xf32>
    %109 = vector.shape_cast %106 : vector<16x8xf32> to vector<1x16x8xf32>
    tpu.vector_store %arg7[%c0_32, %c0_33, %c0_34], %109 {strides = array<i32>} : memref<1x16x8xf32, #tpu.memory_space<vmem>>, vector<1x16x8xf32>,
    return
  }
  func.func @transform_0(%arg0: i32) -> (i32, i32, i32) {
    %c0_i32 = arith.constant 0 : i32
    %c0_i32_0 = arith.constant 0 : i32
    %c0_i32_1 = arith.constant 0 : i32
    return %arg0, %c0_i32, %c0_i32_0 : i32, i32, i32
  }
  func.func @transform_1(%arg0: i32) -> (i32, i32) {
    %c0_i32 = arith.constant 0 : i32
    %c0_i32_0 = arith.constant 0 : i32
    %c0_i32_1 = arith.constant 0 : i32
    return %c0_i32, %c0_i32_0 : i32, i32
  }
  func.func @transform_2(%arg0: i32) -> (i32, i32) {
    %c0_i32 = arith.constant 0 : i32
    %c0_i32_0 = arith.constant 0 : i32
    %c0_i32_1 = arith.constant 0 : i32
    return %c0_i32, %c0_i32_0 : i32, i32
  }
  func.func @transform_3(%arg0: i32) -> (i32, i32) {
    %c0_i32 = arith.constant 0 : i32
    %c0_i32_0 = arith.constant 0 : i32
    %c0_i32_1 = arith.constant 0 : i32
    return %c0_i32, %c0_i32_0 : i32, i32
  }
  func.func @transform_4(%arg0: i32) -> (i32, i32) {
    %c0_i32 = arith.constant 0 : i32
    %c0_i32_0 = arith.constant 0 : i32
    %c0_i32_1 = arith.constant 0 : i32
    return %c0_i32, %c0_i32_0 : i32, i32
  }
  func.func @transform_5(%arg0: i32) -> (i32, i32) {
    %c0_i32 = arith.constant 0 : i32
    %c0_i32_0 = arith.constant 0 : i32
    %c0_i32_1 = arith.constant 0 : i32
    return %c0_i32, %c0_i32_0 : i32, i32
  }
  func.func @transform_6(%arg0: i32) -> (i32, i32, i32) {
    %c0_i32 = arith.constant 0 : i32
    %c0_i32_0 = arith.constant 0 : i32
    %c0_i32_1 = arith.constant 0 : i32
    return %arg0, %c0_i32, %c0_i32_0 : i32, i32, i32
  }
}

module attributes {stable_mosaic.version = 11 : i64} {
  func.func @_dwconv3x3_kernel(%arg0: i32, %arg1: memref<1x6x6x8xf32, #tpu.memory_space<vmem>>, %arg2: memref<3x3x8xf32, #tpu.memory_space<vmem>>, %arg3: memref<1x8xf32, #tpu.memory_space<vmem>>, %arg4: memref<1x4x4x8xf32, #tpu.memory_space<vmem>>) attributes {dimension_semantics = [#tpu.dimension_semantics<parallel>], iteration_bounds = array<i64: 2>, scalar_prefetch = 0 : i64, scratch_operands = 0 : i64, tpu.core_type = #tpu.core_type<tc>, window_params = [{transform_indices = @transform_0, window_bounds = array<i64: 1, 6, 6, 8>}, {pipeline_mode = #tpu.pipeline_mode<synchronous>, transform_indices = @transform_1, window_bounds = array<i64: 3, 3, 8>}, {pipeline_mode = #tpu.pipeline_mode<synchronous>, transform_indices = @transform_2, window_bounds = array<i64: 1, 8>}, {transform_indices = @transform_3, window_bounds = array<i64: 1, 4, 4, 8>}]} {
    %c0 = arith.constant 0 : index
    %c0_0 = arith.constant 0 : index
    %c0_1 = arith.constant 0 : index
    %c0_2 = arith.constant 0 : index
    %0 = vector.load %arg1[%c0, %c0_0, %c0_1, %c0_2] : memref<1x6x6x8xf32, #tpu.memory_space<vmem>>, vector<1x6x6x8xf32>
    %1 = vector.shape_cast %0 : vector<1x6x6x8xf32> to vector<6x6x8xf32>
    %c0_3 = arith.constant 0 : index
    %c0_4 = arith.constant 0 : index
    %c0_5 = arith.constant 0 : index
    %2 = vector.load %arg2[%c0_3, %c0_4, %c0_5] : memref<3x3x8xf32, #tpu.memory_space<vmem>>, vector<3x3x8xf32>
    %cst = arith.constant 0.000000e+00 : f32
    %3 = vector.broadcast %cst : f32 to vector<4x4x8xf32>
    %4 = vector.extract_strided_slice %1 {offsets = [0, 0, 0], sizes = [4, 4, 8], strides = [1, 1, 1]} : vector<6x6x8xf32> to vector<4x4x8xf32>
    %5 = vector.extract_strided_slice %2 {offsets = [0, 0, 0], sizes = [1, 1, 8], strides = [1, 1, 1]} : vector<3x3x8xf32> to vector<1x1x8xf32>
    %6 = vector.shape_cast %5 : vector<1x1x8xf32> to vector<8xf32>
    %7 = vector.shape_cast %6 : vector<8xf32> to vector<1x1x8xf32>
    %8 = vector.broadcast %7 : vector<1x1x8xf32> to vector<4x4x8xf32>
    %9 = arith.mulf %4, %8 : vector<4x4x8xf32>
    %10 = arith.addf %3, %9 : vector<4x4x8xf32>
    %11 = vector.extract_strided_slice %1 {offsets = [0, 1, 0], sizes = [4, 4, 8], strides = [1, 1, 1]} : vector<6x6x8xf32> to vector<4x4x8xf32>
    %12 = vector.extract_strided_slice %2 {offsets = [0, 1, 0], sizes = [1, 1, 8], strides = [1, 1, 1]} : vector<3x3x8xf32> to vector<1x1x8xf32>
    %13 = vector.shape_cast %12 : vector<1x1x8xf32> to vector<8xf32>
    %14 = vector.shape_cast %13 : vector<8xf32> to vector<1x1x8xf32>
    %15 = vector.broadcast %14 : vector<1x1x8xf32> to vector<4x4x8xf32>
    %16 = arith.mulf %11, %15 : vector<4x4x8xf32>
    %17 = arith.addf %10, %16 : vector<4x4x8xf32>
    %18 = vector.extract_strided_slice %1 {offsets = [0, 2, 0], sizes = [4, 4, 8], strides = [1, 1, 1]} : vector<6x6x8xf32> to vector<4x4x8xf32>
    %19 = vector.extract_strided_slice %2 {offsets = [0, 2, 0], sizes = [1, 1, 8], strides = [1, 1, 1]} : vector<3x3x8xf32> to vector<1x1x8xf32>
    %20 = vector.shape_cast %19 : vector<1x1x8xf32> to vector<8xf32>
    %21 = vector.shape_cast %20 : vector<8xf32> to vector<1x1x8xf32>
    %22 = vector.broadcast %21 : vector<1x1x8xf32> to vector<4x4x8xf32>
    %23 = arith.mulf %18, %22 : vector<4x4x8xf32>
    %24 = arith.addf %17, %23 : vector<4x4x8xf32>
    %25 = vector.extract_strided_slice %1 {offsets = [1, 0, 0], sizes = [4, 4, 8], strides = [1, 1, 1]} : vector<6x6x8xf32> to vector<4x4x8xf32>
    %26 = vector.extract_strided_slice %2 {offsets = [1, 0, 0], sizes = [1, 1, 8], strides = [1, 1, 1]} : vector<3x3x8xf32> to vector<1x1x8xf32>
    %27 = vector.shape_cast %26 : vector<1x1x8xf32> to vector<8xf32>
    %28 = vector.shape_cast %27 : vector<8xf32> to vector<1x1x8xf32>
    %29 = vector.broadcast %28 : vector<1x1x8xf32> to vector<4x4x8xf32>
    %30 = arith.mulf %25, %29 : vector<4x4x8xf32>
    %31 = arith.addf %24, %30 : vector<4x4x8xf32>
    %32 = vector.extract_strided_slice %1 {offsets = [1, 1, 0], sizes = [4, 4, 8], strides = [1, 1, 1]} : vector<6x6x8xf32> to vector<4x4x8xf32>
    %33 = vector.extract_strided_slice %2 {offsets = [1, 1, 0], sizes = [1, 1, 8], strides = [1, 1, 1]} : vector<3x3x8xf32> to vector<1x1x8xf32>
    %34 = vector.shape_cast %33 : vector<1x1x8xf32> to vector<8xf32>
    %35 = vector.shape_cast %34 : vector<8xf32> to vector<1x1x8xf32>
    %36 = vector.broadcast %35 : vector<1x1x8xf32> to vector<4x4x8xf32>
    %37 = arith.mulf %32, %36 : vector<4x4x8xf32>
    %38 = arith.addf %31, %37 : vector<4x4x8xf32>
    %39 = vector.extract_strided_slice %1 {offsets = [1, 2, 0], sizes = [4, 4, 8], strides = [1, 1, 1]} : vector<6x6x8xf32> to vector<4x4x8xf32>
    %40 = vector.extract_strided_slice %2 {offsets = [1, 2, 0], sizes = [1, 1, 8], strides = [1, 1, 1]} : vector<3x3x8xf32> to vector<1x1x8xf32>
    %41 = vector.shape_cast %40 : vector<1x1x8xf32> to vector<8xf32>
    %42 = vector.shape_cast %41 : vector<8xf32> to vector<1x1x8xf32>
    %43 = vector.broadcast %42 : vector<1x1x8xf32> to vector<4x4x8xf32>
    %44 = arith.mulf %39, %43 : vector<4x4x8xf32>
    %45 = arith.addf %38, %44 : vector<4x4x8xf32>
    %46 = vector.extract_strided_slice %1 {offsets = [2, 0, 0], sizes = [4, 4, 8], strides = [1, 1, 1]} : vector<6x6x8xf32> to vector<4x4x8xf32>
    %47 = vector.extract_strided_slice %2 {offsets = [2, 0, 0], sizes = [1, 1, 8], strides = [1, 1, 1]} : vector<3x3x8xf32> to vector<1x1x8xf32>
    %48 = vector.shape_cast %47 : vector<1x1x8xf32> to vector<8xf32>
    %49 = vector.shape_cast %48 : vector<8xf32> to vector<1x1x8xf32>
    %50 = vector.broadcast %49 : vector<1x1x8xf32> to vector<4x4x8xf32>
    %51 = arith.mulf %46, %50 : vector<4x4x8xf32>
    %52 = arith.addf %45, %51 : vector<4x4x8xf32>
    %53 = vector.extract_strided_slice %1 {offsets = [2, 1, 0], sizes = [4, 4, 8], strides = [1, 1, 1]} : vector<6x6x8xf32> to vector<4x4x8xf32>
    %54 = vector.extract_strided_slice %2 {offsets = [2, 1, 0], sizes = [1, 1, 8], strides = [1, 1, 1]} : vector<3x3x8xf32> to vector<1x1x8xf32>
    %55 = vector.shape_cast %54 : vector<1x1x8xf32> to vector<8xf32>
    %56 = vector.shape_cast %55 : vector<8xf32> to vector<1x1x8xf32>
    %57 = vector.broadcast %56 : vector<1x1x8xf32> to vector<4x4x8xf32>
    %58 = arith.mulf %53, %57 : vector<4x4x8xf32>
    %59 = arith.addf %52, %58 : vector<4x4x8xf32>
    %60 = vector.extract_strided_slice %1 {offsets = [2, 2, 0], sizes = [4, 4, 8], strides = [1, 1, 1]} : vector<6x6x8xf32> to vector<4x4x8xf32>
    %61 = vector.extract_strided_slice %2 {offsets = [2, 2, 0], sizes = [1, 1, 8], strides = [1, 1, 1]} : vector<3x3x8xf32> to vector<1x1x8xf32>
    %62 = vector.shape_cast %61 : vector<1x1x8xf32> to vector<8xf32>
    %63 = vector.shape_cast %62 : vector<8xf32> to vector<1x1x8xf32>
    %64 = vector.broadcast %63 : vector<1x1x8xf32> to vector<4x4x8xf32>
    %65 = arith.mulf %60, %64 : vector<4x4x8xf32>
    %66 = arith.addf %59, %65 : vector<4x4x8xf32>
    %c0_6 = arith.constant 0 : index
    %c0_7 = arith.constant 0 : index
    %67 = vector.load %arg3[%c0_6, %c0_7] : memref<1x8xf32, #tpu.memory_space<vmem>>, vector<1x8xf32>
    %68 = vector.shape_cast %67 : vector<1x8xf32> to vector<8xf32>
    %69 = vector.shape_cast %68 : vector<8xf32> to vector<1x1x8xf32>
    %70 = vector.broadcast %69 : vector<1x1x8xf32> to vector<4x4x8xf32>
    %71 = arith.addf %66, %70 : vector<4x4x8xf32>
    %cst_8 = arith.constant 5.000000e-01 : f32
    %72 = vector.broadcast %cst_8 : f32 to vector<4x4x8xf32>
    %73 = arith.mulf %72, %71 : vector<4x4x8xf32>
    %cst_9 = arith.constant 0.707106769 : f32
    %74 = vector.broadcast %cst_9 : f32 to vector<4x4x8xf32>
    %75 = arith.mulf %71, %74 : vector<4x4x8xf32>
    %76 = math.erf %75 : vector<4x4x8xf32>
    %cst_10 = arith.constant 1.000000e+00 : f32
    %77 = vector.broadcast %cst_10 : f32 to vector<4x4x8xf32>
    %78 = arith.addf %77, %76 : vector<4x4x8xf32>
    %79 = arith.mulf %73, %78 : vector<4x4x8xf32>
    %c0_11 = arith.constant 0 : index
    %c0_12 = arith.constant 0 : index
    %c0_13 = arith.constant 0 : index
    %c0_14 = arith.constant 0 : index
    %80 = vector.load %arg4[%c0_11, %c0_12, %c0_13, %c0_14] : memref<1x4x4x8xf32, #tpu.memory_space<vmem>>, vector<1x4x4x8xf32>
    %81 = vector.shape_cast %80 : vector<1x4x4x8xf32> to vector<4x4x8xf32>
    %82 = vector.shape_cast %79 : vector<4x4x8xf32> to vector<1x4x4x8xf32>
    tpu.vector_store %arg4[%c0_11, %c0_12, %c0_13, %c0_14], %82 {strides = array<i32>} : memref<1x4x4x8xf32, #tpu.memory_space<vmem>>, vector<1x4x4x8xf32>,
    return
  }
  func.func @transform_0(%arg0: i32) -> (i32, i32, i32, i32) {
    %c0_i32 = arith.constant 0 : i32
    %c0_i32_0 = arith.constant 0 : i32
    %c0_i32_1 = arith.constant 0 : i32
    %c0_i32_2 = arith.constant 0 : i32
    return %arg0, %c0_i32, %c0_i32_0, %c0_i32_1 : i32, i32, i32, i32
  }
  func.func @transform_1(%arg0: i32) -> (i32, i32, i32) {
    %c0_i32 = arith.constant 0 : i32
    %c0_i32_0 = arith.constant 0 : i32
    %c0_i32_1 = arith.constant 0 : i32
    %c0_i32_2 = arith.constant 0 : i32
    return %c0_i32, %c0_i32_0, %c0_i32_1 : i32, i32, i32
  }
  func.func @transform_2(%arg0: i32) -> (i32, i32) {
    %c0_i32 = arith.constant 0 : i32
    %c0_i32_0 = arith.constant 0 : i32
    %c0_i32_1 = arith.constant 0 : i32
    return %c0_i32, %c0_i32_0 : i32, i32
  }
  func.func @transform_3(%arg0: i32) -> (i32, i32, i32, i32) {
    %c0_i32 = arith.constant 0 : i32
    %c0_i32_0 = arith.constant 0 : i32
    %c0_i32_1 = arith.constant 0 : i32
    %c0_i32_2 = arith.constant 0 : i32
    return %arg0, %c0_i32, %c0_i32_0, %c0_i32_1 : i32, i32, i32, i32
  }
}

</mosaic_0001>

<bundles_post_ra>
// kernel: post_pos_embed.10
= control target key start
LH: loop header
LB: loop body
LE: loop exit
PB: predicated region body
PF: predicated region fallthrough
CT: control target
= control target key end

     0   :  { %s1410_s21 = smov 0   ;;  %s1412_s22 = smov 0   ;;  %s1881_s0 = inlined_call_operand.vmem [shape: f32[2,16,8,16], index: 0, kind: input, shape index: {}]   ;;  %s1882_s1 = inlined_call_operand.vmem [shape: f32[1,8], index: 1, kind: input, shape index: {}]   ;;  %s1883_s2 = inlined_call_operand.vmem [shape: f32[1,8], index: 2, kind: input, shape index: {}]   ;;  %s1884_s3 = inlined_call_operand.vmem [shape: f32[2,2], index: 3, kind: input, shape index: {}]   ;;  %s1885_s4 = inlined_call_operand.vmem [shape: f32[1,2], index: 4, kind: input, shape index: {}]   ;;  %s1886_s5 = inlined_call_operand.vmem [shape: f32[2,8,8,8], index: 5, kind: output, shape index: {0}]   ;;  %s1887_s6 = inlined_call_operand.vmem [shape: f32[2,8,8,2], index: 6, kind: output, shape index: {1}]  }
   0x1   :  { %s1414_s23 = smov 0  }
   0x2 LB: > { %s29_s24 = sadd.s32 1, %s1365_s22  ;;  %p1256_p0 = scmp.ge.s32.totalorder %s1369_s23, 1  ;;  %s1369_s23 = sphi %s1414_s23, %s17_s23   ;;  %s1365_s22 = sphi %s1412_s22, %s1893_s22   ;;  %s1361_s21 = sphi %s1410_s21, %s1892_s21  }
   0x3   : > { %p31_p1 = scmp.ge.s32.totalorder %s29_s24, 2  ;;  %p238_p2 = scmp.lt.s32.totalorder %s1369_s23, 3 }
   0x5   : > { %s1895_s24 = smov (%p31_p1, %s29_s24), 0  ;;  %p239_p3 = pnand %p1256_p0, %p238_p2 }
   0x6   : > { %p286_p4 = scmp.lt.s32.totalorder (!%p239_p3), %s1361_s21, 1  ;;  %s1371_s29 = smov (!%p239_p3), 120  }
   0x7   : > { %242 = sbr.rel (%p239_p3) target bundleno = 654 (0x28e), region = 40 }
   0xc   : > { %s1897_s21 = smov (!%p286_p4, %s1361_s21), 1  ;;  %vm419_vm0 = vcmask 64512  }
   0xd   : > { %s1273_s25 = sshll.u32 %s1897_s21, 7  ;;  %s1274_s8 = sshll.u32 %s1897_s21, 6 }
   0xe   : > { %s1434_s28 = scalar_lea.vmem %s1881_s0, %s1273_s25  ;;  %s1535_s13 = scalar_lea.vmem %s1886_s5, %s1274_s8 }
   0xf   : > { %v319_v0 = vld [vmem:[%s1434_s28 + $0x20] sm:$0xff]  ;;  %v317_v1 = vld [vmem:[%s1434_s28 + $0x10] sm:$0xff]  ;;  %v320_v3 = vld [vmem:[%s1434_s28 + $0x28] sm:$0xff]  ;;  %s1732_s20 = scalar_lea.vmem %s1887_s6, %s1274_s8 }
  0x10   : > { %v315_v2 = vld [vmem:[%s1434_s28] sm:$0xff]  ;;  %355 = vrot.lane.b32.xlu2 %v319_v0, %s1371_s29  ;;  %351 = vrot.lane.b32.xlu1 %v317_v1, %s1371_s29  ;;  %v318_v4 = vld [vmem:[%s1434_s28 + $0x18] sm:$0xff] }
  0x11   : > { %347 = vrot.lane.b32.xlu0 %v315_v2, %s1371_s29  ;;  %v316_v5 = vld [vmem:[%s1434_s28 + $0x8] sm:$0xff]  ;;  %v322_v6 = vld [vmem:[%s1434_s28 + $0x38] sm:$0xff]  ;;  %v323_v7 = vld [vmem:[%s1434_s28 + $0x40] sm:$0xff] }
  0x12   : > { %v321_v8 = vld [vmem:[%s1434_s28 + $0x30] sm:$0xff]  ;;  %v326_v10 = vld [vmem:[%s1434_s28 + $0x58] sm:$0xff]  ;;  %v324_v11 = vld [vmem:[%s1434_s28 + $0x48] sm:$0xff] }
  0x13   : > { %v325_v9 = vld [vmem:[%s1434_s28 + $0x50] sm:$0xff]  ;;  %v328_v12 = vld [vmem:[%s1434_s28 + $0x68] sm:$0xff]  ;;  %v327_v14 = vld [vmem:[%s1434_s28 + $0x60] sm:$0xff] }
  0x14   : > { %v329_v13 = vld [vmem:[%s1434_s28 + $0x70] sm:$0xff]  ;;  %v330_v15 = vld [vmem:[%s1434_s28 + $0x78] sm:$0xff] }
  0x18   : > { %357 = vrot.lane.b32.xlu2 %v320_v3, %s1371_s29  ;;  %353 = vrot.lane.b32.xlu1 %v318_v4, %s1371_s29 }
  0x19   : > { %349 = vrot.lane.b32.xlu0 %v316_v5, %s1371_s29 }
  0x20   : > { %361 = vrot.lane.b32.xlu1 %v322_v6, %s1371_s29  ;;  %363 = vrot.lane.b32.xlu2 %v323_v7, %s1371_s29 }
  0x21   : > { %359 = vrot.lane.b32.xlu0 %v321_v8, %s1371_s29 }
  0x28   : > { %367 = vrot.lane.b32.xlu1 %v325_v9, %s1371_s29  ;;  %369 = vrot.lane.b32.xlu2 %v326_v10, %s1371_s29 }
  0x29   : > { %365 = vrot.lane.b32.xlu0 %v324_v11, %s1371_s29 }
  0x30   : > { %373 = vrot.lane.b32.xlu1 %v328_v12, %s1371_s29  ;;  %375 = vrot.lane.b32.xlu2 %v329_v13, %s1371_s29 }
  0x31   : > { %371 = vrot.lane.b32.xlu0 %v327_v14, %s1371_s29 }
  0x39   : > { %377 = vrot.lane.b32.xlu0 %v330_v15, %s1371_s29 }
  0x6a   : > { %v356_v16 = vpop.permute.xlu2 %355 }
  0x6b   : > { %v399_v17 = vmax.f32 %v319_v0, %v356_v16  ;;  %v1372_v0 = vmov 8.0  }
  0x6c   : > { %1313 = vrcp.f32 %v1372_v0 }
  0x72   : > { %v358_v18 = vpop.permute.xlu2 %357 }
  0x73   : > { %v400_v19 = vmax.f32 %v320_v3, %v358_v18 }
  0x75   : > { %v1452_v20 = vmax.f32 %v399_v17, %v400_v19 }
  0x77   : > { %v426_v21 = vsel %vm419_vm0, %v1452_v20, 0.0 }
  0x78   : > { %427 = vadd.xlane.f32.xlu0 %v426_v21 }
  0x7a   : > { %v364_v30 = vpop.permute.xlu2 %363 }
  0x7b   : > { %v403_v43 = vmax.f32 %v323_v7, %v364_v30 }
  0x82   : > { %v352_v22 = vpop.permute.xlu1 %351  ;;  %v370_v40 = vpop.permute.xlu2 %369 }
  0x83   : > { %v348_v23 = vpop.permute.xlu0 %347  ;;  %v397_v24 = vmax.f32 %v317_v1, %v352_v22  ;;  %v406_v42 = vmax.f32 %v326_v10, %v370_v40  ;;  %v1314_v1 = vpop.eup %1313 }
  0x84   : > { %v395_v28 = vmax.f32 %v315_v2, %v348_v23  ;;  %v445_v2 = vmul.f32 8.0, %v1314_v1  ;;  %vm449_vm1 = vweird.f32 %v1314_v1 }
  0x86   : > { %v446_v3 = vsub.f32 1.0, %v445_v2 }
  0x8a   : > { %v354_v25 = vpop.permute.xlu1 %353  ;;  %v376_v57 = vpop.permute.xlu2 %375 }
  0x8b   : > { %v398_v26 = vmax.f32 %v318_v4, %v354_v25  ;;  %v350_v27 = vpop.permute.xlu0 %349  ;;  %v409_v59 = vmax.f32 %v329_v13, %v376_v57  ;;  %v447_v4 = vmul.f32 %v1314_v1, %v446_v3  ;;  %v1518_v57 = vld [vmem:[%s1882_s1] ss:$0 sm:$0xff] }
  0x8c   : > { %v396_v29 = vmax.f32 %v316_v5, %v350_v27 }
  0x8d   : > { %v412_v31 = vmax.f32 %v397_v24, %v398_v26  ;;  %v448_v5 = vadd.f32 %v1314_v1, %v447_v4 }
  0x8e   : > { %v411_v32 = vmax.f32 %v395_v28, %v396_v29 }
  0x8f   : > { %v423_v33 = vsel %vm419_vm0, %v412_v31, 0.0 }
  0x90   : > { %424 = vadd.xlane.f32.xlu2 %v423_v33  ;;  %v420_v34 = vsel %vm419_vm0, %v411_v32, 0.0 }
  0x91   : > { %421 = vadd.xlane.f32.xlu1 %v420_v34 }
  0x92   : > { %v362_v35 = vpop.permute.xlu1 %361 }
  0x93   : > { %v402_v36 = vmax.f32 %v322_v6, %v362_v35  ;;  %v360_v37 = vpop.permute.xlu0 %359  ;;  %v1463_v6 = vsel %vm449_vm1, %v1314_v1, %v448_v5 }
  0x94   : > { %v401_v38 = vmax.f32 %v321_v8, %v360_v37 }
  0x96   : > { %v414_v39 = vmax.f32 %v401_v38, %v402_v36 }
  0x98   : > { %v429_v41 = vsel %vm419_vm0, %v414_v39, 0.0 }
  0x99   : > { %430 = vadd.xlane.f32.xlu2 %v429_v41 }
  0x9a   : > { %v368_v44 = vpop.permute.xlu1 %367 }
  0x9b   : > { %v405_v45 = vmax.f32 %v325_v9, %v368_v44  ;;  %v366_v46 = vpop.permute.xlu0 %365 }
  0x9c   : > { %v404_v47 = vmax.f32 %v324_v11, %v366_v46 }
  0x9d   : > { %v416_v48 = vmax.f32 %v405_v45, %v406_v42 }
  0x9e   : > { %v415_v49 = vmax.f32 %v403_v43, %v404_v47  ;;  %v1373_v47 = vmov 6  }
  0x9f   : > { %v435_v50 = vsel %vm419_vm0, %v416_v48, 0.0  ;;  %1306 = vset.pattern.permute.xlu0 %v1373_v47  ;;  %1305 = vset.pattern.permute.xlu2 %v1373_v47 }
  0xa0   : > { %v432_v51 = vsel %vm419_vm0, %v415_v49, 0.0  ;;  %1304 = vset.pattern.permute.xlu1 %v1373_v47 }
  0xa1   : > { %436 = vadd.xlane.f32.xlu2 %v435_v50  ;;  %433 = vadd.xlane.f32.xlu1 %v432_v51 }
  0xa2   : > { %v374_v52 = vpop.permute.xlu1 %373 }
  0xa3   : > { %v408_v53 = vmax.f32 %v328_v12, %v374_v52  ;;  %v372_v54 = vpop.permute.xlu0 %371 }
  0xa4   : > { %v407_v55 = vmax.f32 %v327_v14, %v372_v54 }
  0xa6   : > { %v417_v56 = vmax.f32 %v407_v55, %v408_v53 }
  0xa8   : > { %v438_v58 = vsel %vm419_vm0, %v417_v56, 0.0 }
  0xa9   : > { %439 = vadd.xlane.f32.xlu0 %v438_v58 }
  0xab   : > { %v378_v60 = vpop.permute.xlu0 %377 }
  0xac   : > { %v410_v61 = vmax.f32 %v330_v15, %v378_v60  ;;  %v1525_v60 = vld [vmem:[%s1883_s2] ss:$0 sm:$0xff] }
  0xae   : > { %v418_v62 = vmax.f32 %v409_v59, %v410_v61 }
  0xb0   : > { %v441_v63 = vsel %vm419_vm0, %v418_v62, 0.0 }
  0xb1   : > { %442 = vadd.xlane.f32.xlu1 %v441_v63 }
  0xeb   : > { %v428_v7 = vpop.xlane.xlu0 %427 }
  0xec   : > { %v453_v8 = vmul.f32 %v1463_v6, %v428_v7 }
  0xee   : > { %v1467_v9 = vsub.f32 %v1452_v20, %v453_v8 }
  0xf0   : > { %v469_v10 = vmul.f32 %v1467_v9, %v1467_v9 }
  0xf2   : > { %v481_v11 = vsel %vm419_vm0, %v469_v10, 0.0 }
  0xf3   : > { %482 = vadd.xlane.f32.xlu1 %v481_v11 }
 0x103   : > { %v425_v12 = vpop.xlane.xlu2 %424 }
 0x104   : > { %v452_v13 = vmul.f32 %v1463_v6, %v425_v12  ;;  %v422_v14 = vpop.xlane.xlu1 %421 }
 0x105   : > { %v451_v15 = vmul.f32 %v1463_v6, %v422_v14 }
 0x106   : > { %v1474_v16 = vsub.f32 %v412_v31, %v452_v13  ;;  %v1374_v13 = vmov 7  }
 0x107   : > { %v1476_v17 = vsub.f32 %v411_v32, %v451_v15 }
 0x108   : > { %v468_v18 = vmul.f32 %v1474_v16, %v1474_v16 }
 0x109   : > { %v467_v19 = vmul.f32 %v1476_v17, %v1476_v17 }
 0x10a   : > { %v478_v20 = vsel %vm419_vm0, %v468_v18, 0.0 }
 0x10b   : > { %v475_v21 = vsel %vm419_vm0, %v467_v19, 0.0  ;;  %479 = vadd.xlane.f32.xlu0 %v478_v20 }
 0x10c   : > { %476 = vadd.xlane.f32.xlu2 %v475_v21  ;;  %v431_v22 = vpop.xlane.xlu2 %430 }
 0x10d   : > { %v454_v23 = vmul.f32 %v1463_v6, %v431_v22 }
 0x10f   : > { %v1485_v24 = vsub.f32 %v414_v39, %v454_v23 }
 0x111   : > { %v470_v25 = vmul.f32 %v1485_v24, %v1485_v24 }
 0x113   : > { %v484_v26 = vsel %vm419_vm0, %v470_v25, 0.0 }
 0x114   : > { %485 = vadd.xlane.f32.xlu2 %v484_v26  ;;  %v437_v27 = vpop.xlane.xlu2 %436  ;;  %v434_v28 = vpop.xlane.xlu1 %433 }
 0x115   : > { %v456_v29 = vmul.f32 %v1463_v6, %v437_v27  ;;  %v455_v30 = vmul.f32 %v1463_v6, %v434_v28 }
 0x117   : > { %v1492_v31 = vsub.f32 %v416_v48, %v456_v29  ;;  %v1494_v32 = vsub.f32 %v415_v49, %v455_v30 }
 0x119   : > { %v471_v33 = vmul.f32 %v1494_v32, %v1494_v32  ;;  %v472_v34 = vmul.f32 %v1492_v31, %v1492_v31 }
 0x11b   : > { %v487_v35 = vsel %vm419_vm0, %v471_v33, 0.0  ;;  %v490_v36 = vsel %vm419_vm0, %v472_v34, 0.0 }
 0x11c   : > { %488 = vadd.xlane.f32.xlu0 %v487_v35  ;;  %491 = vadd.xlane.f32.xlu1 %v490_v36  ;;  %v440_v37 = vpop.xlane.xlu0 %439 }
 0x11d   : > { %v457_v38 = vmul.f32 %v1463_v6, %v440_v37 }
 0x11f   : > { %v1503_v39 = vsub.f32 %v417_v56, %v457_v38 }
 0x121   : > { %v473_v40 = vmul.f32 %v1503_v39, %v1503_v39 }
 0x123   : > { %v493_v41 = vsel %vm419_vm0, %v473_v40, 0.0 }
 0x124   : > { %v443_v42 = vpop.xlane.xlu1 %442  ;;  %494 = vadd.xlane.f32.xlu2 %v493_v41 }
 0x125   : > { %v458_v43 = vmul.f32 %v1463_v6, %v443_v42 }
 0x127   : > { %v1509_v44 = vsub.f32 %v418_v62, %v458_v43 }
 0x129   : > { %v474_v45 = vmul.f32 %v1509_v44, %v1509_v44 }
 0x12b   : > { %v496_v46 = vsel %vm419_vm0, %v474_v45, 0.0 }
 0x12c   : > { %497 = vadd.xlane.f32.xlu0 %v496_v46 }
 0x166   : > { %v483_v48 = vpop.xlane.xlu1 %482 }
 0x167   : > { %v501_v49 = vmul.f32 %v483_v48, %v1463_v6 }
 0x169   : > { %v509_v50 = vadd.f32 1e-06, %v501_v49 }
 0x16b   : > { %1315 = vrsqrt.f32 %v509_v50  ;;  %vm541_vm3 = vweird.f32 %v509_v50 }
 0x171   : > { %v1316_v51 = vpop.eup %1315 }
 0x172   : > { %v536_v52 = vmul.f32 %v1316_v51, %v509_v50  ;;  %vm542_vm2 = vweird.f32 %v1316_v51 }
 0x173   : > { %vm543_vm4 = vmor %vm541_vm3, %vm542_vm2 }
 0x174   : > { %v537_v53 = vmul.f32 %v1316_v51, %v536_v52 }
 0x176   : > { %v538_v54 = vmul.f32 0.5, %v537_v53 }
 0x178   : > { %v539_v55 = vsub.f32 1.5, %v538_v54 }
 0x17a   : > { %v540_v56 = vmul.f32 %v1316_v51, %v539_v55 }
 0x17c   : > { %v544_v58 = vsel %vm543_vm4, %v1316_v51, %v540_v56 }
 0x17d   : > { %v597_v59 = vmul.f32 %v544_v58, %v1467_v9 }
 0x17e   : > { %v480_v61 = vpop.xlane.xlu0 %479 }
 0x17f   : > { %v477_v62 = vpop.xlane.xlu2 %476  ;;  %v500_v63 = vmul.f32 %v480_v61, %v1463_v6  ;;  %v609_v0 = vmul.f32 %v1518_v57, %v597_v59 }
 0x180   : > { %v499_v1 = vmul.f32 %v477_v62, %v1463_v6 }
 0x181   : > { %v508_v2 = vadd.f32 1e-06, %v500_v63  ;;  %v1538_v3 = vadd.f32 %v1525_v60, %v609_v0 }
 0x182   : > { %v507_v4 = vadd.f32 1e-06, %v499_v1 }
 0x183   : > { %1317 = vrsqrt.f32 %v508_v2  ;;  %648 = vperm.xlu0 %1306, %v1538_v3   ;;  %629 = vst.msk [vmem:[%s1535_s13 + $0x10] sm:$0xff] %vm419_vm0, %v1538_v3  ;;  %vm531_vm7 = vweird.f32 %v508_v2 }
 0x184   : > { %1319 = vrsqrt.f32 %v507_v4  ;;  %vm521_vm8 = vweird.f32 %v507_v4 }
 0x187   : > { %v486_v5 = vpop.xlane.xlu2 %485 }
 0x188   : > { %v502_v7 = vmul.f32 %v486_v5, %v1463_v6 }
 0x189   : > { %v1318_v8 = vpop.eup %1317 }
 0x18a   : > { %v1320_v9 = vpop.eup %1319  ;;  %v526_v10 = vmul.f32 %v1318_v8, %v508_v2  ;;  %v510_v11 = vadd.f32 1e-06, %v502_v7  ;;  %vm532_vm5 = vweird.f32 %v1318_v8 }
 0x18b   : > { %v516_v12 = vmul.f32 %v1320_v9, %v507_v4  ;;  %1308 = vset.pattern.permute.xlu0 %v1374_v13  ;;  %vm522_vm6 = vweird.f32 %v1320_v9  ;;  %vm533_vm9 = vmor %vm531_vm7, %vm532_vm5 }
 0x18c   : > { %v527_v14 = vmul.f32 %v1318_v8, %v526_v10  ;;  %1321 = vrsqrt.f32 %v510_v11  ;;  %vm523_vm10 = vmor %vm521_vm8, %vm522_vm6  ;;  %vm551_vm12 = vweird.f32 %v510_v11 }
 0x18d   : > { %v517_v15 = vmul.f32 %v1320_v9, %v516_v12 }
 0x18e   : > { %v528_v18 = vmul.f32 0.5, %v527_v14 }
 0x18f   : > { %v518_v19 = vmul.f32 0.5, %v517_v15  ;;  %v492_v20 = vpop.xlane.xlu1 %491  ;;  %v489_v21 = vpop.xlane.xlu0 %488 }
 0x190   : > { %v529_v22 = vsub.f32 1.5, %v528_v18  ;;  %v504_v23 = vmul.f32 %v492_v20, %v1463_v6  ;;  %v503_v25 = vmul.f32 %v489_v21, %v1463_v6 }
 0x191   : > { %v519_v26 = vsub.f32 1.5, %v518_v19 }
 0x192   : > { %v1322_v27 = vpop.eup %1321  ;;  %v530_v28 = vmul.f32 %v1318_v8, %v529_v22  ;;  %v512_v29 = vadd.f32 1e-06, %v504_v23  ;;  %v1548_v30 = vadd.f32 1e-06, %v503_v25 }
 0x193   : > { %v520_v33 = vmul.f32 %v1320_v9, %v519_v26  ;;  %v546_v34 = vmul.f32 %v1322_v27, %v510_v11  ;;  %vm552_vm11 = vweird.f32 %v1322_v27 }
 0x194   : > { %v534_v35 = vsel %vm533_vm9, %v1318_v8, %v530_v28  ;;  %1323 = vrsqrt.f32 %v512_v29  ;;  %vm553_vm13 = vmor %vm551_vm12, %vm552_vm11  ;;  %vm571_vm1 = vweird.f32 %v512_v29  ;;  %vm561_vm3 = vweird.f32 %v1548_v30 }
 0x195   : > { %v524_v36 = vsel %vm523_vm10, %v1320_v9, %v520_v33  ;;  %v547_v37 = vmul.f32 %v1322_v27, %v546_v34  ;;  %1325 = vrsqrt.f32 %v1548_v30  ;;  %v596_v38 = vmul.f32 %v534_v35, %v1474_v16 }
 0x196   : > { %v595_v40 = vmul.f32 %v524_v36, %v1476_v17 }
 0x197   : > { %v548_v41 = vmul.f32 0.5, %v547_v37  ;;  %v495_v42 = vpop.xlane.xlu2 %494  ;;  %v608_v43 = vmul.f32 %v1518_v57, %v596_v38 }
 0x198   : > { %v505_v45 = vmul.f32 %v495_v42, %v1463_v6  ;;  %v607_v46 = vmul.f32 %v1518_v57, %v595_v40 }
 0x199   : > { %v549_v47 = vsub.f32 1.5, %v548_v41  ;;  %v620_v48 = vadd.f32 %v1525_v60, %v608_v43  ;;  %v1614_v43 = vld [vmem:[%s1885_s4] ss:$0 sm:$0xff] }
 0x19a   : > { %v1324_v49 = vpop.eup %1323  ;;  %v513_v50 = vadd.f32 1e-06, %v505_v45  ;;  %v1558_v16 = vadd.f32 %v1525_v60, %v607_v46 }
 0x19b   : > { %v1326_v17 = vpop.eup %1325  ;;  %v550_v51 = vmul.f32 %v1322_v27, %v549_v47  ;;  %v566_v52 = vmul.f32 %v1324_v49, %v512_v29  ;;  %698 = vperm.xlu0 %1308, %v620_v48   ;;  %628 = vst.msk [vmem:[%s1535_s13 + $0x8] sm:$0xff] %vm419_vm0, %v620_v48  ;;  %643 = vperm.xlu2 %1305, %v620_v48   ;;  %vm572_vm14 = vweird.f32 %v1324_v49 }
 0x19c   : > { %v556_v53 = vmul.f32 %v1326_v17, %v1548_v30  ;;  %1327 = vrsqrt.f32 %v513_v50  ;;  %627 = vst.msk [vmem:[%s1535_s13] sm:$0xff] %vm419_vm0, %v1558_v16  ;;  %638 = vperm.xlu1 %1304, %v1558_v16   ;;  %vm562_vm15 = vweird.f32 %v1326_v17  ;;  %vm573_vm2 = vmor %vm571_vm1, %vm572_vm14  ;;  %vm581_vm6 = vweird.f32 %v513_v50 }
 0x19d   : > { %v554_v54 = vsel %vm553_vm13, %v1322_v27, %v550_v51  ;;  %v567_v55 = vmul.f32 %v1324_v49, %v566_v52  ;;  %vm563_vm4 = vmor %vm561_vm3, %vm562_vm15  ;;  %vm1106_vm13 = vcmask 15360  }
 0x19e   : > { %v557_v56 = vmul.f32 %v1326_v17, %v556_v53  ;;  %v598_v58 = vmul.f32 %v554_v54, %v1485_v24 }
 0x19f   : > { %v568_v59 = vmul.f32 0.5, %v567_v55  ;;  %v498_v61 = vpop.xlane.xlu0 %497 }
 0x1a0   : > { %v558_v62 = vmul.f32 0.5, %v557_v56  ;;  %v506_v63 = vmul.f32 %v498_v61, %v1463_v6  ;;  %v610_v0 = vmul.f32 %v1518_v57, %v598_v58 }
 0x1a1   : > { %v569_v1 = vsub.f32 1.5, %v568_v59 }
 0x1a2   : > { %v1328_v2 = vpop.eup %1327  ;;  %v559_v4 = vsub.f32 1.5, %v558_v62  ;;  %v514_v5 = vadd.f32 1e-06, %v506_v63  ;;  %v622_v7 = vadd.f32 %v1525_v60, %v610_v0 }
 0x1a3   : > { %v570_v8 = vmul.f32 %v1324_v49, %v569_v1  ;;  %v576_v9 = vmul.f32 %v1328_v2, %v513_v50  ;;  %vm582_vm5 = vweird.f32 %v1328_v2 }
 0x1a4   : > { %v560_v24 = vmul.f32 %v1326_v17, %v559_v4  ;;  %1329 = vrsqrt.f32 %v514_v5  ;;  %630 = vst.msk [vmem:[%s1535_s13 + $0x18] sm:$0xff] %vm419_vm0, %v622_v7  ;;  %653 = vperm.xlu1 %1304, %v622_v7   ;;  %vm583_vm7 = vmor %vm581_vm6, %vm582_vm5  ;;  %vm591_vm9 = vweird.f32 %v514_v5 }
 0x1a5   : > { %v574_v6 = vsel %vm573_vm2, %v1324_v49, %v570_v8  ;;  %v577_v10 = vmul.f32 %v1328_v2, %v576_v9 }
 0x1a6   : > { %v564_v11 = vsel %vm563_vm4, %v1326_v17, %v560_v24  ;;  %v600_v12 = vmul.f32 %v574_v6, %v1492_v31 }
 0x1a7   : > { %v578_v14 = vmul.f32 0.5, %v577_v10  ;;  %v599_v15 = vmul.f32 %v564_v11, %v1494_v32 }
 0x1a8   : > { %v612_v18 = vmul.f32 %v1518_v57, %v600_v12 }
 0x1a9   : > { %v579_v19 = vsub.f32 1.5, %v578_v14  ;;  %v611_v20 = vmul.f32 %v1518_v57, %v599_v15 }
 0x1aa   : > { %v1330_v21 = vpop.eup %1329  ;;  %v624_v22 = vadd.f32 %v1525_v60, %v612_v18 }
 0x1ab   : > { %v580_v23 = vmul.f32 %v1328_v2, %v579_v19  ;;  %v586_v25 = vmul.f32 %v1330_v21, %v514_v5  ;;  %v623_v26 = vadd.f32 %v1525_v60, %v611_v20  ;;  %vm592_vm8 = vweird.f32 %v1330_v21 }
 0x1ac   : > { %663 = vperm.xlu1 %1304, %v624_v22   ;;  %632 = vst.msk [vmem:[%s1535_s13 + $0x28] sm:$0xff] %vm419_vm0, %v624_v22  ;;  %vm593_vm10 = vmor %vm591_vm9, %vm592_vm8 }
 0x1ad   : > { %v584_v31 = vsel %vm583_vm7, %v1328_v2, %v580_v23  ;;  %v587_v32 = vmul.f32 %v1330_v21, %v586_v25  ;;  %658 = vperm.xlu2 %1305, %v623_v26   ;;  %631 = vst.msk [vmem:[%s1535_s13 + $0x20] sm:$0xff] %vm419_vm0, %v623_v26 }
 0x1ae   : > { %v601_v27 = vmul.f32 %v584_v31, %v1503_v39 }
 0x1af   : > { %v588_v28 = vmul.f32 0.5, %v587_v32 }
 0x1b0   : > { %v613_v29 = vmul.f32 %v1518_v57, %v601_v27 }
 0x1b1   : > { %v589_v30 = vsub.f32 1.5, %v588_v28 }
 0x1b2   : > { %v625_v33 = vadd.f32 %v1525_v60, %v613_v29 }
 0x1b3   : > { %v590_v34 = vmul.f32 %v1330_v21, %v589_v30 }
 0x1b4   : > { %633 = vst.msk [vmem:[%s1535_s13 + $0x30] sm:$0xff] %vm419_vm0, %v625_v33  ;;  %718 = vperm.xlu0 %1308, %v625_v33  }
 0x1b5   : > { %v594_v35 = vsel %vm593_vm10, %v1330_v21, %v590_v34  ;;  %668 = vperm.xlu2 %1305, %v625_v33  }
 0x1b6   : > { %v602_v36 = vmul.f32 %v594_v35, %v1509_v44 }
 0x1b8   : > { %v614_v39 = vmul.f32 %v1518_v57, %v602_v36  ;;  %v635_v57 = vld [vmem:[%s1884_s3] sm:$0x3] }
 0x1b9   : > { %v1603_v38 = vperm.slane %v635_v57, 0 }
 0x1ba   : > { %v626_v37 = vadd.f32 %v1525_v60, %v614_v39 }
 0x1bc   : > { %673 = vperm.xlu1 %1304, %v626_v37   ;;  %634 = vst.msk [vmem:[%s1535_s13 + $0x38] sm:$0xff] %vm419_vm0, %v626_v37 }
 0x1bd   : > { %1307 = vset.pattern.permute.xlu2 %v1374_v13 }
 0x1be   : > { %694 = vperm.xlu2 %1307, %v1558_v16  }
 0x1c4   : > { %1309 = vset.pattern.permute.xlu1 %v1374_v13  ;;  %v1608_v13 = vperm.slane %v635_v57, 1 }
 0x1c5   : > { %702 = vperm.xlu1 %1309, %v1538_v3  }
 0x1c6   : > { %706 = vperm.xlu2 %1307, %v622_v7  }
 0x1cd   : > { %710 = vperm.xlu1 %1309, %v623_v26  }
 0x1ce   : > { %714 = vperm.xlu2 %1307, %v624_v22  }
 0x1d5   : > { %722 = vperm.xlu1 %1309, %v626_v37  }
 0x1f5   : > { %v644_v44 = vpop.permute.xlu2 %643  ;;  %v1601_v60 = vpop.permute.xlu0 %648 }
 0x1f6   : > { %v678_v42 = vmul.f32 %v1603_v38, %v644_v44 }
 0x207   : > { %v659_v40 = vpop.permute.xlu2 %658 }
 0x208   : > { %v1606_v41 = vmul.f32 %v1603_v38, %v659_v40 }
 0x20d   : > { %v699_v3 = vpop.permute.xlu0 %698 }
 0x20e   : > { %v727_v45 = vmul.f32 %v1608_v13, %v699_v3  ;;  %v639_v48 = vpop.permute.xlu1 %638 }
 0x20f   : > { %v669_v46 = vpop.permute.xlu2 %668  ;;  %v677_v52 = vmul.f32 %v1603_v38, %v639_v48 }
 0x210   : > { %v735_v47 = vadd.f32 %v727_v45, %v678_v42  ;;  %v683_v20 = vmul.f32 %v1603_v38, %v669_v46 }
 0x212   : > { %v1618_v49 = vadd.f32 %v1614_v43, %v735_v47 }
 0x214   : > { %v1621_v50 = vmul.f32 0.70710677, %v1618_v49 }
 0x216   : > { %v810_v16 = vmul.f32 %v1621_v50, %v1621_v50  ;;  %v654_v61 = vpop.permute.xlu1 %653 }
 0x217   : > { %v680_v7 = vmul.f32 %v1603_v38, %v654_v61 }
 0x218   : > { %v811_v17 = vmin.f32 %v810_v16, 16.0  ;;  %v695_v51 = vpop.permute.xlu2 %694 }
 0x219   : > { %v726_v53 = vmul.f32 %v1608_v13, %v695_v51 }
 0x21a   : > { %v812_v54 = vmul.f32 2.1237322e-06, %v811_v17  ;;  %v823_v55 = vmul.f32 3.8918573e-05, %v811_v17 }
 0x21b   : > { %v734_v56 = vadd.f32 %v726_v53, %v677_v52 }
 0x21c   : > { %v813_v58 = vadd.f32 0.00028619796, %v812_v54  ;;  %v824_v59 = vadd.f32 0.001143296, %v823_v55 }
 0x21d   : > { %v1628_v62 = vadd.f32 %v1614_v43, %v734_v56 }
 0x21e   : > { %v814_v63 = vmul.f32 %v813_v58, %v811_v17  ;;  %v825_v0 = vmul.f32 %v824_v59, %v811_v17  ;;  %v664_v22 = vpop.permute.xlu1 %663 }
 0x21f   : > { %v1631_v1 = vmul.f32 0.70710677, %v1628_v62  ;;  %v682_v39 = vmul.f32 %v1603_v38, %v664_v22 }
 0x220   : > { %v815_v2 = vadd.f32 0.0036580483, %v814_v63  ;;  %v826_v4 = vadd.f32 0.014752088, %v825_v0  ;;  %v707_v5 = vpop.permute.xlu2 %706  ;;  %v1679_v0 = vmul.f32 %v1603_v38, %v1601_v60 }
 0x221   : > { %v770_v8 = vmul.f32 %v1631_v1, %v1631_v1  ;;  %v729_v9 = vmul.f32 %v1608_v13, %v707_v5 }
 0x222   : > { %v816_v24 = vmul.f32 %v815_v2, %v811_v17  ;;  %v827_v6 = vmul.f32 %v826_v4, %v811_v17 }
 0x223   : > { %v1637_v10 = vmin.f32 %v770_v8, 16.0  ;;  %v737_v11 = vadd.f32 %v729_v9, %v680_v7 }
 0x224   : > { %v817_v12 = vadd.f32 0.05243302, %v816_v24  ;;  %v828_v14 = vadd.f32 0.112945676, %v827_v6 }
 0x225   : > { %v772_v15 = vmul.f32 2.1237322e-06, %v1637_v10  ;;  %v783_v18 = vmul.f32 3.8918573e-05, %v1637_v10  ;;  %v1642_v19 = vadd.f32 %v1614_v43, %v737_v11 }
 0x226   : > { %v829_v21 = vmul.f32 %v828_v14, %v811_v17  ;;  %v719_v23 = vpop.permute.xlu0 %718  ;;  %v818_v25 = vmul.f32 %v817_v12, %v811_v17 }
 0x227   : > { %v773_v26 = vadd.f32 0.00028619796, %v772_v15  ;;  %v784_v31 = vadd.f32 0.001143296, %v783_v18  ;;  %v732_v32 = vmul.f32 %v1608_v13, %v719_v23  ;;  %v1647_v28 = vmul.f32 0.70710677, %v1642_v19 }
 0x228   : > { %v830_v27 = vadd.f32 0.4994258, %v829_v21  ;;  %v715_v29 = vpop.permute.xlu2 %714  ;;  %v819_v44 = vadd.f32 0.18741608, %v818_v25 }
 0x229   : > { %v774_v30 = vmul.f32 %v773_v26, %v1637_v10  ;;  %v785_v33 = vmul.f32 %v784_v31, %v1637_v10  ;;  %v740_v34 = vadd.f32 %v732_v32, %v683_v20  ;;  %v731_v35 = vmul.f32 %v1608_v13, %v715_v29 }
 0x22a   : > { %v831_v36 = vmul.f32 %v830_v27, %v811_v17  ;;  %v890_v37 = vmul.f32 %v1647_v28, %v1647_v28  ;;  %v820_v52 = vmul.f32 %v819_v44, %v811_v17 }
 0x22b   : > { %v775_v57 = vadd.f32 0.0036580483, %v774_v30  ;;  %v786_v40 = vadd.f32 0.014752088, %v785_v33  ;;  %v1656_v3 = vadd.f32 %v1614_v43, %v740_v34  ;;  %v739_v46 = vadd.f32 %v731_v35, %v682_v39 }
 0x22c   : > { %v832_v42 = vadd.f32 1.0, %v831_v36  ;;  %v1658_v45 = vmin.f32 %v890_v37, 16.0  ;;  %v821_v4 = vadd.f32 1.1283791, %v820_v52 }
 0x22d   : > { %v776_v47 = vmul.f32 %v775_v57, %v1637_v10  ;;  %v787_v48 = vmul.f32 %v786_v40, %v1637_v10  ;;  %v1663_v16 = vmul.f32 0.70710677, %v1656_v3  ;;  %v1672_v59 = vadd.f32 %v1614_v43, %v739_v46 }
 0x22e   : > { %1331 = vrcp.f32 %v832_v42  ;;  %v1665_v51 = vpop.permute.xlu1 %673  ;;  %v892_v56 = vmul.f32 2.1237322e-06, %v1658_v45  ;;  %v903_v58 = vmul.f32 3.8918573e-05, %v1658_v45  ;;  %v842_v14 = vand.u32 2147483647, %v832_v42 }
 0x22f   : > { %v777_v53 = vadd.f32 0.05243302, %v776_v47  ;;  %v788_v54 = vadd.f32 0.112945676, %v787_v48  ;;  %v1010_v55 = vmul.f32 %v1663_v16, %v1663_v16  ;;  %v1687_v12 = vmul.f32 0.70710677, %v1672_v59 }
 0x230   : > { %v893_v17 = vadd.f32 0.00028619796, %v892_v56  ;;  %v904_v2 = vadd.f32 0.001143296, %v903_v58  ;;  %v844_v15 = vand.u32 2147483648, %v832_v42  ;;  %v822_v35 = vmul.f32 %v821_v4, %v1621_v50 }
 0x231   : > { %v789_v61 = vmul.f32 %v788_v54, %v1637_v10  ;;  %v1675_v63 = vmin.f32 %v1010_v55, 16.0  ;;  %v778_v5 = vmul.f32 %v777_v53, %v1637_v10  ;;  %v970_v23 = vmul.f32 %v1687_v12, %v1687_v12 }
 0x232   : > { %v894_v24 = vmul.f32 %v893_v17, %v1658_v45  ;;  %v905_v6 = vmul.f32 %v904_v2, %v1658_v45  ;;  %vm838_vm11 = vweird.f32 %v832_v42  ;;  %vm1703_vm12 = vcmp.eq.f32.partialorder %v842_v14, 8.507059e+37 }
 0x233   : > { %v790_v7 = vadd.f32 0.4994258, %v789_v61  ;;  %v1012_v8 = vmul.f32 2.1237322e-06, %v1675_v63  ;;  %v1023_v11 = vmul.f32 3.8918573e-05, %v1675_v63 }
 0x234   : > { %v1332_v9 = vpop.eup %1331  ;;  %v895_v20 = vadd.f32 0.0036580483, %v894_v24  ;;  %v906_v21 = vadd.f32 0.014752088, %v905_v6  ;;  %v779_v26 = vadd.f32 0.18741608, %v778_v5 }
 0x235   : > { %v834_v60 = vmul.f32 %v1332_v9, %v832_v42  ;;  %v791_v18 = vmul.f32 %v790_v7, %v1637_v10  ;;  %v1013_v22 = vadd.f32 0.00028619796, %v1012_v8  ;;  %v1024_v32 = vadd.f32 0.001143296, %v1023_v11 }
 0x236   : > { %v896_v27 = vmul.f32 %v895_v20, %v1658_v45  ;;  %v907_v29 = vmul.f32 %v906_v21, %v1658_v45  ;;  %v1697_v33 = vmin.f32 %v970_v23, 16.0  ;;  %vm839_vm0 = vweird.f32 %v1332_v9 }
 0x237   : > { %v835_v25 = vsub.f32 1.0, %v834_v60  ;;  %v1692_v31 = vadd.f32 1.0, %v791_v18  ;;  %v1014_v30 = vmul.f32 %v1013_v22, %v1675_v63  ;;  %v1699_v34 = vpop.permute.xlu1 %702  ;;  %v1025_v44 = vmul.f32 %v1024_v32, %v1675_v63  ;;  %vm840_vm14 = vmor %vm838_vm11, %vm839_vm0 }
 0x238   : > { %v897_v37 = vadd.f32 0.05243302, %v896_v27  ;;  %v908_v40 = vadd.f32 0.112945676, %v907_v29  ;;  %v972_v47 = vmul.f32 2.1237322e-06, %v1697_v33  ;;  %v780_v48 = vmul.f32 %v779_v26, %v1637_v10 }
 0x239   : > { %v836_v36 = vmul.f32 %v1332_v9, %v835_v25  ;;  %1333 = vrcp.f32 %v1692_v31  ;;  %v1015_v46 = vadd.f32 0.0036580483, %v1014_v30  ;;  %v845_v50 = vor.u32 1.1754944e-38, %v844_v15 }
 0x23a   : > { %v898_v52 = vmul.f32 %v897_v37, %v1658_v45  ;;  %v1026_v42 = vadd.f32 0.014752088, %v1025_v44  ;;  %v909_v54 = vmul.f32 %v908_v40, %v1658_v45  ;;  %v973_v56 = vadd.f32 0.00028619796, %v972_v47 }
 0x23b   : > { %v837_v57 = vadd.f32 %v1332_v9, %v836_v36  ;;  %v1016_v55 = vmul.f32 %v1015_v46, %v1675_v63  ;;  %v755_v58 = vmul.f32 0.5, %v1618_v49  ;;  %v983_v2 = vmul.f32 3.8918573e-05, %v1697_v33 }
 0x23c   : > { %v1027_v17 = vmul.f32 %v1026_v42, %v1675_v63  ;;  %v899_v5 = vadd.f32 0.18741608, %v898_v52  ;;  %v910_v7 = vadd.f32 0.4994258, %v909_v54  ;;  %v974_v8 = vmul.f32 %v973_v56, %v1697_v33 }
 0x23d   : > { %v841_v53 = vsel %vm840_vm14, %v1332_v9, %v837_v57  ;;  %v781_v9 = vadd.f32 1.1283791, %v780_v48  ;;  %v1017_v6 = vadd.f32 0.05243302, %v1016_v55  ;;  %v802_v60 = vand.u32 2147483647, %v1692_v31 }
 0x23e   : > { %v846_v61 = vsel %vm1703_vm12, %v845_v50, %v841_v53  ;;  %v1028_v11 = vadd.f32 0.112945676, %v1027_v17  ;;  %v804_v14 = vand.u32 2147483648, %v1692_v31  ;;  %v911_v15 = vmul.f32 %v910_v7, %v1658_v45 }
 0x23f   : > { %v1334_v4 = vpop.eup %1333  ;;  %v847_v10 = vmul.f32 %v846_v61, %v822_v35  ;;  %v984_v21 = vadd.f32 0.001143296, %v983_v2  ;;  %v711_v22 = vpop.permute.xlu1 %710  ;;  %v900_v25 = vmul.f32 %v899_v5, %v1658_v45  ;;  %v975_v32 = vadd.f32 0.0036580483, %v974_v8 }
 0x240   : > { %v794_v24 = vmul.f32 %v1334_v4, %v1692_v31  ;;  %vm799_vm15 = vweird.f32 %v1334_v4  ;;  %v1029_v20 = vmul.f32 %v1028_v11, %v1675_v63  ;;  %v1725_v26 = vadd.f32 1.0, %v911_v15 }
 0x241   : > { %v1264_v49 = vclamps-f32 %v847_v10, 1.0  ;;  %v1018_v29 = vmul.f32 %v1017_v6, %v1675_v63  ;;  %v985_v35 = vmul.f32 %v984_v21, %v1697_v33  ;;  %v782_v39 = vmul.f32 %v781_v9, %v1631_v1 }
 0x242   : > { %v795_v18 = vsub.f32 1.0, %v794_v24  ;;  %v1030_v30 = vadd.f32 0.4994258, %v1029_v20  ;;  %vm798_vm1 = vweird.f32 %v1692_v31  ;;  %1335 = vrcp.f32 %v1725_v26 }
 0x243   : > { %v1091_v23 = vadd.f32 1.0, %v1264_v49  ;;  %vm803_vm2 = vcmp.eq.f32.partialorder %v802_v60, 8.507059e+37  ;;  %v805_v37 = vor.u32 1.1754944e-38, %v804_v14  ;;  %vm800_vm3 = vmor %vm798_vm1, %vm799_vm15  ;;  %v901_v57 = vadd.f32 1.1283791, %v900_v25 }
 0x244   : > { %v796_v27 = vmul.f32 %v1334_v4, %v795_v18  ;;  %v1031_v44 = vmul.f32 %v1030_v30, %v1675_v63  ;;  %v976_v40 = vmul.f32 %v975_v32, %v1697_v33  ;;  %v986_v46 = vadd.f32 0.014752088, %v985_v35 }
 0x245   : > { %v1099_v36 = vmul.f32 %v1091_v23, %v755_v58  ;;  %v728_v1 = vmul.f32 %v1608_v13, %v1699_v34  ;;  %v922_v31 = vand.u32 2147483647, %v1725_v26  ;;  %v1019_v50 = vadd.f32 0.18741608, %v1018_v29 }
 0x246   : > { %v797_v45 = vadd.f32 %v1334_v4, %v796_v27  ;;  %v1747_v48 = vadd.f32 1.0, %v1031_v44  ;;  %v924_v42 = vand.u32 2147483648, %v1725_v26  ;;  %v987_v53 = vmul.f32 %v986_v46, %v1697_v33 }
 0x247   : > { %1108 = vst.msk [vmem:[%s1732_s20 + $0x8] sm:$0xff] %vm1106_vm13, %v1099_v36  ;;  %v736_v54 = vadd.f32 %v728_v1, %v1679_v0  ;;  %v754_v58 = vmul.f32 0.5, %v1628_v62  ;;  %v977_v34 = vadd.f32 0.05243302, %v976_v40  ;;  %v684_v61 = vmul.f32 %v1603_v38, %v1665_v51  ;;  %v723_v0 = vpop.permute.xlu1 %722 }
 0x248   : > { %v801_v47 = vsel %vm800_vm3, %v1334_v4, %v797_v45  ;;  %1337 = vrcp.f32 %v1747_v48  ;;  %v1336_v56 = vpop.eup %1335  ;;  %v902_v4 = vmul.f32 %v901_v57, %v1647_v28  ;;  %v988_v5 = vadd.f32 0.112945676, %v987_v53 }
 0x249   : > { %v806_v52 = vsel %vm803_vm2, %v805_v37, %v801_v47  ;;  %v1757_v17 = vadd.f32 %v1614_v43, %v736_v54  ;;  %v914_v10 = vmul.f32 %v1336_v56, %v1725_v26  ;;  %vm918_vm4 = vweird.f32 %v1725_v26 }
 0x24a   : > { %v807_v55 = vmul.f32 %v806_v52, %v782_v39  ;;  %vm1762_vm5 = vcmp.eq.f32.partialorder %v922_v31, 8.507059e+37  ;;  %v925_v62 = vor.u32 1.1754944e-38, %v924_v42  ;;  %v1020_v8 = vmul.f32 %v1019_v50, %v1675_v63 }
 0x24b   : > { %v915_v51 = vsub.f32 1.0, %v914_v10  ;;  %v989_v9 = vmul.f32 %v988_v5, %v1697_v33  ;;  %v1769_v28 = vmul.f32 0.70710677, %v1757_v17  ;;  %vm919_vm6 = vweird.f32 %v1336_v56 }
 0x24c   : > { %v1263_v2 = vclamps-f32 %v807_v55, 1.0  ;;  %v978_v24 = vmul.f32 %v977_v34, %v1697_v33  ;;  %v730_v6 = vmul.f32 %v1608_v13, %v711_v22  ;;  %v733_v11 = vmul.f32 %v1608_v13, %v723_v0  ;;  %vm920_vm7 = vmor %vm918_vm4, %vm919_vm6 }
 0x24d   : > { %v916_v14 = vmul.f32 %v1336_v56, %v915_v51  ;;  %v990_v15 = vadd.f32 0.4994258, %v989_v9  ;;  %v850_v63 = vmul.f32 %v1769_v28, %v1769_v28  ;;  %v1021_v18 = vadd.f32 1.1283791, %v1020_v8 }
 0x24e   : > { %v1090_v38 = vadd.f32 1.0, %v1263_v2  ;;  %v1338_v49 = vpop.eup %1337  ;;  %v1042_v21 = vand.u32 2147483647, %v1747_v48  ;;  %v738_v23 = vadd.f32 %v730_v6, %v1606_v41  ;;  %v1044_v22 = vand.u32 2147483648, %v1747_v48 }
 0x24f   : > { %v1034_v20 = vmul.f32 %v1338_v49, %v1747_v48  ;;  %v917_v25 = vadd.f32 %v1336_v56, %v916_v14  ;;  %v991_v13 = vmul.f32 %v990_v15, %v1697_v33  ;;  %v1783_v32 = vmin.f32 %v850_v63, 16.0 }
 0x250   : > { %v1098_v60 = vmul.f32 %v1090_v38, %v754_v58  ;;  %v979_v29 = vadd.f32 0.18741608, %v978_v24  ;;  %v1789_v30 = vadd.f32 %v1614_v43, %v738_v23  ;;  %v741_v35 = vadd.f32 %v733_v11, %v684_v61 }
 0x251   : > { %v1035_v27 = vsub.f32 1.0, %v1034_v20  ;;  %v921_v41 = vsel %vm920_vm7, %v1336_v56, %v917_v25  ;;  %v1791_v36 = vadd.f32 1.0, %v991_v13  ;;  %v852_v39 = vmul.f32 2.1237322e-06, %v1783_v32 }
 0x252   : > { %1107 = vst.msk [vmem:[%s1732_s20] sm:$0xff] %vm1106_vm13, %v1098_v60  ;;  %v863_v45 = vmul.f32 3.8918573e-05, %v1783_v32  ;;  %v926_v37 = vsel %vm1762_vm5, %v925_v62, %v921_v41  ;;  %vm1039_vm8 = vweird.f32 %v1338_v49  ;;  %v1798_v26 = vmul.f32 0.70710677, %v1789_v30 }
 0x253   : > { %v1036_v44 = vmul.f32 %v1338_v49, %v1035_v27  ;;  %v927_v57 = vmul.f32 %v926_v37, %v902_v4  ;;  %v1022_v40 = vmul.f32 %v1021_v18, %v1663_v16  ;;  %vm1038_vm9 = vweird.f32 %v1747_v48 }
 0x254   : > { %1339 = vrcp.f32 %v1791_v36  ;;  %vm1043_vm10 = vcmp.eq.f32.partialorder %v1042_v21, 8.507059e+37  ;;  %v853_v1 = vadd.f32 0.00028619796, %v852_v39  ;;  %v864_v47 = vadd.f32 0.001143296, %v863_v45  ;;  %vm1040_vm0 = vmor %vm1038_vm9, %vm1039_vm8 }
 0x255   : > { %v1037_v46 = vadd.f32 %v1338_v49, %v1036_v44  ;;  %v1266_v31 = vclamps-f32 %v927_v57, 1.0  ;;  %v1045_v50 = vor.u32 1.1754944e-38, %v1044_v22  ;;  %v930_v52 = vmul.f32 %v1798_v26, %v1798_v26 }
 0x256   : > { %v1806_v42 = vadd.f32 %v1614_v43, %v741_v35  ;;  %v980_v16 = vmul.f32 %v979_v29, %v1697_v33  ;;  %v854_v48 = vmul.f32 %v853_v1, %v1783_v32  ;;  %v865_v54 = vmul.f32 %v864_v47, %v1783_v32 }
 0x257   : > { %v1041_v53 = vsel %vm1040_vm0, %v1338_v49, %v1037_v46  ;;  %v757_v55 = vmul.f32 0.5, %v1642_v19  ;;  %v1093_v56 = vadd.f32 1.0, %v1266_v31  ;;  %v1812_v34 = vmin.f32 %v930_v52, 16.0 }
 0x258   : > { %v1046_v58 = vsel %vm1043_vm10, %v1045_v50, %v1041_v53  ;;  %v855_v2 = vadd.f32 0.0036580483, %v854_v48  ;;  %v866_v4 = vadd.f32 0.014752088, %v865_v54  ;;  %v1815_v43 = vmul.f32 0.70710677, %v1806_v42 }
 0x259   : > { %v1047_v61 = vmul.f32 %v1046_v58, %v1022_v40  ;;  %v1101_v5 = vmul.f32 %v1093_v56, %v757_v55  ;;  %v932_v33 = vmul.f32 2.1237322e-06, %v1812_v34  ;;  %v943_v0 = vmul.f32 3.8918573e-05, %v1812_v34 }
 0x25a   : > { %v1340_v10 = vpop.eup %1339  ;;  %v760_v7 = vmul.f32 0.5, %v1656_v3  ;;  %v981_v62 = vadd.f32 1.1283791, %v980_v16  ;;  %v867_v38 = vmul.f32 %v866_v4, %v1783_v32  ;;  %v1050_v24 = vmul.f32 %v1815_v43, %v1815_v43 }
 0x25b   : > { %v1269_v19 = vclamps-f32 %v1047_v61, 1.0  ;;  %v994_v8 = vmul.f32 %v1340_v10, %v1791_v36  ;;  %1110 = vst.msk [vmem:[%s1732_s20 + $0x18] sm:$0xff] %vm1106_vm13, %v1101_v5  ;;  %v933_v51 = vadd.f32 0.00028619796, %v932_v33  ;;  %v944_v9 = vadd.f32 0.001143296, %v943_v0 }
 0x25c   : > { %v1004_v49 = vand.u32 2147483648, %v1791_v36  ;;  %v856_v3 = vmul.f32 %v855_v2, %v1783_v32  ;;  %v868_v60 = vadd.f32 0.112945676, %v867_v38  ;;  %v1830_v63 = vmin.f32 %v1050_v24, 16.0 }
 0x25d   : > { %v1096_v6 = vadd.f32 1.0, %v1269_v19  ;;  %v995_v11 = vsub.f32 1.0, %v994_v8  ;;  %v934_v14 = vmul.f32 %v933_v51, %v1812_v34  ;;  %v945_v15 = vmul.f32 %v944_v9, %v1812_v34 }
 0x25e   : > { %vm999_vm11 = vweird.f32 %v1340_v10  ;;  %v1002_v21 = vand.u32 2147483647, %v1791_v36  ;;  %vm998_vm12 = vweird.f32 %v1791_v36  ;;  %v869_v23 = vmul.f32 %v868_v60, %v1783_v32 }
 0x25f   : > { %v1104_v18 = vmul.f32 %v1096_v6, %v760_v7  ;;  %v996_v20 = vmul.f32 %v1340_v10, %v995_v11  ;;  %v946_v25 = vadd.f32 0.014752088, %v945_v15  ;;  %v1052_v22 = vmul.f32 2.1237322e-06, %v1830_v63  ;;  %vm1000_vm14 = vmor %vm998_vm12, %vm999_vm11 }
 0x260   : > { %v1005_v27 = vor.u32 1.1754944e-38, %v1004_v49  ;;  %v857_v29 = vadd.f32 0.05243302, %v856_v3  ;;  %v1063_v35 = vmul.f32 3.8918573e-05, %v1830_v63  ;;  %v982_v36 = vmul.f32 %v981_v62, %v1687_v12 }
 0x261   : > { %1113 = vst.msk [vmem:[%s1732_s20 + $0x30] sm:$0xff] %vm1106_vm13, %v1104_v18  ;;  %v997_v13 = vadd.f32 %v1340_v10, %v996_v20  ;;  %v870_v41 = vadd.f32 0.4994258, %v869_v23  ;;  %v935_v39 = vadd.f32 0.0036580483, %v934_v14  ;;  %v947_v45 = vmul.f32 %v946_v25, %v1812_v34 }
 0x262   : > { %v1053_v37 = vadd.f32 0.00028619796, %v1052_v22  ;;  %vm1003_vm15 = vcmp.eq.f32.partialorder %v1002_v21, 8.507059e+37  ;;  %v1064_v57 = vadd.f32 0.001143296, %v1063_v35  ;;  %v858_v52 = vmul.f32 %v857_v29, %v1783_v32 }
 0x263   : > { %v1001_v44 = vsel %vm1000_vm14, %v1340_v10, %v997_v13  ;;  %v871_v46 = vmul.f32 %v870_v41, %v1783_v32  ;;  %v948_v1 = vadd.f32 0.112945676, %v947_v45  ;;  %v936_v16 = vmul.f32 %v935_v39, %v1812_v34 }
 0x264   : > { %v1006_v40 = vsel %vm1003_vm15, %v1005_v27, %v1001_v44  ;;  %v1054_v31 = vmul.f32 %v1053_v37, %v1830_v63  ;;  %v1065_v50 = vmul.f32 %v1064_v57, %v1830_v63  ;;  %v759_v55 = vmul.f32 0.5, %v1672_v59 }
 0x265   : > { %v1007_v47 = vmul.f32 %v1006_v40, %v982_v36  ;;  %v872_v53 = vadd.f32 1.0, %v871_v46  ;;  %v949_v12 = vmul.f32 %v948_v1, %v1812_v34  ;;  %v859_v2 = vadd.f32 0.18741608, %v858_v52 }
 0x266   : > { %v1066_v54 = vadd.f32 0.014752088, %v1065_v50  ;;  %v1055_v61 = vadd.f32 0.0036580483, %v1054_v31  ;;  %v937_v4 = vadd.f32 0.05243302, %v936_v16 }
 0x267   : > { %v1268_v48 = vclamps-f32 %v1007_v47, 1.0  ;;  %1341 = vrcp.f32 %v872_v53  ;;  %v950_v58 = vadd.f32 0.4994258, %v949_v12  ;;  %v860_v8 = vmul.f32 %v859_v2, %v1783_v32 }
 0x268   : > { %v1067_v10 = vmul.f32 %v1066_v54, %v1830_v63  ;;  %v1056_v19 = vmul.f32 %v1055_v61, %v1830_v63  ;;  %v938_v59 = vmul.f32 %v937_v4, %v1812_v34  ;;  %v884_v49 = vand.u32 2147483648, %v872_v53 }
 0x269   : > { %v1095_v56 = vadd.f32 1.0, %v1268_v48  ;;  %v951_v33 = vmul.f32 %v950_v58, %v1812_v34  ;;  %v861_v11 = vadd.f32 1.1283791, %v860_v8  ;;  %v882_v14 = vand.u32 2147483647, %v872_v53 }
 0x26a   : > { %v1068_v0 = vadd.f32 0.112945676, %v1067_v10  ;;  %v1057_v24 = vadd.f32 0.05243302, %v1056_v19  ;;  %v939_v3 = vadd.f32 0.18741608, %v938_v59  ;;  %vm878_vm2 = vweird.f32 %v872_v53 }
 0x26b   : > { %v1103_v5 = vmul.f32 %v1095_v56, %v759_v55  ;;  %v952_v7 = vadd.f32 1.0, %v951_v33  ;;  %v885_v23 = vor.u32 1.1754944e-38, %v884_v49  ;;  %v862_v13 = vmul.f32 %v861_v11, %v1769_v28 }
 0x26c   : > { %v1069_v38 = vmul.f32 %v1068_v0, %v1830_v63  ;;  %v1058_v32 = vmul.f32 %v1057_v24, %v1830_v63  ;;  %v940_v25 = vmul.f32 %v939_v3, %v1812_v34  ;;  %vm883_vm4 = vcmp.eq.f32.partialorder %v882_v14, 8.507059e+37 }
 0x26d   : > { %1112 = vst.msk [vmem:[%s1732_s20 + $0x28] sm:$0xff] %vm1106_vm13, %v1103_v5  ;;  %v1342_v62 = vpop.eup %1341  ;;  %1343 = vrcp.f32 %v952_v7  ;;  %v964_v39 = vand.u32 2147483648, %v952_v7  ;;  %v962_v44 = vand.u32 2147483647, %v952_v7  ;;  %vm958_vm6 = vweird.f32 %v952_v7 }
 0x26e   : > { %v874_v51 = vmul.f32 %v1342_v62, %v872_v53  ;;  %v1070_v6 = vadd.f32 0.4994258, %v1069_v38  ;;  %vm879_vm1 = vweird.f32 %v1342_v62  ;;  %v1059_v45 = vadd.f32 0.18741608, %v1058_v32 }
 0x26f   : > { %vm880_vm3 = vmor %vm878_vm2, %vm879_vm1  ;;  %v941_v37 = vadd.f32 1.1283791, %v940_v25  ;;  %v756_v46 = vmul.f32 0.5, %v1757_v17  ;;  %v965_v1 = vor.u32 1.1754944e-38, %v964_v39  ;;  %vm963_vm8 = vcmp.eq.f32.partialorder %v962_v44, 8.507059e+37 }
 0x270   : > { %v875_v9 = vsub.f32 1.0, %v874_v51  ;;  %v1071_v15 = vmul.f32 %v1070_v6, %v1830_v63  ;;  %v1060_v47 = vmul.f32 %v1059_v45, %v1830_v63  ;;  %v758_v63 = vmul.f32 0.5, %v1789_v30 }
 0x271   : > { %v942_v31 = vmul.f32 %v941_v37, %v1798_v26  ;;  %v761_v19 = vmul.f32 0.5, %v1806_v42 }
 0x272   : > { %v876_v60 = vmul.f32 %v1342_v62, %v875_v9  ;;  %v1072_v21 = vadd.f32 1.0, %v1071_v15  ;;  %v1061_v54 = vadd.f32 1.1283791, %v1060_v47 }
 0x273   : > { %v1344_v18 = vpop.eup %1343 }
 0x274   : > { %v877_v20 = vadd.f32 %v1342_v62, %v876_v60  ;;  %v954_v22 = vmul.f32 %v1344_v18, %v952_v7  ;;  %1345 = vrcp.f32 %v1072_v21  ;;  %vm959_vm5 = vweird.f32 %v1344_v18 }
 0x275   : > { %vm960_vm7 = vmor %vm958_vm6, %vm959_vm5  ;;  %v1084_v55 = vand.u32 2147483648, %v1072_v21  ;;  %v1082_v58 = vand.u32 2147483647, %v1072_v21  ;;  %vm1078_vm10 = vweird.f32 %v1072_v21  ;;  %v1062_v10 = vmul.f32 %v1061_v54, %v1815_v43 }
 0x276   : > { %v881_v27 = vsel %vm880_vm3, %v1342_v62, %v877_v20  ;;  %v955_v35 = vsub.f32 1.0, %v954_v22 }
 0x277   : > { %v886_v29 = vsel %vm883_vm4, %v885_v23, %v881_v27  ;;  %v1085_v2 = vor.u32 1.1754944e-38, %v1084_v55  ;;  %vm1083_vm11 = vcmp.eq.f32.partialorder %v1082_v58, 8.507059e+37 }
 0x278   : > { %v887_v41 = vmul.f32 %v886_v29, %v862_v13  ;;  %v956_v36 = vmul.f32 %v1344_v18, %v955_v35 }
 0x27a   : > { %v1265_v57 = vclamps-f32 %v887_v41, 1.0  ;;  %v957_v40 = vadd.f32 %v1344_v18, %v956_v36  ;;  %v1346_v34 = vpop.eup %1345 }
 0x27b   : > { %v1074_v52 = vmul.f32 %v1346_v34, %v1072_v21  ;;  %vm1079_vm9 = vweird.f32 %v1346_v34 }
 0x27c   : > { %v1092_v28 = vadd.f32 1.0, %v1265_v57  ;;  %v961_v50 = vsel %vm960_vm7, %v1344_v18, %v957_v40  ;;  %vm1080_vm0 = vmor %vm1078_vm10, %vm1079_vm9 }
 0x27d   : > { %v966_v16 = vsel %vm963_vm8, %v965_v1, %v961_v50  ;;  %v1075_v48 = vsub.f32 1.0, %v1074_v52 }
 0x27e   : > { %v1100_v53 = vmul.f32 %v1092_v28, %v756_v46  ;;  %v967_v12 = vmul.f32 %v966_v16, %v942_v31 }
 0x27f   : > { %v1076_v56 = vmul.f32 %v1346_v34, %v1075_v48 }
 0x280   : > { %1109 = vst.msk [vmem:[%s1732_s20 + $0x10] sm:$0xff] %vm1106_vm13, %v1100_v53  ;;  %v1267_v17 = vclamps-f32 %v967_v12, 1.0 }
 0x281   : > { %v1077_v26 = vadd.f32 %v1346_v34, %v1076_v56 }
 0x282   : > { %v1094_v61 = vadd.f32 1.0, %v1267_v17 }
 0x283   : > { %v1081_v5 = vsel %vm1080_vm0, %v1346_v34, %v1077_v26 }
 0x284   : > { %v1102_v4 = vmul.f32 %v1094_v61, %v758_v63  ;;  %v1086_v33 = vsel %vm1083_vm11, %v1085_v2, %v1081_v5 }
 0x285   : > { %v1087_v0 = vmul.f32 %v1086_v33, %v1062_v10 }
 0x286   : > { %1111 = vst.msk [vmem:[%s1732_s20 + $0x20] sm:$0xff] %vm1106_vm13, %v1102_v4 }
 0x287   : > { %v1270_v7 = vclamps-f32 %v1087_v0, 1.0 }
 0x289   : > { %v1097_v62 = vadd.f32 1.0, %v1270_v7 }
 0x28b   : > { %v1105_v30 = vmul.f32 %v1097_v62, %v761_v19 }
 0x28d   : > { %1114 = vst.msk [vmem:[%s1732_s20 + $0x38] sm:$0xff] %vm1106_vm13, %v1105_v30 }
 0x28e PF: > { %s17_s23 = sadd.s32 1, %s1369_s23   ;;  %s1892_s21 = smov %s1365_s22 }
 0x28f   : > { %p14_p5 = scmp.ge.s32.totalorder %s17_s23, 4   ;;  %s1893_s22 = smov %s1895_s24 }
 0x291   :  { %16 = sbr.rel (!%p14_p5) target bundleno = 2 (0x2), region = 82 }

// kernel: post_pos_embed.11
= control target key start
LH: loop header
LB: loop body
LE: loop exit
PB: predicated region body
PF: predicated region fallthrough
CT: control target
= control target key end

     0   :  { %s810_s12 = smov 0   ;;  %s1193_s0 = inlined_call_operand.vmem [shape: f32[2,10,10,2], index: 0, kind: input, shape index: {}]   ;;  %s1194_s1 = inlined_call_operand.vmem [shape: f32[3,3,2], index: 1, kind: input, shape index: {}]   ;;  %s1195_s2 = inlined_call_operand.vmem [shape: f32[1,2], index: 2, kind: input, shape index: {}]   ;;  %s1196_s3 = inlined_call_operand.vmem [shape: f32[2,8,8,2], index: 3, kind: output, shape index: {}]  }
   0x1 LB: > { %s761_s13 = sadd.s32 4294967295, %s788_s12   ;;  %p765_p0 = scmp.ge.s32.totalorder %s788_s12, 1  ;;  %s788_s12 = sphi %s810_s12, %s13_s12  }
   0x2   : > { %p137_p1 = scmp.lt.s32.totalorder %s788_s12, 3 }
   0x4   : > { %p138_p2 = pnand %p765_p0, %p137_p1 }
   0x5   : > { %p161_p3 = scmp.lt.s32.totalorder (!%p138_p2), %s761_s13, 1 }
   0x6   : > { %141 = sbr.rel (%p138_p2) target bundleno = 112 (0x70), region = 32 }
   0xb   : > { %v191_v0 = vld [vmem:[%s1194_s1] sm:$0x7]  ;;  %s1198_s13 = smov (!%p161_p3, %s761_s13), 1  ;;  %v192_v1 = vld [vmem:[%s1194_s1 + $0x4] sm:$0x7]  ;;  %vm244_vm0 = vcmask 1046528  }
   0xc   : > { %s772_s18 = smul.u32 160, %s1198_s13  ;;  %v193_v2 = vld [vmem:[%s1194_s1 + $0x8] sm:$0x7]  ;;  %v830_v3 = vperm.slane %v191_v0, 0  ;;  %v832_v4 = vperm.slane %v191_v0, 1  ;;  %v834_v5 = vperm.slane %v191_v0, 2 }
   0xd   : > { %v836_v6 = vperm.slane %v192_v1, 0  ;;  %v838_v7 = vperm.slane %v192_v1, 1  ;;  %vm318_vm1 = vcmask 1045504   ;;  %v845_v8 = vperm.slane %v192_v1, 2  ;;  %s771_s24 = sshll.u32 %s1198_s13, 6 }
   0xe   : > { %s843_s23 = scalar_lea.vmem %s1193_s0, %s772_s18  ;;  %v849_v11 = vperm.slane %v193_v2, 0  ;;  %v851_v12 = vperm.slane %v193_v2, 1  ;;  %v853_v13 = vperm.slane %v193_v2, 2  ;;  %vm697_vm2 = vcmask 15360   ;;  %s940_s29 = scalar_lea.vmem %s1196_s3, %s771_s24 }
   0xf   : > { %v171_v9 = vld [vmem:[%s843_s23] sm:$0xff]  ;;  %v172_v10 = vld [vmem:[%s843_s23 + $0x8] sm:$0x3]  ;;  %v173_v14 = vld [vmem:[%s843_s23 + $0x10] sm:$0xff] }
  0x10   : > { %v174_v15 = vld [vmem:[%s843_s23 + $0x18] sm:$0x3]  ;;  %v195_v16 = vmul.f32 %v830_v3, %v171_v9  ;;  %v212_v17 = vmul.f32 %v832_v4, %v171_v9  ;;  %v213_v18 = vmul.f32 %v832_v4, %v172_v10  ;;  %v286_v19 = vmul.f32 %v834_v5, %v171_v9  ;;  %v867_v28 = vld [vmem:[%s843_s23 + $0x20] sm:$0xff]  ;;  %v876_v37 = vld [vmem:[%s843_s23 + $0x28] sm:$0x3] }
  0x11   : > { %v287_v20 = vmul.f32 %v834_v5, %v172_v10  ;;  %v360_v21 = vmul.f32 %v836_v6, %v173_v14  ;;  %v377_v22 = vmul.f32 %v838_v7, %v173_v14  ;;  %v378_v23 = vmul.f32 %v838_v7, %v174_v15 }
  0x12   : > { %v245_v24 = vrot.slane %v212_v17, 1  ;;  %v246_v25 = vrot.slane %v213_v18, 1  ;;  %v319_v26 = vrot.slane %v286_v19, 2  ;;  %v450_v27 = vmul.f32 %v845_v8, %v173_v14 }
  0x13   : > { %v320_v29 = vrot.slane %v287_v20, 2  ;;  %v409_v30 = vrot.slane %v377_v22, 1  ;;  %v410_v31 = vrot.slane %v378_v23, 1  ;;  %v451_v32 = vmul.f32 %v845_v8, %v174_v15  ;;  %v910_v20 = vld [vmem:[%s843_s23 + $0x38] sm:$0x3] }
  0x14   : > { %v247_v33 = vsel %vm244_vm0, %v245_v24, %v246_v25  ;;  %v482_v34 = vrot.slane %v450_v27, 2  ;;  %v523_v35 = vmul.f32 %v849_v11, %v867_v28  ;;  %v540_v36 = vmul.f32 %v851_v12, %v867_v28 }
  0x15   : > { %v277_v38 = vadd.f32 %v247_v33, %v195_v16  ;;  %v321_v39 = vsel %vm318_vm1, %v319_v26, %v320_v29  ;;  %v411_v40 = vsel %vm244_vm0, %v409_v30, %v410_v31  ;;  %v483_v41 = vrot.slane %v451_v32, 2  ;;  %v906_v16 = vld [vmem:[%s843_s23 + $0x30] sm:$0xff] }
  0x16   : > { %v541_v42 = vmul.f32 %v851_v12, %v876_v37  ;;  %v572_v43 = vrot.slane %v540_v36, 1  ;;  %v613_v44 = vmul.f32 %v853_v13, %v867_v28  ;;  %v614_v45 = vmul.f32 %v853_v13, %v876_v37 }
  0x17   : > { %v351_v46 = vadd.f32 %v321_v39, %v277_v38  ;;  %v484_v47 = vsel %vm318_vm1, %v482_v34, %v483_v41  ;;  %v196_v48 = vmul.f32 %v830_v3, %v173_v14  ;;  %v214_v49 = vmul.f32 %v832_v4, %v173_v14 }
  0x18   : > { %v573_v50 = vrot.slane %v541_v42, 1  ;;  %v645_v51 = vrot.slane %v613_v44, 2  ;;  %v646_v52 = vrot.slane %v614_v45, 2  ;;  %v215_v53 = vmul.f32 %v832_v4, %v174_v15 }
  0x19   : > { %v368_v54 = vadd.f32 %v360_v21, %v351_v46  ;;  %v248_v55 = vrot.slane %v214_v49, 1  ;;  %v288_v56 = vmul.f32 %v834_v5, %v173_v14  ;;  %v289_v57 = vmul.f32 %v834_v5, %v174_v15 }
  0x1a   : > { %v574_v58 = vsel %vm244_vm0, %v572_v43, %v573_v50  ;;  %v647_v59 = vsel %vm318_vm1, %v645_v51, %v646_v52  ;;  %v249_v60 = vrot.slane %v215_v53, 1  ;;  %v361_v61 = vmul.f32 %v836_v6, %v867_v28 }
  0x1b   : > { %v441_v62 = vadd.f32 %v411_v40, %v368_v54  ;;  %v322_v63 = vrot.slane %v288_v56, 2  ;;  %v323_v0 = vrot.slane %v289_v57, 2  ;;  %v379_v1 = vmul.f32 %v838_v7, %v867_v28 }
  0x1c   : > { %v250_v2 = vsel %vm244_vm0, %v248_v55, %v249_v60  ;;  %v380_v9 = vmul.f32 %v838_v7, %v876_v37  ;;  %v452_v10 = vmul.f32 %v845_v8, %v867_v28  ;;  %v453_v14 = vmul.f32 %v845_v8, %v876_v37 }
  0x1d   : > { %v514_v15 = vadd.f32 %v484_v47, %v441_v62  ;;  %v278_v17 = vadd.f32 %v250_v2, %v196_v48  ;;  %v324_v18 = vsel %vm318_vm1, %v322_v63, %v323_v0  ;;  %v412_v19 = vrot.slane %v379_v1, 1  ;;  %v962_v62 = vld [vmem:[%s843_s23 + $0x40] sm:$0xff] }
  0x1e   : > { %v413_v21 = vrot.slane %v380_v9, 1  ;;  %v485_v22 = vrot.slane %v452_v10, 2  ;;  %v486_v23 = vrot.slane %v453_v14, 2  ;;  %v524_v24 = vmul.f32 %v849_v11, %v906_v16  ;;  %v966_v10 = vld [vmem:[%s843_s23 + $0x48] sm:$0x3] }
  0x1f   : > { %v531_v25 = vadd.f32 %v523_v35, %v514_v15  ;;  %v352_v26 = vadd.f32 %v324_v18, %v278_v17  ;;  %v542_v27 = vmul.f32 %v851_v12, %v906_v16  ;;  %v543_v29 = vmul.f32 %v851_v12, %v910_v20  ;;  %v928_v35 = vld [vmem:[%s1195_s2] ss:$0 sm:$0xff] }
  0x20   : > { %v414_v30 = vsel %vm244_vm0, %v412_v19, %v413_v21  ;;  %v487_v31 = vsel %vm318_vm1, %v485_v22, %v486_v23  ;;  %v615_v32 = vmul.f32 %v853_v13, %v906_v16  ;;  %v616_v33 = vmul.f32 %v853_v13, %v910_v20 }
  0x21   : > { %v604_v34 = vadd.f32 %v574_v58, %v531_v25  ;;  %v369_v36 = vadd.f32 %v361_v61, %v352_v26  ;;  %v575_v38 = vrot.slane %v542_v27, 1  ;;  %v576_v39 = vrot.slane %v543_v29, 1 }
  0x22   : > { %v648_v40 = vrot.slane %v615_v32, 2  ;;  %v649_v41 = vrot.slane %v616_v33, 2  ;;  %v197_v42 = vmul.f32 %v830_v3, %v867_v28  ;;  %v216_v43 = vmul.f32 %v832_v4, %v867_v28 }
  0x23   : > { %v677_v44 = vadd.f32 %v647_v59, %v604_v34  ;;  %v442_v45 = vadd.f32 %v414_v30, %v369_v36  ;;  %v577_v46 = vsel %vm244_vm0, %v575_v38, %v576_v39  ;;  %v217_v47 = vmul.f32 %v832_v4, %v876_v37 }
  0x24   : > { %v650_v48 = vsel %vm318_vm1, %v648_v40, %v649_v41  ;;  %v251_v49 = vrot.slane %v216_v43, 1  ;;  %v290_v50 = vmul.f32 %v834_v5, %v867_v28  ;;  %v291_v51 = vmul.f32 %v834_v5, %v876_v37 }
  0x25   : > { %v689_v52 = vadd.f32 %v928_v35, %v677_v44  ;;  %v515_v53 = vadd.f32 %v487_v31, %v442_v45  ;;  %v252_v54 = vrot.slane %v217_v47, 1  ;;  %v362_v55 = vmul.f32 %v836_v6, %v906_v16 }
  0x26   : > { %v325_v56 = vrot.slane %v290_v50, 2  ;;  %v326_v57 = vrot.slane %v291_v51, 2  ;;  %v381_v58 = vmul.f32 %v838_v7, %v906_v16  ;;  %v382_v59 = vmul.f32 %v838_v7, %v910_v20  ;;  %v1000_v50 = vld [vmem:[%s843_s23 + $0x50] sm:$0xff] }
  0x27   : > { %698 = vst.msk [vmem:[%s940_s29] sm:$0xff] %vm697_vm2, %v689_v52  ;;  %v532_v28 = vadd.f32 %v524_v24, %v515_v53  ;;  %v253_v37 = vsel %vm244_vm0, %v251_v49, %v252_v54  ;;  %v454_v60 = vmul.f32 %v845_v8, %v906_v16  ;;  %v455_v61 = vmul.f32 %v845_v8, %v910_v20 }
  0x28   : > { %v279_v63 = vadd.f32 %v253_v37, %v197_v42  ;;  %v327_v0 = vsel %vm318_vm1, %v325_v56, %v326_v57  ;;  %v415_v1 = vrot.slane %v381_v58, 1  ;;  %v416_v2 = vrot.slane %v382_v59, 1  ;;  %v1012_v57 = vld [vmem:[%s843_s23 + $0x58] sm:$0x3] }
  0x29   : > { %v605_v9 = vadd.f32 %v577_v46, %v532_v28  ;;  %v488_v14 = vrot.slane %v454_v60, 2  ;;  %v489_v15 = vrot.slane %v455_v61, 2  ;;  %v525_v17 = vmul.f32 %v849_v11, %v962_v62 }
  0x2a   : > { %v353_v18 = vadd.f32 %v327_v0, %v279_v63  ;;  %v417_v19 = vsel %vm244_vm0, %v415_v1, %v416_v2  ;;  %v544_v21 = vmul.f32 %v851_v12, %v962_v62  ;;  %v545_v22 = vmul.f32 %v851_v12, %v966_v10 }
  0x2b   : > { %v678_v23 = vadd.f32 %v650_v48, %v605_v9  ;;  %v490_v24 = vsel %vm318_vm1, %v488_v14, %v489_v15  ;;  %v617_v25 = vmul.f32 %v853_v13, %v962_v62  ;;  %v618_v26 = vmul.f32 %v853_v13, %v966_v10 }
  0x2c   : > { %v370_v27 = vadd.f32 %v362_v55, %v353_v18  ;;  %v578_v29 = vrot.slane %v544_v21, 1  ;;  %v579_v30 = vrot.slane %v545_v22, 1  ;;  %v198_v31 = vmul.f32 %v830_v3, %v906_v16 }
  0x2d   : > { %v690_v32 = vadd.f32 %v928_v35, %v678_v23  ;;  %v651_v33 = vrot.slane %v617_v25, 2  ;;  %v652_v34 = vrot.slane %v618_v26, 2  ;;  %v218_v36 = vmul.f32 %v832_v4, %v906_v16 }
  0x2e   : > { %v443_v38 = vadd.f32 %v417_v19, %v370_v27  ;;  %v580_v39 = vsel %vm244_vm0, %v578_v29, %v579_v30  ;;  %v219_v40 = vmul.f32 %v832_v4, %v910_v20  ;;  %v292_v41 = vmul.f32 %v834_v5, %v906_v16 }
  0x2f   : > { %699 = vst.msk [vmem:[%s940_s29 + $0x8] sm:$0xff] %vm697_vm2, %v690_v32  ;;  %v653_v42 = vsel %vm318_vm1, %v651_v33, %v652_v34  ;;  %v254_v43 = vrot.slane %v218_v36, 1  ;;  %v293_v44 = vmul.f32 %v834_v5, %v910_v20  ;;  %v363_v45 = vmul.f32 %v836_v6, %v962_v62 }
  0x30   : > { %v516_v46 = vadd.f32 %v490_v24, %v443_v38  ;;  %v255_v47 = vrot.slane %v219_v40, 1  ;;  %v328_v48 = vrot.slane %v292_v41, 2  ;;  %v383_v49 = vmul.f32 %v838_v7, %v962_v62 }
  0x31   : > { %v329_v16 = vrot.slane %v293_v44, 2  ;;  %v384_v51 = vmul.f32 %v838_v7, %v966_v10  ;;  %v456_v52 = vmul.f32 %v845_v8, %v962_v62  ;;  %v457_v20 = vmul.f32 %v845_v8, %v966_v10 }
  0x32   : > { %v533_v53 = vadd.f32 %v525_v17, %v516_v46  ;;  %v256_v54 = vsel %vm244_vm0, %v254_v43, %v255_v47  ;;  %v418_v55 = vrot.slane %v383_v49, 1  ;;  %v526_v56 = vmul.f32 %v849_v11, %v1000_v50  ;;  %v1052_v47 = vld [vmem:[%s843_s23 + $0x60] sm:$0xff] }
  0x33   : > { %v280_v58 = vadd.f32 %v256_v54, %v198_v31  ;;  %v330_v59 = vsel %vm318_vm1, %v328_v48, %v329_v16  ;;  %v419_v28 = vrot.slane %v384_v51, 1  ;;  %v491_v37 = vrot.slane %v456_v52, 2  ;;  %v1056_v51 = vld [vmem:[%s843_s23 + $0x68] sm:$0x3] }
  0x34   : > { %v606_v60 = vadd.f32 %v580_v39, %v533_v53  ;;  %v492_v61 = vrot.slane %v457_v20, 2  ;;  %v546_v63 = vmul.f32 %v851_v12, %v1000_v50  ;;  %v547_v0 = vmul.f32 %v851_v12, %v1012_v57 }
  0x35   : > { %v354_v1 = vadd.f32 %v330_v59, %v280_v58  ;;  %v420_v2 = vsel %vm244_vm0, %v418_v55, %v419_v28  ;;  %v619_v9 = vmul.f32 %v853_v13, %v1000_v50  ;;  %v620_v14 = vmul.f32 %v853_v13, %v1012_v57 }
  0x36   : > { %v679_v15 = vadd.f32 %v653_v42, %v606_v60  ;;  %v493_v17 = vsel %vm318_vm1, %v491_v37, %v492_v61  ;;  %v581_v18 = vrot.slane %v546_v63, 1  ;;  %v582_v19 = vrot.slane %v547_v0, 1 }
  0x37   : > { %v371_v21 = vadd.f32 %v363_v45, %v354_v1  ;;  %v654_v22 = vrot.slane %v619_v9, 2  ;;  %v655_v23 = vrot.slane %v620_v14, 2  ;;  %v199_v24 = vmul.f32 %v830_v3, %v962_v62 }
  0x38   : > { %v691_v25 = vadd.f32 %v928_v35, %v679_v15  ;;  %v583_v26 = vsel %vm244_vm0, %v581_v18, %v582_v19  ;;  %v220_v27 = vmul.f32 %v832_v4, %v962_v62  ;;  %v221_v29 = vmul.f32 %v832_v4, %v966_v10 }
  0x39   : > { %v444_v30 = vadd.f32 %v420_v2, %v371_v21  ;;  %v656_v31 = vsel %vm318_vm1, %v654_v22, %v655_v23  ;;  %v294_v32 = vmul.f32 %v834_v5, %v962_v62  ;;  %v295_v33 = vmul.f32 %v834_v5, %v966_v10 }
  0x3a   : > { %700 = vst.msk [vmem:[%s940_s29 + $0x10] sm:$0xff] %vm697_vm2, %v691_v25  ;;  %v257_v34 = vrot.slane %v220_v27, 1  ;;  %v258_v36 = vrot.slane %v221_v29, 1  ;;  %v364_v38 = vmul.f32 %v836_v6, %v1000_v50  ;;  %v385_v39 = vmul.f32 %v838_v7, %v1000_v50 }
  0x3b   : > { %v517_v40 = vadd.f32 %v493_v17, %v444_v30  ;;  %v331_v41 = vrot.slane %v294_v32, 2  ;;  %v332_v42 = vrot.slane %v295_v33, 2  ;;  %v386_v62 = vmul.f32 %v838_v7, %v1012_v57 }
  0x3c   : > { %v259_v43 = vsel %vm244_vm0, %v257_v34, %v258_v36  ;;  %v421_v10 = vrot.slane %v385_v39, 1  ;;  %v458_v44 = vmul.f32 %v845_v8, %v1000_v50  ;;  %v459_v45 = vmul.f32 %v845_v8, %v1012_v57  ;;  %v1095_v36 = vld [vmem:[%s843_s23 + $0x70] sm:$0xff] }
  0x3d   : > { %v534_v46 = vadd.f32 %v526_v56, %v517_v40  ;;  %v281_v48 = vadd.f32 %v259_v43, %v199_v24  ;;  %v333_v49 = vsel %vm318_vm1, %v331_v41, %v332_v42  ;;  %v422_v16 = vrot.slane %v386_v62, 1 }
  0x3e   : > { %v494_v52 = vrot.slane %v458_v44, 2  ;;  %v495_v20 = vrot.slane %v459_v45, 2  ;;  %v527_v53 = vmul.f32 %v849_v11, %v1052_v47  ;;  %v548_v54 = vmul.f32 %v851_v12, %v1052_v47  ;;  %v1103_v44 = vld [vmem:[%s843_s23 + $0x78] sm:$0x3] }
  0x3f   : > { %v607_v55 = vadd.f32 %v583_v26, %v534_v46  ;;  %v355_v58 = vadd.f32 %v333_v49, %v281_v48  ;;  %v423_v56 = vsel %vm244_vm0, %v421_v10, %v422_v16  ;;  %v549_v59 = vmul.f32 %v851_v12, %v1056_v51 }
  0x40   : > { %v496_v28 = vsel %vm318_vm1, %v494_v52, %v495_v20  ;;  %v584_v37 = vrot.slane %v548_v54, 1  ;;  %v621_v60 = vmul.f32 %v853_v13, %v1052_v47  ;;  %v622_v61 = vmul.f32 %v853_v13, %v1056_v51 }
  0x41   : > { %v680_v63 = vadd.f32 %v656_v31, %v607_v55  ;;  %v372_v0 = vadd.f32 %v364_v38, %v355_v58  ;;  %v585_v1 = vrot.slane %v549_v59, 1  ;;  %v200_v2 = vmul.f32 %v830_v3, %v1000_v50 }
  0x42   : > { %v657_v9 = vrot.slane %v621_v60, 2  ;;  %v658_v14 = vrot.slane %v622_v61, 2  ;;  %v222_v15 = vmul.f32 %v832_v4, %v1000_v50  ;;  %v223_v17 = vmul.f32 %v832_v4, %v1012_v57 }
  0x43   : > { %v692_v18 = vadd.f32 %v928_v35, %v680_v63  ;;  %v445_v19 = vadd.f32 %v423_v56, %v372_v0  ;;  %v586_v21 = vsel %vm244_vm0, %v584_v37, %v585_v1  ;;  %v296_v22 = vmul.f32 %v834_v5, %v1000_v50 }
  0x44   : > { %v659_v23 = vsel %vm318_vm1, %v657_v9, %v658_v14  ;;  %v260_v24 = vrot.slane %v222_v15, 1  ;;  %v261_v25 = vrot.slane %v223_v17, 1  ;;  %v297_v26 = vmul.f32 %v834_v5, %v1012_v57 }
  0x45   : > { %701 = vst.msk [vmem:[%s940_s29 + $0x18] sm:$0xff] %vm697_vm2, %v692_v18  ;;  %v518_v27 = vadd.f32 %v496_v28, %v445_v19  ;;  %v334_v29 = vrot.slane %v296_v22, 2  ;;  %v365_v30 = vmul.f32 %v836_v6, %v1052_v47  ;;  %v387_v31 = vmul.f32 %v838_v7, %v1052_v47 }
  0x46   : > { %v262_v50 = vsel %vm244_vm0, %v260_v24, %v261_v25  ;;  %v335_v32 = vrot.slane %v297_v26, 2  ;;  %v388_v33 = vmul.f32 %v838_v7, %v1056_v51  ;;  %v460_v57 = vmul.f32 %v845_v8, %v1052_v47 }
  0x47   : > { %v535_v34 = vadd.f32 %v527_v53, %v518_v27  ;;  %v282_v38 = vadd.f32 %v262_v50, %v200_v2  ;;  %v424_v39 = vrot.slane %v387_v31, 1  ;;  %v461_v40 = vmul.f32 %v845_v8, %v1056_v51 }
  0x48   : > { %v336_v41 = vsel %vm318_vm1, %v334_v29, %v335_v32  ;;  %v425_v42 = vrot.slane %v388_v33, 1  ;;  %v497_v62 = vrot.slane %v460_v57, 2  ;;  %v528_v43 = vmul.f32 %v849_v11, %v1095_v36  ;;  %v187_v32 = vld [vmem:[%s843_s23 + $0x80] sm:$0xff]  ;;  %v188_v33 = vld [vmem:[%s843_s23 + $0x88] sm:$0x3] }
  0x49   : > { %v608_v10 = vadd.f32 %v586_v21, %v535_v34  ;;  %v356_v45 = vadd.f32 %v336_v41, %v282_v38  ;;  %v498_v46 = vrot.slane %v461_v40, 2  ;;  %v550_v48 = vmul.f32 %v851_v12, %v1095_v36 }
  0x4a   : > { %v426_v49 = vsel %vm244_vm0, %v424_v39, %v425_v42  ;;  %v551_v16 = vmul.f32 %v851_v12, %v1103_v44  ;;  %v623_v52 = vmul.f32 %v853_v13, %v1095_v36  ;;  %v624_v20 = vmul.f32 %v853_v13, %v1103_v44 }
  0x4b   : > { %v681_v53 = vadd.f32 %v659_v23, %v608_v10  ;;  %v373_v54 = vadd.f32 %v365_v30, %v356_v45  ;;  %v499_v55 = vsel %vm318_vm1, %v497_v62, %v498_v46  ;;  %v587_v58 = vrot.slane %v550_v48, 1 }
  0x4c   : > { %v588_v56 = vrot.slane %v551_v16, 1  ;;  %v660_v59 = vrot.slane %v623_v52, 2  ;;  %v661_v28 = vrot.slane %v624_v20, 2  ;;  %v201_v37 = vmul.f32 %v830_v3, %v1052_v47 }
  0x4d   : > { %v693_v60 = vadd.f32 %v928_v35, %v681_v53  ;;  %v446_v61 = vadd.f32 %v426_v49, %v373_v54  ;;  %v224_v63 = vmul.f32 %v832_v4, %v1052_v47  ;;  %v225_v0 = vmul.f32 %v832_v4, %v1056_v51 }
  0x4e   : > { %v589_v1 = vsel %vm244_vm0, %v587_v58, %v588_v56  ;;  %v662_v2 = vsel %vm318_vm1, %v660_v59, %v661_v28  ;;  %v298_v9 = vmul.f32 %v834_v5, %v1052_v47  ;;  %v299_v14 = vmul.f32 %v834_v5, %v1056_v51 }
  0x4f   : > { %702 = vst.msk [vmem:[%s940_s29 + $0x20] sm:$0xff] %vm697_vm2, %v693_v60  ;;  %v519_v15 = vadd.f32 %v499_v55, %v446_v61  ;;  %v263_v17 = vrot.slane %v224_v63, 1  ;;  %v264_v18 = vrot.slane %v225_v0, 1  ;;  %v366_v19 = vmul.f32 %v836_v6, %v1095_v36 }
  0x50   : > { %v337_v21 = vrot.slane %v298_v9, 2  ;;  %v338_v22 = vrot.slane %v299_v14, 2  ;;  %v389_v23 = vmul.f32 %v838_v7, %v1095_v36  ;;  %v390_v47 = vmul.f32 %v838_v7, %v1103_v44 }
  0x51   : > { %v536_v24 = vadd.f32 %v528_v43, %v519_v15  ;;  %v265_v51 = vsel %vm244_vm0, %v263_v17, %v264_v18  ;;  %v462_v25 = vmul.f32 %v845_v8, %v1095_v36  ;;  %v463_v26 = vmul.f32 %v845_v8, %v1103_v44 }
  0x52   : > { %v283_v27 = vadd.f32 %v265_v51, %v201_v37  ;;  %v339_v29 = vsel %vm318_vm1, %v337_v21, %v338_v22  ;;  %v427_v30 = vrot.slane %v389_v23, 1  ;;  %v428_v31 = vrot.slane %v390_v47, 1 }
  0x53   : > { %v609_v50 = vadd.f32 %v589_v1, %v536_v24  ;;  %v500_v57 = vrot.slane %v462_v25, 2  ;;  %v501_v34 = vrot.slane %v463_v26, 2  ;;  %v529_v39 = vmul.f32 %v849_v11, %v187_v32  ;;  %v189_v1 = vld [vmem:[%s843_s23 + $0x90] sm:$0xff] }
  0x54   : > { %v357_v38 = vadd.f32 %v339_v29, %v283_v27  ;;  %v552_v40 = vmul.f32 %v851_v12, %v187_v32  ;;  %v553_v41 = vmul.f32 %v851_v12, %v188_v33  ;;  %v429_v62 = vsel %vm244_vm0, %v427_v30, %v428_v31 }
  0x55   : > { %v682_v42 = vadd.f32 %v662_v2, %v609_v50  ;;  %v625_v43 = vmul.f32 %v853_v13, %v187_v32  ;;  %v626_v10 = vmul.f32 %v853_v13, %v188_v33  ;;  %v502_v46 = vsel %vm318_vm1, %v500_v57, %v501_v34 }
  0x56   : > { %v374_v45 = vadd.f32 %v366_v19, %v357_v38  ;;  %v590_v48 = vrot.slane %v552_v40, 1  ;;  %v591_v49 = vrot.slane %v553_v41, 1  ;;  %v226_v53 = vmul.f32 %v832_v4, %v1095_v36 }
  0x57   : > { %v694_v16 = vadd.f32 %v928_v35, %v682_v42  ;;  %v663_v52 = vrot.slane %v625_v43, 2  ;;  %v664_v20 = vrot.slane %v626_v10, 2  ;;  %v202_v55 = vmul.f32 %v830_v3, %v1095_v36 }
  0x58   : > { %v447_v54 = vadd.f32 %v429_v62, %v374_v45  ;;  %v227_v58 = vmul.f32 %v832_v4, %v1103_v44  ;;  %v300_v56 = vmul.f32 %v834_v5, %v1095_v36  ;;  %v592_v59 = vsel %vm244_vm0, %v590_v48, %v591_v49  ;;  %v190_v4 = vld [vmem:[%s843_s23 + $0x98] sm:$0x3] }
  0x59   : > { %703 = vst.msk [vmem:[%s940_s29 + $0x28] sm:$0xff] %vm697_vm2, %v694_v16  ;;  %v665_v28 = vsel %vm318_vm1, %v663_v52, %v664_v20  ;;  %v266_v37 = vrot.slane %v226_v53, 1  ;;  %v301_v60 = vmul.f32 %v834_v5, %v1103_v44  ;;  %v391_v3 = vmul.f32 %v838_v7, %v187_v32 }
  0x5a   : > { %v520_v61 = vadd.f32 %v502_v46, %v447_v54  ;;  %v267_v63 = vrot.slane %v227_v58, 1  ;;  %v340_v0 = vrot.slane %v300_v56, 2  ;;  %v392_v36 = vmul.f32 %v838_v7, %v188_v33 }
  0x5b   : > { %v341_v2 = vrot.slane %v301_v60, 2  ;;  %v464_v9 = vmul.f32 %v845_v8, %v187_v32  ;;  %v465_v14 = vmul.f32 %v845_v8, %v188_v33  ;;  %v367_v18 = vmul.f32 %v836_v6, %v187_v32 }
  0x5c   : > { %v537_v15 = vadd.f32 %v529_v39, %v520_v61  ;;  %v268_v17 = vsel %vm244_vm0, %v266_v37, %v267_v63  ;;  %v430_v5 = vrot.slane %v391_v3, 1  ;;  %v431_v21 = vrot.slane %v392_v36, 1 }
  0x5d   : > { %v284_v44 = vadd.f32 %v268_v17, %v202_v55  ;;  %v342_v19 = vsel %vm318_vm1, %v340_v0, %v341_v2  ;;  %v503_v22 = vrot.slane %v464_v9, 2  ;;  %v504_v47 = vrot.slane %v465_v14, 2 }
  0x5e   : > { %v610_v23 = vadd.f32 %v592_v59, %v537_v15  ;;  %v554_v7 = vmul.f32 %v851_v12, %v189_v1  ;;  %v555_v24 = vmul.f32 %v851_v12, %v190_v4  ;;  %v432_v25 = vsel %vm244_vm0, %v430_v5, %v431_v21 }
  0x5f   : > { %v358_v51 = vadd.f32 %v342_v19, %v284_v44  ;;  %v627_v26 = vmul.f32 %v853_v13, %v189_v1  ;;  %v628_v6 = vmul.f32 %v853_v13, %v190_v4  ;;  %v505_v30 = vsel %vm318_vm1, %v503_v22, %v504_v47 }
  0x60   : > { %v683_v8 = vadd.f32 %v665_v28, %v610_v23  ;;  %v593_v31 = vrot.slane %v554_v7, 1  ;;  %v594_v50 = vrot.slane %v555_v24, 1  ;;  %v530_v33 = vmul.f32 %v849_v11, %v189_v1 }
  0x61   : > { %v375_v27 = vadd.f32 %v367_v18, %v358_v51  ;;  %v666_v12 = vrot.slane %v627_v26, 2  ;;  %v667_v57 = vrot.slane %v628_v6, 2 }
  0x62   : > { %v695_v29 = vadd.f32 %v928_v35, %v683_v8  ;;  %v595_v38 = vsel %vm244_vm0, %v593_v31, %v594_v50 }
  0x63   : > { %v448_v32 = vadd.f32 %v432_v25, %v375_v27  ;;  %v668_v13 = vsel %vm318_vm1, %v666_v12, %v667_v57 }
  0x64   : > { %704 = vst.msk [vmem:[%s940_s29 + $0x30] sm:$0xff] %vm697_vm2, %v695_v29 }
  0x65   : > { %v521_v34 = vadd.f32 %v505_v30, %v448_v32 }
  0x67   : > { %v538_v39 = vadd.f32 %v530_v33, %v521_v34 }
  0x69   : > { %v611_v40 = vadd.f32 %v595_v38, %v538_v39 }
  0x6b   : > { %v684_v41 = vadd.f32 %v668_v13, %v611_v40 }
  0x6d   : > { %v696_v42 = vadd.f32 %v928_v35, %v684_v41 }
  0x6f   : > { %705 = vst.msk [vmem:[%s940_s29 + $0x38] sm:$0xff] %vm697_vm2, %v696_v42 }
  0x70 PF: > { %s13_s12 = sadd.s32 1, %s788_s12  }
  0x71   : > { %p10_p4 = scmp.ge.s32.totalorder %s13_s12, 4  }
  0x73   :  { %12 = sbr.rel (!%p10_p4) target bundleno = 1 (0x1), region = 62 }

// kernel: post_pos_embed.12
= control target key start
LH: loop header
LB: loop body
LE: loop exit
PB: predicated region body
PF: predicated region fallthrough
CT: control target
= control target key end

     0   :  { %s1045_s24 = smov 0   ;;  %s1047_s25 = smov 0   ;;  %s1328_s0 = inlined_call_operand.vmem [shape: f32[2,8,8,8], index: 0, kind: input, shape index: {}]   ;;  %s1329_s1 = inlined_call_operand.vmem [shape: f32[2,8,8,2], index: 1, kind: input, shape index: {}]   ;;  %s1330_s2 = inlined_call_operand.vmem [shape: f32[8,8,2], index: 2, kind: input, shape index: {}]   ;;  %s1331_s3 = inlined_call_operand.vmem [shape: f32[8,1,2], index: 3, kind: input, shape index: {}]   ;;  %s1332_s4 = inlined_call_operand.vmem [shape: f32[1,8,2], index: 4, kind: input, shape index: {}]   ;;  %s1333_s5 = inlined_call_operand.vmem [shape: f32[1,8], index: 5, kind: input, shape index: {}]   ;;  %s1334_s6 = inlined_call_operand.vmem [shape: f32[1,8], index: 6, kind: input, shape index: {}]   ;;  %s1335_s7 = inlined_call_operand.vmem [shape: f32[2,8,8,8], index: 7, kind: output, shape index: {}]  }
   0x1   :  { %s1049_s26 = smov 0  }
   0x2 LB: > { %s29_s27 = sadd.s32 1, %s995_s25  ;;  %p909_p0 = scmp.ge.s32.totalorder %s999_s26, 1  ;;  %s999_s26 = sphi %s1049_s26, %s17_s26   ;;  %s995_s25 = sphi %s1047_s25, %s1337_s25   ;;  %s991_s24 = sphi %s1045_s24, %s1336_s24  }
   0x3   : > { %p31_p1 = scmp.ge.s32.totalorder %s29_s27, 2  ;;  %p296_p2 = scmp.lt.s32.totalorder %s999_s26, 3 }
   0x5   : > { %s1339_s27 = smov (%p31_p1, %s29_s27), 0  ;;  %p297_p3 = pnand %p909_p0, %p296_p2 }
   0x6   : > { %s1001_s9 = smov (!%p297_p3), 2   ;;  %p355_p4 = scmp.lt.s32.totalorder (!%p297_p3), %s991_s24, 1 }
   0x7   : > { %300 = sbr.rel (%p297_p3) target bundleno = 446 (0x1be), region = 48  ;;  %s1002_s29 = smov (!%p297_p3), 4  }
   0x8   : > { %s1003_s11 = smov (!%p297_p3), 6  }
   0xc   : > { %v949_v0 = vld [vmem:[%s1331_s3 + $0x2] ss:$0 sm:$0xff]  ;;  %v950_v1 = vld [vmem:[%s1331_s3] ss:$0 sm:$0xff]  ;;  %v951_v2 = vld [vmem:[%s1331_s3 + $0x4] ss:$0 sm:$0xff] }
   0xd   : > { %447 = vrot.lane.b32.xlu1 %v949_v0, %s1001_s9  ;;  %443 = vrot.lane.b32.xlu0 %v950_v1, %s1001_s9  ;;  %v952_v3 = vld [vmem:[%s1331_s3 + $0x3] ss:$0 sm:$0xff]  ;;  %v953_v4 = vld [vmem:[%s1331_s3 + $0x1] ss:$0 sm:$0xff]  ;;  %s1341_s24 = smov (!%p355_p4, %s991_s24), 1  ;;  %vm528_vm0 = vcmask 15360  }
   0xe   : > { %451 = vrot.lane.b32.xlu2 %v951_v2, %s1001_s9  ;;  %v954_v5 = vld [vmem:[%s1331_s3 + $0x5] ss:$0 sm:$0xff]  ;;  %v955_v6 = vld [vmem:[%s1331_s3 + $0x7] ss:$0 sm:$0xff]  ;;  %v956_v7 = vld [vmem:[%s1331_s3 + $0x6] ss:$0 sm:$0xff] }
   0xf   : > { %v475_v8 = vld [vmem:[%s1332_s4] sm:$0xff]  ;;  %s1090_s28 = sshll.u32 %s1341_s24, 6  ;;  %v405_v21 = vld [vmem:[%s1330_s2 + $0x10] sm:$0xff]  ;;  %vm537_vm1 = vcmask 31744   ;;  %vm546_vm2 = vcmask 48128   ;;  %vm555_vm3 = vcmask 64512  }
  0x10   : > { %s372_s10 = scalar_lea.vmem %s1329_s1, %s1090_s28  ;;  %s1102_s12 = scalar_lea.vmem %s1328_s0, %s1090_s28  ;;  %v404_v35 = vld [vmem:[%s1330_s2 + $0x8] sm:$0xff]  ;;  %v403_v37 = vld [vmem:[%s1330_s2] sm:$0xff]  ;;  %v406_v53 = vld [vmem:[%s1330_s2 + $0x18] sm:$0xff] }
  0x11   : > { %v489_v9 = vld [vmem:[%s372_s10 + $0x8] sm:$0xff]  ;;  %v488_v10 = vld [vmem:[%s372_s10] sm:$0xff]  ;;  %v490_v11 = vld [vmem:[%s372_s10 + $0x10] sm:$0xff]  ;;  %s1264_s16 = scalar_lea.vmem %s1335_s7, %s1090_s28 }
  0x12   : > { %v492_v12 = vld [vmem:[%s372_s10 + $0x20] sm:$0xff]  ;;  %v491_v13 = vld [vmem:[%s372_s10 + $0x18] sm:$0xff]  ;;  %v493_v14 = vld [vmem:[%s372_s10 + $0x28] sm:$0xff] }
  0x13   : > { %v495_v15 = vld [vmem:[%s372_s10 + $0x38] sm:$0xff]  ;;  %v494_v16 = vld [vmem:[%s372_s10 + $0x30] sm:$0xff]  ;;  %v396_v34 = vld [vmem:[%s1102_s12 + $0x8] sm:$0xff] }
  0x14   : > { %v397_v20 = vld [vmem:[%s1102_s12 + $0x10] sm:$0xff]  ;;  %v395_v36 = vld [vmem:[%s1102_s12] sm:$0xff]  ;;  %v412_v39 = vmul.f32 %v404_v35, %v396_v34  ;;  %v400_v42 = vld [vmem:[%s1102_s12 + $0x28] sm:$0xff] }
  0x15   : > { %449 = vrot.lane.b32.xlu1 %v952_v3, %s1001_s9  ;;  %445 = vrot.lane.b32.xlu0 %v953_v4, %s1001_s9  ;;  %v413_v22 = vmul.f32 %v405_v21, %v397_v20  ;;  %v408_v43 = vld [vmem:[%s1330_s2 + $0x28] sm:$0xff]  ;;  %v411_v44 = vmul.f32 %v403_v37, %v395_v36  ;;  %v398_v52 = vld [vmem:[%s1102_s12 + $0x18] sm:$0xff] }
  0x16   : > { %453 = vrot.lane.b32.xlu2 %v954_v5, %s1001_s9  ;;  %v416_v47 = vmul.f32 %v408_v43, %v400_v42  ;;  %v414_v61 = vmul.f32 %v406_v53, %v398_v52  ;;  %v399_v4 = vld [vmem:[%s1102_s12 + $0x20] sm:$0xff] }
  0x17   : > { %v407_v5 = vld [vmem:[%s1330_s2 + $0x20] sm:$0xff] }
  0x1d   : > { %457 = vrot.lane.b32.xlu1 %v955_v6, %s1001_s9  ;;  %455 = vrot.lane.b32.xlu0 %v956_v7, %s1001_s9 }
  0x1e   : > { %477 = vrot.lane.b32.xlu2 %v475_v8, %s1002_s29  ;;  %v401_v8 = vld [vmem:[%s1102_s12 + $0x30] sm:$0xff] }
  0x25   : > { %506 = vrot.lane.b32.xlu1 %v489_v9, %s1003_s11  ;;  %504 = vrot.lane.b32.xlu0 %v488_v10, %s1003_s11  ;;  %v409_v9 = vld [vmem:[%s1330_s2 + $0x30] sm:$0xff] }
  0x26   : > { %508 = vrot.lane.b32.xlu2 %v490_v11, %s1003_s11  ;;  %v415_v11 = vmul.f32 %v407_v5, %v399_v4 }
  0x2d   : > { %512 = vrot.lane.b32.xlu1 %v492_v12, %s1003_s11  ;;  %510 = vrot.lane.b32.xlu0 %v491_v13, %s1003_s11 }
  0x2e   : > { %514 = vrot.lane.b32.xlu2 %v493_v14, %s1003_s11 }
  0x35   : > { %518 = vrot.lane.b32.xlu1 %v495_v15, %s1003_s11  ;;  %516 = vrot.lane.b32.xlu0 %v494_v16, %s1003_s11  ;;  %v417_v15 = vmul.f32 %v409_v9, %v401_v8 }
  0x68   : > { %v1096_v17 = vpop.permute.xlu2 %451 }
  0x69   : > { %v471_v12 = vmul.f32 %v1096_v17, %v399_v4  ;;  %v402_v17 = vld [vmem:[%s1102_s12 + $0x38] sm:$0xff] }
  0x70   : > { %v454_v18 = vpop.permute.xlu2 %453 }
  0x71   : > { %v472_v48 = vmul.f32 %v454_v18, %v400_v42 }
  0x73   : > { %v534_v57 = vsel %vm528_vm0, %v416_v47, %v472_v48 }
  0x78   : > { %v1104_v19 = vpop.permute.xlu2 %477 }
  0x79   : > { %v482_v24 = vmul.f32 %v1104_v19, %v397_v20  ;;  %v481_v46 = vmul.f32 %v1104_v19, %v396_v34  ;;  %v480_v49 = vmul.f32 %v1104_v19, %v395_v36  ;;  %v485_v56 = vmul.f32 %v1104_v19, %v400_v42 }
  0x7a   : > { %v483_v6 = vmul.f32 %v1104_v19, %v398_v52 }
  0x7b   : > { %v543_v3 = vsel %vm537_vm1, %v534_v57, %v485_v56 }
  0x7f   : > { %v448_v23 = vpop.permute.xlu1 %447  ;;  %v444_v26 = vpop.permute.xlu0 %443 }
  0x80   : > { %v469_v25 = vmul.f32 %v448_v23, %v397_v20  ;;  %v509_v27 = vpop.permute.xlu2 %508  ;;  %v467_v45 = vmul.f32 %v444_v26, %v395_v36  ;;  %v484_v23 = vmul.f32 %v1104_v19, %v399_v4  ;;  %v486_v26 = vmul.f32 %v1104_v19, %v401_v8 }
  0x81   : > { %v487_v36 = vmul.f32 %v1104_v19, %v402_v17 }
  0x82   : > { %v531_v28 = vsel %vm528_vm0, %v413_v22, %v469_v25  ;;  %v529_v51 = vsel %vm528_vm0, %v411_v44, %v467_v45  ;;  %v410_v25 = vld [vmem:[%s1330_s2 + $0x38] sm:$0xff]  ;;  %v1004_v44 = vmov 8.0  }
  0x83   : > { %v540_v29 = vsel %vm537_vm1, %v531_v28, %v482_v24  ;;  %v538_v60 = vsel %vm537_vm1, %v529_v51, %v480_v49  ;;  %v533_v24 = vsel %vm528_vm0, %v415_v11, %v471_v12  ;;  %959 = vrcp.f32 %v1004_v44 }
  0x84   : > { %v1114_v30 = vsel %vm546_vm2, %v540_v29, %v509_v27  ;;  %v542_v28 = vsel %vm537_vm1, %v533_v24, %v484_v23  ;;  %v418_v29 = vmul.f32 %v410_v25, %v402_v17 }
  0x85   : > { %v562_v31 = vsel %vm555_vm3, %v1114_v30, 0.0 }
  0x86   : > { %563 = vadd.xlane.f32.xlu1 %v562_v31 }
  0x87   : > { %v450_v32 = vpop.permute.xlu1 %449  ;;  %v446_v33 = vpop.permute.xlu0 %445 }
  0x88   : > { %v468_v40 = vmul.f32 %v446_v33, %v396_v34  ;;  %v470_v62 = vmul.f32 %v450_v32, %v398_v52  ;;  %v515_v2 = vpop.permute.xlu2 %514 }
  0x89   : > { %v1164_v10 = vsel %vm546_vm2, %v543_v3, %v515_v2  ;;  %v960_v45 = vpop.eup %959 }
  0x8a   : > { %v530_v50 = vsel %vm528_vm0, %v412_v39, %v468_v40  ;;  %v532_v7 = vsel %vm528_vm0, %v414_v61, %v470_v62  ;;  %v571_v18 = vsel %vm555_vm3, %v1164_v10, 0.0  ;;  %v581_v19 = vmul.f32 8.0, %v960_v45 }
  0x8b   : > { %v539_v55 = vsel %vm537_vm1, %v530_v50, %v481_v46  ;;  %v541_v14 = vsel %vm537_vm1, %v532_v7, %v483_v6  ;;  %vm585_vm4 = vweird.f32 %v960_v45 }
  0x8c   : > { %v582_v46 = vsub.f32 1.0, %v581_v19 }
  0x8e   : > { %v583_v47 = vmul.f32 %v960_v45, %v582_v46 }
  0x8f   : > { %v458_v38 = vpop.permute.xlu1 %457  ;;  %v456_v41 = vpop.permute.xlu0 %455 }
  0x90   : > { %v473_v16 = vmul.f32 %v456_v41, %v401_v8  ;;  %v474_v31 = vmul.f32 %v458_v38, %v402_v17  ;;  %v584_v48 = vadd.f32 %v960_v45, %v583_v47 }
  0x92   : > { %v535_v27 = vsel %vm528_vm0, %v417_v15, %v473_v16  ;;  %v536_v40 = vsel %vm528_vm0, %v418_v29, %v474_v31  ;;  %v1191_v49 = vsel %vm585_vm4, %v960_v45, %v584_v48 }
  0x93   : > { %v544_v34 = vsel %vm537_vm1, %v535_v27, %v486_v26  ;;  %v545_v38 = vsel %vm537_vm1, %v536_v40, %v487_v36 }
  0x97   : > { %v507_v54 = vpop.permute.xlu1 %506  ;;  %v505_v58 = vpop.permute.xlu0 %504 }
  0x98   : > { %v1142_v59 = vsel %vm546_vm2, %v539_v55, %v507_v54  ;;  %v1148_v0 = vsel %vm546_vm2, %v538_v60, %v505_v58 }
  0x99   : > { %v559_v63 = vsel %vm555_vm3, %v1142_v59, 0.0  ;;  %v556_v1 = vsel %vm555_vm3, %v1148_v0, 0.0 }
  0x9a   : > { %560 = vadd.xlane.f32.xlu0 %v559_v63  ;;  %557 = vadd.xlane.f32.xlu2 %v556_v1 }
  0x9f   : > { %v511_v13 = vpop.permute.xlu0 %510  ;;  %v513_v21 = vpop.permute.xlu1 %512 }
  0xa0   : > { %v550_v20 = vsel %vm546_vm2, %v541_v14, %v511_v13  ;;  %v551_v32 = vsel %vm546_vm2, %v542_v28, %v513_v21 }
  0xa1   : > { %v565_v22 = vsel %vm555_vm3, %v550_v20, 0.0  ;;  %v568_v39 = vsel %vm555_vm3, %v551_v32, 0.0 }
  0xa2   : > { %572 = vadd.xlane.f32.xlu0 %v571_v18  ;;  %566 = vadd.xlane.f32.xlu2 %v565_v22 }
  0xa7   : > { %v517_v33 = vpop.permute.xlu0 %516  ;;  %v519_v41 = vpop.permute.xlu1 %518 }
  0xa8   : > { %v553_v35 = vsel %vm546_vm2, %v544_v34, %v517_v33  ;;  %v554_v42 = vsel %vm546_vm2, %v545_v38, %v519_v41 }
  0xa9   : > { %v574_v37 = vsel %vm555_vm3, %v553_v35, 0.0  ;;  %v577_v43 = vsel %vm555_vm3, %v554_v42, 0.0 }
  0xaa   : > { %575 = vadd.xlane.f32.xlu1 %v574_v37  ;;  %569 = vadd.xlane.f32.xlu2 %v568_v39  ;;  %v1249_v37 = vld [vmem:[%s1333_s5] ss:$0 sm:$0xff] }
  0xb2   : > { %578 = vadd.xlane.f32.xlu2 %v577_v43 }
  0xf9   : > { %v564_v50 = vpop.xlane.xlu1 %563 }
  0xfa   : > { %v589_v51 = vmul.f32 %v1191_v49, %v564_v50 }
  0xfc   : > { %v1195_v52 = vsub.f32 %v1114_v30, %v589_v51 }
  0xfe   : > { %v605_v53 = vmul.f32 %v1195_v52, %v1195_v52 }
 0x100   : > { %v617_v54 = vsel %vm555_vm3, %v605_v53, 0.0 }
 0x101   : > { %618 = vadd.xlane.f32.xlu2 %v617_v54 }
 0x10d   : > { %v561_v55 = vpop.xlane.xlu0 %560  ;;  %v558_v57 = vpop.xlane.xlu2 %557 }
 0x10e   : > { %v588_v56 = vmul.f32 %v1191_v49, %v561_v55  ;;  %v587_v58 = vmul.f32 %v1191_v49, %v558_v57 }
 0x110   : > { %v1203_v60 = vsub.f32 %v1142_v59, %v588_v56  ;;  %v1206_v61 = vsub.f32 %v1148_v0, %v587_v58 }
 0x112   : > { %v604_v30 = vmul.f32 %v1203_v60, %v1203_v60  ;;  %v603_v62 = vmul.f32 %v1206_v61, %v1206_v61 }
 0x114   : > { %v614_v63 = vsel %vm555_vm3, %v604_v30, 0.0  ;;  %v611_v2 = vsel %vm555_vm3, %v603_v62, 0.0 }
 0x115   : > { %615 = vadd.xlane.f32.xlu1 %v614_v63  ;;  %v573_v1 = vpop.xlane.xlu0 %572  ;;  %612 = vadd.xlane.f32.xlu0 %v611_v2  ;;  %v567_v59 = vpop.xlane.xlu2 %566 }
 0x116   : > { %v592_v3 = vmul.f32 %v1191_v49, %v573_v1  ;;  %v590_v4 = vmul.f32 %v1191_v49, %v567_v59 }
 0x118   : > { %v1217_v0 = vsub.f32 %v1164_v10, %v592_v3  ;;  %v1219_v5 = vsub.f32 %v550_v20, %v590_v4 }
 0x11a   : > { %v608_v6 = vmul.f32 %v1217_v0, %v1217_v0  ;;  %v606_v7 = vmul.f32 %v1219_v5, %v1219_v5 }
 0x11c   : > { %v626_v8 = vsel %vm555_vm3, %v608_v6, 0.0  ;;  %v620_v9 = vsel %vm555_vm3, %v606_v7, 0.0 }
 0x11d   : > { %627 = vadd.xlane.f32.xlu2 %v626_v8  ;;  %v576_v11 = vpop.xlane.xlu1 %575  ;;  %621 = vadd.xlane.f32.xlu0 %v620_v9  ;;  %v570_v12 = vpop.xlane.xlu2 %569 }
 0x11e   : > { %v593_v13 = vmul.f32 %v1191_v49, %v576_v11  ;;  %v591_v10 = vmul.f32 %v1191_v49, %v570_v12 }
 0x120   : > { %v1229_v14 = vsub.f32 %v553_v35, %v593_v13  ;;  %v1231_v15 = vsub.f32 %v551_v32, %v591_v10 }
 0x122   : > { %v609_v16 = vmul.f32 %v1229_v14, %v1229_v14  ;;  %v607_v18 = vmul.f32 %v1231_v15, %v1231_v15 }
 0x124   : > { %v629_v20 = vsel %vm555_vm3, %v609_v16, 0.0  ;;  %v623_v21 = vsel %vm555_vm3, %v607_v18, 0.0 }
 0x125   : > { %630 = vadd.xlane.f32.xlu0 %v629_v20  ;;  %624 = vadd.xlane.f32.xlu1 %v623_v21  ;;  %v579_v22 = vpop.xlane.xlu2 %578 }
 0x126   : > { %v594_v23 = vmul.f32 %v1191_v49, %v579_v22 }
 0x128   : > { %v1240_v24 = vsub.f32 %v554_v42, %v594_v23  ;;  %v1256_v42 = vld [vmem:[%s1334_s6] ss:$0 sm:$0xff] }
 0x12a   : > { %v610_v17 = vmul.f32 %v1240_v24, %v1240_v24 }
 0x12c   : > { %v632_v25 = vsel %vm555_vm3, %v610_v17, 0.0 }
 0x12d   : > { %633 = vadd.xlane.f32.xlu1 %v632_v25 }
 0x174   : > { %v619_v26 = vpop.xlane.xlu2 %618 }
 0x175   : > { %v637_v27 = vmul.f32 %v619_v26, %v1191_v49 }
 0x177   : > { %v645_v28 = vadd.f32 1e-06, %v637_v27 }
 0x179   : > { %961 = vrsqrt.f32 %v645_v28  ;;  %vm677_vm6 = vweird.f32 %v645_v28 }
 0x17f   : > { %v962_v29 = vpop.eup %961 }
 0x180   : > { %v672_v31 = vmul.f32 %v962_v29, %v645_v28  ;;  %vm678_vm5 = vweird.f32 %v962_v29 }
 0x181   : > { %vm679_vm7 = vmor %vm677_vm6, %vm678_vm5 }
 0x182   : > { %v673_v32 = vmul.f32 %v962_v29, %v672_v31 }
 0x184   : > { %v674_v33 = vmul.f32 0.5, %v673_v32 }
 0x186   : > { %v675_v34 = vsub.f32 1.5, %v674_v33 }
 0x188   : > { %v676_v35 = vmul.f32 %v962_v29, %v675_v34  ;;  %v616_v36 = vpop.xlane.xlu1 %615  ;;  %v613_v40 = vpop.xlane.xlu0 %612 }
 0x189   : > { %v636_v39 = vmul.f32 %v616_v36, %v1191_v49  ;;  %v635_v38 = vmul.f32 %v613_v40, %v1191_v49 }
 0x18a   : > { %v680_v41 = vsel %vm679_vm7, %v962_v29, %v676_v35 }
 0x18b   : > { %v733_v43 = vmul.f32 %v680_v41, %v1195_v52  ;;  %v644_v44 = vadd.f32 1e-06, %v636_v39  ;;  %v643_v45 = vadd.f32 1e-06, %v635_v38 }
 0x18d   : > { %v745_v19 = vmul.f32 %v1249_v37, %v733_v43  ;;  %963 = vrsqrt.f32 %v644_v44  ;;  %vm667_vm10 = vweird.f32 %v644_v44  ;;  %vm657_vm12 = vweird.f32 %v643_v45 }
 0x18e   : > { %965 = vrsqrt.f32 %v643_v45 }
 0x18f   : > { %v757_v46 = vadd.f32 %v1256_v42, %v745_v19 }
 0x190   : > { %v628_v47 = vpop.xlane.xlu2 %627  ;;  %v622_v48 = vpop.xlane.xlu0 %621 }
 0x191   : > { %765 = vst.msk [vmem:[%s1264_s16 + $0x10] sm:$0xff] %vm555_vm3, %v757_v46  ;;  %v640_v50 = vmul.f32 %v628_v47, %v1191_v49  ;;  %v638_v51 = vmul.f32 %v622_v48, %v1191_v49 }
 0x193   : > { %v964_v52 = vpop.eup %963  ;;  %v648_v53 = vadd.f32 1e-06, %v640_v50  ;;  %v646_v56 = vadd.f32 1e-06, %v638_v51 }
 0x194   : > { %v966_v54 = vpop.eup %965  ;;  %v662_v55 = vmul.f32 %v964_v52, %v644_v44  ;;  %vm668_vm8 = vweird.f32 %v964_v52 }
 0x195   : > { %v652_v57 = vmul.f32 %v966_v54, %v643_v45  ;;  %967 = vrsqrt.f32 %v648_v53  ;;  %vm658_vm9 = vweird.f32 %v966_v54  ;;  %vm669_vm11 = vmor %vm667_vm10, %vm668_vm8  ;;  %vm707_vm0 = vweird.f32 %v648_v53 }
 0x196   : > { %v663_v58 = vmul.f32 %v964_v52, %v662_v55  ;;  %969 = vrsqrt.f32 %v646_v56  ;;  %vm659_vm13 = vmor %vm657_vm12, %vm658_vm9  ;;  %vm687_vm1 = vweird.f32 %v646_v56 }
 0x197   : > { %v653_v30 = vmul.f32 %v966_v54, %v652_v57 }
 0x198   : > { %v664_v62 = vmul.f32 0.5, %v663_v58  ;;  %v631_v1 = vpop.xlane.xlu0 %630  ;;  %v625_v2 = vpop.xlane.xlu1 %624 }
 0x199   : > { %v654_v63 = vmul.f32 0.5, %v653_v30  ;;  %v641_v59 = vmul.f32 %v631_v1, %v1191_v49  ;;  %v639_v4 = vmul.f32 %v625_v2, %v1191_v49 }
 0x19a   : > { %v665_v3 = vsub.f32 1.5, %v664_v62 }
 0x19b   : > { %v968_v6 = vpop.eup %967  ;;  %v655_v7 = vsub.f32 1.5, %v654_v63  ;;  %v1273_v12 = vadd.f32 1e-06, %v641_v59  ;;  %v1275_v16 = vadd.f32 1e-06, %v639_v4 }
 0x19c   : > { %v970_v8 = vpop.eup %969  ;;  %v666_v9 = vmul.f32 %v964_v52, %v665_v3  ;;  %v702_v11 = vmul.f32 %v968_v6, %v648_v53  ;;  %vm708_vm14 = vweird.f32 %v968_v6 }
 0x19d   : > { %v656_v13 = vmul.f32 %v966_v54, %v655_v7  ;;  %v682_v10 = vmul.f32 %v970_v8, %v646_v56  ;;  %971 = vrsqrt.f32 %v1273_v12  ;;  %vm688_vm15 = vweird.f32 %v970_v8  ;;  %vm709_vm2 = vmor %vm707_vm0, %vm708_vm14 }
 0x19e   : > { %v670_v18 = vsel %vm669_vm11, %v964_v52, %v666_v9  ;;  %v703_v20 = vmul.f32 %v968_v6, %v702_v11  ;;  %973 = vrsqrt.f32 %v1275_v16  ;;  %vm689_vm4 = vmor %vm687_vm1, %vm688_vm15  ;;  %vm717_vm7 = vweird.f32 %v1273_v12 }
 0x19f   : > { %v732_v21 = vmul.f32 %v670_v18, %v1203_v60  ;;  %v660_v22 = vsel %vm659_vm13, %v966_v54, %v656_v13  ;;  %v683_v23 = vmul.f32 %v970_v8, %v682_v10  ;;  %vm697_vm9 = vweird.f32 %v1275_v16 }
 0x1a0   : > { %v731_v17 = vmul.f32 %v660_v22, %v1206_v61  ;;  %v704_v25 = vmul.f32 0.5, %v703_v20  ;;  %v634_v28 = vpop.xlane.xlu1 %633 }
 0x1a1   : > { %v744_v26 = vmul.f32 %v1249_v37, %v732_v21  ;;  %v684_v27 = vmul.f32 0.5, %v683_v23  ;;  %v642_v32 = vmul.f32 %v634_v28, %v1191_v49 }
 0x1a2   : > { %v743_v29 = vmul.f32 %v1249_v37, %v731_v17  ;;  %v705_v31 = vsub.f32 1.5, %v704_v25 }
 0x1a3   : > { %v756_v60 = vadd.f32 %v1256_v42, %v744_v26  ;;  %v685_v33 = vsub.f32 1.5, %v684_v27  ;;  %v972_v34 = vpop.eup %971  ;;  %v650_v36 = vadd.f32 1e-06, %v642_v32 }
 0x1a4   : > { %v755_v61 = vadd.f32 %v1256_v42, %v743_v29  ;;  %v706_v35 = vmul.f32 %v968_v6, %v705_v31  ;;  %v974_v39 = vpop.eup %973  ;;  %v712_v41 = vmul.f32 %v972_v34, %v1273_v12  ;;  %vm718_vm5 = vweird.f32 %v972_v34 }
 0x1a5   : > { %764 = vst.msk [vmem:[%s1264_s16 + $0x8] sm:$0xff] %vm555_vm3, %v756_v60  ;;  %v686_v40 = vmul.f32 %v970_v8, %v685_v33  ;;  %v692_v38 = vmul.f32 %v974_v39, %v1275_v16  ;;  %975 = vrsqrt.f32 %v650_v36  ;;  %vm698_vm6 = vweird.f32 %v974_v39  ;;  %vm719_vm8 = vmor %vm717_vm7, %vm718_vm5 }
 0x1a6   : > { %763 = vst.msk [vmem:[%s1264_s16] sm:$0xff] %vm555_vm3, %v755_v61  ;;  %v710_v49 = vsel %vm709_vm2, %v968_v6, %v706_v35  ;;  %v713_v45 = vmul.f32 %v972_v34, %v712_v41  ;;  %vm699_vm10 = vmor %vm697_vm9, %vm698_vm6  ;;  %vm727_vm12 = vweird.f32 %v650_v36 }
 0x1a7   : > { %v690_v43 = vsel %vm689_vm4, %v970_v8, %v686_v40  ;;  %v736_v44 = vmul.f32 %v710_v49, %v1217_v0  ;;  %v693_v46 = vmul.f32 %v974_v39, %v692_v38 }
 0x1a8   : > { %v734_v19 = vmul.f32 %v690_v43, %v1219_v5  ;;  %v714_v48 = vmul.f32 0.5, %v713_v45 }
 0x1a9   : > { %v748_v47 = vmul.f32 %v1249_v37, %v736_v44  ;;  %v694_v51 = vmul.f32 0.5, %v693_v46 }
 0x1aa   : > { %v746_v50 = vmul.f32 %v1249_v37, %v734_v19  ;;  %v715_v53 = vsub.f32 1.5, %v714_v48 }
 0x1ab   : > { %v760_v52 = vadd.f32 %v1256_v42, %v748_v47  ;;  %v976_v54 = vpop.eup %975  ;;  %v695_v56 = vsub.f32 1.5, %v694_v51 }
 0x1ac   : > { %v758_v55 = vadd.f32 %v1256_v42, %v746_v50  ;;  %v716_v0 = vmul.f32 %v972_v34, %v715_v53  ;;  %v722_v5 = vmul.f32 %v976_v54, %v650_v36  ;;  %vm728_vm11 = vweird.f32 %v976_v54 }
 0x1ad   : > { %768 = vst.msk [vmem:[%s1264_s16 + $0x28] sm:$0xff] %vm555_vm3, %v760_v52  ;;  %v696_v57 = vmul.f32 %v974_v39, %v695_v56  ;;  %vm729_vm13 = vmor %vm727_vm12, %vm728_vm11 }
 0x1ae   : > { %766 = vst.msk [vmem:[%s1264_s16 + $0x18] sm:$0xff] %vm555_vm3, %v758_v55  ;;  %v720_v58 = vsel %vm719_vm8, %v972_v34, %v716_v0  ;;  %v723_v30 = vmul.f32 %v976_v54, %v722_v5 }
 0x1af   : > { %v737_v62 = vmul.f32 %v720_v58, %v1229_v14  ;;  %v700_v63 = vsel %vm699_vm10, %v974_v39, %v696_v57 }
 0x1b0   : > { %v735_v1 = vmul.f32 %v700_v63, %v1231_v15  ;;  %v724_v2 = vmul.f32 0.5, %v723_v30 }
 0x1b1   : > { %v749_v3 = vmul.f32 %v1249_v37, %v737_v62 }
 0x1b2   : > { %v747_v59 = vmul.f32 %v1249_v37, %v735_v1  ;;  %v725_v4 = vsub.f32 1.5, %v724_v2 }
 0x1b3   : > { %v761_v6 = vadd.f32 %v1256_v42, %v749_v3 }
 0x1b4   : > { %v759_v7 = vadd.f32 %v1256_v42, %v747_v59  ;;  %v726_v8 = vmul.f32 %v976_v54, %v725_v4 }
 0x1b5   : > { %769 = vst.msk [vmem:[%s1264_s16 + $0x30] sm:$0xff] %vm555_vm3, %v761_v6 }
 0x1b6   : > { %767 = vst.msk [vmem:[%s1264_s16 + $0x20] sm:$0xff] %vm555_vm3, %v759_v7  ;;  %v730_v14 = vsel %vm729_vm13, %v976_v54, %v726_v8 }
 0x1b7   : > { %v738_v15 = vmul.f32 %v730_v14, %v1240_v24 }
 0x1b9   : > { %v750_v9 = vmul.f32 %v1249_v37, %v738_v15 }
 0x1bb   : > { %v762_v11 = vadd.f32 %v1256_v42, %v750_v9 }
 0x1bd   : > { %770 = vst.msk [vmem:[%s1264_s16 + $0x38] sm:$0xff] %vm555_vm3, %v762_v11 }
 0x1be PF: > { %s17_s26 = sadd.s32 1, %s999_s26   ;;  %s1336_s24 = smov %s995_s25 }
 0x1bf   : > { %p14_p5 = scmp.ge.s32.totalorder %s17_s26, 4   ;;  %s1337_s25 = smov %s1339_s27 }
 0x1c1   :  { %16 = sbr.rel (!%p14_p5) target bundleno = 2 (0x2), region = 87 }

// kernel: post_pos_embed.13
= control target key start
LH: loop header
LB: loop body
LE: loop exit
PB: predicated region body
PF: predicated region fallthrough
CT: control target
= control target key end

     0   :  { %s1186_s12 = smov 0   ;;  %s1898_s0 = inlined_call_operand.vmem [shape: f32[2,10,10,8], index: 0, kind: input, shape index: {}]   ;;  %s1899_s1 = inlined_call_operand.vmem [shape: f32[3,3,8], index: 1, kind: input, shape index: {}]   ;;  %s1900_s2 = inlined_call_operand.vmem [shape: f32[1,8], index: 2, kind: input, shape index: {}]   ;;  %s1901_s3 = inlined_call_operand.vmem [shape: f32[2,8,8,8], index: 3, kind: output, shape index: {}]  }
   0x1 LB: > { %s1113_s13 = sadd.s32 4294967295, %s1164_s12   ;;  %p1117_p0 = scmp.ge.s32.totalorder %s1164_s12, 1  ;;  %s1164_s12 = sphi %s1186_s12, %s13_s12  }
   0x2   : > { %p137_p1 = scmp.lt.s32.totalorder %s1164_s12, 3 }
   0x4   : > { %p138_p2 = pnand %p1117_p0, %p137_p1 }
   0x6   : > { %141 = sbr.rel (%p138_p2) target bundleno = 204 (0xcc), region = 32 }
   0xb   : > { %p161_p3 = scmp.lt.s32.totalorder %s1113_s13, 1  ;;  %v191_v0 = vld [vmem:[%s1899_s1] sm:$0x7]  ;;  %v1211_v2 = vld [vmem:[%s1899_s1 + $0x4] sm:$0x7]  ;;  %vm244_vm0 = vcmask 1046528  }
   0xc   : > { %v194_v3 = vperm.slane %v191_v0, 0  ;;  %v211_v7 = vperm.slane %v191_v0, 1  ;;  %v1251_v19 = vperm.slane %v191_v0, 2  ;;  %v1254_v20 = vperm.slane %v1211_v2, 0 }
   0xd   : > { %s1929_s13 = smov (!%p161_p3, %s1113_s13), 1  ;;  %vm318_vm1 = vcmask 1045504  }
   0xe   : > { %s1132_s14 = smul.u32 160, %s1929_s13  ;;  %s1131_s26 = sshll.u32 %s1929_s13, 6 }
   0xf   : > { %s1852_s29 = scalar_lea.vmem %s1901_s3, %s1131_s26 }
  0x10   : > { %s1200_s17 = scalar_lea.vmem %s1898_s0, %s1132_s14 }
  0x11   : > { %v1206_v1 = vld [vmem:[%s1200_s17] sm:$0xff]  ;;  %v1214_v4 = vld [vmem:[%s1200_s17 + $0x8] sm:$0x3]  ;;  %v1217_v5 = vld [vmem:[%s1200_s17 + $0x10] sm:$0xff] }
  0x12   : > { %v1220_v6 = vld [vmem:[%s1200_s17 + $0x18] sm:$0x3]  ;;  %v1223_v8 = vld [vmem:[%s1200_s17 + $0x20] sm:$0xff]  ;;  %v1226_v9 = vld [vmem:[%s1200_s17 + $0x28] sm:$0x3]  ;;  %v195_v17 = vmul.f32 %v194_v3, %v1206_v1  ;;  %v196_v18 = vmul.f32 %v194_v3, %v1217_v5  ;;  %v212_v24 = vmul.f32 %v211_v7, %v1206_v1  ;;  %v213_v25 = vmul.f32 %v211_v7, %v1214_v4 }
  0x13   : > { %v1229_v10 = vld [vmem:[%s1200_s17 + $0x30] sm:$0xff]  ;;  %v1232_v11 = vld [vmem:[%s1200_s17 + $0x38] sm:$0x3]  ;;  %v1235_v12 = vld [vmem:[%s1200_s17 + $0x40] sm:$0xff]  ;;  %v214_v26 = vmul.f32 %v211_v7, %v1217_v5  ;;  %v215_v27 = vmul.f32 %v211_v7, %v1220_v6  ;;  %v216_v28 = vmul.f32 %v211_v7, %v1223_v8  ;;  %v217_v29 = vmul.f32 %v211_v7, %v1226_v9 }
  0x14   : > { %v1238_v13 = vld [vmem:[%s1200_s17 + $0x48] sm:$0x3]  ;;  %v1241_v14 = vld [vmem:[%s1200_s17 + $0x50] sm:$0xff]  ;;  %v1244_v15 = vld [vmem:[%s1200_s17 + $0x58] sm:$0x3]  ;;  %v218_v30 = vmul.f32 %v211_v7, %v1229_v10  ;;  %v219_v31 = vmul.f32 %v211_v7, %v1232_v11  ;;  %v220_v32 = vmul.f32 %v211_v7, %v1235_v12  ;;  %v245_v40 = vrot.slane %v212_v24, 1 }
  0x15   : > { %v1247_v16 = vld [vmem:[%s1200_s17 + $0x60] sm:$0xff]  ;;  %v1257_v21 = vld [vmem:[%s1200_s17 + $0x68] sm:$0x3]  ;;  %v1260_v22 = vld [vmem:[%s1200_s17 + $0x70] sm:$0xff]  ;;  %v221_v33 = vmul.f32 %v211_v7, %v1238_v13  ;;  %v222_v34 = vmul.f32 %v211_v7, %v1241_v14  ;;  %v223_v35 = vmul.f32 %v211_v7, %v1244_v15  ;;  %v246_v41 = vrot.slane %v213_v25, 1 }
  0x16   : > { %1904 = vst [vmem:[#allocation2_spill] sm:$0xff] %v1257_v21  ;;  %v1263_v23 = vld [vmem:[%s1200_s17 + $0x78] sm:$0x3]  ;;  %v224_v36 = vmul.f32 %v211_v7, %v1247_v16  ;;  %v225_v37 = vmul.f32 %v211_v7, %v1257_v21  ;;  %v226_v38 = vmul.f32 %v211_v7, %v1260_v22  ;;  %v248_v42 = vrot.slane %v214_v26, 1 }
  0x17   : > { %v227_v39 = vmul.f32 %v211_v7, %v1263_v23  ;;  %v249_v43 = vrot.slane %v215_v27, 1  ;;  %v251_v44 = vrot.slane %v216_v28, 1  ;;  %v252_v45 = vrot.slane %v217_v29, 1 }
  0x18   : > { %v254_v46 = vrot.slane %v218_v30, 1  ;;  %v255_v47 = vrot.slane %v219_v31, 1  ;;  %v257_v48 = vrot.slane %v220_v32, 1  ;;  %v258_v49 = vrot.slane %v221_v33, 1 }
  0x19   : > { %v260_v50 = vrot.slane %v222_v34, 1  ;;  %v261_v51 = vrot.slane %v223_v35, 1  ;;  %v263_v52 = vrot.slane %v224_v36, 1  ;;  %v264_v53 = vrot.slane %v225_v37, 1 }
  0x1a   : > { %v266_v54 = vrot.slane %v226_v38, 1  ;;  %v267_v55 = vrot.slane %v227_v39, 1  ;;  %v197_v56 = vmul.f32 %v194_v3, %v1223_v8  ;;  %v198_v57 = vmul.f32 %v194_v3, %v1229_v10 }
  0x1b   : > { %v247_v58 = vsel %vm244_vm0, %v245_v40, %v246_v41  ;;  %v250_v59 = vsel %vm244_vm0, %v248_v42, %v249_v43  ;;  %v199_v60 = vmul.f32 %v194_v3, %v1235_v12  ;;  %v200_v61 = vmul.f32 %v194_v3, %v1241_v14 }
  0x1c   : > { %v201_v62 = vmul.f32 %v194_v3, %v1247_v16  ;;  %v202_v63 = vmul.f32 %v194_v3, %v1260_v22  ;;  %v253_v0 = vsel %vm244_vm0, %v251_v44, %v252_v45  ;;  %v256_v7 = vsel %vm244_vm0, %v254_v46, %v255_v47 }
  0x1d   : > { %v259_v24 = vsel %vm244_vm0, %v257_v48, %v258_v49  ;;  %v262_v25 = vsel %vm244_vm0, %v260_v50, %v261_v51  ;;  %v265_v26 = vsel %vm244_vm0, %v263_v52, %v264_v53  ;;  %v268_v27 = vsel %vm244_vm0, %v266_v54, %v267_v55 }
  0x1e   : > { %v277_v28 = vadd.f32 %v247_v58, %v195_v17  ;;  %v278_v29 = vadd.f32 %v250_v59, %v196_v18  ;;  %v286_v30 = vmul.f32 %v1251_v19, %v1206_v1  ;;  %v287_v3 = vmul.f32 %v1251_v19, %v1214_v4 }
  0x1f   : > { %v288_v31 = vmul.f32 %v1251_v19, %v1217_v5  ;;  %v289_v32 = vmul.f32 %v1251_v19, %v1220_v6  ;;  %v290_v33 = vmul.f32 %v1251_v19, %v1223_v8  ;;  %v291_v34 = vmul.f32 %v1251_v19, %v1226_v9 }
  0x20   : > { %v292_v17 = vmul.f32 %v1251_v19, %v1229_v10  ;;  %v293_v1 = vmul.f32 %v1251_v19, %v1232_v11  ;;  %v294_v4 = vmul.f32 %v1251_v19, %v1235_v12  ;;  %v295_v18 = vmul.f32 %v1251_v19, %v1238_v13 }
  0x21   : > { %v296_v35 = vmul.f32 %v1251_v19, %v1241_v14  ;;  %v297_v36 = vmul.f32 %v1251_v19, %v1244_v15  ;;  %v298_v37 = vmul.f32 %v1251_v19, %v1247_v16  ;;  %v299_v38 = vmul.f32 %v1251_v19, %v1257_v21 }
  0x22   : > { %v300_v39 = vmul.f32 %v1251_v19, %v1260_v22  ;;  %v301_v40 = vmul.f32 %v1251_v19, %v1263_v23  ;;  %v319_v41 = vrot.slane %v286_v30, 2  ;;  %v320_v42 = vrot.slane %v287_v3, 2 }
  0x23   : > { %v322_v43 = vrot.slane %v288_v31, 2  ;;  %v323_v44 = vrot.slane %v289_v32, 2  ;;  %v325_v45 = vrot.slane %v290_v33, 2  ;;  %v326_v46 = vrot.slane %v291_v34, 2 }
  0x24   : > { %v328_v47 = vrot.slane %v292_v17, 2  ;;  %v329_v48 = vrot.slane %v293_v1, 2  ;;  %v331_v49 = vrot.slane %v294_v4, 2  ;;  %v332_v50 = vrot.slane %v295_v18, 2 }
  0x25   : > { %v334_v51 = vrot.slane %v296_v35, 2  ;;  %v335_v52 = vrot.slane %v297_v36, 2  ;;  %v337_v53 = vrot.slane %v298_v37, 2  ;;  %v338_v54 = vrot.slane %v299_v38, 2 }
  0x26   : > { %v340_v55 = vrot.slane %v300_v39, 2  ;;  %v341_v58 = vrot.slane %v301_v40, 2  ;;  %v279_v59 = vadd.f32 %v253_v0, %v197_v56  ;;  %v280_v21 = vadd.f32 %v256_v7, %v198_v57 }
  0x27   : > { %v321_v19 = vsel %vm318_vm1, %v319_v41, %v320_v42  ;;  %v324_v30 = vsel %vm318_vm1, %v322_v43, %v323_v44  ;;  %v281_v3 = vadd.f32 %v259_v24, %v199_v60  ;;  %v282_v31 = vadd.f32 %v262_v25, %v200_v61  ;;  %v1358_v42 = vld [vmem:[%s1200_s17 + $0x88] sm:$0x3] }
  0x28   : > { %v283_v32 = vadd.f32 %v265_v26, %v201_v62  ;;  %v327_v33 = vsel %vm318_vm1, %v325_v45, %v326_v46  ;;  %v284_v34 = vadd.f32 %v268_v27, %v202_v63  ;;  %v330_v17 = vsel %vm318_vm1, %v328_v47, %v329_v48  ;;  %v1342_v63 = vld [vmem:[%s1200_s17 + $0x80] sm:$0xff] }
  0x29   : > { %v333_v1 = vsel %vm318_vm1, %v331_v49, %v332_v50  ;;  %v336_v4 = vsel %vm318_vm1, %v334_v51, %v335_v52  ;;  %v339_v56 = vsel %vm318_vm1, %v337_v53, %v338_v54  ;;  %v342_v57 = vsel %vm318_vm1, %v340_v55, %v341_v58  ;;  %v1906_v53 = vld [vmem:[#allocation2_spill] sm:$0xff] }
  0x2a   : > { %v351_v0 = vadd.f32 %v321_v19, %v277_v28  ;;  %v352_v7 = vadd.f32 %v324_v30, %v278_v29  ;;  %v353_v18 = vadd.f32 %v327_v33, %v279_v59  ;;  %v360_v60 = vmul.f32 %v1254_v20, %v1217_v5 }
  0x2b   : > { %v361_v61 = vmul.f32 %v1254_v20, %v1223_v8  ;;  %v362_v62 = vmul.f32 %v1254_v20, %v1229_v10  ;;  %v354_v24 = vadd.f32 %v330_v17, %v280_v21  ;;  %v376_v25 = vperm.slane %v1211_v2, 1 }
  0x2c   : > { %v355_v26 = vadd.f32 %v333_v1, %v281_v3  ;;  %v356_v27 = vadd.f32 %v336_v4, %v282_v31  ;;  %v357_v28 = vadd.f32 %v339_v56, %v283_v32  ;;  %v358_v29 = vadd.f32 %v342_v57, %v284_v34 }
  0x2d   : > { %v363_v35 = vmul.f32 %v1254_v20, %v1235_v12  ;;  %v364_v36 = vmul.f32 %v1254_v20, %v1241_v14  ;;  %v365_v37 = vmul.f32 %v1254_v20, %v1247_v16  ;;  %v366_v38 = vmul.f32 %v1254_v20, %v1260_v22 }
  0x2e   : > { %v367_v21 = vmul.f32 %v1254_v20, %v1342_v63  ;;  %v368_v39 = vadd.f32 %v360_v60, %v351_v0  ;;  %v369_v40 = vadd.f32 %v361_v61, %v352_v7  ;;  %v1355_v41 = vadd.f32 %v362_v62, %v353_v18 }
  0x2f   : > { %v377_v43 = vmul.f32 %v376_v25, %v1217_v5  ;;  %v378_v44 = vmul.f32 %v376_v25, %v1220_v6  ;;  %v379_v45 = vmul.f32 %v376_v25, %v1223_v8  ;;  %v380_v46 = vmul.f32 %v376_v25, %v1226_v9 }
  0x30   : > { %1905 = vst [vmem:[#allocation3_spill] sm:$0xff] %v1355_v41  ;;  %v381_v47 = vmul.f32 %v376_v25, %v1229_v10  ;;  %v382_v48 = vmul.f32 %v376_v25, %v1232_v11  ;;  %v383_v20 = vmul.f32 %v376_v25, %v1235_v12  ;;  %v384_v49 = vmul.f32 %v376_v25, %v1238_v13 }
  0x31   : > { %v385_v50 = vmul.f32 %v376_v25, %v1241_v14  ;;  %v386_v51 = vmul.f32 %v376_v25, %v1244_v15  ;;  %v387_v52 = vmul.f32 %v376_v25, %v1247_v16  ;;  %v388_v54 = vmul.f32 %v376_v25, %v1906_v53 }
  0x32   : > { %v389_v55 = vmul.f32 %v376_v25, %v1260_v22  ;;  %v390_v58 = vmul.f32 %v376_v25, %v1263_v23  ;;  %v391_v59 = vmul.f32 %v376_v25, %v1342_v63  ;;  %v392_v19 = vmul.f32 %v376_v25, %v1358_v42 }
  0x33   : > { %v409_v30 = vrot.slane %v377_v43, 1  ;;  %v410_v3 = vrot.slane %v378_v44, 1  ;;  %v412_v31 = vrot.slane %v379_v45, 1  ;;  %v413_v32 = vrot.slane %v380_v46, 1 }
  0x34   : > { %v415_v33 = vrot.slane %v381_v47, 1  ;;  %v416_v34 = vrot.slane %v382_v48, 1  ;;  %v418_v17 = vrot.slane %v383_v20, 1  ;;  %v419_v1 = vrot.slane %v384_v49, 1 }
  0x35   : > { %v421_v4 = vrot.slane %v385_v50, 1  ;;  %v422_v56 = vrot.slane %v386_v51, 1  ;;  %v424_v57 = vrot.slane %v387_v52, 1  ;;  %v425_v0 = vrot.slane %v388_v54, 1 }
  0x36   : > { %v427_v7 = vrot.slane %v389_v55, 1  ;;  %v428_v18 = vrot.slane %v390_v58, 1  ;;  %v430_v60 = vrot.slane %v391_v59, 1  ;;  %v431_v61 = vrot.slane %v392_v19, 1 }
  0x37   : > { %v371_v62 = vadd.f32 %v363_v35, %v354_v24  ;;  %v411_v41 = vsel %vm244_vm0, %v409_v30, %v410_v3  ;;  %v414_v25 = vsel %vm244_vm0, %v412_v31, %v413_v32  ;;  %v449_v43 = vperm.slane %v1211_v2, 2 }
  0x38   : > { %v372_v44 = vadd.f32 %v364_v36, %v355_v26  ;;  %v373_v45 = vadd.f32 %v365_v37, %v356_v27  ;;  %v374_v46 = vadd.f32 %v366_v38, %v357_v28  ;;  %v375_v47 = vadd.f32 %v367_v21, %v358_v29 }
  0x39   : > { %v417_v48 = vsel %vm244_vm0, %v415_v33, %v416_v34  ;;  %v420_v20 = vsel %vm244_vm0, %v418_v17, %v419_v1  ;;  %v423_v49 = vsel %vm244_vm0, %v421_v4, %v422_v56  ;;  %v426_v50 = vsel %vm244_vm0, %v424_v57, %v425_v0  ;;  %v193_v34 = vld [vmem:[%s1899_s1 + $0x8] sm:$0x7] }
  0x3a   : > { %v429_v24 = vsel %vm244_vm0, %v427_v7, %v428_v18  ;;  %v432_v35 = vsel %vm244_vm0, %v430_v60, %v431_v61  ;;  %v441_v51 = vadd.f32 %v411_v41, %v368_v39  ;;  %v442_v52 = vadd.f32 %v414_v25, %v369_v40  ;;  %v1907_v60 = vld [vmem:[#allocation3_spill] sm:$0xff] }
  0x3b   : > { %v450_v2 = vmul.f32 %v449_v43, %v1217_v5  ;;  %v451_v26 = vmul.f32 %v449_v43, %v1220_v6  ;;  %v452_v27 = vmul.f32 %v449_v43, %v1223_v8  ;;  %v453_v28 = vmul.f32 %v449_v43, %v1226_v9 }
  0x3c   : > { %v454_v29 = vmul.f32 %v449_v43, %v1229_v10  ;;  %v455_v36 = vmul.f32 %v449_v43, %v1232_v11  ;;  %v456_v37 = vmul.f32 %v449_v43, %v1235_v12  ;;  %v457_v38 = vmul.f32 %v449_v43, %v1238_v13 }
  0x3d   : > { %v458_v21 = vmul.f32 %v449_v43, %v1241_v14  ;;  %v459_v39 = vmul.f32 %v449_v43, %v1244_v15  ;;  %v460_v5 = vmul.f32 %v449_v43, %v1247_v16  ;;  %v461_v6 = vmul.f32 %v449_v43, %v1906_v53 }
  0x3e   : > { %v462_v40 = vmul.f32 %v449_v43, %v1260_v22  ;;  %v463_v41 = vmul.f32 %v449_v43, %v1263_v23  ;;  %v464_v54 = vmul.f32 %v449_v43, %v1342_v63  ;;  %v465_v55 = vmul.f32 %v449_v43, %v1358_v42 }
  0x3f   : > { %v482_v58 = vrot.slane %v450_v2, 2  ;;  %v483_v59 = vrot.slane %v451_v26, 2  ;;  %v485_v19 = vrot.slane %v452_v27, 2  ;;  %v486_v30 = vrot.slane %v453_v28, 2 }
  0x40   : > { %v488_v3 = vrot.slane %v454_v29, 2  ;;  %v489_v31 = vrot.slane %v455_v36, 2  ;;  %v491_v32 = vrot.slane %v456_v37, 2  ;;  %v492_v33 = vrot.slane %v457_v38, 2 }
  0x41   : > { %v494_v17 = vrot.slane %v458_v21, 2  ;;  %v495_v1 = vrot.slane %v459_v39, 2  ;;  %v497_v4 = vrot.slane %v460_v5, 2  ;;  %v498_v56 = vrot.slane %v461_v6, 2 }
  0x42   : > { %v500_v57 = vrot.slane %v462_v40, 2  ;;  %v501_v0 = vrot.slane %v463_v41, 2  ;;  %v503_v7 = vrot.slane %v464_v54, 2  ;;  %v504_v18 = vrot.slane %v465_v55, 2 }
  0x43   : > { %v443_v61 = vadd.f32 %v417_v48, %v1907_v60  ;;  %v444_v25 = vadd.f32 %v420_v20, %v371_v62  ;;  %v445_v43 = vadd.f32 %v423_v49, %v372_v44  ;;  %v446_v2 = vadd.f32 %v426_v50, %v373_v45 }
  0x44   : > { %v447_v26 = vadd.f32 %v429_v24, %v374_v46  ;;  %v448_v27 = vadd.f32 %v432_v35, %v375_v47  ;;  %v484_v28 = vsel %vm318_vm1, %v482_v58, %v483_v59  ;;  %v522_v29 = vperm.slane %v193_v34, 0  ;;  %v1417_v24 = vld [vmem:[%s1200_s17 + $0x90] sm:$0xff] }
  0x45   : > { %v487_v36 = vsel %vm318_vm1, %v485_v19, %v486_v30  ;;  %v490_v37 = vsel %vm318_vm1, %v488_v3, %v489_v31  ;;  %v493_v38 = vsel %vm318_vm1, %v491_v32, %v492_v33  ;;  %v539_v21 = vperm.slane %v193_v34, 1 }
  0x46   : > { %v496_v39 = vsel %vm318_vm1, %v494_v17, %v495_v1  ;;  %v499_v48 = vsel %vm318_vm1, %v497_v4, %v498_v56  ;;  %v502_v62 = vsel %vm318_vm1, %v500_v57, %v501_v0  ;;  %v505_v44 = vsel %vm318_vm1, %v503_v7, %v504_v18 }
  0x47   : > { %v514_v45 = vadd.f32 %v484_v28, %v441_v51  ;;  %v1413_v46 = vperm.slane %v193_v34, 2  ;;  %v515_v47 = vadd.f32 %v487_v36, %v442_v52  ;;  %v516_v20 = vadd.f32 %v490_v37, %v443_v61  ;;  %v1455_v37 = vld [vmem:[%s1200_s17 + $0x98] sm:$0x3] }
  0x48   : > { %v517_v49 = vadd.f32 %v493_v38, %v444_v25  ;;  %v523_v50 = vmul.f32 %v522_v29, %v1223_v8  ;;  %v518_v35 = vadd.f32 %v496_v39, %v445_v43  ;;  %v1419_v5 = vadd.f32 %v499_v48, %v446_v2 }
  0x49   : > { %v1421_v6 = vadd.f32 %v502_v62, %v447_v26  ;;  %v1423_v40 = vadd.f32 %v505_v44, %v448_v27  ;;  %v540_v41 = vmul.f32 %v539_v21, %v1223_v8  ;;  %v541_v51 = vmul.f32 %v539_v21, %v1226_v9 }
  0x4a   : > { %v542_v54 = vmul.f32 %v539_v21, %v1229_v10  ;;  %v543_v52 = vmul.f32 %v539_v21, %v1232_v11  ;;  %v524_v55 = vmul.f32 %v522_v29, %v1229_v10  ;;  %v525_v58 = vmul.f32 %v522_v29, %v1235_v12 }
  0x4b   : > { %v526_v59 = vmul.f32 %v522_v29, %v1241_v14  ;;  %v527_v19 = vmul.f32 %v522_v29, %v1247_v16  ;;  %v528_v30 = vmul.f32 %v522_v29, %v1260_v22  ;;  %v529_v3 = vmul.f32 %v522_v29, %v1342_v63 }
  0x4c   : > { %v1436_v31 = vmul.f32 %v522_v29, %v1417_v24  ;;  %v531_v32 = vadd.f32 %v523_v50, %v514_v45  ;;  %v544_v33 = vmul.f32 %v539_v21, %v1235_v12  ;;  %v545_v34 = vmul.f32 %v539_v21, %v1238_v13 }
  0x4d   : > { %v546_v17 = vmul.f32 %v539_v21, %v1241_v14  ;;  %v547_v1 = vmul.f32 %v539_v21, %v1244_v15  ;;  %v572_v4 = vrot.slane %v540_v41, 1  ;;  %v573_v56 = vrot.slane %v541_v51, 1 }
  0x4e   : > { %v575_v57 = vrot.slane %v542_v54, 1  ;;  %v576_v0 = vrot.slane %v543_v52, 1  ;;  %v532_v7 = vadd.f32 %v524_v55, %v515_v47  ;;  %v533_v18 = vadd.f32 %v525_v58, %v516_v20 }
  0x4f   : > { %v534_v60 = vadd.f32 %v526_v59, %v517_v49  ;;  %v1442_v61 = vadd.f32 %v527_v19, %v518_v35  ;;  %v548_v25 = vmul.f32 %v539_v21, %v1247_v16  ;;  %v549_v43 = vmul.f32 %v539_v21, %v1906_v53 }
  0x50   : > { %v550_v2 = vmul.f32 %v539_v21, %v1260_v22  ;;  %v551_v26 = vmul.f32 %v539_v21, %v1263_v23  ;;  %v1449_v27 = vmul.f32 %v539_v21, %v1342_v63  ;;  %v1452_v28 = vmul.f32 %v539_v21, %v1358_v42 }
  0x51   : > { %v578_v29 = vrot.slane %v544_v33, 1  ;;  %v579_v36 = vrot.slane %v545_v34, 1  ;;  %v574_v38 = vsel %vm244_vm0, %v572_v4, %v573_v56  ;;  %v577_v39 = vsel %vm244_vm0, %v575_v57, %v576_v0  ;;  %v1486_v0 = vld [vmem:[%s1900_s2] ss:$0 sm:$0xff] }
  0x52   : > { %v581_v48 = vrot.slane %v546_v17, 1  ;;  %v582_v62 = vrot.slane %v547_v1, 1  ;;  %v613_v44 = vmul.f32 %v1413_v46, %v1223_v8  ;;  %v614_v45 = vmul.f32 %v1413_v46, %v1226_v9 }
  0x53   : > { %v615_v47 = vmul.f32 %v1413_v46, %v1229_v10  ;;  %v616_v20 = vmul.f32 %v1413_v46, %v1232_v11  ;;  %v617_v49 = vmul.f32 %v1413_v46, %v1235_v12  ;;  %v618_v50 = vmul.f32 %v1413_v46, %v1238_v13 }
  0x54   : > { %v619_v35 = vmul.f32 %v1413_v46, %v1241_v14  ;;  %v620_v8 = vmul.f32 %v1413_v46, %v1244_v15  ;;  %v554_v9 = vmul.f32 %v539_v21, %v1417_v24  ;;  %v555_v41 = vmul.f32 %v539_v21, %v1455_v37 }
  0x55   : > { %v584_v10 = vrot.slane %v548_v25, 1  ;;  %v585_v51 = vrot.slane %v549_v43, 1  ;;  %v580_v11 = vsel %vm244_vm0, %v578_v29, %v579_v36  ;;  %v583_v54 = vsel %vm244_vm0, %v581_v48, %v582_v62 }
  0x56   : > { %v604_v12 = vadd.f32 %v574_v38, %v531_v32  ;;  %v605_v52 = vadd.f32 %v577_v39, %v532_v7  ;;  %v645_v55 = vrot.slane %v613_v44, 2  ;;  %v646_v13 = vrot.slane %v614_v45, 2 }
  0x57   : > { %v648_v58 = vrot.slane %v615_v47, 2  ;;  %v649_v59 = vrot.slane %v616_v20, 2  ;;  %v651_v14 = vrot.slane %v617_v49, 2  ;;  %v652_v19 = vrot.slane %v618_v50, 2 }
  0x58   : > { %v654_v33 = vrot.slane %v619_v35, 2  ;;  %v655_v15 = vrot.slane %v620_v8, 2  ;;  %v606_v34 = vadd.f32 %v580_v11, %v533_v18  ;;  %v607_v17 = vadd.f32 %v583_v54, %v534_v60 }
  0x59   : > { %v647_v21 = vsel %vm318_vm1, %v645_v55, %v646_v13  ;;  %v650_v1 = vsel %vm318_vm1, %v648_v58, %v649_v59  ;;  %v587_v4 = vrot.slane %v550_v2, 1  ;;  %v588_v56 = vrot.slane %v551_v26, 1 }
  0x5a   : > { %v653_v57 = vsel %vm318_vm1, %v651_v14, %v652_v19  ;;  %v656_v32 = vsel %vm318_vm1, %v654_v33, %v655_v15  ;;  %v536_v7 = vadd.f32 %v528_v30, %v1419_v5  ;;  %v537_v18 = vadd.f32 %v529_v3, %v1421_v6 }
  0x5b   : > { %v590_v60 = vrot.slane %v1449_v27, 1  ;;  %v591_v25 = vrot.slane %v1452_v28, 1  ;;  %v593_v43 = vrot.slane %v554_v9, 1  ;;  %v594_v2 = vrot.slane %v555_v41, 1 }
  0x5c   : > { %v677_v26 = vadd.f32 %v647_v21, %v604_v12  ;;  %v678_v29 = vadd.f32 %v650_v1, %v605_v52  ;;  %v621_v36 = vmul.f32 %v1413_v46, %v1247_v16  ;;  %v622_v38 = vmul.f32 %v1413_v46, %v1906_v53 }
  0x5d   : > { %v679_v39 = vadd.f32 %v653_v57, %v606_v34  ;;  %v680_v48 = vadd.f32 %v656_v32, %v607_v17  ;;  %v538_v5 = vadd.f32 %v1436_v31, %v1423_v40  ;;  %v586_v6 = vsel %vm244_vm0, %v584_v10, %v585_v51 }
  0x5e   : > { %v589_v30 = vsel %vm244_vm0, %v587_v4, %v588_v56  ;;  %v1501_v3 = vadd.f32 %v1486_v0, %v677_v26  ;;  %v623_v27 = vmul.f32 %v1413_v46, %v1260_v22  ;;  %v624_v16 = vmul.f32 %v1413_v46, %v1263_v23 }
  0x5f   : > { %v1508_v53 = vadd.f32 %v1486_v0, %v678_v29  ;;  %v1511_v28 = vadd.f32 %v1486_v0, %v679_v39  ;;  %v592_v40 = vsel %vm244_vm0, %v590_v60, %v591_v25  ;;  %v625_v31 = vmul.f32 %v1413_v46, %v1342_v63 }
  0x60   : > { %v626_v62 = vmul.f32 %v1413_v46, %v1358_v42  ;;  %v1519_v44 = vadd.f32 %v1486_v0, %v680_v48  ;;  %v595_v22 = vsel %vm244_vm0, %v593_v43, %v594_v2  ;;  %v608_v23 = vadd.f32 %v586_v6, %v1442_v61 }
  0x61   : > { %v657_v45 = vrot.slane %v621_v36, 2  ;;  %v658_v47 = vrot.slane %v622_v38, 2  ;;  %v609_v20 = vadd.f32 %v589_v30, %v536_v7  ;;  %v627_v49 = vmul.f32 %v1413_v46, %v1417_v24 }
  0x62   : > { %v628_v50 = vmul.f32 %v1413_v46, %v1455_v37  ;;  %v1528_v63 = vmul.f32 0.70710677, %v1501_v3  ;;  %v660_v42 = vrot.slane %v623_v27, 2  ;;  %v661_v35 = vrot.slane %v624_v16, 2 }
  0x63   : > { %v1531_v8 = vmul.f32 0.70710677, %v1508_v53  ;;  %v1534_v9 = vmul.f32 0.70710677, %v1511_v28  ;;  %v663_v61 = vrot.slane %v625_v31, 2  ;;  %v664_v41 = vrot.slane %v626_v62, 2 }
  0x64   : > { %v1537_v10 = vmul.f32 0.70710677, %v1519_v44  ;;  %v713_v24 = vmul.f32 %v1528_v63, %v1528_v63  ;;  %v1541_v46 = vadd.f32 %v592_v40, %v537_v18  ;;  %v659_v37 = vsel %vm318_vm1, %v657_v45, %v658_v47 }
  0x65   : > { %v753_v51 = vmul.f32 %v1531_v8, %v1531_v8  ;;  %v793_v11 = vmul.f32 %v1534_v9, %v1534_v9  ;;  %v666_v54 = vrot.slane %v627_v49, 2  ;;  %v667_v12 = vrot.slane %v628_v50, 2 }
  0x66   : > { %v1548_v52 = vmin.f32 %v713_v24, 16.0  ;;  %v833_v55 = vmul.f32 %v1537_v10, %v1537_v10  ;;  %v1552_v13 = vadd.f32 %v595_v22, %v538_v5  ;;  %v662_v58 = vsel %vm318_vm1, %v660_v42, %v661_v35 }
  0x67   : > { %v1555_v59 = vmin.f32 %v753_v51, 16.0  ;;  %v1557_v14 = vmin.f32 %v793_v11, 16.0  ;;  %v665_v19 = vsel %vm318_vm1, %v663_v61, %v664_v41  ;;  %v681_v17 = vadd.f32 %v659_v37, %v608_v23 }
  0x68   : > { %v715_v33 = vmul.f32 2.1237322e-06, %v1548_v52  ;;  %v726_v15 = vmul.f32 3.8918573e-05, %v1548_v52  ;;  %v1562_v34 = vmin.f32 %v833_v55, 16.0  ;;  %v668_v56 = vsel %vm318_vm1, %v666_v54, %v667_v12 }
  0x69   : > { %v755_v21 = vmul.f32 2.1237322e-06, %v1555_v59  ;;  %v766_v1 = vmul.f32 3.8918573e-05, %v1555_v59  ;;  %v795_v4 = vmul.f32 2.1237322e-06, %v1557_v14  ;;  %v682_v18 = vadd.f32 %v662_v58, %v609_v20 }
  0x6a   : > { %v716_v57 = vadd.f32 0.00028619796, %v715_v33  ;;  %v727_v32 = vadd.f32 0.001143296, %v726_v15  ;;  %v806_v7 = vmul.f32 3.8918573e-05, %v1557_v14  ;;  %v1578_v40 = vadd.f32 %v1486_v0, %v681_v17 }
  0x6b   : > { %v756_v60 = vadd.f32 0.00028619796, %v755_v21  ;;  %v767_v25 = vadd.f32 0.001143296, %v766_v1  ;;  %v796_v43 = vadd.f32 0.00028619796, %v795_v4  ;;  %v683_v17 = vadd.f32 %v665_v19, %v1541_v46 }
  0x6c   : > { %v717_v2 = vmul.f32 %v716_v57, %v1548_v52  ;;  %v728_v26 = vmul.f32 %v727_v32, %v1548_v52  ;;  %v807_v29 = vadd.f32 0.001143296, %v806_v7  ;;  %v835_v36 = vmul.f32 2.1237322e-06, %v1562_v34 }
  0x6d   : > { %v757_v38 = vmul.f32 %v756_v60, %v1555_v59  ;;  %v768_v39 = vmul.f32 %v767_v25, %v1555_v59  ;;  %v797_v48 = vmul.f32 %v796_v43, %v1557_v14  ;;  %v846_v5 = vmul.f32 3.8918573e-05, %v1562_v34 }
  0x6e   : > { %v718_v6 = vadd.f32 0.0036580483, %v717_v2  ;;  %v729_v30 = vadd.f32 0.014752088, %v728_v26  ;;  %v808_v27 = vmul.f32 %v807_v29, %v1557_v14  ;;  %v836_v16 = vadd.f32 0.00028619796, %v835_v36 }
  0x6f   : > { %v758_v31 = vadd.f32 0.0036580483, %v757_v38  ;;  %v769_v62 = vadd.f32 0.014752088, %v768_v39  ;;  %v798_v22 = vadd.f32 0.0036580483, %v797_v48  ;;  %v684_v25 = vadd.f32 %v668_v56, %v1552_v13 }
  0x70   : > { %v719_v23 = vmul.f32 %v718_v6, %v1548_v52  ;;  %v730_v45 = vmul.f32 %v729_v30, %v1548_v52  ;;  %v809_v47 = vadd.f32 0.014752088, %v808_v27  ;;  %v837_v20 = vmul.f32 %v836_v16, %v1562_v34 }
  0x71   : > { %v759_v49 = vmul.f32 %v758_v31, %v1555_v59  ;;  %v770_v50 = vmul.f32 %v769_v62, %v1555_v59  ;;  %v799_v42 = vmul.f32 %v798_v22, %v1557_v14  ;;  %v847_v35 = vadd.f32 0.001143296, %v846_v5 }
  0x72   : > { %v720_v61 = vadd.f32 0.05243302, %v719_v23  ;;  %v731_v41 = vadd.f32 0.112945676, %v730_v45  ;;  %v810_v24 = vmul.f32 %v809_v47, %v1557_v14  ;;  %v838_v37 = vadd.f32 0.0036580483, %v837_v20 }
  0x73   : > { %v760_v51 = vadd.f32 0.05243302, %v759_v49  ;;  %v771_v11 = vadd.f32 0.112945676, %v770_v50  ;;  %v800_v54 = vadd.f32 0.05243302, %v799_v42  ;;  %v848_v12 = vmul.f32 %v847_v35, %v1562_v34 }
  0x74   : > { %v1589_v55 = vmul.f32 0.70710677, %v1578_v40  ;;  %v721_v58 = vmul.f32 %v720_v61, %v1548_v52  ;;  %v732_v33 = vmul.f32 %v731_v41, %v1548_v52  ;;  %v811_v15 = vadd.f32 0.112945676, %v810_v24 }
  0x75   : > { %v772_v21 = vmul.f32 %v771_v11, %v1555_v59  ;;  %v839_v1 = vmul.f32 %v838_v37, %v1562_v34  ;;  %v849_v4 = vadd.f32 0.014752088, %v848_v12  ;;  %v761_v32 = vmul.f32 %v760_v51, %v1555_v59 }
  0x76   : > { %v733_v57 = vadd.f32 0.4994258, %v732_v33  ;;  %v801_v7 = vmul.f32 %v800_v54, %v1557_v14  ;;  %v812_v60 = vmul.f32 %v811_v15, %v1557_v14  ;;  %v722_v43 = vadd.f32 0.18741608, %v721_v58 }
  0x77   : > { %v773_v2 = vadd.f32 0.4994258, %v772_v21  ;;  %v850_v26 = vmul.f32 %v849_v4, %v1562_v34  ;;  %v1602_v46 = vadd.f32 %v1486_v0, %v682_v18  ;;  %v873_v36 = vmul.f32 %v1589_v55, %v1589_v55 }
  0x78   : > { %v734_v19 = vmul.f32 %v733_v57, %v1548_v52  ;;  %v813_v29 = vadd.f32 0.4994258, %v812_v60  ;;  %v1608_v38 = vadd.f32 %v1486_v0, %v683_v17  ;;  %v840_v48 = vadd.f32 0.05243302, %v839_v1 }
  0x79   : > { %v774_v39 = vmul.f32 %v773_v2, %v1555_v59  ;;  %v851_v13 = vadd.f32 0.112945676, %v850_v26  ;;  %v762_v5 = vadd.f32 0.18741608, %v761_v32  ;;  %v802_v6 = vadd.f32 0.18741608, %v801_v7 }
  0x7a   : > { %v1611_v56 = vadd.f32 1.0, %v734_v19  ;;  %v723_v18 = vmul.f32 %v722_v43, %v1548_v52  ;;  %v814_v27 = vmul.f32 %v813_v29, %v1557_v14  ;;  %v1619_v31 = vmin.f32 %v873_v36, 16.0 }
  0x7b   : > { %v1614_v30 = vadd.f32 1.0, %v774_v39  ;;  %v852_v16 = vmul.f32 %v851_v13, %v1562_v34  ;;  %v1622_v62 = vadd.f32 %v1486_v0, %v684_v25  ;;  %v1625_v22 = vmul.f32 0.70710677, %v1602_v46 }
  0x7c   : > { %1142 = vrcp.f32 %v1611_v56  ;;  %v1628_v23 = vmul.f32 0.70710677, %v1608_v38  ;;  %v1632_v52 = vmul.f32 0.5, %v1501_v3  ;;  %v763_v45 = vmul.f32 %v762_v5, %v1555_v59 }
  0x7d   : > { %1144 = vrcp.f32 %v1614_v30  ;;  %v841_v47 = vmul.f32 %v840_v48, %v1562_v34  ;;  %v724_v20 = vadd.f32 1.1283791, %v723_v18  ;;  %v803_v49 = vmul.f32 %v802_v6, %v1557_v14 }
  0x7e   : > { %v1637_v0 = vadd.f32 1.0, %v814_v27  ;;  %v853_v50 = vadd.f32 0.4994258, %v852_v16  ;;  %v1640_v42 = vmul.f32 0.5, %v1508_v53  ;;  %v1643_v35 = vmul.f32 0.5, %v1511_v28 }
  0x7f   : > { %v875_v61 = vmul.f32 2.1237322e-06, %v1619_v31  ;;  %v886_v3 = vmul.f32 3.8918573e-05, %v1619_v31  ;;  %v1648_v59 = vmul.f32 0.70710677, %v1622_v62  ;;  %v913_v14 = vmul.f32 %v1625_v22, %v1625_v22 }
  0x80   : > { %1146 = vrcp.f32 %v1637_v0  ;;  %v953_v41 = vmul.f32 %v1628_v23, %v1628_v23  ;;  %v764_v24 = vadd.f32 1.1283791, %v763_v45  ;;  %v854_v28 = vmul.f32 %v853_v50, %v1562_v34 }
  0x81   : > { %v876_v37 = vadd.f32 0.00028619796, %v875_v61  ;;  %v887_v51 = vadd.f32 0.001143296, %v886_v3  ;;  %v1661_v54 = vmul.f32 %v724_v20, %v1528_v63  ;;  %v1665_v58 = vadd.f32 1.1283791, %v803_v49 }
  0x82   : > { %v1655_v53 = vpop.eup %1142  ;;  %v842_v33 = vadd.f32 0.18741608, %v841_v47  ;;  %vm741_vm2 = vweird.f32 %v1611_v56  ;;  %v747_v15 = vand.u32 2147483648, %v1611_v56  ;;  %v1671_v21 = vadd.f32 1.0, %v854_v28 }
  0x83   : > { %v1658_v11 = vpop.eup %1144  ;;  %v737_v12 = vmul.f32 %v1655_v53, %v1611_v56  ;;  %v787_v4 = vand.u32 2147483648, %v1614_v30  ;;  %v877_v63 = vmul.f32 %v876_v37, %v1619_v31  ;;  %v888_v57 = vmul.f32 %v887_v51, %v1619_v31 }
  0x84   : > { %v777_v17 = vmul.f32 %v1658_v11, %v1614_v30  ;;  %v745_v32 = vand.u32 2147483647, %v1611_v56  ;;  %v1678_v7 = vmul.f32 %v764_v24, %v1531_v8  ;;  %v785_v60 = vand.u32 2147483647, %v1614_v30 }
  0x85   : > { %v738_v1 = vsub.f32 1.0, %v737_v12  ;;  %1148 = vrcp.f32 %v1671_v21  ;;  %vm781_vm3 = vweird.f32 %v1614_v30  ;;  %v878_v43 = vadd.f32 0.0036580483, %v877_v63 }
  0x86   : > { %v1682_v25 = vpop.eup %1146  ;;  %v889_v2 = vadd.f32 0.014752088, %v888_v57  ;;  %v1685_v26 = vmin.f32 %v913_v14, 16.0  ;;  %v1688_v29 = vor.u32 1.1754944e-38, %v747_v15  ;;  %v778_v36 = vsub.f32 1.0, %v777_v17 }
  0x87   : > { %v739_v19 = vmul.f32 %v1655_v53, %v738_v1  ;;  %v817_v8 = vmul.f32 %v1682_v25, %v1637_v0  ;;  %v1692_v39 = vor.u32 1.1754944e-38, %v787_v4  ;;  %v843_v48 = vmul.f32 %v842_v33, %v1562_v34 }
  0x88   : > { %v879_v13 = vmul.f32 %v878_v43, %v1619_v31  ;;  %v890_v5 = vmul.f32 %v889_v2, %v1619_v31  ;;  %vm742_vm4 = vweird.f32 %v1655_v53  ;;  %v825_v18 = vand.u32 2147483647, %v1637_v0 }
  0x89   : > { %v818_v6 = vsub.f32 1.0, %v817_v8  ;;  %v915_v27 = vmul.f32 2.1237322e-06, %v1685_v26  ;;  %vm1700_vm5 = vcmp.eq.f32.partialorder %v745_v32, 8.507059e+37  ;;  %vm821_vm6 = vweird.f32 %v1637_v0  ;;  %vm1713_vm7 = vmor %vm741_vm2, %vm742_vm4 }
  0x8a   : > { %v880_v45 = vadd.f32 0.05243302, %v879_v13  ;;  %v891_v47 = vadd.f32 0.112945676, %v890_v5  ;;  %v926_v34 = vmul.f32 3.8918573e-05, %v1685_v26  ;;  %v740_v49 = vadd.f32 %v1655_v53, %v739_v19 }
  0x8b   : > { %v1706_v20 = vpop.eup %1148  ;;  %v779_v50 = vmul.f32 %v1658_v11, %v778_v36  ;;  %v827_v61 = vand.u32 2147483648, %v1637_v0  ;;  %v916_v3 = vadd.f32 0.00028619796, %v915_v27  ;;  %vm782_vm8 = vweird.f32 %v1658_v11 }
  0x8c   : > { %v857_v24 = vmul.f32 %v1706_v20, %v1671_v21  ;;  %vm861_vm9 = vweird.f32 %v1671_v21  ;;  %v865_v28 = vand.u32 2147483647, %v1671_v21  ;;  %vm1722_vm10 = vcmp.eq.f32.partialorder %v785_v60, 8.507059e+37  ;;  %vm1745_vm13 = vmor %vm781_vm3, %vm782_vm8 }
  0x8d   : > { %v819_v51 = vmul.f32 %v1682_v25, %v818_v6  ;;  %v867_v56 = vand.u32 2147483648, %v1671_v21  ;;  %v881_v12 = vmul.f32 %v880_v45, %v1619_v31  ;;  %v892_v33 = vmul.f32 %v891_v47, %v1619_v31 }
  0x8e   : > { %v858_v15 = vsub.f32 1.0, %v857_v24  ;;  %v917_v17 = vmul.f32 %v916_v3, %v1685_v26  ;;  %v927_v1 = vadd.f32 0.001143296, %v926_v34  ;;  %v1731_v4 = vmin.f32 %v953_v41, 16.0 }
  0x8f   : > { %v744_v63 = vsel %vm1713_vm7, %v1655_v53, %v740_v49  ;;  %v780_v57 = vadd.f32 %v1658_v11, %v779_v50  ;;  %vm822_vm11 = vweird.f32 %v1682_v25  ;;  %v893_v32 = vadd.f32 0.4994258, %v892_v33 }
  0x90   : > { %v859_v60 = vmul.f32 %v1706_v20, %v858_v15  ;;  %vm862_vm12 = vweird.f32 %v1706_v20  ;;  %v918_v43 = vadd.f32 0.0036580483, %v917_v17  ;;  %v928_v2 = vmul.f32 %v927_v1, %v1685_v26  ;;  %vm1754_vm14 = vmor %vm821_vm6, %vm822_vm11 }
  0x91   : > { %v820_v53 = vadd.f32 %v1682_v25, %v819_v51  ;;  %v882_v19 = vadd.f32 0.18741608, %v881_v12  ;;  %v894_v36 = vmul.f32 %v893_v32, %v1619_v31  ;;  %v955_v8 = vmul.f32 2.1237322e-06, %v1731_v4  ;;  %vm1769_vm0 = vmor %vm861_vm9, %vm862_vm12 }
  0x92   : > { %v860_v5 = vadd.f32 %v1706_v20, %v859_v60  ;;  %v919_v30 = vmul.f32 %v918_v43, %v1685_v26  ;;  %v929_v6 = vadd.f32 0.014752088, %v928_v2  ;;  %v966_v27 = vmul.f32 3.8918573e-05, %v1731_v4 }
  0x93   : > { %vm1761_vm15 = vcmp.eq.f32.partialorder %v825_v18, 8.507059e+37  ;;  %v844_v47 = vadd.f32 1.1283791, %v843_v48  ;;  %v895_v34 = vadd.f32 1.0, %v894_v36  ;;  %v956_v49 = vadd.f32 0.00028619796, %v955_v8 }
  0x94   : > { %v828_v50 = vor.u32 1.1754944e-38, %v827_v61  ;;  %vm1773_vm1 = vcmp.eq.f32.partialorder %v865_v28, 8.507059e+37  ;;  %v930_v18 = vmul.f32 %v929_v6, %v1685_v26  ;;  %v967_v14 = vadd.f32 0.001143296, %v966_v27 }
  0x95   : > { %v749_v48 = vsel %vm1700_vm5, %v1688_v29, %v744_v63  ;;  %v784_v21 = vsel %vm1745_vm13, %v1658_v11, %v780_v57  ;;  %v868_v24 = vor.u32 1.1754944e-38, %v867_v56  ;;  %1150 = vrcp.f32 %v895_v34 }
  0x96   : > { %v824_v61 = vsel %vm1754_vm14, %v1682_v25, %v820_v53  ;;  %v864_v28 = vsel %vm1769_vm0, %v1706_v20, %v860_v5  ;;  %v883_v51 = vmul.f32 %v882_v19, %v1619_v31  ;;  %v920_v12 = vadd.f32 0.05243302, %v919_v30 }
  0x97   : > { %v931_v33 = vadd.f32 0.112945676, %v930_v18  ;;  %v957_v29 = vmul.f32 %v956_v49, %v1731_v4  ;;  %v968_v16 = vmul.f32 %v967_v14, %v1731_v4  ;;  %v993_v11 = vmul.f32 %v1648_v59, %v1648_v59 }
  0x98   : > { %v1796_v56 = vmul.f32 %v749_v48, %v1661_v54  ;;  %v789_v25 = vsel %vm1722_vm10, %v1692_v39, %v784_v21  ;;  %v805_v20 = vmul.f32 %v1665_v58, %v1534_v9  ;;  %v845_v31 = vmul.f32 %v844_v47, %v1537_v10 }
  0x99   : > { %v932_v15 = vmul.f32 %v931_v33, %v1685_v26  ;;  %v958_v17 = vadd.f32 0.0036580483, %v957_v29  ;;  %v969_v1 = vadd.f32 0.014752088, %v968_v16  ;;  %v1805_v63 = vmin.f32 %v993_v11, 16.0 }
  0x9a   : > { %v829_v57 = vsel %vm1761_vm15, %v828_v50, %v824_v61  ;;  %v869_v54 = vsel %vm1773_vm1, %v868_v24, %v864_v28  ;;  %v884_v32 = vadd.f32 1.1283791, %v883_v51  ;;  %v921_v39 = vmul.f32 %v920_v12, %v1685_v26 }
  0x9b   : > { %v1151_v37 = vpop.eup %1150  ;;  %vm901_vm2 = vweird.f32 %v895_v34  ;;  %v933_v9 = vadd.f32 0.4994258, %v932_v15  ;;  %v970_v10 = vmul.f32 %v969_v1, %v1731_v4  ;;  %v995_v58 = vmul.f32 2.1237322e-06, %v1805_v63 }
  0x9c   : > { %v897_v60 = vmul.f32 %v1151_v37, %v895_v34  ;;  %v905_v43 = vand.u32 2147483647, %v895_v34  ;;  %v959_v2 = vmul.f32 %v958_v17, %v1731_v4  ;;  %v1006_v41 = vmul.f32 3.8918573e-05, %v1805_v63 }
  0x9d   : > { %v907_v53 = vand.u32 2147483648, %v895_v34  ;;  %v934_v19 = vmul.f32 %v933_v9, %v1685_v26  ;;  %v971_v36 = vadd.f32 0.112945676, %v970_v10  ;;  %v996_v8 = vadd.f32 0.00028619796, %v995_v58 }
  0x9e   : > { %v898_v13 = vsub.f32 1.0, %v897_v60  ;;  %vm902_vm3 = vweird.f32 %v1151_v37  ;;  %v922_v5 = vadd.f32 0.18741608, %v921_v39  ;;  %v1007_v30 = vadd.f32 0.001143296, %v1006_v41 }
  0x9f   : > { %v790_v6 = vmul.f32 %v789_v25, %v1678_v7  ;;  %v1818_v27 = vadd.f32 1.0, %v934_v19  ;;  %v972_v45 = vmul.f32 %v971_v36, %v1731_v4  ;;  %v997_v47 = vmul.f32 %v996_v8, %v1805_v63  ;;  %vm1825_vm4 = vmor %vm901_vm2, %vm902_vm3 }
  0xa0   : > { %v830_v0 = vmul.f32 %v829_v57, %v805_v20  ;;  %v899_v49 = vmul.f32 %v1151_v37, %v898_v13  ;;  %v960_v50 = vadd.f32 0.05243302, %v959_v2  ;;  %v1008_v3 = vmul.f32 %v1007_v30, %v1805_v63 }
  0xa1   : > { %v870_v18 = vmul.f32 %v869_v54, %v845_v31  ;;  %v885_v14 = vmul.f32 %v884_v32, %v1589_v55  ;;  %v908_v7 = vor.u32 1.1754944e-38, %v907_v53  ;;  %1152 = vrcp.f32 %v1818_v27 }
  0xa2   : > { %v900_v21 = vadd.f32 %v1151_v37, %v899_v49  ;;  %vm906_vm5 = vcmp.eq.f32.partialorder %v905_v43, 8.507059e+37  ;;  %v923_v24 = vmul.f32 %v922_v5, %v1685_v26  ;;  %v973_v61 = vadd.f32 0.4994258, %v972_v45 }
  0xa3   : > { %v700_v28 = vmul.f32 0.5, %v1519_v44  ;;  %v1121_v51 = vclamps-f32 %v1796_v56, 1.0  ;;  %v998_v12 = vadd.f32 0.0036580483, %v997_v47  ;;  %v1009_v33 = vadd.f32 0.014752088, %v1008_v3 }
  0xa4   : > { %v1122_v55 = vclamps-f32 %v790_v6, 1.0  ;;  %v904_v34 = vsel %vm1825_vm4, %v1151_v37, %v900_v21  ;;  %v961_v29 = vmul.f32 %v960_v50, %v1731_v4  ;;  %v974_v16 = vmul.f32 %v973_v61, %v1731_v4 }
  0xa5   : > { %v701_v11 = vmul.f32 0.5, %v1578_v40  ;;  %v1123_v25 = vclamps-f32 %v830_v0, 1.0  ;;  %v909_v26 = vsel %vm906_vm5, %v908_v7, %v904_v34  ;;  %v1010_v20 = vmul.f32 %v1009_v33, %v1805_v63 }
  0xa6   : > { %v1124_v44 = vclamps-f32 %v870_v18, 1.0  ;;  %v910_v31 = vmul.f32 %v909_v26, %v885_v14  ;;  %v924_v56 = vadd.f32 1.1283791, %v923_v24  ;;  %v1839_v15 = vadd.f32 1.0, %v974_v16 }
  0xa7   : > { %v1153_v17 = vpop.eup %1152  ;;  %vm941_vm6 = vweird.f32 %v1818_v27  ;;  %v999_v1 = vmul.f32 %v998_v12, %v1805_v63  ;;  %v1011_v57 = vadd.f32 0.112945676, %v1010_v20  ;;  %v1033_v54 = vadd.f32 1.0, %v1121_v51 }
  0xa8   : > { %v1125_v32 = vclamps-f32 %v910_v31, 1.0  ;;  %v937_v40 = vmul.f32 %v1153_v17, %v1818_v27  ;;  %v962_v39 = vadd.f32 0.18741608, %v961_v29  ;;  %v1034_v37 = vadd.f32 1.0, %v1122_v55 }
  0xa9   : > { %v945_v9 = vand.u32 2147483647, %v1818_v27  ;;  %v947_v10 = vand.u32 2147483648, %v1818_v27  ;;  %1154 = vrcp.f32 %v1839_v15  ;;  %v1035_v58 = vadd.f32 1.0, %v1123_v25 }
  0xaa   : > { %v938_v60 = vsub.f32 1.0, %v937_v40  ;;  %vm942_vm7 = vweird.f32 %v1153_v17  ;;  %v1012_v43 = vmul.f32 %v1011_v57, %v1805_v63  ;;  %v1036_v2 = vadd.f32 1.0, %v1124_v44 }
  0xab   : > { %v925_v41 = vmul.f32 %v924_v56, %v1625_v22  ;;  %v1000_v53 = vadd.f32 0.05243302, %v999_v1  ;;  %v1037_v19 = vadd.f32 1.0, %v1125_v32  ;;  %v1041_v36 = vmul.f32 %v1033_v54, %v1632_v52  ;;  %vm1860_vm8 = vmor %vm941_vm6, %vm942_vm7 }
  0xac   : > { %v939_v8 = vmul.f32 %v1153_v17, %v938_v60  ;;  %v963_v13 = vmul.f32 %v962_v39, %v1731_v4  ;;  %v1013_v5 = vadd.f32 0.4994258, %v1012_v43  ;;  %v1042_v30 = vmul.f32 %v1034_v37, %v1640_v42 }
  0xad   : > { %v948_v22 = vor.u32 1.1754944e-38, %v947_v10  ;;  %v1043_v45 = vmul.f32 %v1035_v58, %v1643_v35  ;;  %v1044_v47 = vmul.f32 %v1036_v2, %v700_v28  ;;  %vm1049_vm9 = vcmask 64512  }
  0xae   : > { %v940_v52 = vadd.f32 %v1153_v17, %v939_v8  ;;  %vm946_vm10 = vcmp.eq.f32.partialorder %v945_v9, 8.507059e+37  ;;  %v1014_v4 = vmul.f32 %v1013_v5, %v1805_v63  ;;  %v1045_v0 = vmul.f32 %v1037_v19, %v701_v11  ;;  %1050 = vst.msk [vmem:[%s1852_s29] sm:$0xff] %vm1049_vm9, %v1041_v36 }
  0xaf   : > { %v1155_v42 = vpop.eup %1154  ;;  %v1001_v27 = vmul.f32 %v1000_v53, %v1805_v63  ;;  %1051 = vst.msk [vmem:[%s1852_s29 + $0x8] sm:$0xff] %vm1049_vm9, %v1042_v30  ;;  %v964_v35 = vadd.f32 1.1283791, %v963_v13  ;;  %vm981_vm11 = vweird.f32 %v1839_v15  ;;  %v987_v18 = vand.u32 2147483648, %v1839_v15 }
  0xb0   : > { %v944_v49 = vsel %vm1860_vm8, %v1153_v17, %v940_v52  ;;  %v977_v50 = vmul.f32 %v1155_v42, %v1839_v15  ;;  %1052 = vst.msk [vmem:[%s1852_s29 + $0x10] sm:$0xff] %vm1049_vm9, %v1043_v45  ;;  %v1015_v14 = vadd.f32 1.0, %v1014_v4  ;;  %vm982_vm12 = vweird.f32 %v1155_v42 }
  0xb1   : > { %v949_v3 = vsel %vm946_vm10, %v948_v22, %v944_v49  ;;  %1053 = vst.msk [vmem:[%s1852_s29 + $0x18] sm:$0xff] %vm1049_vm9, %v1044_v47  ;;  %v985_v21 = vand.u32 2147483647, %v1839_v15  ;;  %v1002_v24 = vadd.f32 0.18741608, %v1001_v27  ;;  %v702_v61 = vmul.f32 0.5, %v1602_v46  ;;  %vm983_vm13 = vmor %vm981_vm11, %vm982_vm12 }
  0xb2   : > { %v950_v48 = vmul.f32 %v949_v3, %v925_v41  ;;  %v978_v7 = vsub.f32 1.0, %v977_v50  ;;  %1054 = vst.msk [vmem:[%s1852_s29 + $0x20] sm:$0xff] %vm1049_vm9, %v1045_v0  ;;  %1156 = vrcp.f32 %v1015_v14  ;;  %v988_v12 = vor.u32 1.1754944e-38, %v987_v18 }
  0xb3   : > { %v965_v33 = vmul.f32 %v964_v35, %v1628_v23  ;;  %vm986_vm14 = vcmp.eq.f32.partialorder %v985_v21, 8.507059e+37  ;;  %v1003_v29 = vmul.f32 %v1002_v24, %v1805_v63  ;;  %v703_v46 = vmul.f32 0.5, %v1608_v38 }
  0xb4   : > { %v1126_v28 = vclamps-f32 %v950_v48, 1.0  ;;  %v979_v51 = vmul.f32 %v1155_v42, %v978_v7  ;;  %vm1021_vm15 = vweird.f32 %v1015_v14  ;;  %v1027_v56 = vand.u32 2147483648, %v1015_v14 }
  0xb5   : > { %v1004_v31 = vadd.f32 1.1283791, %v1003_v29  ;;  %v1025_v17 = vand.u32 2147483647, %v1015_v14  ;;  %v704_v9 = vmul.f32 0.5, %v1622_v62 }
  0xb6   : > { %v980_v55 = vadd.f32 %v1155_v42, %v979_v51  ;;  %v1038_v34 = vadd.f32 1.0, %v1126_v28  ;;  %v1028_v57 = vor.u32 1.1754944e-38, %v1027_v56 }
  0xb7   : > { %v1005_v54 = vmul.f32 %v1004_v31, %v1648_v59  ;;  %vm1026_vm2 = vcmp.eq.f32.partialorder %v1025_v17, 8.507059e+37 }
  0xb8   : > { %v984_v16 = vsel %vm983_vm13, %v1155_v42, %v980_v55  ;;  %v1046_v11 = vmul.f32 %v1038_v34, %v702_v61  ;;  %v1157_v25 = vpop.eup %1156 }
  0xb9   : > { %v989_v26 = vsel %vm986_vm14, %v988_v12, %v984_v16  ;;  %v1017_v44 = vmul.f32 %v1157_v25, %v1015_v14  ;;  %vm1022_vm0 = vweird.f32 %v1157_v25 }
  0xba   : > { %v990_v20 = vmul.f32 %v989_v26, %v965_v33  ;;  %1055 = vst.msk [vmem:[%s1852_s29 + $0x28] sm:$0xff] %vm1049_vm9, %v1046_v11  ;;  %vm1023_vm1 = vmor %vm1021_vm15, %vm1022_vm0 }
  0xbb   : > { %v1018_v15 = vsub.f32 1.0, %v1017_v44 }
  0xbc   : > { %v1127_v23 = vclamps-f32 %v990_v20, 1.0 }
  0xbd   : > { %v1019_v1 = vmul.f32 %v1157_v25, %v1018_v15 }
  0xbe   : > { %v1039_v63 = vadd.f32 1.0, %v1127_v23 }
  0xbf   : > { %v1020_v32 = vadd.f32 %v1157_v25, %v1019_v1 }
  0xc0   : > { %v1047_v40 = vmul.f32 %v1039_v63, %v703_v46 }
  0xc1   : > { %v1024_v39 = vsel %vm1023_vm1, %v1157_v25, %v1020_v32 }
  0xc2   : > { %1056 = vst.msk [vmem:[%s1852_s29 + $0x30] sm:$0xff] %vm1049_vm9, %v1047_v40  ;;  %v1029_v38 = vsel %vm1026_vm2, %v1028_v57, %v1024_v39 }
  0xc3   : > { %v1030_v37 = vmul.f32 %v1029_v38, %v1005_v54 }
  0xc5   : > { %v1128_v10 = vclamps-f32 %v1030_v37, 1.0 }
  0xc7   : > { %v1040_v58 = vadd.f32 1.0, %v1128_v10 }
  0xc9   : > { %v1048_v60 = vmul.f32 %v1040_v58, %v704_v9 }
  0xcb   : > { %1057 = vst.msk [vmem:[%s1852_s29 + $0x38] sm:$0xff] %vm1049_vm9, %v1048_v60 }
  0xcc PF: > { %s13_s12 = sadd.s32 1, %s1164_s12  }
  0xcd   : > { %p10_p4 = scmp.ge.s32.totalorder %s13_s12, 4  }
  0xcf   :  { %12 = sbr.rel (!%p10_p4) target bundleno = 1 (0x1), region = 62 }

// kernel: post_pos_embed.15
= control target key start
LH: loop header
LB: loop body
LE: loop exit
PB: predicated region body
PF: predicated region fallthrough
CT: control target
= control target key end

     0   :  { %s1002_s21 = smov 0   ;;  %s1004_s22 = smov 0   ;;  %s1185_s0 = inlined_call_operand.vmem [shape: f32[2,8,4,16], index: 0, kind: input, shape index: {}]   ;;  %s1186_s1 = inlined_call_operand.vmem [shape: f32[1,8], index: 1, kind: input, shape index: {}]   ;;  %s1187_s2 = inlined_call_operand.vmem [shape: f32[1,8], index: 2, kind: input, shape index: {}]   ;;  %s1188_s3 = inlined_call_operand.vmem [shape: f32[2,2], index: 3, kind: input, shape index: {}]   ;;  %s1189_s4 = inlined_call_operand.vmem [shape: f32[1,2], index: 4, kind: input, shape index: {}]   ;;  %s1190_s5 = inlined_call_operand.vmem [shape: f32[2,4,4,8], index: 5, kind: output, shape index: {0}]   ;;  %s1191_s6 = inlined_call_operand.vmem [shape: f32[2,4,4,2], index: 6, kind: output, shape index: {1}]  }
   0x1   :  { %s1006_s23 = smov 0  }
   0x2 LB: > { %s29_s24 = sadd.s32 1, %s957_s22  ;;  %p868_p0 = scmp.ge.s32.totalorder %s961_s23, 1  ;;  %s961_s23 = sphi %s1006_s23, %s17_s23   ;;  %s957_s22 = sphi %s1004_s22, %s1193_s22   ;;  %s953_s21 = sphi %s1002_s21, %s1192_s21  }
   0x3   : > { %p31_p1 = scmp.ge.s32.totalorder %s29_s24, 2  ;;  %p238_p2 = scmp.lt.s32.totalorder %s961_s23, 3 }
   0x5   : > { %s1195_s24 = smov (%p31_p1, %s29_s24), 0  ;;  %p239_p3 = pnand %p868_p0, %p238_p2 }
   0x6   : > { %p286_p4 = scmp.lt.s32.totalorder (!%p239_p3), %s953_s21, 1  ;;  %s963_s29 = smov (!%p239_p3), 120  }
   0x7   : > { %242 = sbr.rel (%p239_p3) target bundleno = 603 (0x25b), region = 40 }
   0xc   : > { %s1197_s21 = smov (!%p286_p4, %s953_s21), 1  ;;  %vm367_vm0 = vcmask 60416   ;;  %v964_v32 = vmov 8.0   ;;  %v965_v59 = vmov 6  }
   0xd   : > { %s881_s25 = sshll.u32 %s1197_s21, 5  ;;  %921 = vrcp.f32 %v964_v32  ;;  %914 = vset.pattern.permute.xlu2 %v965_v59  ;;  %913 = vset.pattern.permute.xlu1 %v965_v59  ;;  %s882_s8 = sshll.u32 %s1197_s21, 4 }
   0xe   : > { %s293_s28 = scalar_lea.vmem %s1185_s0, %s881_s25  ;;  %912 = vset.pattern.permute.xlu0 %v965_v59  ;;  %s1063_s13 = scalar_lea.vmem %s1190_s5, %s882_s8 }
   0xf   : > { %v319_v0 = vld [vmem:[%s293_s28 + $0x10] sm:$0xf]  ;;  %v317_v1 = vld [vmem:[%s293_s28 + $0x8] sm:$0xf]  ;;  %v315_v2 = vld [vmem:[%s293_s28] sm:$0xf]  ;;  %s1149_s20 = scalar_lea.vmem %s1191_s6, %s882_s8 }
  0x10   : > { %339 = vrot.lane.b32.xlu2 %v319_v0, %s963_s29  ;;  %335 = vrot.lane.b32.xlu1 %v317_v1, %s963_s29  ;;  %v320_v3 = vld [vmem:[%s293_s28 + $0x14] sm:$0xf]  ;;  %v318_v4 = vld [vmem:[%s293_s28 + $0xc] sm:$0xf] }
  0x11   : > { %331 = vrot.lane.b32.xlu0 %v315_v2, %s963_s29  ;;  %v316_v5 = vld [vmem:[%s293_s28 + $0x4] sm:$0xf]  ;;  %v322_v6 = vld [vmem:[%s293_s28 + $0x1c] sm:$0xf]  ;;  %v321_v7 = vld [vmem:[%s293_s28 + $0x18] sm:$0xf] }
  0x13   : > { %v922_v33 = vpop.eup %921 }
  0x14   : > { %v381_v34 = vmul.f32 8.0, %v922_v33  ;;  %vm385_vm1 = vweird.f32 %v922_v33 }
  0x16   : > { %v382_v35 = vsub.f32 1.0, %v381_v34 }
  0x18   : > { %341 = vrot.lane.b32.xlu2 %v320_v3, %s963_s29  ;;  %337 = vrot.lane.b32.xlu1 %v318_v4, %s963_s29  ;;  %v383_v36 = vmul.f32 %v922_v33, %v382_v35 }
  0x19   : > { %333 = vrot.lane.b32.xlu0 %v316_v5, %s963_s29 }
  0x1a   : > { %v384_v37 = vadd.f32 %v922_v33, %v383_v36 }
  0x1c   : > { %v386_v38 = vsel %vm385_vm1, %v922_v33, %v384_v37 }
  0x20   : > { %345 = vrot.lane.b32.xlu1 %v322_v6, %s963_s29 }
  0x21   : > { %343 = vrot.lane.b32.xlu0 %v321_v7, %s963_s29 }
  0x6a   : > { %v340_v8 = vpop.permute.xlu2 %339 }
  0x6b   : > { %v359_v9 = vmax.f32 %v319_v0, %v340_v8  ;;  %v1055_v8 = vld [vmem:[%s1187_s2] ss:$0 sm:$0xff] }
  0x72   : > { %v342_v10 = vpop.permute.xlu2 %341 }
  0x73   : > { %v360_v11 = vmax.f32 %v320_v3, %v342_v10 }
  0x75   : > { %v365_v12 = vmax.f32 %v359_v9, %v360_v11 }
  0x77   : > { %v374_v13 = vsel %vm367_vm0, %v365_v12, 0.0 }
  0x78   : > { %375 = vadd.xlane.f32.xlu1 %v374_v13 }
  0x82   : > { %v336_v14 = vpop.permute.xlu1 %335 }
  0x83   : > { %v332_v15 = vpop.permute.xlu0 %331  ;;  %v357_v17 = vmax.f32 %v317_v1, %v336_v14 }
  0x84   : > { %v355_v20 = vmax.f32 %v315_v2, %v332_v15 }
  0x8a   : > { %v338_v16 = vpop.permute.xlu1 %337 }
  0x8b   : > { %v358_v18 = vmax.f32 %v318_v4, %v338_v16  ;;  %v334_v19 = vpop.permute.xlu0 %333 }
  0x8c   : > { %v356_v21 = vmax.f32 %v316_v5, %v334_v19  ;;  %v1049_v5 = vld [vmem:[%s1186_s1] ss:$0 sm:$0xff] }
  0x8d   : > { %v364_v22 = vmax.f32 %v357_v17, %v358_v18 }
  0x8e   : > { %v363_v23 = vmax.f32 %v355_v20, %v356_v21 }
  0x8f   : > { %v371_v24 = vsel %vm367_vm0, %v364_v22, 0.0 }
  0x90   : > { %372 = vadd.xlane.f32.xlu0 %v371_v24  ;;  %v368_v25 = vsel %vm367_vm0, %v363_v23, 0.0  ;;  %v966_v24 = vmov 7  }
  0x91   : > { %369 = vadd.xlane.f32.xlu2 %v368_v25 }
  0x92   : > { %v346_v26 = vpop.permute.xlu1 %345 }
  0x93   : > { %v362_v27 = vmax.f32 %v322_v6, %v346_v26  ;;  %v344_v28 = vpop.permute.xlu0 %343 }
  0x94   : > { %v361_v29 = vmax.f32 %v321_v7, %v344_v28 }
  0x96   : > { %v366_v30 = vmax.f32 %v361_v29, %v362_v27 }
  0x98   : > { %v377_v31 = vsel %vm367_vm0, %v366_v30, 0.0 }
  0x99   : > { %378 = vadd.xlane.f32.xlu2 %v377_v31 }
  0xeb   : > { %v376_v39 = vpop.xlane.xlu1 %375 }
  0xec   : > { %v389_v40 = vmul.f32 %v386_v38, %v376_v39 }
  0xee   : > { %v393_v41 = vsub.f32 %v365_v12, %v389_v40 }
  0xf0   : > { %v397_v42 = vmul.f32 %v393_v41, %v393_v41 }
  0xf2   : > { %v405_v43 = vsel %vm367_vm0, %v397_v42, 0.0 }
  0xf3   : > { %406 = vadd.xlane.f32.xlu1 %v405_v43 }
 0x103   : > { %v373_v44 = vpop.xlane.xlu0 %372 }
 0x104   : > { %v370_v45 = vpop.xlane.xlu2 %369  ;;  %v388_v46 = vmul.f32 %v386_v38, %v373_v44 }
 0x105   : > { %v387_v47 = vmul.f32 %v386_v38, %v370_v45 }
 0x106   : > { %v1031_v48 = vsub.f32 %v364_v22, %v388_v46 }
 0x107   : > { %v1033_v49 = vsub.f32 %v363_v23, %v387_v47 }
 0x108   : > { %v396_v50 = vmul.f32 %v1031_v48, %v1031_v48 }
 0x109   : > { %v395_v51 = vmul.f32 %v1033_v49, %v1033_v49 }
 0x10a   : > { %v402_v52 = vsel %vm367_vm0, %v396_v50, 0.0 }
 0x10b   : > { %v399_v53 = vsel %vm367_vm0, %v395_v51, 0.0  ;;  %403 = vadd.xlane.f32.xlu0 %v402_v52 }
 0x10c   : > { %400 = vadd.xlane.f32.xlu2 %v399_v53  ;;  %v379_v54 = vpop.xlane.xlu2 %378  ;;  %v483_v53 = vld [vmem:[%s1188_s3] sm:$0x3] }
 0x10d   : > { %v390_v55 = vmul.f32 %v386_v38, %v379_v54  ;;  %v504_v54 = vperm.slane %v483_v53, 0 }
 0x10f   : > { %v1041_v56 = vsub.f32 %v366_v30, %v390_v55  ;;  %v529_v55 = vperm.slane %v483_v53, 1 }
 0x111   : > { %v398_v57 = vmul.f32 %v1041_v56, %v1041_v56 }
 0x113   : > { %v408_v58 = vsel %vm367_vm0, %v398_v57, 0.0 }
 0x114   : > { %409 = vadd.xlane.f32.xlu2 %v408_v58  ;;  %v920_v58 = vld [vmem:[%s1189_s4] ss:$0 sm:$0xff] }
 0x166   : > { %v407_v60 = vpop.xlane.xlu1 %406 }
 0x167   : > { %v413_v61 = vmul.f32 %v407_v60, %v386_v38 }
 0x169   : > { %v417_v62 = vadd.f32 1e-06, %v413_v61 }
 0x16b   : > { %923 = vrsqrt.f32 %v417_v62  ;;  %vm445_vm3 = vweird.f32 %v417_v62 }
 0x171   : > { %v924_v63 = vpop.eup %923 }
 0x172   : > { %v440_v0 = vmul.f32 %v924_v63, %v417_v62  ;;  %vm446_vm2 = vweird.f32 %v924_v63 }
 0x173   : > { %vm447_vm4 = vmor %vm445_vm3, %vm446_vm2  ;;  %vm722_vm2 = vcmask 11264  }
 0x174   : > { %v441_v1 = vmul.f32 %v924_v63, %v440_v0 }
 0x176   : > { %v442_v2 = vmul.f32 0.5, %v441_v1 }
 0x178   : > { %v443_v3 = vsub.f32 1.5, %v442_v2 }
 0x17a   : > { %v444_v4 = vmul.f32 %v924_v63, %v443_v3 }
 0x17c   : > { %v448_v6 = vsel %vm447_vm4, %v924_v63, %v444_v4 }
 0x17d   : > { %v461_v7 = vmul.f32 %v448_v6, %v393_v41 }
 0x17e   : > { %v404_v9 = vpop.xlane.xlu0 %403 }
 0x17f   : > { %v401_v10 = vpop.xlane.xlu2 %400  ;;  %v412_v11 = vmul.f32 %v404_v9, %v386_v38  ;;  %v469_v12 = vmul.f32 %v1049_v5, %v461_v7 }
 0x180   : > { %v411_v13 = vmul.f32 %v401_v10, %v386_v38 }
 0x181   : > { %v416_v14 = vadd.f32 1e-06, %v412_v11  ;;  %v477_v15 = vadd.f32 %v1055_v8, %v469_v12 }
 0x182   : > { %v415_v16 = vadd.f32 1e-06, %v411_v13 }
 0x183   : > { %925 = vrsqrt.f32 %v416_v14  ;;  %481 = vst.msk [vmem:[%s1063_s13 + $0x8] sm:$0xf] %vm367_vm0, %v477_v15  ;;  %496 = vperm.xlu2 %914, %v477_v15   ;;  %vm435_vm7 = vweird.f32 %v416_v14 }
 0x184   : > { %927 = vrsqrt.f32 %v415_v16  ;;  %vm425_vm8 = vweird.f32 %v415_v16 }
 0x187   : > { %v410_v17 = vpop.xlane.xlu2 %409 }
 0x188   : > { %v414_v18 = vmul.f32 %v410_v17, %v386_v38 }
 0x189   : > { %v926_v19 = vpop.eup %925 }
 0x18a   : > { %v928_v20 = vpop.eup %927  ;;  %v430_v21 = vmul.f32 %v926_v19, %v416_v14  ;;  %v418_v22 = vadd.f32 1e-06, %v414_v18  ;;  %vm436_vm5 = vweird.f32 %v926_v19 }
 0x18b   : > { %v420_v23 = vmul.f32 %v928_v20, %v415_v16  ;;  %915 = vset.pattern.permute.xlu2 %v966_v24  ;;  %vm426_vm6 = vweird.f32 %v928_v20  ;;  %vm437_vm9 = vmor %vm435_vm7, %vm436_vm5 }
 0x18c   : > { %v431_v25 = vmul.f32 %v926_v19, %v430_v21  ;;  %929 = vrsqrt.f32 %v418_v22  ;;  %vm427_vm10 = vmor %vm425_vm8, %vm426_vm6  ;;  %vm455_vm12 = vweird.f32 %v418_v22 }
 0x18d   : > { %v421_v26 = vmul.f32 %v928_v20, %v420_v23 }
 0x18e   : > { %v432_v27 = vmul.f32 0.5, %v431_v25 }
 0x18f   : > { %v422_v28 = vmul.f32 0.5, %v421_v26 }
 0x190   : > { %v433_v29 = vsub.f32 1.5, %v432_v27 }
 0x191   : > { %v423_v30 = vsub.f32 1.5, %v422_v28 }
 0x192   : > { %v930_v31 = vpop.eup %929  ;;  %v434_v32 = vmul.f32 %v926_v19, %v433_v29 }
 0x193   : > { %v424_v33 = vmul.f32 %v928_v20, %v423_v30  ;;  %v450_v34 = vmul.f32 %v930_v31, %v418_v22  ;;  %vm456_vm11 = vweird.f32 %v930_v31 }
 0x194   : > { %v438_v35 = vsel %vm437_vm9, %v926_v19, %v434_v32  ;;  %vm457_vm13 = vmor %vm455_vm12, %vm456_vm11 }
 0x195   : > { %v428_v36 = vsel %vm427_vm10, %v928_v20, %v424_v33  ;;  %v451_v37 = vmul.f32 %v930_v31, %v450_v34  ;;  %v460_v38 = vmul.f32 %v438_v35, %v1031_v48 }
 0x196   : > { %v459_v39 = vmul.f32 %v428_v36, %v1033_v49 }
 0x197   : > { %v452_v40 = vmul.f32 0.5, %v451_v37  ;;  %v468_v41 = vmul.f32 %v1049_v5, %v460_v38 }
 0x198   : > { %v467_v42 = vmul.f32 %v1049_v5, %v459_v39 }
 0x199   : > { %v453_v43 = vsub.f32 1.5, %v452_v40  ;;  %v476_v44 = vadd.f32 %v1055_v8, %v468_v41 }
 0x19a   : > { %v475_v45 = vadd.f32 %v1055_v8, %v467_v42 }
 0x19b   : > { %v454_v46 = vmul.f32 %v930_v31, %v453_v43  ;;  %491 = vperm.xlu1 %913, %v476_v44   ;;  %480 = vst.msk [vmem:[%s1063_s13 + $0x4] sm:$0xf] %vm367_vm0, %v476_v44 }
 0x19c   : > { %514 = vperm.xlu2 %915, %v475_v45   ;;  %479 = vst.msk [vmem:[%s1063_s13] sm:$0xf] %vm367_vm0, %v475_v45  ;;  %486 = vperm.xlu0 %912, %v475_v45  }
 0x19d   : > { %v458_v47 = vsel %vm457_vm13, %v930_v31, %v454_v46 }
 0x19e   : > { %v462_v48 = vmul.f32 %v458_v47, %v1041_v56 }
 0x1a0   : > { %v470_v49 = vmul.f32 %v1049_v5, %v462_v48 }
 0x1a2   : > { %v478_v50 = vadd.f32 %v1055_v8, %v470_v49 }
 0x1a4   : > { %522 = vperm.xlu2 %915, %v477_v15   ;;  %917 = vset.pattern.permute.xlu0 %v966_v24  ;;  %482 = vst.msk [vmem:[%s1063_s13 + $0xc] sm:$0xf] %vm367_vm0, %v478_v50 }
 0x1a5   : > { %501 = vperm.xlu1 %913, %v478_v50   ;;  %526 = vperm.xlu0 %917, %v478_v50  }
 0x1ad   : > { %916 = vset.pattern.permute.xlu1 %v966_v24 }
 0x1ae   : > { %518 = vperm.xlu1 %916, %v476_v44  }
 0x1dd   : > { %v497_v51 = vpop.permute.xlu2 %496 }
 0x1de   : > { %v507_v57 = vmul.f32 %v504_v54, %v497_v51 }
 0x1f6   : > { %v515_v52 = vpop.permute.xlu2 %514 }
 0x1f7   : > { %v530_v7 = vmul.f32 %v529_v55, %v515_v52 }
 0x1fe   : > { %v523_v56 = vpop.permute.xlu2 %522 }
 0x1ff   : > { %v532_v59 = vmul.f32 %v529_v55, %v523_v56 }
 0x201   : > { %v536_v60 = vadd.f32 %v532_v59, %v507_v57 }
 0x203   : > { %v1089_v61 = vadd.f32 %v920_v58, %v536_v60 }
 0x205   : > { %v1092_v62 = vmul.f32 0.70710677, %v1089_v61 }
 0x207   : > { %v634_v63 = vmul.f32 %v1092_v62, %v1092_v62 }
 0x209   : > { %v635_v0 = vmin.f32 %v634_v63, 16.0 }
 0x20b   : > { %v636_v1 = vmul.f32 2.1237322e-06, %v635_v0  ;;  %v647_v2 = vmul.f32 3.8918573e-05, %v635_v0 }
 0x20d   : > { %v637_v3 = vadd.f32 0.00028619796, %v636_v1  ;;  %v648_v4 = vadd.f32 0.001143296, %v647_v2  ;;  %v492_v5 = vpop.permute.xlu1 %491 }
 0x20e   : > { %v487_v6 = vpop.permute.xlu0 %486  ;;  %v506_v42 = vmul.f32 %v504_v54, %v492_v5 }
 0x20f   : > { %v638_v8 = vmul.f32 %v637_v3, %v635_v0  ;;  %v649_v9 = vmul.f32 %v648_v4, %v635_v0  ;;  %v505_v10 = vmul.f32 %v504_v54, %v487_v6 }
 0x211   : > { %v639_v11 = vadd.f32 0.0036580483, %v638_v8  ;;  %v650_v12 = vadd.f32 0.014752088, %v649_v9  ;;  %v534_v13 = vadd.f32 %v530_v7, %v505_v10 }
 0x213   : > { %v640_v14 = vmul.f32 %v639_v11, %v635_v0  ;;  %v651_v15 = vmul.f32 %v650_v12, %v635_v0  ;;  %v1096_v16 = vadd.f32 %v920_v58, %v534_v13 }
 0x215   : > { %v652_v17 = vadd.f32 0.112945676, %v651_v15  ;;  %v641_v18 = vadd.f32 0.05243302, %v640_v14  ;;  %v1099_v19 = vmul.f32 0.70710677, %v1096_v16 }
 0x217   : > { %v653_v20 = vmul.f32 %v652_v17, %v635_v0  ;;  %v502_v21 = vpop.permute.xlu1 %501  ;;  %v527_v22 = vpop.permute.xlu0 %526  ;;  %v554_v23 = vmul.f32 %v1099_v19, %v1099_v19  ;;  %v642_v27 = vmul.f32 %v641_v18, %v635_v0 }
 0x218   : > { %v508_v24 = vmul.f32 %v504_v54, %v502_v21  ;;  %v533_v25 = vmul.f32 %v529_v55, %v527_v22 }
 0x219   : > { %v654_v26 = vadd.f32 0.4994258, %v653_v20  ;;  %v1103_v28 = vmin.f32 %v554_v23, 16.0  ;;  %v643_v35 = vadd.f32 0.18741608, %v642_v27 }
 0x21a   : > { %v537_v29 = vadd.f32 %v533_v25, %v508_v24 }
 0x21b   : > { %v655_v30 = vmul.f32 %v654_v26, %v635_v0  ;;  %v556_v31 = vmul.f32 2.1237322e-06, %v1103_v28  ;;  %v567_v32 = vmul.f32 3.8918573e-05, %v1103_v28  ;;  %v644_v44 = vmul.f32 %v643_v35, %v635_v0 }
 0x21c   : > { %v1107_v33 = vadd.f32 %v920_v58, %v537_v29 }
 0x21d   : > { %v656_v34 = vadd.f32 1.0, %v655_v30  ;;  %v557_v36 = vadd.f32 0.00028619796, %v556_v31  ;;  %v568_v37 = vadd.f32 0.001143296, %v567_v32 }
 0x21e   : > { %v1112_v40 = vmul.f32 0.70710677, %v1107_v33  ;;  %v645_v56 = vadd.f32 1.1283791, %v644_v44 }
 0x21f   : > { %931 = vrcp.f32 %v656_v34  ;;  %v558_v38 = vmul.f32 %v557_v36, %v1103_v28  ;;  %v569_v39 = vmul.f32 %v568_v37, %v1103_v28  ;;  %v668_v0 = vand.u32 2147483648, %v656_v34 }
 0x220   : > { %v519_v41 = vpop.permute.xlu1 %518  ;;  %v674_v47 = vmul.f32 %v1112_v40, %v1112_v40  ;;  %v646_v8 = vmul.f32 %v645_v56, %v1092_v62  ;;  %vm662_vm15 = vweird.f32 %v656_v34 }
 0x221   : > { %v531_v43 = vmul.f32 %v529_v55, %v519_v41  ;;  %v559_v45 = vadd.f32 0.0036580483, %v558_v38  ;;  %v570_v46 = vadd.f32 0.014752088, %v569_v39  ;;  %v666_v55 = vand.u32 2147483647, %v656_v34 }
 0x222   : > { %v1117_v50 = vmin.f32 %v674_v47, 16.0  ;;  %v669_v14 = vor.u32 1.1754944e-38, %v668_v0 }
 0x223   : > { %v535_v48 = vadd.f32 %v531_v43, %v506_v42  ;;  %v571_v49 = vmul.f32 %v570_v46, %v1103_v28  ;;  %v560_v52 = vmul.f32 %v559_v45, %v1103_v28  ;;  %vm667_vm1 = vcmp.eq.f32.partialorder %v666_v55, 8.507059e+37 }
 0x224   : > { %v676_v59 = vmul.f32 2.1237322e-06, %v1117_v50  ;;  %v687_v60 = vmul.f32 3.8918573e-05, %v1117_v50 }
 0x225   : > { %v932_v51 = vpop.eup %931  ;;  %v1120_v53 = vadd.f32 %v920_v58, %v535_v48  ;;  %v572_v54 = vadd.f32 0.112945676, %v571_v49  ;;  %v561_v3 = vadd.f32 0.05243302, %v560_v52 }
 0x226   : > { %v658_v57 = vmul.f32 %v932_v51, %v656_v34  ;;  %v677_v4 = vadd.f32 0.00028619796, %v676_v59  ;;  %v688_v5 = vadd.f32 0.001143296, %v687_v60  ;;  %vm663_vm14 = vweird.f32 %v932_v51 }
 0x227   : > { %v573_v1 = vmul.f32 %v572_v54, %v1103_v28  ;;  %v1126_v2 = vmul.f32 0.70710677, %v1120_v53  ;;  %vm664_vm0 = vmor %vm662_vm15, %vm663_vm14  ;;  %v562_v15 = vmul.f32 %v561_v3, %v1103_v28  ;;  %v548_v34 = vmul.f32 0.5, %v1089_v61 }
 0x228   : > { %v659_v63 = vsub.f32 1.0, %v658_v57  ;;  %v678_v9 = vmul.f32 %v677_v4, %v1117_v50  ;;  %v689_v10 = vmul.f32 %v688_v5, %v1117_v50 }
 0x229   : > { %v574_v6 = vadd.f32 0.4994258, %v573_v1  ;;  %v594_v7 = vmul.f32 %v1126_v2, %v1126_v2  ;;  %v563_v26 = vadd.f32 0.18741608, %v562_v15 }
 0x22a   : > { %v660_v58 = vmul.f32 %v932_v51, %v659_v63  ;;  %v690_v17 = vadd.f32 0.014752088, %v689_v10  ;;  %v679_v21 = vadd.f32 0.0036580483, %v678_v9 }
 0x22b   : > { %v575_v12 = vmul.f32 %v574_v6, %v1103_v28  ;;  %v1134_v13 = vmin.f32 %v594_v7, 16.0  ;;  %v564_v42 = vmul.f32 %v563_v26, %v1103_v28 }
 0x22c   : > { %v661_v11 = vadd.f32 %v932_v51, %v660_v58  ;;  %v691_v23 = vmul.f32 %v690_v17, %v1117_v50  ;;  %v680_v29 = vmul.f32 %v679_v21, %v1117_v50  ;;  %v546_v17 = vmul.f32 0.5, %v1096_v16 }
 0x22d   : > { %v576_v20 = vadd.f32 1.0, %v575_v12  ;;  %v596_v62 = vmul.f32 2.1237322e-06, %v1134_v13  ;;  %v607_v24 = vmul.f32 3.8918573e-05, %v1134_v13 }
 0x22e   : > { %v665_v18 = vsel %vm664_vm0, %v932_v51, %v661_v11  ;;  %v692_v30 = vadd.f32 0.112945676, %v691_v23  ;;  %v681_v61 = vadd.f32 0.05243302, %v680_v29  ;;  %v565_v51 = vadd.f32 1.1283791, %v564_v42 }
 0x22f   : > { %v670_v22 = vsel %vm667_vm1, %v669_v14, %v665_v18  ;;  %933 = vrcp.f32 %v576_v20  ;;  %v597_v31 = vadd.f32 0.00028619796, %v596_v62  ;;  %v608_v32 = vadd.f32 0.001143296, %v607_v24 }
 0x230   : > { %v671_v25 = vmul.f32 %v670_v22, %v646_v8  ;;  %v693_v36 = vmul.f32 %v692_v30, %v1117_v50  ;;  %v588_v52 = vand.u32 2147483648, %v576_v20  ;;  %v682_v56 = vmul.f32 %v681_v61, %v1117_v50 }
 0x231   : > { %v598_v37 = vmul.f32 %v597_v31, %v1134_v13  ;;  %v609_v38 = vmul.f32 %v608_v32, %v1134_v13  ;;  %v586_v28 = vand.u32 2147483647, %v576_v20  ;;  %vm582_vm4 = vweird.f32 %v576_v20 }
 0x232   : > { %v877_v27 = vclamps-f32 %v671_v25, 1.0  ;;  %v694_v43 = vadd.f32 0.4994258, %v693_v36  ;;  %v589_v0 = vor.u32 1.1754944e-38, %v588_v52  ;;  %v683_v1 = vadd.f32 0.18741608, %v682_v56 }
 0x233   : > { %v610_v45 = vadd.f32 0.014752088, %v609_v38  ;;  %v599_v47 = vadd.f32 0.0036580483, %v598_v37  ;;  %v566_v3 = vmul.f32 %v565_v51, %v1099_v19  ;;  %vm587_vm6 = vcmp.eq.f32.partialorder %v586_v28, 8.507059e+37 }
 0x234   : > { %v716_v35 = vadd.f32 1.0, %v877_v27  ;;  %v695_v46 = vmul.f32 %v694_v43, %v1117_v50  ;;  %v684_v10 = vmul.f32 %v683_v1, %v1117_v50  ;;  %v549_v36 = vmul.f32 0.5, %v1107_v33 }
 0x235   : > { %v934_v39 = vpop.eup %933  ;;  %v611_v49 = vmul.f32 %v610_v45, %v1134_v13  ;;  %v600_v59 = vmul.f32 %v599_v47, %v1134_v13  ;;  %v547_v47 = vmul.f32 0.5, %v1120_v53 }
 0x236   : > { %v720_v41 = vmul.f32 %v716_v35, %v548_v34  ;;  %v578_v44 = vmul.f32 %v934_v39, %v576_v20  ;;  %v696_v57 = vadd.f32 1.0, %v695_v46  ;;  %vm583_vm3 = vweird.f32 %v934_v39 }
 0x237   : > { %v612_v55 = vadd.f32 0.112945676, %v611_v49  ;;  %vm584_vm5 = vmor %vm582_vm4, %vm583_vm3  ;;  %v601_v6 = vadd.f32 0.05243302, %v600_v59  ;;  %v685_v20 = vadd.f32 1.1283791, %v684_v10 }
 0x238   : > { %725 = vst.msk [vmem:[%s1149_s20 + $0x8] sm:$0xf] %vm722_vm2, %v720_v41  ;;  %v579_v48 = vsub.f32 1.0, %v578_v44  ;;  %935 = vrcp.f32 %v696_v57  ;;  %v708_v21 = vand.u32 2147483648, %v696_v57  ;;  %v706_v23 = vand.u32 2147483647, %v696_v57 }
 0x239   : > { %v613_v63 = vmul.f32 %v612_v55, %v1134_v13  ;;  %v602_v14 = vmul.f32 %v601_v6, %v1134_v13  ;;  %vm702_vm8 = vweird.f32 %v696_v57  ;;  %v686_v26 = vmul.f32 %v685_v20, %v1112_v40 }
 0x23a   : > { %v580_v54 = vmul.f32 %v934_v39, %v579_v48  ;;  %v709_v25 = vor.u32 1.1754944e-38, %v708_v21  ;;  %vm707_vm10 = vcmp.eq.f32.partialorder %v706_v23, 8.507059e+37 }
 0x23b   : > { %v614_v5 = vadd.f32 0.4994258, %v613_v63  ;;  %v603_v24 = vadd.f32 0.18741608, %v602_v14 }
 0x23c   : > { %v581_v60 = vadd.f32 %v934_v39, %v580_v54 }
 0x23d   : > { %v615_v8 = vmul.f32 %v614_v5, %v1134_v13  ;;  %v604_v30 = vmul.f32 %v603_v24, %v1134_v13 }
 0x23e   : > { %v585_v4 = vsel %vm584_vm5, %v934_v39, %v581_v60  ;;  %v936_v9 = vpop.eup %935 }
 0x23f   : > { %v590_v58 = vsel %vm587_vm6, %v589_v0, %v585_v4  ;;  %v698_v12 = vmul.f32 %v936_v9, %v696_v57  ;;  %v616_v15 = vadd.f32 1.0, %v615_v8  ;;  %vm703_vm7 = vweird.f32 %v936_v9 }
 0x240   : > { %v591_v7 = vmul.f32 %v590_v58, %v566_v3  ;;  %vm704_vm9 = vmor %vm702_vm8, %vm703_vm7  ;;  %v605_v37 = vadd.f32 1.1283791, %v604_v30 }
 0x241   : > { %v699_v18 = vsub.f32 1.0, %v698_v12  ;;  %937 = vrcp.f32 %v616_v15  ;;  %v628_v38 = vand.u32 2147483648, %v616_v15  ;;  %v626_v42 = vand.u32 2147483647, %v616_v15 }
 0x242   : > { %v875_v11 = vclamps-f32 %v591_v7, 1.0  ;;  %vm622_vm12 = vweird.f32 %v616_v15  ;;  %v606_v13 = vmul.f32 %v605_v37, %v1126_v2 }
 0x243   : > { %v700_v22 = vmul.f32 %v936_v9, %v699_v18  ;;  %v629_v43 = vor.u32 1.1754944e-38, %v628_v38  ;;  %vm627_vm14 = vcmp.eq.f32.partialorder %v626_v42, 8.507059e+37 }
 0x244   : > { %v714_v19 = vadd.f32 1.0, %v875_v11 }
 0x245   : > { %v701_v50 = vadd.f32 %v936_v9, %v700_v22 }
 0x246   : > { %v718_v62 = vmul.f32 %v714_v19, %v546_v17 }
 0x247   : > { %v705_v27 = vsel %vm704_vm9, %v936_v9, %v701_v50  ;;  %v938_v16 = vpop.eup %937 }
 0x248   : > { %723 = vst.msk [vmem:[%s1149_s20] sm:$0xf] %vm722_vm2, %v718_v62  ;;  %v710_v29 = vsel %vm707_vm10, %v709_v25, %v705_v27  ;;  %v618_v32 = vmul.f32 %v938_v16, %v616_v15  ;;  %vm623_vm11 = vweird.f32 %v938_v16 }
 0x249   : > { %v711_v31 = vmul.f32 %v710_v29, %v686_v26  ;;  %vm624_vm13 = vmor %vm622_vm12, %vm623_vm11 }
 0x24a   : > { %v619_v35 = vsub.f32 1.0, %v618_v32 }
 0x24b   : > { %v878_v34 = vclamps-f32 %v711_v31, 1.0 }
 0x24c   : > { %v620_v41 = vmul.f32 %v938_v16, %v619_v35 }
 0x24d   : > { %v717_v39 = vadd.f32 1.0, %v878_v34 }
 0x24e   : > { %v621_v61 = vadd.f32 %v938_v16, %v620_v41 }
 0x24f   : > { %v721_v40 = vmul.f32 %v717_v39, %v549_v36 }
 0x250   : > { %v625_v44 = vsel %vm624_vm13, %v938_v16, %v621_v61 }
 0x251   : > { %726 = vst.msk [vmem:[%s1149_s20 + $0xc] sm:$0xf] %vm722_vm2, %v721_v40  ;;  %v630_v45 = vsel %vm627_vm14, %v629_v43, %v625_v44 }
 0x252   : > { %v631_v33 = vmul.f32 %v630_v45, %v606_v13 }
 0x254   : > { %v876_v46 = vclamps-f32 %v631_v33, 1.0 }
 0x256   : > { %v715_v48 = vadd.f32 1.0, %v876_v46 }
 0x258   : > { %v719_v49 = vmul.f32 %v715_v48, %v547_v47 }
 0x25a   : > { %724 = vst.msk [vmem:[%s1149_s20 + $0x4] sm:$0xf] %vm722_vm2, %v719_v49 }
 0x25b PF: > { %s17_s23 = sadd.s32 1, %s961_s23   ;;  %s1192_s21 = smov %s957_s22 }
 0x25c   : > { %p14_p5 = scmp.ge.s32.totalorder %s17_s23, 4   ;;  %s1193_s22 = smov %s1195_s24 }
 0x25e   :  { %16 = sbr.rel (!%p14_p5) target bundleno = 2 (0x2), region = 82 }

// kernel: post_pos_embed.14
= control target key start
LH: loop header
LB: loop body
LE: loop exit
PB: predicated region body
PF: predicated region fallthrough
CT: control target
= control target key end

     0   :  { %s1107_s21 = smov 0   ;;  %s1615_s0 = inlined_call_operand.vmem [shape: f32[2,64,8], index: 0, kind: input, shape index: {}]   ;;  %s1616_s1 = inlined_call_operand.vmem [shape: f32[8,8], index: 1, kind: input, shape index: {}]   ;;  %s1617_s2 = inlined_call_operand.vmem [shape: f32[1,8], index: 2, kind: input, shape index: {}]   ;;  %s1618_s3 = inlined_call_operand.vmem [shape: f32[1,8], index: 3, kind: input, shape index: {}]   ;;  %s1619_s4 = inlined_call_operand.vmem [shape: f32[1,8], index: 4, kind: input, shape index: {}]   ;;  %s1620_s5 = inlined_call_operand.vmem [shape: f32[4,8], index: 5, kind: input, shape index: {}]   ;;  %s1621_s6 = inlined_call_operand.vmem [shape: f32[2,64,8], index: 6, kind: output, shape index: {}]  }
   0x1 LB: > { %s981_s22 = sadd.s32 4294967295, %s1067_s21   ;;  %p985_p0 = scmp.ge.s32.totalorder %s1067_s21, 1  ;;  %s1067_s21 = sphi %s1107_s21, %s16_s21  }
   0x2   : > { %p212_p1 = scmp.lt.s32.totalorder %s1067_s21, 3 }
   0x4   : > { %p213_p2 = pnand %p985_p0, %p212_p1 }
   0x5   : > { %p242_p3 = scmp.lt.s32.totalorder (!%p213_p2), %s981_s22, 1  ;;  %s1069_s7 = smov (!%p213_p2), 122  }
   0x6   : > { %216 = sbr.rel (%p213_p2) target bundleno = 633 (0x279), region = 44  ;;  %s1070_s8 = smov (!%p213_p2), 124  }
   0x7   : > { %s1071_s9 = smov (!%p213_p2), 126  }
   0xb   : > { %v260_v0 = vld [vmem:[%s1616_s1] sm:$0xff]  ;;  %s1637_s22 = smov (!%p242_p3, %s981_s22), 1  ;;  %vm265_vm0 = vcmask 64512   ;;  %vm382_vm1 = vcmask 8192  }
   0xc   : > { %305 = vmatpush.msra.mxu0 %v260_v0  ;;  %1011 = vmatpush.msra.mxu2 %v260_v0  ;;  %s1008_s25 = sshll.u32 %s1637_s22, 6  ;;  %v1040_v10 = vld [vmem:[%s1617_s2] ss:$0 sm:$0xff] }
   0xd   : > { %1010 = vmatpush.msra.mxu1 %v260_v0  ;;  %1012 = vmatpush.msra.mxu3 %v260_v0  ;;  %s246_s28 = scalar_lea.vmem %s1615_s0, %s1008_s25 }
   0xe   : > { %v252_v1 = vld [vmem:[%s246_s28] sm:$0xff]  ;;  %v254_v3 = vld [vmem:[%s246_s28 + $0x10] sm:$0xff]  ;;  %v253_v5 = vld [vmem:[%s246_s28 + $0x8] sm:$0xff] }
   0xf   : > { %v256_v2 = vld [vmem:[%s246_s28 + $0x20] sm:$0xff]  ;;  %990 = vmatmul.msk.f32.vlgmr.msra.gmra.mxu0 %vm265_vm0, %v252_v1  ;;  %v258_v4 = vld [vmem:[%s246_s28 + $0x30] sm:$0xff]  ;;  %992 = vmatmul.msk.f32.vlgmr.msra.gmra.mxu1 %vm265_vm0, %v254_v3  ;;  %v257_v6 = vld [vmem:[%s246_s28 + $0x28] sm:$0xff] }
  0x10   : > { %994 = vmatmul.msk.f32.vlgmr.msra.gmra.mxu2 %vm265_vm0, %v256_v2  ;;  %996 = vmatmul.msk.f32.vlgmr.msra.gmra.mxu3 %vm265_vm0, %v258_v4  ;;  %v255_v7 = vld [vmem:[%s246_s28 + $0x18] sm:$0xff] }
  0x11   : > { %v259_v8 = vld [vmem:[%s246_s28 + $0x38] sm:$0xff] }
  0x17   : > { %991 = vmatmul.msk.f32.gmra.mxu0 %vm265_vm0, %v253_v5  ;;  %993 = vmatmul.msk.f32.gmra.mxu1 %vm265_vm0, %v255_v7 }
  0x18   : > { %995 = vmatmul.msk.f32.gmra.mxu2 %vm265_vm0, %v257_v6  ;;  %997 = vmatmul.msk.f32.gmra.mxu3 %vm265_vm0, %v259_v8 }
  0x8c   : > { %v307_v9 = vpop.f32.mrf.mxu0  ;;  %v313_v11 = vpop.f32.mrf.mxu1 }
  0x8d   : > { %v1137_v12 = vadd.f32 %v1040_v10, %v307_v9  ;;  %v1139_v13 = vadd.f32 %v1040_v10, %v313_v11 }
  0x8f   : > { %v352_v17 = vmul.f32 %v1137_v12, %v1137_v12  ;;  %v354_v20 = vmul.f32 %v1139_v13, %v1139_v13  ;;  %v331_v22 = vsel %vm265_vm0, %v1137_v12, 0.0  ;;  %v334_v29 = vsel %vm265_vm0, %v1139_v13, 0.0 }
  0x91   : > { %v360_v28 = vsel %vm265_vm0, %v352_v17, 0.0  ;;  %v363_v32 = vsel %vm265_vm0, %v354_v20, 0.0 }
  0x93   : > { %v319_v14 = vpop.f32.mrf.mxu2  ;;  %v325_v15 = vpop.f32.mrf.mxu3 }
  0x94   : > { %v310_v16 = vpop.f32.mrf.mxu0  ;;  %v316_v19 = vpop.f32.mrf.mxu1  ;;  %v1155_v25 = vadd.f32 %v1040_v10, %v319_v14  ;;  %v1169_v38 = vadd.f32 %v1040_v10, %v325_v15 }
  0x95   : > { %v1143_v18 = vadd.f32 %v1040_v10, %v310_v16  ;;  %v1147_v21 = vadd.f32 %v1040_v10, %v316_v19 }
  0x96   : > { %v356_v36 = vmul.f32 %v1155_v25, %v1155_v25  ;;  %v338_v44 = vsel %vm265_vm0, %v1155_v25, 0.0  ;;  %v358_v50 = vmul.f32 %v1169_v38, %v1169_v38  ;;  %v342_v55 = vsel %vm265_vm0, %v1169_v38, 0.0 }
  0x97   : > { %v332_v23 = vsel %vm265_vm0, %v1143_v18, 0.0  ;;  %v353_v24 = vmul.f32 %v1143_v18, %v1143_v18  ;;  %v355_v27 = vmul.f32 %v1147_v21, %v1147_v21  ;;  %v336_v31 = vsel %vm265_vm0, %v1147_v21, 0.0 }
  0x98   : > { %v333_v26 = vadd.f32 %v332_v23, %v331_v22  ;;  %v367_v49 = vsel %vm265_vm0, %v356_v36, 0.0  ;;  %v371_v59 = vsel %vm265_vm0, %v358_v50, 0.0 }
  0x99   : > { %v361_v30 = vsel %vm265_vm0, %v353_v24, 0.0  ;;  %v365_v37 = vsel %vm265_vm0, %v355_v27, 0.0 }
  0x9a   : > { %v362_v33 = vadd.f32 %v361_v30, %v360_v28  ;;  %v335_v34 = vadd.f32 %v334_v29, %v333_v26 }
  0x9b   : > { %v322_v35 = vpop.f32.mrf.mxu2  ;;  %v328_v40 = vpop.f32.mrf.mxu3 }
  0x9c   : > { %v1171_v39 = vadd.f32 %v1040_v10, %v322_v35  ;;  %v337_v41 = vadd.f32 %v336_v31, %v335_v34  ;;  %v364_v42 = vadd.f32 %v363_v32, %v362_v33  ;;  %v1173_v43 = vadd.f32 %v1040_v10, %v328_v40 }
  0x9e   : > { %v340_v45 = vsel %vm265_vm0, %v1171_v39, 0.0  ;;  %v357_v46 = vmul.f32 %v1171_v39, %v1171_v39  ;;  %v366_v47 = vadd.f32 %v365_v37, %v364_v42  ;;  %v339_v48 = vadd.f32 %v338_v44, %v337_v41 }
  0x9f   : > { %v359_v52 = vmul.f32 %v1173_v43, %v1173_v43  ;;  %v344_v56 = vsel %vm265_vm0, %v1173_v43, 0.0 }
  0xa0   : > { %v369_v51 = vsel %vm265_vm0, %v357_v46, 0.0  ;;  %v341_v53 = vadd.f32 %v340_v45, %v339_v48  ;;  %v368_v54 = vadd.f32 %v367_v49, %v366_v47 }
  0xa1   : > { %v373_v60 = vsel %vm265_vm0, %v359_v52, 0.0 }
  0xa2   : > { %v370_v57 = vadd.f32 %v369_v51, %v368_v54  ;;  %v343_v58 = vadd.f32 %v342_v55, %v341_v53 }
  0xa4   : > { %v345_v61 = vadd.f32 %v344_v56, %v343_v58  ;;  %v372_v62 = vadd.f32 %v371_v59, %v370_v57 }
  0xa6   : > { %v346_v63 = vrot.slane %v345_v61, 4  ;;  %v374_v0 = vadd.f32 %v373_v60, %v372_v62 }
  0xa8   : > { %v347_v1 = vadd.f32 %v346_v63, %v345_v61  ;;  %v375_v2 = vrot.slane %v374_v0, 4 }
  0xaa   : > { %v348_v3 = vrot.slane %v347_v1, 2  ;;  %v376_v4 = vadd.f32 %v375_v2, %v374_v0 }
  0xac   : > { %v349_v5 = vadd.f32 %v348_v3, %v347_v1  ;;  %v377_v6 = vrot.slane %v376_v4, 2 }
  0xae   : > { %v350_v7 = vrot.slane %v349_v5, 1  ;;  %v378_v9 = vadd.f32 %v377_v6, %v376_v4 }
  0xb0   : > { %v351_v8 = vadd.f32 %v350_v7, %v349_v5  ;;  %v379_v10 = vrot.slane %v378_v9, 1 }
  0xb2   : > { %478 = vrot.lane.b32.xlu2 %v351_v8, %s1069_s7  ;;  %445 = vrot.lane.b32.xlu1 %v351_v8, %s1070_s8  ;;  %v380_v11 = vadd.f32 %v379_v10, %v378_v9  ;;  %v383_v15 = vsel %vm382_vm1, %v351_v8, 0.0 }
  0xb3   : > { %411 = vrot.lane.b32.xlu0 %v351_v8, %s1071_s9 }
  0xb4   : > { %v396_v14 = vsel %vm382_vm1, %v380_v11, 0.0 }
  0xba   : > { %494 = vrot.lane.b32.xlu2 %v380_v11, %s1069_s7  ;;  %461 = vrot.lane.b32.xlu1 %v380_v11, %s1070_s8 }
  0xbb   : > { %428 = vrot.lane.b32.xlu0 %v380_v11, %s1071_s9 }
  0xe4   : > { %397 = vadd.xlane.f32.xlu1 %v396_v14 }
  0xe5   : > { %384 = vadd.xlane.f32.xlu0 %v383_v15 }
 0x10c   : > { %v479_v16 = vpop.permute.xlu2 %478 }
 0x10d   : > { %v481_v30 = vsel %vm382_vm1, %v479_v16, 0.0 }
 0x114   : > { %v495_v23 = vpop.permute.xlu2 %494 }
 0x115   : > { %v497_v28 = vsel %vm382_vm1, %v495_v23, 0.0 }
 0x124   : > { %v446_v17 = vpop.permute.xlu1 %445 }
 0x125   : > { %v412_v19 = vpop.permute.xlu0 %411  ;;  %v448_v20 = vsel %vm382_vm1, %v446_v17, 0.0 }
 0x126   : > { %v414_v22 = vsel %vm382_vm1, %v412_v19, 0.0  ;;  %449 = vadd.xlane.f32.xlu0 %v448_v20 }
 0x127   : > { %415 = vadd.xlane.f32.xlu2 %v414_v22 }
 0x12c   : > { %v462_v24 = vpop.permute.xlu1 %461 }
 0x12d   : > { %v429_v26 = vpop.permute.xlu0 %428  ;;  %v464_v27 = vsel %vm382_vm1, %v462_v24, 0.0 }
 0x12e   : > { %465 = vadd.xlane.f32.xlu1 %v464_v27  ;;  %v431_v29 = vsel %vm382_vm1, %v429_v26, 0.0  ;;  %498 = vadd.xlane.f32.xlu0 %v497_v28 }
 0x12f   : > { %432 = vadd.xlane.f32.xlu2 %v431_v29 }
 0x137   : > { %482 = vadd.xlane.f32.xlu2 %v481_v30 }
 0x157   : > { %v398_v31 = vpop.xlane.xlu1 %397 }
 0x158   : > { %v399_v32 = vrot.slane %v398_v31, 4  ;;  %v385_v33 = vpop.xlane.xlu0 %384 }
 0x159   : > { %v386_v34 = vrot.slane %v385_v33, 4 }
 0x15a   : > { %v400_v35 = vadd.f32 %v399_v32, %v398_v31  ;;  %v409_v31 = vld [vmem:[%s1620_s5 + $0x1] sm:$0x1] }
 0x15b   : > { %v387_v36 = vadd.f32 %v386_v34, %v385_v33  ;;  %v381_v33 = vld [vmem:[%s1620_s5] sm:$0x1] }
 0x15c   : > { %v401_v37 = vrot.slane %v400_v35, 2 }
 0x15d   : > { %v388_v40 = vrot.slane %v387_v36, 2 }
 0x15e   : > { %v402_v41 = vadd.f32 %v401_v37, %v400_v35 }
 0x15f   : > { %v389_v42 = vadd.f32 %v388_v40, %v387_v36  ;;  %v444_v36 = vld [vmem:[%s1620_s5 + $0x2] sm:$0x1] }
 0x160   : > { %v403_v44 = vrot.slane %v402_v41, 1 }
 0x161   : > { %v390_v45 = vrot.slane %v389_v42, 1 }
 0x162   : > { %v404_v46 = vadd.f32 %v403_v44, %v402_v41 }
 0x163   : > { %v391_v47 = vadd.f32 %v390_v45, %v389_v42 }
 0x165   : > { %1013 = vpush %v391_v47 }
 0x166   : > { %1015 = vpush %v404_v46  ;;  %v477_v46 = vld [vmem:[%s1620_s5 + $0x3] sm:$0x1] }
 0x196   : > { %s1014_s10 = spop %1013 }
 0x197   : > { %s1016_s11 = spop %1015  ;;  %v393_v34 = vstv %s1014_s10 }
 0x198   : > { %v406_v41 = vstv %s1016_s11  ;;  %v394_v42 = vmul.f32 %v393_v34, %v381_v33  ;;  %s1572_s11 = scalar_lea.vmem %s1621_s6, %s1008_s25 }
 0x199   : > { %v450_v48 = vpop.xlane.xlu0 %449  ;;  %v407_v47 = vmul.f32 %v406_v41, %v381_v33 }
 0x19a   : > { %v416_v49 = vpop.xlane.xlu2 %415  ;;  %v451_v50 = vrot.slane %v450_v48, 4 }
 0x19b   : > { %v417_v51 = vrot.slane %v416_v49, 4 }
 0x19c   : > { %v452_v53 = vadd.f32 %v451_v50, %v450_v48 }
 0x19d   : > { %v418_v52 = vadd.f32 %v417_v51, %v416_v49 }
 0x19e   : > { %v453_v58 = vrot.slane %v452_v53, 2 }
 0x19f   : > { %v419_v54 = vrot.slane %v418_v52, 2 }
 0x1a0   : > { %v454_v5 = vadd.f32 %v453_v58, %v452_v53 }
 0x1a1   : > { %v466_v55 = vpop.xlane.xlu1 %465  ;;  %v499_v56 = vpop.xlane.xlu0 %498  ;;  %v420_v57 = vadd.f32 %v419_v54, %v418_v52 }
 0x1a2   : > { %v467_v59 = vrot.slane %v466_v55, 4  ;;  %v433_v60 = vpop.xlane.xlu2 %432  ;;  %v500_v61 = vrot.slane %v499_v56, 4  ;;  %v455_v11 = vrot.slane %v454_v5, 1 }
 0x1a3   : > { %v434_v62 = vrot.slane %v433_v60, 4  ;;  %v421_v63 = vrot.slane %v420_v57, 1 }
 0x1a4   : > { %v468_v0 = vadd.f32 %v467_v59, %v466_v55  ;;  %v501_v4 = vadd.f32 %v500_v61, %v499_v56  ;;  %v456_v23 = vadd.f32 %v455_v11, %v454_v5 }
 0x1a5   : > { %v435_v1 = vadd.f32 %v434_v62, %v433_v60  ;;  %v422_v2 = vadd.f32 %v421_v63, %v420_v57 }
 0x1a6   : > { %v469_v3 = vrot.slane %v468_v0, 2  ;;  %v502_v9 = vrot.slane %v501_v4, 2 }
 0x1a7   : > { %v436_v6 = vrot.slane %v435_v1, 2  ;;  %1017 = vpush %v422_v2 }
 0x1a8   : > { %v470_v7 = vadd.f32 %v469_v3, %v468_v0  ;;  %v503_v22 = vadd.f32 %v502_v9, %v501_v4 }
 0x1a9   : > { %v437_v8 = vadd.f32 %v436_v6, %v435_v1 }
 0x1aa   : > { %v483_v10 = vpop.xlane.xlu2 %482  ;;  %v471_v14 = vrot.slane %v470_v7, 1  ;;  %v504_v27 = vrot.slane %v503_v22, 1 }
 0x1ab   : > { %v484_v15 = vrot.slane %v483_v10, 4  ;;  %v438_v16 = vrot.slane %v437_v8, 1 }
 0x1ac   : > { %v472_v20 = vadd.f32 %v471_v14, %v470_v7  ;;  %v505_v30 = vadd.f32 %v504_v27, %v503_v22 }
 0x1ad   : > { %v485_v17 = vadd.f32 %v484_v15, %v483_v10  ;;  %v439_v19 = vadd.f32 %v438_v16, %v437_v8  ;;  %v1228_v15 = vld [vmem:[%s1618_s3] ss:$0 sm:$0xff] }
 0x1af   : > { %v486_v24 = vrot.slane %v485_v17, 2  ;;  %1019 = vpush %v439_v19 }
 0x1b0   : > { %1021 = vpush %v456_v23 }
 0x1b1   : > { %v487_v26 = vadd.f32 %v486_v24, %v485_v17  ;;  %1023 = vpush %v472_v20 }
 0x1b3   : > { %v488_v28 = vrot.slane %v487_v26, 1 }
 0x1b5   : > { %v489_v29 = vadd.f32 %v488_v28, %v487_v26 }
 0x1b7   : > { %1025 = vpush %v489_v29 }
 0x1b8   : > { %1027 = vpush %v505_v30 }
 0x1d8   : > { %s1018_s12 = spop %1017 }
 0x1d9   : > { %v424_v32 = vstv %s1018_s12 }
 0x1da   : > { %v425_v40 = vmul.f32 %v424_v32, %v409_v31 }
 0x1dc   : > { %v426_v48 = vadd.f32 %v425_v40, %v394_v42 }
 0x1e0   : > { %s1020_s13 = spop %1019 }
 0x1e1   : > { %s1022_s16 = spop %1021  ;;  %v441_v35 = vstv %s1020_s13 }
 0x1e2   : > { %v458_v37 = vstv %s1022_s16  ;;  %v442_v44 = vmul.f32 %v441_v35, %v409_v31  ;;  %s1024_s23 = spop %1023 }
 0x1e3   : > { %v459_v45 = vmul.f32 %v458_v37, %v444_v36  ;;  %v474_v49 = vstv %s1024_s23 }
 0x1e4   : > { %v443_v51 = vadd.f32 %v442_v44, %v407_v47  ;;  %v475_v55 = vmul.f32 %v474_v49, %v444_v36 }
 0x1e5   : > { %v460_v52 = vadd.f32 %v459_v45, %v426_v48 }
 0x1e6   : > { %v476_v58 = vadd.f32 %v475_v55, %v443_v51 }
 0x1e8   : > { %s1026_s27 = spop %1025 }
 0x1e9   : > { %v491_v50 = vstv %s1026_s27  ;;  %s1028_s28 = spop %1027 }
 0x1ea   : > { %v492_v53 = vmul.f32 %v491_v50, %v477_v46  ;;  %v507_v54 = vstv %s1028_s28 }
 0x1eb   : > { %v508_v57 = vmul.f32 %v507_v54, %v477_v46 }
 0x1ec   : > { %v493_v56 = vadd.f32 %v492_v53, %v460_v52 }
 0x1ed   : > { %v509_v60 = vadd.f32 %v508_v57, %v476_v58 }
 0x1ee   : > { %v510_v59 = vmul.f32 %v493_v56, %v493_v56  ;;  %v1213_v4 = vperm.slane %v493_v56, 0 }
 0x1f0   : > { %v511_v61 = vsub.f32 %v509_v60, %v510_v59  ;;  %v514_v7 = vsub.f32 %v1137_v12, %v1213_v4  ;;  %v515_v9 = vsub.f32 %v1143_v18, %v1213_v4  ;;  %v516_v10 = vsub.f32 %v1139_v13, %v1213_v4  ;;  %v1237_v13 = vld [vmem:[%s1619_s4] ss:$0 sm:$0xff] }
 0x1f1   : > { %v517_v11 = vsub.f32 %v1147_v21, %v1213_v4  ;;  %v518_v34 = vsub.f32 %v1155_v25, %v1213_v4  ;;  %v519_v50 = vsub.f32 %v1171_v39, %v1213_v4 }
 0x1f2   : > { %v512_v62 = vmax.f32 %v511_v61, 0.0 }
 0x1f4   : > { %v522_v63 = vadd.f32 1e-05, %v512_v62 }
 0x1f6   : > { %1043 = vrsqrt.f32 %v522_v63  ;;  %vm529_vm3 = vweird.f32 %v522_v63 }
 0x1fc   : > { %v1044_v0 = vpop.eup %1043 }
 0x1fd   : > { %v524_v1 = vmul.f32 %v1044_v0, %v522_v63  ;;  %vm530_vm2 = vweird.f32 %v1044_v0 }
 0x1fe   : > { %vm531_vm4 = vmor %vm529_vm3, %vm530_vm2 }
 0x1ff   : > { %v525_v2 = vmul.f32 %v1044_v0, %v524_v1 }
 0x201   : > { %v526_v3 = vmul.f32 0.5, %v525_v2 }
 0x203   : > { %v527_v5 = vsub.f32 1.5, %v526_v3 }
 0x205   : > { %v528_v6 = vmul.f32 %v1044_v0, %v527_v5 }
 0x207   : > { %v532_v8 = vsel %vm531_vm4, %v1044_v0, %v528_v6  ;;  %v520_v6 = vsub.f32 %v1169_v38, %v1213_v4 }
 0x208   : > { %v1223_v14 = vperm.slane %v532_v8, 0 }
 0x20a   : > { %v534_v16 = vmul.f32 %v1223_v14, %v514_v7  ;;  %v535_v12 = vmul.f32 %v1223_v14, %v515_v9  ;;  %v536_v17 = vmul.f32 %v1223_v14, %v516_v10  ;;  %v537_v18 = vmul.f32 %v1223_v14, %v517_v11 }
 0x20b   : > { %v538_v41 = vmul.f32 %v1223_v14, %v518_v34  ;;  %v539_v1 = vmul.f32 %v1223_v14, %v519_v50 }
 0x20c   : > { %v546_v21 = vmul.f32 %v1228_v15, %v534_v16  ;;  %v547_v19 = vmul.f32 %v1228_v15, %v535_v12  ;;  %v548_v20 = vmul.f32 %v1228_v15, %v536_v17  ;;  %v549_v22 = vmul.f32 %v1228_v15, %v537_v18 }
 0x20d   : > { %v550_v54 = vmul.f32 %v1228_v15, %v538_v41  ;;  %v551_v38 = vmul.f32 %v1228_v15, %v539_v1  ;;  %v521_v41 = vsub.f32 %v1173_v43, %v1213_v4 }
 0x20e   : > { %v1244_v23 = vadd.f32 %v1237_v13, %v546_v21  ;;  %v1247_v24 = vadd.f32 %v1237_v13, %v547_v19  ;;  %v1250_v26 = vadd.f32 %v1237_v13, %v548_v20  ;;  %v1253_v27 = vadd.f32 %v1237_v13, %v549_v22 }
 0x20f   : > { %v1307_v10 = vadd.f32 %v1237_v13, %v550_v54 }
 0x210   : > { %v1256_v28 = vmul.f32 0.70710677, %v1244_v23  ;;  %v1259_v29 = vmul.f32 0.70710677, %v1247_v24  ;;  %v1262_v30 = vmul.f32 0.70710677, %v1250_v26 }
 0x211   : > { %v1265_v31 = vmul.f32 0.70710677, %v1253_v27 }
 0x212   : > { %v582_v32 = vmul.f32 %v1256_v28, %v1256_v28  ;;  %v622_v33 = vmul.f32 %v1259_v29, %v1259_v29  ;;  %v662_v35 = vmul.f32 %v1262_v30, %v1262_v30 }
 0x213   : > { %v702_v36 = vmul.f32 %v1265_v31, %v1265_v31 }
 0x214   : > { %v1277_v37 = vmin.f32 %v582_v32, 16.0  ;;  %v1279_v40 = vmin.f32 %v622_v33, 16.0  ;;  %v1282_v42 = vmin.f32 %v662_v35, 16.0 }
 0x215   : > { %v1284_v44 = vmin.f32 %v702_v36, 16.0 }
 0x216   : > { %v584_v45 = vmul.f32 2.1237322e-06, %v1277_v37  ;;  %v595_v25 = vmul.f32 3.8918573e-05, %v1277_v37  ;;  %v624_v46 = vmul.f32 2.1237322e-06, %v1279_v40 }
 0x217   : > { %v635_v47 = vmul.f32 3.8918573e-05, %v1279_v40  ;;  %v664_v48 = vmul.f32 2.1237322e-06, %v1282_v42  ;;  %v675_v49 = vmul.f32 3.8918573e-05, %v1282_v42 }
 0x218   : > { %v585_v51 = vadd.f32 0.00028619796, %v584_v45  ;;  %v596_v52 = vadd.f32 0.001143296, %v595_v25  ;;  %v625_v53 = vadd.f32 0.00028619796, %v624_v46  ;;  %v540_v45 = vmul.f32 %v1223_v14, %v520_v6 }
 0x219   : > { %v636_v55 = vadd.f32 0.001143296, %v635_v47  ;;  %v665_v56 = vadd.f32 0.00028619796, %v664_v48  ;;  %v676_v57 = vadd.f32 0.001143296, %v675_v49 }
 0x21a   : > { %v586_v58 = vmul.f32 %v585_v51, %v1277_v37  ;;  %v597_v59 = vmul.f32 %v596_v52, %v1277_v37  ;;  %v626_v60 = vmul.f32 %v625_v53, %v1279_v40  ;;  %v704_v61 = vmul.f32 2.1237322e-06, %v1284_v44 }
 0x21b   : > { %v637_v62 = vmul.f32 %v636_v55, %v1279_v40  ;;  %v666_v39 = vmul.f32 %v665_v56, %v1282_v42  ;;  %v677_v63 = vmul.f32 %v676_v57, %v1282_v42  ;;  %v715_v0 = vmul.f32 3.8918573e-05, %v1284_v44 }
 0x21c   : > { %v587_v2 = vadd.f32 0.0036580483, %v586_v58  ;;  %v598_v3 = vadd.f32 0.014752088, %v597_v59  ;;  %v627_v5 = vadd.f32 0.0036580483, %v626_v60  ;;  %v1328_v51 = vadd.f32 %v1237_v13, %v551_v38 }
 0x21d   : > { %v638_v7 = vadd.f32 0.014752088, %v637_v62  ;;  %v667_v8 = vadd.f32 0.0036580483, %v666_v39  ;;  %v678_v9 = vadd.f32 0.014752088, %v677_v63  ;;  %v541_v57 = vmul.f32 %v1223_v14, %v521_v41 }
 0x21e   : > { %v588_v11 = vmul.f32 %v587_v2, %v1277_v37  ;;  %v599_v16 = vmul.f32 %v598_v3, %v1277_v37  ;;  %v705_v12 = vadd.f32 0.00028619796, %v704_v61  ;;  %v628_v17 = vmul.f32 %v627_v5, %v1279_v40 }
 0x21f   : > { %v639_v18 = vmul.f32 %v638_v7, %v1279_v40  ;;  %v679_v21 = vmul.f32 %v678_v9, %v1282_v42  ;;  %v716_v19 = vadd.f32 0.001143296, %v715_v0  ;;  %v668_v22 = vmul.f32 %v667_v8, %v1282_v42 }
 0x220   : > { %v600_v20 = vadd.f32 0.112945676, %v599_v16  ;;  %v706_v32 = vmul.f32 %v705_v12, %v1284_v44  ;;  %v589_v33 = vadd.f32 0.05243302, %v588_v11  ;;  %v1322_v25 = vmul.f32 0.70710677, %v1307_v10 }
 0x221   : > { %v640_v34 = vadd.f32 0.112945676, %v639_v18  ;;  %v680_v35 = vadd.f32 0.112945676, %v679_v21  ;;  %v717_v36 = vmul.f32 %v716_v19, %v1284_v44  ;;  %v629_v47 = vadd.f32 0.05243302, %v628_v17 }
 0x222   : > { %v601_v46 = vmul.f32 %v600_v20, %v1277_v37  ;;  %v669_v53 = vadd.f32 0.05243302, %v668_v22  ;;  %v707_v54 = vadd.f32 0.0036580483, %v706_v32  ;;  %v590_v43 = vmul.f32 %v589_v33, %v1277_v37 }
 0x223   : > { %v641_v48 = vmul.f32 %v640_v34, %v1279_v40  ;;  %v681_v49 = vmul.f32 %v680_v35, %v1282_v42  ;;  %v718_v50 = vadd.f32 0.014752088, %v717_v36  ;;  %v552_v58 = vmul.f32 %v1228_v15, %v540_v45 }
 0x224   : > { %v602_v52 = vadd.f32 0.4994258, %v601_v46  ;;  %v742_v60 = vmul.f32 %v1322_v25, %v1322_v25  ;;  %v630_v61 = vmul.f32 %v629_v47, %v1279_v40  ;;  %v1341_v0 = vmul.f32 0.70710677, %v1328_v51 }
 0x225   : > { %v642_v4 = vadd.f32 0.4994258, %v641_v48  ;;  %v682_v55 = vadd.f32 0.4994258, %v681_v49  ;;  %v719_v56 = vmul.f32 %v718_v50, %v1284_v44  ;;  %v670_v14 = vmul.f32 %v669_v53, %v1282_v42 }
 0x226   : > { %v603_v59 = vmul.f32 %v602_v52, %v1277_v37  ;;  %v708_v2 = vmul.f32 %v707_v54, %v1284_v44  ;;  %v591_v3 = vadd.f32 0.18741608, %v590_v43  ;;  %v553_v7 = vmul.f32 %v1228_v15, %v541_v57 }
 0x227   : > { %v643_v62 = vmul.f32 %v642_v4, %v1279_v40  ;;  %v683_v39 = vmul.f32 %v682_v55, %v1282_v42  ;;  %v720_v63 = vadd.f32 0.112945676, %v719_v56  ;;  %v1353_v8 = vadd.f32 %v1237_v13, %v552_v58 }
 0x228   : > { %v1343_v1 = vadd.f32 1.0, %v603_v59  ;;  %v631_v9 = vadd.f32 0.18741608, %v630_v61  ;;  %v1358_v16 = vmin.f32 %v742_v60, 16.0  ;;  %v671_v12 = vadd.f32 0.18741608, %v670_v14 }
 0x229   : > { %v1347_v5 = vadd.f32 1.0, %v643_v62  ;;  %v1349_v6 = vadd.f32 1.0, %v683_v39  ;;  %v721_v11 = vmul.f32 %v720_v63, %v1284_v44  ;;  %v709_v17 = vadd.f32 0.05243302, %v708_v2 }
 0x22a   : > { %1045 = vrcp.f32 %v1343_v1  ;;  %v782_v18 = vmul.f32 %v1341_v0, %v1341_v0  ;;  %v592_v21 = vmul.f32 %v591_v3, %v1277_v37  ;;  %v1365_v15 = vadd.f32 %v1237_v13, %v553_v7 }
 0x22b   : > { %1047 = vrcp.f32 %v1347_v5  ;;  %v1368_v19 = vmul.f32 0.70710677, %v1353_v8  ;;  %v632_v38 = vmul.f32 %v631_v9, %v1279_v40  ;;  %v722_v20 = vadd.f32 0.4994258, %v721_v11 }
 0x22c   : > { %1049 = vrcp.f32 %v1349_v6  ;;  %v744_v22 = vmul.f32 2.1237322e-06, %v1358_v16  ;;  %v672_v33 = vmul.f32 %v671_v12, %v1282_v42  ;;  %v710_v34 = vmul.f32 %v709_v17, %v1284_v44 }
 0x22d   : > { %v755_v37 = vmul.f32 3.8918573e-05, %v1358_v16  ;;  %v1377_v35 = vmin.f32 %v782_v18, 16.0  ;;  %v593_v36 = vadd.f32 1.1283791, %v592_v21  ;;  %v723_v40 = vmul.f32 %v722_v20, %v1284_v44 }
 0x22e   : > { %v745_v45 = vadd.f32 0.00028619796, %v744_v22  ;;  %v1385_v46 = vmul.f32 0.5, %v1244_v23  ;;  %v1388_v42 = vmul.f32 0.5, %v1247_v24  ;;  %v1391_v47 = vmul.f32 0.5, %v1250_v26 }
 0x22f   : > { %v1394_v48 = vmul.f32 0.70710677, %v1365_v15  ;;  %v633_v50 = vadd.f32 1.1283791, %v632_v38  ;;  %v1398_v52 = vadd.f32 1.0, %v723_v40  ;;  %v822_v26 = vmul.f32 %v1368_v19, %v1368_v19 }
 0x230   : > { %v1372_v32 = vpop.eup %1045  ;;  %v746_v53 = vmul.f32 %v745_v45, %v1358_v16  ;;  %v756_v54 = vadd.f32 0.001143296, %v755_v37  ;;  %v711_v24 = vadd.f32 0.18741608, %v710_v34  ;;  %v1406_v4 = vmul.f32 %v593_v36, %v1256_v28 }
 0x231   : > { %v1379_v13 = vpop.eup %1047  ;;  %v606_v41 = vmul.f32 %v1372_v32, %v1343_v1  ;;  %v673_v55 = vadd.f32 1.1283791, %v672_v33  ;;  %1051 = vrcp.f32 %v1398_v52  ;;  %v784_v56 = vmul.f32 2.1237322e-06, %v1377_v35 }
 0x232   : > { %v1396_v49 = vpop.eup %1049  ;;  %v646_v23 = vmul.f32 %v1379_v13, %v1347_v5  ;;  %vm610_vm5 = vweird.f32 %v1343_v1  ;;  %v614_v57 = vand.u32 2147483647, %v1343_v1  ;;  %v616_v58 = vand.u32 2147483648, %v1343_v1 }
 0x233   : > { %v607_v43 = vsub.f32 1.0, %v606_v41  ;;  %v686_v59 = vmul.f32 %v1396_v49, %v1349_v6  ;;  %v1416_v60 = vmul.f32 %v633_v50, %v1259_v29  ;;  %v654_v28 = vand.u32 2147483647, %v1347_v5 }
 0x234   : > { %v747_v61 = vadd.f32 0.0036580483, %v746_v53  ;;  %v757_v62 = vmul.f32 %v756_v54, %v1358_v16  ;;  %v647_v63 = vsub.f32 1.0, %v646_v23  ;;  %v656_v14 = vand.u32 2147483648, %v1347_v5 }
 0x235   : > { %v608_v39 = vmul.f32 %v1372_v32, %v607_v43  ;;  %v712_v2 = vmul.f32 %v711_v24, %v1284_v44  ;;  %v1424_v3 = vmul.f32 %v673_v55, %v1262_v30  ;;  %v696_v7 = vand.u32 2147483648, %v1349_v6 }
 0x236   : > { %v758_v9 = vadd.f32 0.014752088, %v757_v62  ;;  %v785_v29 = vadd.f32 0.00028619796, %v784_v56  ;;  %v617_v11 = vor.u32 1.1754944e-38, %v616_v58  ;;  %v687_v12 = vsub.f32 1.0, %v686_v59 }
 0x237   : > { %v694_v17 = vand.u32 2147483647, %v1349_v6  ;;  %v1428_v18 = vmin.f32 %v822_v26, 16.0  ;;  %v1430_v21 = vpop.eup %1051  ;;  %vm611_vm6 = vweird.f32 %v1372_v32  ;;  %vm1433_vm7 = vcmp.eq.f32.partialorder %v614_v57, 8.507059e+37 }
 0x238   : > { %vm650_vm8 = vweird.f32 %v1347_v5  ;;  %v748_v30 = vmul.f32 %v747_v61, %v1358_v16  ;;  %v759_v44 = vmul.f32 %v758_v9, %v1358_v16  ;;  %v795_v20 = vmul.f32 3.8918573e-05, %v1377_v35  ;;  %vm1454_vm12 = vmor %vm610_vm5, %vm611_vm6 }
 0x239   : > { %v609_v22 = vadd.f32 %v1372_v32, %v608_v39  ;;  %v648_v33 = vmul.f32 %v1379_v13, %v647_v63  ;;  %v713_v34 = vadd.f32 1.1283791, %v712_v2  ;;  %v726_v37 = vmul.f32 %v1430_v21, %v1398_v52 }
 0x23a   : > { %v657_v36 = vor.u32 1.1754944e-38, %v656_v14  ;;  %vm690_vm9 = vweird.f32 %v1349_v6  ;;  %v697_v41 = vor.u32 1.1754944e-38, %v696_v7  ;;  %v760_v40 = vadd.f32 0.112945676, %v759_v44 }
 0x23b   : > { %v786_v45 = vmul.f32 %v785_v29, %v1377_v35  ;;  %vm651_vm10 = vweird.f32 %v1379_v13  ;;  %v688_v50 = vmul.f32 %v1396_v49, %v687_v12  ;;  %vm691_vm11 = vweird.f32 %v1396_v49 }
 0x23c   : > { %v727_v53 = vsub.f32 1.0, %v726_v37  ;;  %v749_v43 = vadd.f32 0.05243302, %v748_v30  ;;  %v761_v23 = vmul.f32 %v760_v40, %v1358_v16  ;;  %v796_v24 = vadd.f32 0.001143296, %v795_v20  ;;  %vm1490_vm15 = vmor %vm650_vm8, %vm651_vm10 }
 0x23d   : > { %v824_v26 = vmul.f32 2.1237322e-06, %v1428_v18  ;;  %v613_v55 = vsel %vm1454_vm12, %v1372_v32, %v609_v22  ;;  %v649_v56 = vadd.f32 %v1379_v13, %v648_v33  ;;  %vm1464_vm13 = vcmp.eq.f32.partialorder %v654_v28, 8.507059e+37  ;;  %vm1509_vm2 = vmor %vm690_vm9, %vm691_vm11 }
 0x23e   : > { %v1469_v1 = vmul.f32 %v713_v34, %v1265_v31  ;;  %v835_v58 = vmul.f32 3.8918573e-05, %v1428_v18  ;;  %vm1472_vm14 = vcmp.eq.f32.partialorder %v694_v17, 8.507059e+37  ;;  %v762_v61 = vadd.f32 0.4994258, %v761_v23 }
 0x23f   : > { %v787_v62 = vadd.f32 0.0036580483, %v786_v45  ;;  %v797_v39 = vmul.f32 %v796_v24, %v1377_v35  ;;  %v825_v32 = vadd.f32 0.00028619796, %v824_v26  ;;  %v689_v63 = vadd.f32 %v1396_v49, %v688_v50 }
 0x240   : > { %v728_v28 = vmul.f32 %v1430_v21, %v727_v53  ;;  %v836_v14 = vadd.f32 0.001143296, %v835_v58  ;;  %v862_v31 = vmul.f32 %v1394_v48, %v1394_v48  ;;  %v750_v2 = vmul.f32 %v749_v43, %v1358_v16 }
 0x241   : > { %v763_v7 = vmul.f32 %v762_v61, %v1358_v16  ;;  %v798_v9 = vadd.f32 0.014752088, %v797_v39  ;;  %v826_v29 = vmul.f32 %v825_v32, %v1428_v18  ;;  %v618_v12 = vsel %vm1433_vm7, %v617_v11, %v613_v55 }
 0x242   : > { %vm730_vm1 = vweird.f32 %v1398_v52  ;;  %v736_v30 = vand.u32 2147483648, %v1398_v52  ;;  %v837_v44 = vmul.f32 %v836_v14, %v1428_v18  ;;  %v653_v20 = vsel %vm1490_vm15, %v1379_v13, %v649_v56 }
 0x243   : > { %v1500_v38 = vadd.f32 1.0, %v763_v7  ;;  %v799_v11 = vmul.f32 %v798_v9, %v1377_v35  ;;  %v1503_v22 = vmin.f32 %v862_v31, 16.0  ;;  %v729_v33 = vadd.f32 %v1430_v21, %v728_v28 }
 0x244   : > { %vm731_vm3 = vweird.f32 %v1430_v21  ;;  %v827_v34 = vadd.f32 0.0036580483, %v826_v29  ;;  %v838_v13 = vadd.f32 0.014752088, %v837_v44  ;;  %v693_v37 = vsel %vm1509_vm2, %v1396_v49, %v689_v63 }
 0x245   : > { %v751_v40 = vadd.f32 0.18741608, %v750_v2  ;;  %1053 = vrcp.f32 %v1500_v38  ;;  %v788_v45 = vmul.f32 %v787_v62, %v1377_v35  ;;  %v619_v6 = vmul.f32 %v618_v12, %v1406_v4  ;;  %vm1526_vm4 = vmor %vm730_vm1, %vm731_vm3 }
 0x246   : > { %v734_v50 = vand.u32 2147483647, %v1398_v52  ;;  %v737_v53 = vor.u32 1.1754944e-38, %v736_v30  ;;  %v800_v54 = vadd.f32 0.112945676, %v799_v11  ;;  %v658_v43 = vsel %vm1464_vm13, %v657_v36, %v653_v20 }
 0x247   : > { %v828_v49 = vmul.f32 %v827_v34, %v1428_v18  ;;  %v839_v24 = vmul.f32 %v838_v13, %v1428_v18  ;;  %v864_v26 = vmul.f32 2.1237322e-06, %v1503_v22  ;;  %v698_v4 = vsel %vm1472_vm14, %v697_v41, %v693_v37 }
 0x248   : > { %v733_v55 = vsel %vm1526_vm4, %v1430_v21, %v729_v33  ;;  %v801_v36 = vmul.f32 %v800_v54, %v1377_v35  ;;  %v875_v52 = vmul.f32 3.8918573e-05, %v1503_v22  ;;  %v752_v56 = vmul.f32 %v751_v40, %v1358_v16 }
 0x249   : > { %v789_v57 = vadd.f32 0.05243302, %v788_v45  ;;  %v840_v58 = vadd.f32 0.112945676, %v839_v24  ;;  %v865_v61 = vadd.f32 0.00028619796, %v864_v26  ;;  %v659_v62 = vmul.f32 %v658_v43, %v1416_v60 }
 0x24a   : > { %vm735_vm5 = vcmp.eq.f32.partialorder %v734_v50, 8.507059e+37  ;;  %v802_v39 = vadd.f32 0.4994258, %v801_v36  ;;  %v876_v32 = vadd.f32 0.001143296, %v875_v52  ;;  %v998_v41 = vclamps-f32 %v619_v6, 1.0 }
 0x24b   : > { %v1054_v59 = vpop.eup %1053  ;;  %v738_v63 = vsel %vm735_vm5, %v737_v53, %v733_v55  ;;  %v829_v28 = vadd.f32 0.05243302, %v828_v49  ;;  %v841_v21 = vmul.f32 %v840_v58, %v1428_v18  ;;  %v699_v14 = vmul.f32 %v698_v4, %v1424_v3 }
 0x24c   : > { %v766_v31 = vmul.f32 %v1054_v59, %v1500_v38  ;;  %v803_v16 = vmul.f32 %v802_v39, %v1377_v35  ;;  %v866_v2 = vmul.f32 %v865_v61, %v1503_v22  ;;  %v753_v7 = vadd.f32 1.1283791, %v752_v56 }
 0x24d   : > { %v790_v60 = vmul.f32 %v789_v57, %v1377_v35  ;;  %v842_v9 = vadd.f32 0.4994258, %v841_v21  ;;  %v877_v29 = vmul.f32 %v876_v32, %v1503_v22  ;;  %v739_v12 = vmul.f32 %v738_v63, %v1469_v1 }
 0x24e   : > { %v767_v17 = vsub.f32 1.0, %v766_v31  ;;  %v774_v30 = vand.u32 2147483647, %v1500_v38  ;;  %v1551_v44 = vadd.f32 1.0, %v803_v16  ;;  %v776_v3 = vand.u32 2147483648, %v1500_v38 }
 0x24f   : > { %v830_v20 = vmul.f32 %v829_v28, %v1428_v18  ;;  %v843_v11 = vmul.f32 %v842_v9, %v1428_v18  ;;  %v878_v5 = vadd.f32 0.014752088, %v877_v29  ;;  %vm771_vm6 = vweird.f32 %v1054_v59 }
 0x250   : > { %v768_v33 = vmul.f32 %v1054_v59, %v767_v17  ;;  %1055 = vrcp.f32 %v1551_v44  ;;  %v867_v34 = vadd.f32 0.0036580483, %v866_v2  ;;  %v999_v13 = vclamps-f32 %v659_v62, 1.0 }
 0x251   : > { %v1000_v37 = vclamps-f32 %v699_v14, 1.0  ;;  %v791_v1 = vadd.f32 0.18741608, %v790_v60  ;;  %v1557_v40 = vadd.f32 1.0, %v843_v11  ;;  %v754_v45 = vmul.f32 %v753_v7, %v1322_v25 }
 0x252   : > { %v769_v6 = vadd.f32 %v1054_v59, %v768_v33  ;;  %vm770_vm7 = vweird.f32 %v1500_v38  ;;  %v879_v50 = vmul.f32 %v878_v5, %v1503_v22  ;;  %v1001_v53 = vclamps-f32 %v739_v12, 1.0 }
 0x253   : > { %vm772_vm8 = vmor %vm770_vm7, %vm771_vm6  ;;  %v777_v54 = vor.u32 1.1754944e-38, %v776_v3  ;;  %v831_v43 = vadd.f32 0.18741608, %v830_v20  ;;  %1057 = vrcp.f32 %v1557_v40  ;;  %vm775_vm9 = vcmp.eq.f32.partialorder %v774_v30, 8.507059e+37 }
 0x254   : > { %v773_v23 = vsel %vm772_vm8, %v1054_v59, %v769_v6  ;;  %v868_v49 = vmul.f32 %v867_v34, %v1503_v22  ;;  %v902_v24 = vadd.f32 1.0, %v998_v41  ;;  %v880_v4 = vadd.f32 0.112945676, %v879_v50 }
 0x255   : > { %v778_v26 = vsel %vm775_vm9, %v777_v54, %v773_v23  ;;  %v903_v25 = vadd.f32 1.0, %v999_v13  ;;  %v904_v55 = vadd.f32 1.0, %v1000_v37  ;;  %v569_v38 = vmul.f32 0.5, %v1253_v27 }
 0x256   : > { %v1056_v36 = vpop.eup %1055  ;;  %v570_v52 = vmul.f32 0.5, %v1307_v10  ;;  %v779_v56 = vmul.f32 %v778_v26, %v754_v45  ;;  %v792_v57 = vmul.f32 %v791_v1, %v1377_v35  ;;  %v832_v61 = vmul.f32 %v831_v43, %v1428_v18 }
 0x257   : > { %v806_v58 = vmul.f32 %v1056_v36, %v1551_v44  ;;  %v881_v62 = vmul.f32 %v880_v4, %v1503_v22  ;;  %v905_v39 = vadd.f32 1.0, %v1001_v53  ;;  %v869_v32 = vadd.f32 0.05243302, %v868_v49 }
 0x258   : > { %v1002_v27 = vclamps-f32 %v779_v56, 1.0  ;;  %v910_v10 = vmul.f32 %v902_v24, %v1385_v46  ;;  %v911_v35 = vmul.f32 %v903_v25, %v1388_v42  ;;  %v912_v28 = vmul.f32 %v904_v55, %v1391_v47 }
 0x259   : > { %v1058_v59 = vpop.eup %1057  ;;  %v807_v41 = vsub.f32 1.0, %v806_v58  ;;  %v882_v63 = vadd.f32 0.4994258, %v881_v62  ;;  %v913_v21 = vmul.f32 %v905_v39, %v569_v38  ;;  %v793_v14 = vadd.f32 1.1283791, %v792_v57 }
 0x25a   : > { %v816_v18 = vand.u32 2147483648, %v1551_v44  ;;  %v846_v31 = vmul.f32 %v1058_v59, %v1557_v40  ;;  %v906_v16 = vadd.f32 1.0, %v1002_v27  ;;  %918 = vst.msk [vmem:[%s1572_s11] sm:$0xff] %vm265_vm0, %v910_v10  ;;  %vm811_vm10 = vweird.f32 %v1056_v36 }
 0x25b   : > { %v808_v46 = vmul.f32 %v1056_v36, %v807_v41  ;;  %v814_v42 = vand.u32 2147483647, %v1551_v44  ;;  %v883_v2 = vmul.f32 %v882_v63, %v1503_v22  ;;  %919 = vst.msk [vmem:[%s1572_s11 + $0x8] sm:$0xff] %vm265_vm0, %v911_v35  ;;  %vm810_vm11 = vweird.f32 %v1551_v44 }
 0x25c   : > { %v833_v47 = vadd.f32 1.1283791, %v832_v61  ;;  %v847_v7 = vsub.f32 1.0, %v846_v31  ;;  %v914_v60 = vmul.f32 %v906_v16, %v570_v52  ;;  %920 = vst.msk [vmem:[%s1572_s11 + $0x10] sm:$0xff] %vm265_vm0, %v912_v28  ;;  %v856_v29 = vand.u32 2147483648, %v1557_v40  ;;  %vm812_vm12 = vmor %vm810_vm11, %vm811_vm10 }
 0x25d   : > { %v809_v9 = vadd.f32 %v1056_v36, %v808_v46  ;;  %v870_v12 = vmul.f32 %v869_v32, %v1503_v22  ;;  %v884_v17 = vadd.f32 1.0, %v883_v2  ;;  %921 = vst.msk [vmem:[%s1572_s11 + $0x18] sm:$0xff] %vm265_vm0, %v913_v21  ;;  %v817_v30 = vor.u32 1.1754944e-38, %v816_v18 }
 0x25e   : > { %v848_v3 = vmul.f32 %v1058_v59, %v847_v7  ;;  %vm851_vm13 = vweird.f32 %v1058_v59  ;;  %v854_v20 = vand.u32 2147483647, %v1557_v40  ;;  %922 = vst.msk [vmem:[%s1572_s11 + $0x20] sm:$0xff] %vm265_vm0, %v914_v60  ;;  %v794_v44 = vmul.f32 %v793_v14, %v1341_v0 }
 0x25f   : > { %v813_v11 = vsel %vm812_vm12, %v1056_v36, %v809_v9  ;;  %vm815_vm14 = vcmp.eq.f32.partialorder %v814_v42, 8.507059e+37  ;;  %1059 = vrcp.f32 %v884_v17  ;;  %vm850_vm15 = vweird.f32 %v1557_v40 }
 0x260   : > { %v818_v5 = vsel %vm815_vm14, %v817_v30, %v813_v11  ;;  %v849_v33 = vadd.f32 %v1058_v59, %v848_v3  ;;  %vm852_vm1 = vmor %vm850_vm15, %vm851_vm13  ;;  %v857_v13 = vor.u32 1.1754944e-38, %v856_v29  ;;  %v871_v37 = vadd.f32 0.18741608, %v870_v12 }
 0x261   : > { %v819_v34 = vmul.f32 %v818_v5, %v794_v44  ;;  %v834_v1 = vmul.f32 %v833_v47, %v1368_v19  ;;  %vm855_vm2 = vcmp.eq.f32.partialorder %v854_v20, 8.507059e+37  ;;  %v571_v54 = vmul.f32 0.5, %v1328_v51 }
 0x262   : > { %v853_v45 = vsel %vm852_vm1, %v1058_v59, %v849_v33  ;;  %v872_v43 = vmul.f32 %v871_v37, %v1503_v22  ;;  %v572_v26 = vmul.f32 0.5, %v1353_v8  ;;  %v896_v55 = vand.u32 2147483648, %v884_v17 }
 0x263   : > { %v1003_v6 = vclamps-f32 %v819_v34, 1.0  ;;  %v858_v50 = vsel %vm855_vm2, %v857_v13, %v853_v45  ;;  %v894_v38 = vand.u32 2147483647, %v884_v17  ;;  %vm890_vm4 = vweird.f32 %v884_v17 }
 0x264   : > { %v859_v53 = vmul.f32 %v858_v50, %v834_v1  ;;  %v873_v25 = vadd.f32 1.1283791, %v872_v43  ;;  %v897_v22 = vor.u32 1.1754944e-38, %v896_v55  ;;  %v573_v62 = vmul.f32 0.5, %v1365_v15 }
 0x265   : > { %v1060_v0 = vpop.eup %1059  ;;  %v907_v23 = vadd.f32 1.0, %v1003_v6  ;;  %vm895_vm6 = vcmp.eq.f32.partialorder %v894_v38, 8.507059e+37 }
 0x266   : > { %v1004_v40 = vclamps-f32 %v859_v53, 1.0  ;;  %v886_v49 = vmul.f32 %v1060_v0, %v884_v17  ;;  %vm891_vm3 = vweird.f32 %v1060_v0  ;;  %v874_v56 = vmul.f32 %v873_v25, %v1394_v48 }
 0x267   : > { %v915_v24 = vmul.f32 %v907_v23, %v571_v54  ;;  %vm892_vm5 = vmor %vm890_vm4, %vm891_vm3 }
 0x268   : > { %v887_v4 = vsub.f32 1.0, %v886_v49  ;;  %v908_v19 = vadd.f32 1.0, %v1004_v40 }
 0x269   : > { %923 = vst.msk [vmem:[%s1572_s11 + $0x28] sm:$0xff] %vm265_vm0, %v915_v24 }
 0x26a   : > { %v888_v36 = vmul.f32 %v1060_v0, %v887_v4  ;;  %v916_v51 = vmul.f32 %v908_v19, %v572_v26 }
 0x26c   : > { %v889_v52 = vadd.f32 %v1060_v0, %v888_v36  ;;  %924 = vst.msk [vmem:[%s1572_s11 + $0x30] sm:$0xff] %vm265_vm0, %v916_v51 }
 0x26e   : > { %v893_v8 = vsel %vm892_vm5, %v1060_v0, %v889_v52 }
 0x26f   : > { %v898_v57 = vsel %vm895_vm6, %v897_v22, %v893_v8 }
 0x270   : > { %v899_v58 = vmul.f32 %v898_v57, %v874_v56 }
 0x272   : > { %v1005_v61 = vclamps-f32 %v899_v58, 1.0 }
 0x274   : > { %v909_v39 = vadd.f32 1.0, %v1005_v61 }
 0x276   : > { %v917_v27 = vmul.f32 %v909_v39, %v573_v62 }
 0x278   : > { %925 = vst.msk [vmem:[%s1572_s11 + $0x38] sm:$0xff] %vm265_vm0, %v917_v27 }
 0x279 PF: > { %s16_s21 = sadd.s32 1, %s1067_s21  }
 0x27a   : > { %p13_p4 = scmp.ge.s32.totalorder %s16_s21, 4  }
 0x27c   :  { %15 = sbr.rel (!%p13_p4) target bundleno = 1 (0x1), region = 74 }

// kernel: post_pos_embed.16
= control target key start
LH: loop header
LB: loop body
LE: loop exit
PB: predicated region body
PF: predicated region fallthrough
CT: control target
= control target key end

     0   :  { %s450_s12 = smov 0   ;;  %s555_s0 = inlined_call_operand.vmem [shape: f32[2,6,6,2], index: 0, kind: input, shape index: {}]   ;;  %s556_s1 = inlined_call_operand.vmem [shape: f32[3,3,2], index: 1, kind: input, shape index: {}]   ;;  %s557_s2 = inlined_call_operand.vmem [shape: f32[1,2], index: 2, kind: input, shape index: {}]   ;;  %s558_s3 = inlined_call_operand.vmem [shape: f32[2,4,4,2], index: 3, kind: output, shape index: {}]  }
   0x1 LB: > { %s401_s13 = sadd.s32 4294967295, %s428_s12   ;;  %p405_p0 = scmp.ge.s32.totalorder %s428_s12, 1  ;;  %s428_s12 = sphi %s450_s12, %s13_s12  }
   0x2   : > { %p137_p1 = scmp.lt.s32.totalorder %s428_s12, 3 }
   0x4   : > { %p138_p2 = pnand %p405_p0, %p137_p1 }
   0x5   : > { %p161_p3 = scmp.lt.s32.totalorder (!%p138_p2), %s401_s13, 1 }
   0x6   : > { %141 = sbr.rel (%p138_p2) target bundleno = 51 (0x33), region = 32 }
   0xb   : > { %v177_v0 = vld [vmem:[%s556_s1] sm:$0x7]  ;;  %s560_s13 = smov (!%p161_p3, %s401_s13), 1  ;;  %v178_v1 = vld [vmem:[%s556_s1 + $0x4] sm:$0x7]  ;;  %vm341_vm0 = vcmask 11264  }
   0xc   : > { %v179_v2 = vld [vmem:[%s556_s1 + $0x8] sm:$0x7]  ;;  %s412_s20 = smul.u32 48, %s560_s13  ;;  %v470_v3 = vperm.slane %v177_v0, 0  ;;  %v472_v4 = vperm.slane %v177_v0, 1  ;;  %v474_v5 = vperm.slane %v177_v0, 2 }
   0xd   : > { %v476_v6 = vperm.slane %v178_v1, 1  ;;  %v483_v7 = vperm.slane %v178_v1, 2  ;;  %v485_v8 = vperm.slane %v179_v2, 1  ;;  %v488_v10 = vperm.slane %v178_v1, 0  ;;  %s411_s24 = sshll.u32 %s560_s13, 4 }
   0xe   : > { %s481_s23 = scalar_lea.vmem %s555_s0, %s412_s20  ;;  %v494_v15 = vperm.slane %v179_v2, 2  ;;  %v498_v18 = vperm.slane %v179_v2, 0  ;;  %s539_s29 = scalar_lea.vmem %s558_s3, %s411_s24 }
   0xf   : > { %v171_v9 = vld [vmem:[%s481_s23] sm:$0x3f]  ;;  %v172_v11 = vld [vmem:[%s481_s23 + $0x8] sm:$0x3f]  ;;  %v173_v16 = vld [vmem:[%s481_s23 + $0x10] sm:$0x3f] }
  0x10   : > { %v181_v12 = vmul.f32 %v470_v3, %v171_v9  ;;  %v190_v13 = vmul.f32 %v472_v4, %v171_v9  ;;  %v211_v14 = vmul.f32 %v474_v5, %v171_v9  ;;  %v241_v17 = vmul.f32 %v476_v6, %v172_v11  ;;  %v174_v33 = vld [vmem:[%s481_s23 + $0x18] sm:$0x3f]  ;;  %v175_v58 = vld [vmem:[%s481_s23 + $0x20] sm:$0x3f] }
  0x11   : > { %v262_v21 = vmul.f32 %v483_v7, %v172_v11  ;;  %v292_v22 = vmul.f32 %v485_v8, %v173_v16  ;;  %v182_v23 = vmul.f32 %v470_v3, %v172_v11  ;;  %v191_v24 = vmul.f32 %v472_v4, %v172_v11 }
  0x12   : > { %v198_v19 = vrot.slane %v190_v13, 1  ;;  %v219_v20 = vrot.slane %v211_v14, 2  ;;  %v232_v26 = vmul.f32 %v488_v10, %v172_v11  ;;  %v313_v27 = vmul.f32 %v494_v15, %v173_v16 }
  0x13   : > { %v212_v28 = vmul.f32 %v474_v5, %v172_v11  ;;  %v249_v29 = vrot.slane %v241_v17, 1  ;;  %v283_v30 = vmul.f32 %v498_v18, %v173_v16  ;;  %v199_v31 = vrot.slane %v191_v24, 1 }
  0x14   : > { %v206_v25 = vadd.f32 %v198_v19, %v181_v12  ;;  %v242_v32 = vmul.f32 %v476_v6, %v173_v16  ;;  %v270_v35 = vrot.slane %v262_v21, 2  ;;  %v300_v36 = vrot.slane %v292_v22, 1 }
  0x15   : > { %v220_v37 = vrot.slane %v212_v28, 2  ;;  %v207_v38 = vadd.f32 %v199_v31, %v182_v23  ;;  %v233_v39 = vmul.f32 %v488_v10, %v173_v16  ;;  %v263_v40 = vmul.f32 %v483_v7, %v173_v16 }
  0x16   : > { %v227_v34 = vadd.f32 %v219_v20, %v206_v25  ;;  %v293_v41 = vmul.f32 %v485_v8, %v174_v33  ;;  %v321_v43 = vrot.slane %v313_v27, 2  ;;  %v183_v44 = vmul.f32 %v470_v3, %v173_v16 }
  0x17   : > { %v192_v45 = vmul.f32 %v472_v4, %v173_v16  ;;  %v228_v46 = vadd.f32 %v220_v37, %v207_v38  ;;  %v250_v47 = vrot.slane %v242_v32, 1  ;;  %v314_v48 = vmul.f32 %v494_v15, %v174_v33 }
  0x18   : > { %v236_v42 = vadd.f32 %v232_v26, %v227_v34  ;;  %v213_v49 = vmul.f32 %v474_v5, %v173_v16  ;;  %v284_v51 = vmul.f32 %v498_v18, %v174_v33  ;;  %v243_v53 = vmul.f32 %v476_v6, %v174_v33 }
  0x19   : > { %v200_v52 = vrot.slane %v192_v45, 1  ;;  %v237_v54 = vadd.f32 %v233_v39, %v228_v46  ;;  %v271_v55 = vrot.slane %v263_v40, 2  ;;  %v301_v56 = vrot.slane %v293_v41, 1 }
  0x1a   : > { %v257_v50 = vadd.f32 %v249_v29, %v236_v42  ;;  %v221_v57 = vrot.slane %v213_v49, 2  ;;  %v234_v61 = vmul.f32 %v488_v10, %v174_v33  ;;  %v264_v62 = vmul.f32 %v483_v7, %v174_v33  ;;  %v176_v29 = vld [vmem:[%s481_s23 + $0x28] sm:$0x3f] }
  0x1b   : > { %v208_v60 = vadd.f32 %v200_v52, %v183_v44  ;;  %v258_v63 = vadd.f32 %v250_v47, %v237_v54  ;;  %v322_v0 = vrot.slane %v314_v48, 2  ;;  %v184_v1 = vmul.f32 %v470_v3, %v174_v33  ;;  %v421_v3 = vld [vmem:[%s557_s2] ss:$0 sm:$0xff] }
  0x1c   : > { %v278_v59 = vadd.f32 %v270_v35, %v257_v50  ;;  %v193_v2 = vmul.f32 %v472_v4, %v174_v33  ;;  %v251_v12 = vrot.slane %v243_v53, 1  ;;  %v214_v13 = vmul.f32 %v474_v5, %v174_v33 }
  0x1d   : > { %v229_v11 = vadd.f32 %v221_v57, %v208_v60  ;;  %v279_v14 = vadd.f32 %v271_v55, %v258_v63  ;;  %v294_v16 = vmul.f32 %v485_v8, %v175_v58  ;;  %v244_v19 = vmul.f32 %v476_v6, %v175_v58 }
  0x1e   : > { %v287_v9 = vadd.f32 %v283_v30, %v278_v59  ;;  %v201_v17 = vrot.slane %v193_v2, 1  ;;  %v272_v4 = vrot.slane %v264_v62, 2  ;;  %v222_v22 = vrot.slane %v214_v13, 2 }
  0x1f   : > { %v238_v21 = vadd.f32 %v234_v61, %v229_v11  ;;  %v288_v23 = vadd.f32 %v284_v51, %v279_v14  ;;  %v235_v5 = vmul.f32 %v488_v10, %v175_v58  ;;  %v265_v25 = vmul.f32 %v483_v7, %v175_v58 }
  0x20   : > { %v308_v20 = vadd.f32 %v300_v36, %v287_v9  ;;  %v209_v24 = vadd.f32 %v201_v17, %v184_v1  ;;  %v285_v28 = vmul.f32 %v498_v18, %v175_v58  ;;  %v315_v6 = vmul.f32 %v494_v15, %v175_v58 }
  0x21   : > { %v259_v27 = vadd.f32 %v251_v12, %v238_v21  ;;  %v309_v30 = vadd.f32 %v301_v56, %v288_v23  ;;  %v252_v32 = vrot.slane %v244_v19, 1  ;;  %v302_v33 = vrot.slane %v294_v16, 1 }
  0x22   : > { %v329_v26 = vadd.f32 %v321_v43, %v308_v20  ;;  %v230_v31 = vadd.f32 %v222_v22, %v209_v24  ;;  %v273_v36 = vrot.slane %v265_v25, 2  ;;  %v295_v37 = vmul.f32 %v485_v8, %v176_v29 }
  0x23   : > { %v280_v7 = vadd.f32 %v272_v4, %v259_v27  ;;  %v330_v34 = vadd.f32 %v322_v0, %v309_v30  ;;  %v323_v39 = vrot.slane %v315_v6, 2  ;;  %v286_v42 = vmul.f32 %v498_v18, %v176_v29 }
  0x24   : > { %v337_v10 = vadd.f32 %v421_v3, %v329_v26  ;;  %v239_v35 = vadd.f32 %v235_v5, %v230_v31  ;;  %v316_v43 = vmul.f32 %v494_v15, %v176_v29  ;;  %v303_v46 = vrot.slane %v295_v37, 1 }
  0x25   : > { %v289_v38 = vadd.f32 %v285_v28, %v280_v7  ;;  %v338_v40 = vadd.f32 %v421_v3, %v330_v34 }
  0x26   : > { %342 = vst.msk [vmem:[%s539_s29] sm:$0xf] %vm341_vm0, %v337_v10  ;;  %v260_v41 = vadd.f32 %v252_v32, %v239_v35  ;;  %v324_v8 = vrot.slane %v316_v43, 2 }
  0x27   : > { %v310_v44 = vadd.f32 %v302_v33, %v289_v38  ;;  %343 = vst.msk [vmem:[%s539_s29 + $0x4] sm:$0xf] %vm341_vm0, %v338_v40 }
  0x28   : > { %v281_v45 = vadd.f32 %v273_v36, %v260_v41 }
  0x29   : > { %v331_v47 = vadd.f32 %v323_v39, %v310_v44 }
  0x2a   : > { %v290_v48 = vadd.f32 %v286_v42, %v281_v45 }
  0x2b   : > { %v339_v49 = vadd.f32 %v421_v3, %v331_v47 }
  0x2c   : > { %v311_v50 = vadd.f32 %v303_v46, %v290_v48 }
  0x2d   : > { %344 = vst.msk [vmem:[%s539_s29 + $0x8] sm:$0xf] %vm341_vm0, %v339_v49 }
  0x2e   : > { %v332_v51 = vadd.f32 %v324_v8, %v311_v50 }
  0x30   : > { %v340_v52 = vadd.f32 %v421_v3, %v332_v51 }
  0x32   : > { %345 = vst.msk [vmem:[%s539_s29 + $0xc] sm:$0xf] %vm341_vm0, %v340_v52 }
  0x33 PF: > { %s13_s12 = sadd.s32 1, %s428_s12  }
  0x34   : > { %p10_p4 = scmp.ge.s32.totalorder %s13_s12, 4  }
  0x36   :  { %12 = sbr.rel (!%p10_p4) target bundleno = 1 (0x1), region = 62 }

// kernel: post_pos_embed.17
= control target key start
LH: loop header
LB: loop body
LE: loop exit
PB: predicated region body
PF: predicated region fallthrough
CT: control target
= control target key end

     0   :  { %s857_s24 = smov 0   ;;  %s859_s25 = smov 0   ;;  %s976_s0 = inlined_call_operand.vmem [shape: f32[2,4,4,8], index: 0, kind: input, shape index: {}]   ;;  %s977_s1 = inlined_call_operand.vmem [shape: f32[2,4,4,2], index: 1, kind: input, shape index: {}]   ;;  %s978_s2 = inlined_call_operand.vmem [shape: f32[4,4,2], index: 2, kind: input, shape index: {}]   ;;  %s979_s3 = inlined_call_operand.vmem [shape: f32[4,1,2], index: 3, kind: input, shape index: {}]   ;;  %s980_s4 = inlined_call_operand.vmem [shape: f32[1,4,2], index: 4, kind: input, shape index: {}]   ;;  %s981_s5 = inlined_call_operand.vmem [shape: f32[1,8], index: 5, kind: input, shape index: {}]   ;;  %s982_s6 = inlined_call_operand.vmem [shape: f32[1,8], index: 6, kind: input, shape index: {}]   ;;  %s983_s7 = inlined_call_operand.vmem [shape: f32[2,4,4,8], index: 7, kind: output, shape index: {}]  }
   0x1   :  { %s861_s26 = smov 0  }
   0x2 LB: > { %s29_s27 = sadd.s32 1, %s807_s25  ;;  %p733_p0 = scmp.ge.s32.totalorder %s811_s26, 1  ;;  %s811_s26 = sphi %s861_s26, %s17_s26   ;;  %s807_s25 = sphi %s859_s25, %s985_s25   ;;  %s803_s24 = sphi %s857_s24, %s984_s24  }
   0x3   : > { %p31_p1 = scmp.ge.s32.totalorder %s29_s27, 2  ;;  %p296_p2 = scmp.lt.s32.totalorder %s811_s26, 3 }
   0x5   : > { %s987_s27 = smov (%p31_p1, %s29_s27), 0  ;;  %p297_p3 = pnand %p733_p0, %p296_p2 }
   0x6   : > { %p355_p4 = scmp.lt.s32.totalorder (!%p297_p3), %s803_s24, 1  ;;  %s813_s9 = smov (!%p297_p3), 2  }
   0x7   : > { %300 = sbr.rel (%p297_p3) target bundleno = 422 (0x1a6), region = 48  ;;  %s814_s12 = smov (!%p297_p3), 4  }
   0x8   : > { %s815_s21 = smov (!%p297_p3), 6  }
   0xc   : > { %v773_v0 = vld [vmem:[%s979_s3 + $0x2] ss:$0 sm:$0xff]  ;;  %v774_v1 = vld [vmem:[%s979_s3] ss:$0 sm:$0xff]  ;;  %s989_s24 = smov (!%p355_p4, %s803_s24), 1  ;;  %vm464_vm0 = vcmask 15360  }
   0xd   : > { %423 = vrot.lane.b32.xlu1 %v773_v0, %s813_s9  ;;  %419 = vrot.lane.b32.xlu0 %v774_v1, %s813_s9  ;;  %v435_v2 = vld [vmem:[%s980_s4] sm:$0xf]  ;;  %s887_s15 = sshll.u32 %s989_s24, 4  ;;  %vm469_vm1 = vcmask 31744   ;;  %vm474_vm2 = vcmask 48128   ;;  %vm479_vm3 = vcmask 60416  }
   0xe   : > { %437 = vrot.lane.b32.xlu2 %v435_v2, %s814_s12  ;;  %v775_v3 = vld [vmem:[%s979_s3 + $0x3] ss:$0 sm:$0xff]  ;;  %v776_v4 = vld [vmem:[%s979_s3 + $0x1] ss:$0 sm:$0xff]  ;;  %s372_s20 = scalar_lea.vmem %s977_s1, %s887_s15  ;;  %s362_s24 = scalar_lea.vmem %s976_s0, %s887_s15  ;;  %v401_v21 = vld [vmem:[%s978_s2 + $0x8] sm:$0xf] }
   0xf   : > { %v444_v5 = vld [vmem:[%s372_s20] sm:$0xf]  ;;  %v446_v6 = vld [vmem:[%s372_s20 + $0x8] sm:$0xf]  ;;  %v445_v7 = vld [vmem:[%s372_s20 + $0x4] sm:$0xf] }
  0x10   : > { %v447_v8 = vld [vmem:[%s372_s20 + $0xc] sm:$0xf]  ;;  %v395_v10 = vld [vmem:[%s362_s24] sm:$0xf]  ;;  %v397_v20 = vld [vmem:[%s362_s24 + $0x8] sm:$0xf]  ;;  %s954_s20 = scalar_lea.vmem %s983_s7, %s887_s15 }
  0x11   : > { %v399_v11 = vld [vmem:[%s978_s2] sm:$0xf]  ;;  %v396_v24 = vld [vmem:[%s362_s24 + $0x4] sm:$0xf]  ;;  %v405_v27 = vmul.f32 %v401_v21, %v397_v20  ;;  %v398_v30 = vld [vmem:[%s362_s24 + $0xc] sm:$0xf] }
  0x12   : > { %v403_v13 = vmul.f32 %v399_v11, %v395_v10  ;;  %v400_v25 = vld [vmem:[%s978_s2 + $0x4] sm:$0xf]  ;;  %v402_v31 = vld [vmem:[%s978_s2 + $0xc] sm:$0xf]  ;;  %v816_v54 = vmov 8.0  }
  0x13   : > { %v404_v32 = vmul.f32 %v400_v25, %v396_v24  ;;  %v406_v36 = vmul.f32 %v402_v31, %v398_v30  ;;  %779 = vrcp.f32 %v816_v54 }
  0x15   : > { %425 = vrot.lane.b32.xlu1 %v775_v3, %s813_s9  ;;  %421 = vrot.lane.b32.xlu0 %v776_v4, %s813_s9 }
  0x16   : > { %452 = vrot.lane.b32.xlu2 %v444_v5, %s815_s21 }
  0x19   : > { %v780_v55 = vpop.eup %779 }
  0x1a   : > { %v493_v56 = vmul.f32 8.0, %v780_v55  ;;  %vm497_vm4 = vweird.f32 %v780_v55 }
  0x1c   : > { %v494_v57 = vsub.f32 1.0, %v493_v56 }
  0x1d   : > { %456 = vrot.lane.b32.xlu1 %v446_v6, %s815_s21  ;;  %454 = vrot.lane.b32.xlu0 %v445_v7, %s815_s21 }
  0x1e   : > { %458 = vrot.lane.b32.xlu2 %v447_v8, %s815_s21  ;;  %v495_v58 = vmul.f32 %v780_v55, %v494_v57 }
  0x20   : > { %v496_v59 = vadd.f32 %v780_v55, %v495_v58 }
  0x22   : > { %v498_v60 = vsel %vm497_vm4, %v780_v55, %v496_v59 }
  0x68   : > { %v438_v9 = vpop.permute.xlu2 %437 }
  0x69   : > { %v440_v15 = vmul.f32 %v438_v9, %v395_v10  ;;  %v442_v34 = vmul.f32 %v438_v9, %v397_v20  ;;  %v441_v38 = vmul.f32 %v438_v9, %v396_v24  ;;  %v443_v40 = vmul.f32 %v438_v9, %v398_v30 }
  0x70   : > { %v453_v17 = vpop.permute.xlu2 %452 }
  0x78   : > { %v459_v50 = vpop.permute.xlu2 %458 }
  0x7f   : > { %v424_v12 = vpop.permute.xlu1 %423  ;;  %v420_v14 = vpop.permute.xlu0 %419 }
  0x80   : > { %v431_v16 = vmul.f32 %v420_v14, %v395_v10  ;;  %v433_v28 = vmul.f32 %v424_v12, %v397_v20 }
  0x82   : > { %v465_v18 = vsel %vm464_vm0, %v403_v13, %v431_v16  ;;  %v467_v35 = vsel %vm464_vm0, %v405_v27, %v433_v28 }
  0x83   : > { %v470_v19 = vsel %vm469_vm1, %v465_v18, %v440_v15  ;;  %v472_v42 = vsel %vm469_vm1, %v467_v35, %v442_v34  ;;  %v777_v34 = vld [vmem:[%s981_s5] ss:$0 sm:$0xff] }
  0x84   : > { %v475_v22 = vsel %vm474_vm2, %v470_v19, %v453_v17 }
  0x85   : > { %v480_v23 = vsel %vm479_vm3, %v475_v22, 0.0 }
  0x86   : > { %481 = vadd.xlane.f32.xlu0 %v480_v23 }
  0x87   : > { %v426_v26 = vpop.permute.xlu1 %425  ;;  %v422_v29 = vpop.permute.xlu0 %421 }
  0x88   : > { %v432_v33 = vmul.f32 %v422_v29, %v396_v24  ;;  %v434_v37 = vmul.f32 %v426_v26, %v398_v30 }
  0x8a   : > { %v466_v39 = vsel %vm464_vm0, %v404_v32, %v432_v33  ;;  %v468_v43 = vsel %vm464_vm0, %v406_v36, %v434_v37 }
  0x8b   : > { %v471_v46 = vsel %vm469_vm1, %v466_v39, %v441_v38  ;;  %v473_v51 = vsel %vm469_vm1, %v468_v43, %v443_v40  ;;  %v778_v39 = vld [vmem:[%s982_s6] ss:$0 sm:$0xff] }
  0x8c   : > { %v478_v52 = vsel %vm474_vm2, %v473_v51, %v459_v50 }
  0x8d   : > { %v489_v53 = vsel %vm479_vm3, %v478_v52, 0.0 }
  0x8f   : > { %v457_v41 = vpop.permute.xlu1 %456  ;;  %v455_v44 = vpop.permute.xlu0 %454 }
  0x90   : > { %v477_v45 = vsel %vm474_vm2, %v472_v42, %v457_v41  ;;  %v476_v48 = vsel %vm474_vm2, %v471_v46, %v455_v44 }
  0x91   : > { %v486_v47 = vsel %vm479_vm3, %v477_v45, 0.0  ;;  %v483_v49 = vsel %vm479_vm3, %v476_v48, 0.0 }
  0x92   : > { %487 = vadd.xlane.f32.xlu2 %v486_v47  ;;  %484 = vadd.xlane.f32.xlu1 %v483_v49 }
  0x9a   : > { %490 = vadd.xlane.f32.xlu2 %v489_v53 }
  0xf9   : > { %v482_v61 = vpop.xlane.xlu0 %481 }
  0xfa   : > { %v499_v62 = vmul.f32 %v498_v60, %v482_v61 }
  0xfc   : > { %v503_v63 = vsub.f32 %v475_v22, %v499_v62 }
  0xfe   : > { %v507_v0 = vmul.f32 %v503_v63, %v503_v63 }
 0x100   : > { %v511_v1 = vsel %vm479_vm3, %v507_v0, 0.0 }
 0x101   : > { %512 = vadd.xlane.f32.xlu0 %v511_v1 }
 0x105   : > { %v488_v2 = vpop.xlane.xlu2 %487  ;;  %v485_v4 = vpop.xlane.xlu1 %484 }
 0x106   : > { %v501_v3 = vmul.f32 %v498_v60, %v488_v2  ;;  %v500_v5 = vmul.f32 %v498_v60, %v485_v4 }
 0x108   : > { %v929_v6 = vsub.f32 %v477_v45, %v501_v3  ;;  %v931_v7 = vsub.f32 %v476_v48, %v500_v5 }
 0x10a   : > { %v509_v8 = vmul.f32 %v929_v6, %v929_v6  ;;  %v508_v9 = vmul.f32 %v931_v7, %v931_v7 }
 0x10c   : > { %v517_v10 = vsel %vm479_vm3, %v509_v8, 0.0  ;;  %v514_v12 = vsel %vm479_vm3, %v508_v9, 0.0 }
 0x10d   : > { %518 = vadd.xlane.f32.xlu2 %v517_v10  ;;  %v491_v11 = vpop.xlane.xlu2 %490  ;;  %515 = vadd.xlane.f32.xlu1 %v514_v12 }
 0x10e   : > { %v502_v13 = vmul.f32 %v498_v60, %v491_v11 }
 0x110   : > { %v939_v14 = vsub.f32 %v478_v52, %v502_v13 }
 0x112   : > { %v510_v15 = vmul.f32 %v939_v14, %v939_v14 }
 0x114   : > { %v520_v16 = vsel %vm479_vm3, %v510_v15, 0.0 }
 0x115   : > { %521 = vadd.xlane.f32.xlu0 %v520_v16 }
 0x174   : > { %v513_v17 = vpop.xlane.xlu0 %512 }
 0x175   : > { %v523_v18 = vmul.f32 %v513_v17, %v498_v60 }
 0x177   : > { %v527_v19 = vadd.f32 1e-06, %v523_v18 }
 0x179   : > { %781 = vrsqrt.f32 %v527_v19  ;;  %vm537_vm6 = vweird.f32 %v527_v19 }
 0x17f   : > { %v782_v20 = vpop.eup %781 }
 0x180   : > { %v519_v21 = vpop.xlane.xlu2 %518  ;;  %v532_v22 = vmul.f32 %v782_v20, %v527_v19  ;;  %v516_v24 = vpop.xlane.xlu1 %515  ;;  %vm538_vm5 = vweird.f32 %v782_v20 }
 0x181   : > { %v525_v23 = vmul.f32 %v519_v21, %v498_v60  ;;  %v524_v25 = vmul.f32 %v516_v24, %v498_v60  ;;  %vm539_vm7 = vmor %vm537_vm6, %vm538_vm5 }
 0x182   : > { %v533_v26 = vmul.f32 %v782_v20, %v532_v22 }
 0x183   : > { %v529_v27 = vadd.f32 1e-06, %v525_v23  ;;  %v528_v28 = vadd.f32 1e-06, %v524_v25 }
 0x184   : > { %v534_v29 = vmul.f32 0.5, %v533_v26 }
 0x185   : > { %783 = vrsqrt.f32 %v529_v27  ;;  %vm557_vm10 = vweird.f32 %v529_v27  ;;  %vm547_vm12 = vweird.f32 %v528_v28 }
 0x186   : > { %785 = vrsqrt.f32 %v528_v28  ;;  %v535_v30 = vsub.f32 1.5, %v534_v29 }
 0x188   : > { %v522_v31 = vpop.xlane.xlu0 %521  ;;  %v536_v32 = vmul.f32 %v782_v20, %v535_v30 }
 0x189   : > { %v526_v33 = vmul.f32 %v522_v31, %v498_v60 }
 0x18a   : > { %v540_v36 = vsel %vm539_vm7, %v782_v20, %v536_v32 }
 0x18b   : > { %v784_v35 = vpop.eup %783  ;;  %v530_v37 = vadd.f32 1e-06, %v526_v33  ;;  %v571_v40 = vmul.f32 %v540_v36, %v503_v63 }
 0x18c   : > { %v786_v38 = vpop.eup %785  ;;  %v552_v41 = vmul.f32 %v784_v35, %v529_v27  ;;  %vm558_vm8 = vweird.f32 %v784_v35 }
 0x18d   : > { %v542_v42 = vmul.f32 %v786_v38, %v528_v28  ;;  %787 = vrsqrt.f32 %v530_v37  ;;  %v579_v43 = vmul.f32 %v777_v34, %v571_v40  ;;  %vm548_vm9 = vweird.f32 %v786_v38  ;;  %vm559_vm11 = vmor %vm557_vm10, %vm558_vm8 }
 0x18e   : > { %v553_v44 = vmul.f32 %v784_v35, %v552_v41  ;;  %vm549_vm13 = vmor %vm547_vm12, %vm548_vm9  ;;  %vm567_vm15 = vweird.f32 %v530_v37 }
 0x18f   : > { %v543_v45 = vmul.f32 %v786_v38, %v542_v42  ;;  %v587_v46 = vadd.f32 %v778_v39, %v579_v43 }
 0x190   : > { %v554_v47 = vmul.f32 0.5, %v553_v44 }
 0x191   : > { %v544_v48 = vmul.f32 0.5, %v543_v45  ;;  %591 = vst.msk [vmem:[%s954_s20] sm:$0xf] %vm479_vm3, %v587_v46 }
 0x192   : > { %v555_v49 = vsub.f32 1.5, %v554_v47 }
 0x193   : > { %v788_v50 = vpop.eup %787  ;;  %v545_v51 = vsub.f32 1.5, %v544_v48 }
 0x194   : > { %v556_v52 = vmul.f32 %v784_v35, %v555_v49  ;;  %v562_v53 = vmul.f32 %v788_v50, %v530_v37  ;;  %vm568_vm14 = vweird.f32 %v788_v50 }
 0x195   : > { %v546_v54 = vmul.f32 %v786_v38, %v545_v51  ;;  %vm569_vm0 = vmor %vm567_vm15, %vm568_vm14 }
 0x196   : > { %v560_v55 = vsel %vm559_vm11, %v784_v35, %v556_v52  ;;  %v563_v56 = vmul.f32 %v788_v50, %v562_v53 }
 0x197   : > { %v573_v57 = vmul.f32 %v560_v55, %v929_v6  ;;  %v550_v58 = vsel %vm549_vm13, %v786_v38, %v546_v54 }
 0x198   : > { %v572_v59 = vmul.f32 %v550_v58, %v931_v7  ;;  %v564_v60 = vmul.f32 0.5, %v563_v56 }
 0x199   : > { %v581_v61 = vmul.f32 %v777_v34, %v573_v57 }
 0x19a   : > { %v580_v62 = vmul.f32 %v777_v34, %v572_v59  ;;  %v565_v63 = vsub.f32 1.5, %v564_v60 }
 0x19b   : > { %v589_v0 = vadd.f32 %v778_v39, %v581_v61 }
 0x19c   : > { %v588_v1 = vadd.f32 %v778_v39, %v580_v62  ;;  %v566_v2 = vmul.f32 %v788_v50, %v565_v63 }
 0x19d   : > { %593 = vst.msk [vmem:[%s954_s20 + $0x8] sm:$0xf] %vm479_vm3, %v589_v0 }
 0x19e   : > { %592 = vst.msk [vmem:[%s954_s20 + $0x4] sm:$0xf] %vm479_vm3, %v588_v1  ;;  %v570_v3 = vsel %vm569_vm0, %v788_v50, %v566_v2 }
 0x19f   : > { %v574_v4 = vmul.f32 %v570_v3, %v939_v14 }
 0x1a1   : > { %v582_v5 = vmul.f32 %v777_v34, %v574_v4 }
 0x1a3   : > { %v590_v6 = vadd.f32 %v778_v39, %v582_v5 }
 0x1a5   : > { %594 = vst.msk [vmem:[%s954_s20 + $0xc] sm:$0xf] %vm479_vm3, %v590_v6 }
 0x1a6 PF: > { %s17_s26 = sadd.s32 1, %s811_s26   ;;  %s984_s24 = smov %s807_s25 }
 0x1a7   : > { %p14_p5 = scmp.ge.s32.totalorder %s17_s26, 4   ;;  %s985_s25 = smov %s987_s27 }
 0x1a9   :  { %16 = sbr.rel (!%p14_p5) target bundleno = 2 (0x2), region = 87 }

// kernel: post_pos_embed.18
= control target key start
LH: loop header
LB: loop body
LE: loop exit
PB: predicated region body
PF: predicated region fallthrough
CT: control target
= control target key end

     0   :  { %s638_s12 = smov 0   ;;  %s856_s0 = inlined_call_operand.vmem [shape: f32[2,6,6,8], index: 0, kind: input, shape index: {}]   ;;  %s857_s1 = inlined_call_operand.vmem [shape: f32[3,3,8], index: 1, kind: input, shape index: {}]   ;;  %s858_s2 = inlined_call_operand.vmem [shape: f32[1,8], index: 2, kind: input, shape index: {}]   ;;  %s859_s3 = inlined_call_operand.vmem [shape: f32[2,4,4,8], index: 3, kind: output, shape index: {}]  }
   0x1 LB: > { %s577_s13 = sadd.s32 4294967295, %s616_s12   ;;  %p581_p0 = scmp.ge.s32.totalorder %s616_s12, 1  ;;  %s616_s12 = sphi %s638_s12, %s13_s12  }
   0x2   : > { %p137_p1 = scmp.lt.s32.totalorder %s616_s12, 3 }
   0x4   : > { %p138_p2 = pnand %p581_p0, %p137_p1 }
   0x5   : > { %p161_p3 = scmp.lt.s32.totalorder (!%p138_p2), %s577_s13, 1 }
   0x6   : > { %141 = sbr.rel (%p138_p2) target bundleno = 99 (0x63), region = 32 }
   0xb   : > { %v177_v0 = vld [vmem:[%s857_s1] sm:$0x7]  ;;  %s871_s13 = smov (!%p161_p3, %s577_s13), 1  ;;  %v178_v1 = vld [vmem:[%s857_s1 + $0x4] sm:$0x7] }
   0xc   : > { %v179_v2 = vld [vmem:[%s857_s1 + $0x8] sm:$0x7]  ;;  %s592_s20 = smul.u32 48, %s871_s13  ;;  %v180_v3 = vperm.slane %v177_v0, 0  ;;  %v189_v4 = vperm.slane %v177_v0, 1  ;;  %v210_v5 = vperm.slane %v177_v0, 2 }
   0xd   : > { %v231_v6 = vperm.slane %v178_v1, 0  ;;  %v240_v7 = vperm.slane %v178_v1, 1  ;;  %v261_v8 = vperm.slane %v178_v1, 2  ;;  %v663_v9 = vperm.slane %v179_v2, 0  ;;  %s591_s26 = sshll.u32 %s871_s13, 4 }
   0xe   : > { %s661_s23 = scalar_lea.vmem %s856_s0, %s592_s20  ;;  %v665_v10 = vperm.slane %v179_v2, 1  ;;  %v667_v11 = vperm.slane %v179_v2, 2  ;;  %s170_s29 = scalar_lea.vmem %s859_s3, %s591_s26 }
   0xf   : > { %v171_v12 = vld [vmem:[%s661_s23] sm:$0x3f]  ;;  %v172_v13 = vld [vmem:[%s661_s23 + $0x8] sm:$0x3f]  ;;  %v672_v14 = vld [vmem:[%s661_s23 + $0x10] sm:$0x3f] }
  0x10   : > { %v675_v15 = vld [vmem:[%s661_s23 + $0x18] sm:$0x3f]  ;;  %v181_v16 = vmul.f32 %v180_v3, %v171_v12  ;;  %v182_v17 = vmul.f32 %v180_v3, %v172_v13  ;;  %v183_v18 = vmul.f32 %v180_v3, %v672_v14  ;;  %v190_v19 = vmul.f32 %v189_v4, %v171_v12  ;;  %v684_v32 = vld [vmem:[%s661_s23 + $0x20] sm:$0x3f]  ;;  %v176_v1 = vld [vmem:[%s661_s23 + $0x28] sm:$0x3f] }
  0x11   : > { %v184_v20 = vmul.f32 %v180_v3, %v675_v15  ;;  %v191_v21 = vmul.f32 %v189_v4, %v172_v13  ;;  %v192_v22 = vmul.f32 %v189_v4, %v672_v14  ;;  %v193_v23 = vmul.f32 %v189_v4, %v675_v15 }
  0x12   : > { %v198_v24 = vrot.slane %v190_v19, 1  ;;  %v211_v25 = vmul.f32 %v210_v5, %v171_v12  ;;  %v212_v26 = vmul.f32 %v210_v5, %v172_v13  ;;  %v213_v27 = vmul.f32 %v210_v5, %v672_v14 }
  0x13   : > { %v199_v28 = vrot.slane %v191_v21, 1  ;;  %v200_v29 = vrot.slane %v192_v22, 1  ;;  %v201_v30 = vrot.slane %v193_v23, 1  ;;  %v214_v31 = vmul.f32 %v210_v5, %v675_v15 }
  0x14   : > { %v206_v33 = vadd.f32 %v198_v24, %v181_v16  ;;  %v219_v34 = vrot.slane %v211_v25, 2  ;;  %v220_v35 = vrot.slane %v212_v26, 2  ;;  %v221_v36 = vrot.slane %v213_v27, 2 }
  0x15   : > { %v207_v37 = vadd.f32 %v199_v28, %v182_v17  ;;  %v208_v38 = vadd.f32 %v200_v29, %v183_v18  ;;  %v209_v39 = vadd.f32 %v201_v30, %v184_v20  ;;  %v222_v40 = vrot.slane %v214_v31, 2 }
  0x16   : > { %v227_v41 = vadd.f32 %v219_v34, %v206_v33  ;;  %v232_v42 = vmul.f32 %v231_v6, %v172_v13  ;;  %v233_v43 = vmul.f32 %v231_v6, %v672_v14  ;;  %v234_v44 = vmul.f32 %v231_v6, %v675_v15 }
  0x17   : > { %v228_v45 = vadd.f32 %v220_v35, %v207_v37  ;;  %v229_v46 = vadd.f32 %v221_v36, %v208_v38  ;;  %v230_v47 = vadd.f32 %v222_v40, %v209_v39  ;;  %v235_v48 = vmul.f32 %v231_v6, %v684_v32 }
  0x18   : > { %v236_v49 = vadd.f32 %v232_v42, %v227_v41  ;;  %v241_v50 = vmul.f32 %v240_v7, %v172_v13  ;;  %v242_v51 = vmul.f32 %v240_v7, %v672_v14  ;;  %v243_v52 = vmul.f32 %v240_v7, %v675_v15 }
  0x19   : > { %v237_v53 = vadd.f32 %v233_v43, %v228_v45  ;;  %v238_v54 = vadd.f32 %v234_v44, %v229_v46  ;;  %v239_v55 = vadd.f32 %v235_v48, %v230_v47  ;;  %v244_v56 = vmul.f32 %v240_v7, %v684_v32 }
  0x1a   : > { %v249_v57 = vrot.slane %v241_v50, 1  ;;  %v250_v58 = vrot.slane %v242_v51, 1  ;;  %v251_v59 = vrot.slane %v243_v52, 1  ;;  %v262_v60 = vmul.f32 %v261_v8, %v172_v13 }
  0x1b   : > { %v252_v61 = vrot.slane %v244_v56, 1  ;;  %v263_v62 = vmul.f32 %v261_v8, %v672_v14  ;;  %v264_v63 = vmul.f32 %v261_v8, %v675_v15  ;;  %v265_v0 = vmul.f32 %v261_v8, %v684_v32 }
  0x1c   : > { %v257_v2 = vadd.f32 %v249_v57, %v236_v49  ;;  %v258_v3 = vadd.f32 %v250_v58, %v237_v53  ;;  %v259_v4 = vadd.f32 %v251_v59, %v238_v54  ;;  %v270_v5 = vrot.slane %v262_v60, 2 }
  0x1d   : > { %v260_v6 = vadd.f32 %v252_v61, %v239_v55  ;;  %v271_v12 = vrot.slane %v263_v62, 2  ;;  %v272_v16 = vrot.slane %v264_v63, 2  ;;  %v273_v7 = vrot.slane %v265_v0, 2 }
  0x1e   : > { %v278_v17 = vadd.f32 %v270_v5, %v257_v2  ;;  %v283_v13 = vmul.f32 %v663_v9, %v672_v14  ;;  %v284_v18 = vmul.f32 %v663_v9, %v675_v15  ;;  %v285_v19 = vmul.f32 %v663_v9, %v684_v32 }
  0x1f   : > { %v279_v8 = vadd.f32 %v271_v12, %v258_v3  ;;  %v280_v20 = vadd.f32 %v272_v16, %v259_v4  ;;  %v281_v21 = vadd.f32 %v273_v7, %v260_v6  ;;  %v286_v22 = vmul.f32 %v663_v9, %v176_v1 }
  0x20   : > { %v287_v23 = vadd.f32 %v283_v13, %v278_v17  ;;  %v292_v24 = vmul.f32 %v665_v10, %v672_v14  ;;  %v293_v25 = vmul.f32 %v665_v10, %v675_v15  ;;  %v294_v26 = vmul.f32 %v665_v10, %v684_v32 }
  0x21   : > { %v288_v27 = vadd.f32 %v284_v18, %v279_v8  ;;  %v289_v28 = vadd.f32 %v285_v19, %v280_v20  ;;  %v290_v29 = vadd.f32 %v286_v22, %v281_v21  ;;  %v295_v30 = vmul.f32 %v665_v10, %v176_v1  ;;  %v601_v10 = vld [vmem:[%s858_s2] ss:$0 sm:$0xff] }
  0x22   : > { %v300_v31 = vrot.slane %v292_v24, 1  ;;  %v301_v33 = vrot.slane %v293_v25, 1  ;;  %v302_v34 = vrot.slane %v294_v26, 1  ;;  %v313_v9 = vmul.f32 %v667_v11, %v672_v14 }
  0x23   : > { %v303_v35 = vrot.slane %v295_v30, 1  ;;  %v314_v36 = vmul.f32 %v667_v11, %v675_v15  ;;  %v315_v37 = vmul.f32 %v667_v11, %v684_v32  ;;  %v316_v38 = vmul.f32 %v667_v11, %v176_v1 }
  0x24   : > { %v308_v39 = vadd.f32 %v300_v31, %v287_v23  ;;  %v309_v40 = vadd.f32 %v301_v33, %v288_v27  ;;  %v310_v41 = vadd.f32 %v302_v34, %v289_v28  ;;  %v321_v42 = vrot.slane %v313_v9, 2 }
  0x25   : > { %v311_v43 = vadd.f32 %v303_v35, %v290_v29  ;;  %v322_v44 = vrot.slane %v314_v36, 2  ;;  %v323_v14 = vrot.slane %v315_v37, 2  ;;  %v324_v45 = vrot.slane %v316_v38, 2 }
  0x26   : > { %v329_v46 = vadd.f32 %v321_v42, %v308_v39 }
  0x27   : > { %v330_v47 = vadd.f32 %v322_v44, %v309_v40  ;;  %v331_v15 = vadd.f32 %v323_v14, %v310_v41  ;;  %v332_v48 = vadd.f32 %v324_v45, %v311_v43 }
  0x28   : > { %v720_v49 = vadd.f32 %v601_v10, %v329_v46 }
  0x29   : > { %v722_v32 = vadd.f32 %v601_v10, %v330_v47  ;;  %v724_v11 = vadd.f32 %v601_v10, %v331_v15  ;;  %v726_v50 = vadd.f32 %v601_v10, %v332_v48 }
  0x2a   : > { %v729_v51 = vmul.f32 0.70710677, %v720_v49 }
  0x2b   : > { %v732_v52 = vmul.f32 0.70710677, %v722_v32  ;;  %v735_v53 = vmul.f32 0.70710677, %v724_v11  ;;  %v738_v54 = vmul.f32 0.70710677, %v726_v50 }
  0x2c   : > { %v349_v55 = vmul.f32 %v729_v51, %v729_v51 }
  0x2d   : > { %v389_v56 = vmul.f32 %v732_v52, %v732_v52  ;;  %v429_v58 = vmul.f32 %v735_v53, %v735_v53  ;;  %v469_v59 = vmul.f32 %v738_v54, %v738_v54 }
  0x2e   : > { %v744_v57 = vmin.f32 %v349_v55, 16.0 }
  0x2f   : > { %v750_v60 = vmin.f32 %v389_v56, 16.0  ;;  %v754_v63 = vmin.f32 %v429_v58, 16.0  ;;  %v758_v2 = vmin.f32 %v469_v59, 16.0 }
  0x30   : > { %v351_v61 = vmul.f32 2.1237322e-06, %v744_v57  ;;  %v362_v62 = vmul.f32 3.8918573e-05, %v744_v57 }
  0x31   : > { %v391_v0 = vmul.f32 2.1237322e-06, %v750_v60  ;;  %v402_v1 = vmul.f32 3.8918573e-05, %v750_v60  ;;  %v431_v5 = vmul.f32 2.1237322e-06, %v754_v63 }
  0x32   : > { %v352_v3 = vadd.f32 0.00028619796, %v351_v61  ;;  %v363_v4 = vadd.f32 0.001143296, %v362_v62  ;;  %v442_v16 = vmul.f32 3.8918573e-05, %v754_v63 }
  0x33   : > { %v392_v6 = vadd.f32 0.00028619796, %v391_v0  ;;  %v403_v12 = vadd.f32 0.001143296, %v402_v1  ;;  %v432_v13 = vadd.f32 0.00028619796, %v431_v5 }
  0x34   : > { %v353_v7 = vmul.f32 %v352_v3, %v744_v57  ;;  %v364_v17 = vmul.f32 %v363_v4, %v744_v57  ;;  %v471_v18 = vmul.f32 2.1237322e-06, %v758_v2  ;;  %v443_v20 = vadd.f32 0.001143296, %v442_v16 }
  0x35   : > { %v393_v19 = vmul.f32 %v392_v6, %v750_v60  ;;  %v404_v8 = vmul.f32 %v403_v12, %v750_v60  ;;  %v482_v21 = vmul.f32 3.8918573e-05, %v758_v2  ;;  %v433_v24 = vmul.f32 %v432_v13, %v754_v63 }
  0x36   : > { %v354_v22 = vadd.f32 0.0036580483, %v353_v7  ;;  %v365_v23 = vadd.f32 0.014752088, %v364_v17  ;;  %v472_v25 = vadd.f32 0.00028619796, %v471_v18  ;;  %v444_v28 = vmul.f32 %v443_v20, %v754_v63 }
  0x37   : > { %v394_v26 = vadd.f32 0.0036580483, %v393_v19  ;;  %v405_v27 = vadd.f32 0.014752088, %v404_v8  ;;  %v483_v29 = vadd.f32 0.001143296, %v482_v21 }
  0x38   : > { %v355_v30 = vmul.f32 %v354_v22, %v744_v57  ;;  %v366_v31 = vmul.f32 %v365_v23, %v744_v57  ;;  %v434_v33 = vadd.f32 0.0036580483, %v433_v24  ;;  %v473_v34 = vmul.f32 %v472_v25, %v758_v2 }
  0x39   : > { %v395_v9 = vmul.f32 %v394_v26, %v750_v60  ;;  %v406_v35 = vmul.f32 %v405_v27, %v750_v60  ;;  %v445_v36 = vadd.f32 0.014752088, %v444_v28  ;;  %v484_v37 = vmul.f32 %v483_v29, %v758_v2 }
  0x3a   : > { %v356_v38 = vadd.f32 0.05243302, %v355_v30  ;;  %v367_v39 = vadd.f32 0.112945676, %v366_v31  ;;  %v435_v40 = vmul.f32 %v434_v33, %v754_v63  ;;  %v474_v41 = vadd.f32 0.0036580483, %v473_v34 }
  0x3b   : > { %v396_v42 = vadd.f32 0.05243302, %v395_v9  ;;  %v407_v10 = vadd.f32 0.112945676, %v406_v35  ;;  %v446_v43 = vmul.f32 %v445_v36, %v754_v63  ;;  %v485_v44 = vadd.f32 0.014752088, %v484_v37 }
  0x3c   : > { %v357_v14 = vmul.f32 %v356_v38, %v744_v57  ;;  %v368_v45 = vmul.f32 %v367_v39, %v744_v57  ;;  %v475_v46 = vmul.f32 %v474_v41, %v758_v2  ;;  %v436_v59 = vadd.f32 0.05243302, %v435_v40 }
  0x3d   : > { %v397_v47 = vmul.f32 %v396_v42, %v750_v60  ;;  %v408_v15 = vmul.f32 %v407_v10, %v750_v60  ;;  %v447_v48 = vadd.f32 0.112945676, %v446_v43  ;;  %v486_v55 = vmul.f32 %v485_v44, %v758_v2 }
  0x3e   : > { %v358_v56 = vadd.f32 0.18741608, %v357_v14  ;;  %v369_v58 = vadd.f32 0.4994258, %v368_v45  ;;  %v476_v3 = vadd.f32 0.05243302, %v475_v46  ;;  %v437_v17 = vmul.f32 %v436_v59, %v754_v63 }
  0x3f   : > { %v409_v61 = vadd.f32 0.4994258, %v408_v15  ;;  %v448_v62 = vmul.f32 %v447_v48, %v754_v63  ;;  %v487_v0 = vadd.f32 0.112945676, %v486_v55  ;;  %v398_v4 = vadd.f32 0.18741608, %v397_v47 }
  0x40   : > { %v370_v1 = vmul.f32 %v369_v58, %v744_v57  ;;  %v359_v16 = vmul.f32 %v358_v56, %v744_v57  ;;  %v477_v20 = vmul.f32 %v476_v3, %v758_v2  ;;  %v438_v22 = vadd.f32 0.18741608, %v437_v17 }
  0x41   : > { %v410_v5 = vmul.f32 %v409_v61, %v750_v60  ;;  %v449_v6 = vadd.f32 0.4994258, %v448_v62  ;;  %v488_v12 = vmul.f32 %v487_v0, %v758_v2  ;;  %v399_v8 = vmul.f32 %v398_v4, %v750_v60 }
  0x42   : > { %v371_v7 = vadd.f32 1.0, %v370_v1  ;;  %v360_v21 = vadd.f32 1.1283791, %v359_v16  ;;  %v478_v57 = vadd.f32 0.18741608, %v477_v20  ;;  %v439_v28 = vmul.f32 %v438_v22, %v754_v63 }
  0x43   : > { %v411_v13 = vadd.f32 1.0, %v410_v5  ;;  %v450_v18 = vmul.f32 %v449_v6, %v754_v63  ;;  %v489_v19 = vadd.f32 0.4994258, %v488_v12  ;;  %v400_v25 = vadd.f32 1.1283791, %v399_v8 }
  0x44   : > { %602 = vrcp.f32 %v371_v7  ;;  %v361_v27 = vmul.f32 %v360_v21, %v729_v51  ;;  %vm377_vm0 = vweird.f32 %v371_v7  ;;  %v381_v31 = vand.u32 2147483647, %v371_v7 }
  0x45   : > { %604 = vrcp.f32 %v411_v13  ;;  %v451_v23 = vadd.f32 1.0, %v450_v18  ;;  %v490_v24 = vmul.f32 %v489_v19, %v758_v2  ;;  %v383_v33 = vand.u32 2147483648, %v371_v7 }
  0x46   : > { %v421_v9 = vand.u32 2147483647, %v411_v13  ;;  %v423_v35 = vand.u32 2147483648, %v411_v13  ;;  %v401_v37 = vmul.f32 %v400_v25, %v732_v52  ;;  %v479_v51 = vmul.f32 %v478_v57, %v758_v2 }
  0x47   : > { %606 = vrcp.f32 %v451_v23  ;;  %v796_v29 = vadd.f32 1.0, %v490_v24  ;;  %vm417_vm2 = vweird.f32 %v411_v13  ;;  %v463_v63 = vand.u32 2147483648, %v451_v23 }
  0x48   : > { %vm801_vm4 = vcmp.eq.f32.partialorder %v381_v31, 8.507059e+37  ;;  %v384_v42 = vor.u32 1.1754944e-38, %v383_v33  ;;  %v440_v10 = vadd.f32 1.1283791, %v439_v28  ;;  %vm810_vm6 = vcmp.eq.f32.partialorder %v421_v9, 8.507059e+37 }
  0x49   : > { %608 = vrcp.f32 %v796_v29  ;;  %v424_v44 = vor.u32 1.1754944e-38, %v423_v35  ;;  %vm457_vm8 = vweird.f32 %v451_v23  ;;  %v461_v47 = vand.u32 2147483647, %v451_v23 }
  0x4a   : > { %v603_v26 = vpop.eup %602  ;;  %v480_v15 = vadd.f32 1.1283791, %v479_v51  ;;  %v464_v58 = vor.u32 1.1754944e-38, %v463_v63  ;;  %vm497_vm10 = vweird.f32 %v796_v29  ;;  %v501_v62 = vand.u32 2147483647, %v796_v29 }
  0x4b   : > { %v605_v30 = vpop.eup %604  ;;  %v373_v60 = vmul.f32 %v603_v26, %v371_v7  ;;  %vm378_vm1 = vweird.f32 %v603_v26  ;;  %v503_v4 = vand.u32 2147483648, %v796_v29  ;;  %v441_v17 = vmul.f32 %v440_v10, %v735_v53 }
  0x4c   : > { %v413_v34 = vmul.f32 %v605_v30, %v411_v13  ;;  %vm418_vm3 = vweird.f32 %v605_v30  ;;  %vm806_vm5 = vmor %vm377_vm0, %vm378_vm1  ;;  %vm462_vm13 = vcmp.eq.f32.partialorder %v461_v47, 8.507059e+37  ;;  %v341_v18 = vmul.f32 0.5, %v720_v49 }
  0x4d   : > { %v374_v36 = vsub.f32 1.0, %v373_v60  ;;  %v607_v39 = vpop.eup %606  ;;  %vm814_vm7 = vmor %vm417_vm2, %vm418_vm3  ;;  %v342_v19 = vmul.f32 0.5, %v722_v32  ;;  %v504_v24 = vor.u32 1.1754944e-38, %v503_v4  ;;  %vm502_vm15 = vcmp.eq.f32.partialorder %v501_v62, 8.507059e+37 }
  0x4e   : > { %v414_v38 = vsub.f32 1.0, %v413_v34  ;;  %v453_v14 = vmul.f32 %v607_v39, %v451_v23  ;;  %vm458_vm9 = vweird.f32 %v607_v39  ;;  %v481_v23 = vmul.f32 %v480_v15, %v738_v54 }
  0x4f   : > { %v375_v40 = vmul.f32 %v603_v26, %v374_v36  ;;  %v609_v48 = vpop.eup %608  ;;  %vm831_vm11 = vmor %vm457_vm8, %vm458_vm9  ;;  %vm517_vm0 = vcmask 60416   ;;  %v343_v28 = vmul.f32 0.5, %v724_v11  ;;  %v344_v33 = vmul.f32 0.5, %v726_v50 }
  0x50   : > { %v415_v52 = vmul.f32 %v605_v30, %v414_v38  ;;  %v454_v56 = vsub.f32 1.0, %v453_v14  ;;  %v493_v61 = vmul.f32 %v609_v48, %v796_v29  ;;  %vm498_vm12 = vweird.f32 %v609_v48 }
  0x51   : > { %v376_v45 = vadd.f32 %v603_v26, %v375_v40  ;;  %vm499_vm14 = vmor %vm497_vm10, %vm498_vm12 }
  0x52   : > { %v416_v55 = vadd.f32 %v605_v30, %v415_v52  ;;  %v455_v3 = vmul.f32 %v607_v39, %v454_v56  ;;  %v494_v16 = vsub.f32 1.0, %v493_v61 }
  0x53   : > { %v380_v59 = vsel %vm806_vm5, %v603_v26, %v376_v45 }
  0x54   : > { %v385_v0 = vsel %vm801_vm4, %v384_v42, %v380_v59  ;;  %v420_v1 = vsel %vm814_vm7, %v605_v30, %v416_v55  ;;  %v456_v13 = vadd.f32 %v607_v39, %v455_v3  ;;  %v495_v20 = vmul.f32 %v609_v48, %v494_v16 }
  0x55   : > { %v386_v5 = vmul.f32 %v385_v0, %v361_v27  ;;  %v425_v6 = vsel %vm810_vm6, %v424_v44, %v420_v1 }
  0x56   : > { %v426_v7 = vmul.f32 %v425_v6, %v401_v37  ;;  %v460_v22 = vsel %vm831_vm11, %v607_v39, %v456_v13  ;;  %v496_v25 = vadd.f32 %v609_v48, %v495_v20 }
  0x57   : > { %v585_v8 = vclamps-f32 %v386_v5, 1.0  ;;  %v465_v53 = vsel %vm462_vm13, %v464_v58, %v460_v22 }
  0x58   : > { %v586_v21 = vclamps-f32 %v426_v7, 1.0  ;;  %v466_v49 = vmul.f32 %v465_v53, %v441_v17  ;;  %v500_v26 = vsel %vm499_vm14, %v609_v48, %v496_v25 }
  0x59   : > { %v509_v57 = vadd.f32 1.0, %v585_v8  ;;  %v505_v30 = vsel %vm502_vm15, %v504_v24, %v500_v26 }
  0x5a   : > { %v510_v32 = vadd.f32 1.0, %v586_v21  ;;  %v587_v54 = vclamps-f32 %v466_v49, 1.0  ;;  %v506_v60 = vmul.f32 %v505_v30, %v481_v23 }
  0x5b   : > { %v513_v27 = vmul.f32 %v509_v57, %v341_v18 }
  0x5c   : > { %v514_v29 = vmul.f32 %v510_v32, %v342_v19  ;;  %v511_v31 = vadd.f32 1.0, %v587_v54  ;;  %v588_v34 = vclamps-f32 %v506_v60, 1.0 }
  0x5d   : > { %518 = vst.msk [vmem:[%s170_s29] sm:$0xf] %vm517_vm0, %v513_v27 }
  0x5e   : > { %519 = vst.msk [vmem:[%s170_s29 + $0x4] sm:$0xf] %vm517_vm0, %v514_v29  ;;  %v515_v9 = vmul.f32 %v511_v31, %v343_v28  ;;  %v512_v35 = vadd.f32 1.0, %v588_v34 }
  0x60   : > { %520 = vst.msk [vmem:[%s170_s29 + $0x8] sm:$0xf] %vm517_vm0, %v515_v9  ;;  %v516_v36 = vmul.f32 %v512_v35, %v344_v33 }
  0x62   : > { %521 = vst.msk [vmem:[%s170_s29 + $0xc] sm:$0xf] %vm517_vm0, %v516_v36 }
  0x63 PF: > { %s13_s12 = sadd.s32 1, %s616_s12  }
  0x64   : > { %p10_p4 = scmp.ge.s32.totalorder %s13_s12, 4  }
  0x66   :  { %12 = sbr.rel (!%p10_p4) target bundleno = 1 (0x1), region = 62 }

// kernel: post_pos_embed.19
= control target key start
LH: loop header
LB: loop body
LE: loop exit
PB: predicated region body
PF: predicated region fallthrough
CT: control target
= control target key end

     0   :  { %11 = vsyncpa [#allocation3], 0  ;;  %s987_s0 = inlined_call_operand.vmem [shape: f32[2,16,8], index: 0, kind: input, shape index: {}]   ;;  %s988_s1 = inlined_call_operand.vmem [shape: f32[8,8], index: 1, kind: input, shape index: {}]   ;;  %s989_s2 = inlined_call_operand.vmem [shape: f32[1,8], index: 2, kind: input, shape index: {}]   ;;  %s990_s3 = inlined_call_operand.vmem [shape: f32[1,8], index: 3, kind: input, shape index: {}]   ;;  %s991_s4 = inlined_call_operand.vmem [shape: f32[1,8], index: 4, kind: input, shape index: {}]   ;;  %s992_s5 = inlined_call_operand.vmem [shape: f32[4,8], index: 5, kind: input, shape index: {}]   ;;  %s993_s6 = inlined_call_operand.hbm [shape: f32[2,16,8], index: 6, kind: output, shape index: {}]  }
   0x1   :  { %13 = vsyncpa [#allocation3 + $0x1], 0  ;;  %s828_s21 = smov 0   ;;  %s830_s22 = smov 0  }
   0x2   :  { %s832_s23 = smov 0   ;;  %s834_s24 = smov 0  }
   0x3 LB: > { %s849_s25 = sadd.s32 4294967295, %s786_s24   ;;  %s636_s26 = sadd.s32 4294967294, %s786_s24   ;;  %s786_s24 = sphi %s834_s24, %s999_s24   ;;  %s782_s23 = sphi %s832_s23, %s998_s23   ;;  %s778_s22 = sphi %s830_s22, %s997_s22   ;;  %s774_s21 = sphi %s828_s21, %s996_s21  }
   0x4   : > { %s853_s27 = sadd.s32 1, %s786_s24   ;;  %s157_s28 = sadd.s32 1, %s782_s23 }
   0x5   : > { %s154_s29 = ssub.s32 %s786_s24, %s853_s27  ;;  %p167_p0 = scmp.ne.s32.totalorder %s782_s23, %s778_s22 }
   0x6   : > { %p155_p1 = scmp.eq.s32.totalorder %s154_s29, 0  ;;  %p168_p2 = scmp.eq.s32.totalorder %s849_s25, 1 }
   0x7   : > { %p173_p3 = scmp.ne.s32.totalorder %s778_s22, %s774_s21  ;;  %p174_p4 = scmp.eq.s32.totalorder %s636_s26, 1 }
   0x8   : > { %s864_s30 = scalar_select %p155_p1, %s782_s23, %s157_s28  }
   0x9   : > { %p866_p5 = por %p168_p2, %p167_p0  ;;  %p870_p6 = por %p174_p4, %p173_p3 }
   0xa   : > { %p639_p7 = scmp.ge.s32.totalorder %s786_s24, 1  ;;  %p215_p8 = scmp.lt.s32.totalorder %s786_s24, 3 }
   0xc   : > { %p216_p9 = pnand %p639_p7, %p215_p8 }
   0xd   : > { %p245_p10 = scmp.lt.s32.totalorder (!%p216_p9), %s849_s25, 1  ;;  %s788_s18 = smov (!%p216_p9), 122  }
   0xe   : > { %219 = sbr.rel (%p216_p9) target bundleno = 573 (0x23d), region = 44  ;;  %s789_s19 = smov (!%p216_p9), 124  }
   0xf   : > { %s790_s20 = smov (!%p216_p9), 126   ;;  %s653_s13 = sshll.u32 (!%p216_p9), %s849_s25, 4 }
  0x10   : > { %s570_s16 = scalar_lea.hbm (!%p216_p9), %s993_s6, %s653_s13 }
  0x13   : > { %v252_v0 = vld [vmem:[%s988_s1] sm:$0xff]  ;;  %s246_s11 = scalar_select %p245_p10, %s849_s25, 1  ;;  %vm257_vm0 = vcmask 64512   ;;  %vm308_vm1 = vcmask 8192  }
  0x14   : > { %279 = vmatpush.msra.mxu0 %v252_v0  ;;  %654 = vmatpush.msra.mxu1 %v252_v0  ;;  %v715_v3 = vld [vmem:[%s989_s2] ss:$0 sm:$0xff] }
  0x15   : > { %s652_s12 = sshll.u32 %s246_s11, 4  ;;  %s242_s11 = sand.u32 1, %s778_s22  }
  0x16   : > { %s249_s15 = scalar_lea.vmem %s987_s0, %s652_s12 }
  0x17   : > { %v250_v1 = vld [vmem:[%s249_s15] sm:$0xff]  ;;  %v251_v2 = vld [vmem:[%s249_s15 + $0x8] sm:$0xff] }
  0x18   : > { %643 = vmatmul.msk.f32.vlgmr.msra.gmra.mxu0 %vm257_vm0, %v250_v1  ;;  %644 = vmatmul.msk.f32.vlgmr.msra.gmra.mxu1 %vm257_vm0, %v251_v2 }
  0x95   : > { %v281_v4 = vpop.f32.mrf.mxu0  ;;  %v284_v5 = vpop.f32.mrf.mxu1 }
  0x96   : > { %v889_v6 = vadd.f32 %v715_v3, %v281_v4  ;;  %v891_v7 = vadd.f32 %v715_v3, %v284_v5 }
  0x98   : > { %v287_v8 = vsel %vm257_vm0, %v889_v6, 0.0  ;;  %v296_v9 = vmul.f32 %v889_v6, %v889_v6  ;;  %v288_v10 = vsel %vm257_vm0, %v891_v7, 0.0  ;;  %v297_v11 = vmul.f32 %v891_v7, %v891_v7 }
  0x99   : > { %v289_v12 = vadd.f32 %v288_v10, %v287_v8 }
  0x9a   : > { %v298_v13 = vsel %vm257_vm0, %v296_v9, 0.0  ;;  %v299_v14 = vsel %vm257_vm0, %v297_v11, 0.0 }
  0x9b   : > { %v290_v15 = vrot.slane %v289_v12, 4  ;;  %v300_v16 = vadd.f32 %v299_v14, %v298_v13 }
  0x9d   : > { %v291_v17 = vadd.f32 %v290_v15, %v289_v12  ;;  %v301_v18 = vrot.slane %v300_v16, 4 }
  0x9f   : > { %v292_v19 = vrot.slane %v291_v17, 2  ;;  %v302_v20 = vadd.f32 %v301_v18, %v300_v16 }
  0xa1   : > { %v293_v21 = vadd.f32 %v292_v19, %v291_v17  ;;  %v303_v22 = vrot.slane %v302_v20, 2 }
  0xa3   : > { %v294_v23 = vrot.slane %v293_v21, 1  ;;  %v304_v25 = vadd.f32 %v303_v22, %v302_v20 }
  0xa5   : > { %v295_v24 = vadd.f32 %v294_v23, %v293_v21  ;;  %v305_v26 = vrot.slane %v304_v25, 1 }
  0xa7   : > { %404 = vrot.lane.b32.xlu2 %v295_v24, %s788_s18  ;;  %371 = vrot.lane.b32.xlu1 %v295_v24, %s789_s19  ;;  %v306_v27 = vadd.f32 %v305_v26, %v304_v25  ;;  %v309_v29 = vsel %vm308_vm1, %v295_v24, 0.0 }
  0xa8   : > { %337 = vrot.lane.b32.xlu0 %v295_v24, %s790_s20 }
  0xa9   : > { %v322_v28 = vsel %vm308_vm1, %v306_v27, 0.0 }
  0xaf   : > { %420 = vrot.lane.b32.xlu2 %v306_v27, %s788_s18  ;;  %387 = vrot.lane.b32.xlu1 %v306_v27, %s789_s19  ;;  %s573_s18 = sshll.u32 %s570_s16, 4  ;;  %s559_s19 = scalar_lea.sflag [#allocation3], %s242_s11  ;;  %s574_s18 = int_to_ptr.hbm [resolvable:$true] %s573_s18 }
  0xb0   : > { %354 = vrot.lane.b32.xlu0 %v306_v27, %s790_s20 }
  0xd9   : > { %323 = vadd.xlane.f32.xlu1 %v322_v28 }
  0xda   : > { %310 = vadd.xlane.f32.xlu0 %v309_v29 }
 0x101   : > { %v405_v30 = vpop.permute.xlu2 %404 }
 0x102   : > { %v407_v41 = vsel %vm308_vm1, %v405_v30, 0.0 }
 0x109   : > { %v421_v35 = vpop.permute.xlu2 %420 }
 0x10a   : > { %v423_v39 = vsel %vm308_vm1, %v421_v35, 0.0 }
 0x119   : > { %v372_v31 = vpop.permute.xlu1 %371 }
 0x11a   : > { %v338_v32 = vpop.permute.xlu0 %337  ;;  %v374_v33 = vsel %vm308_vm1, %v372_v31, 0.0 }
 0x11b   : > { %v340_v34 = vsel %vm308_vm1, %v338_v32, 0.0  ;;  %375 = vadd.xlane.f32.xlu0 %v374_v33 }
 0x11c   : > { %341 = vadd.xlane.f32.xlu2 %v340_v34 }
 0x121   : > { %v388_v36 = vpop.permute.xlu1 %387 }
 0x122   : > { %v355_v37 = vpop.permute.xlu0 %354  ;;  %v390_v38 = vsel %vm308_vm1, %v388_v36, 0.0  ;;  %v335_v36 = vld [vmem:[%s992_s5 + $0x1] sm:$0x1] }
 0x123   : > { %391 = vadd.xlane.f32.xlu1 %v390_v38  ;;  %v357_v40 = vsel %vm308_vm1, %v355_v37, 0.0  ;;  %424 = vadd.xlane.f32.xlu0 %v423_v39  ;;  %v307_v39 = vld [vmem:[%s992_s5] sm:$0x1] }
 0x124   : > { %358 = vadd.xlane.f32.xlu2 %v357_v40 }
 0x12c   : > { %408 = vadd.xlane.f32.xlu2 %v407_v41 }
 0x14c   : > { %v324_v42 = vpop.xlane.xlu1 %323 }
 0x14d   : > { %v325_v43 = vrot.slane %v324_v42, 4  ;;  %v311_v44 = vpop.xlane.xlu0 %310 }
 0x14e   : > { %v312_v45 = vrot.slane %v311_v44, 4 }
 0x14f   : > { %v326_v46 = vadd.f32 %v325_v43, %v324_v42  ;;  %v370_v42 = vld [vmem:[%s992_s5 + $0x2] sm:$0x1] }
 0x150   : > { %v313_v47 = vadd.f32 %v312_v45, %v311_v44 }
 0x151   : > { %v327_v48 = vrot.slane %v326_v46, 2 }
 0x152   : > { %v314_v49 = vrot.slane %v313_v47, 2 }
 0x153   : > { %v328_v50 = vadd.f32 %v327_v48, %v326_v46 }
 0x154   : > { %v315_v51 = vadd.f32 %v314_v49, %v313_v47 }
 0x155   : > { %v329_v52 = vrot.slane %v328_v50, 1 }
 0x156   : > { %v316_v53 = vrot.slane %v315_v51, 1 }
 0x157   : > { %v330_v54 = vadd.f32 %v329_v52, %v328_v50  ;;  %v403_v50 = vld [vmem:[%s992_s5 + $0x3] sm:$0x1] }
 0x158   : > { %v317_v55 = vadd.f32 %v316_v53, %v315_v51 }
 0x15a   : > { %655 = vpush %v317_v55 }
 0x15b   : > { %657 = vpush %v330_v54 }
 0x18b   : > { %s656_s26 = spop %655 }
 0x18c   : > { %s658_s28 = spop %657  ;;  %v319_v40 = vstv %s656_s26 }
 0x18d   : > { %v332_v41 = vstv %s658_s28  ;;  %v320_v46 = vmul.f32 %v319_v40, %v307_v39 }
 0x18e   : > { %v376_v56 = vpop.xlane.xlu0 %375  ;;  %v333_v47 = vmul.f32 %v332_v41, %v307_v39 }
 0x18f   : > { %v342_v57 = vpop.xlane.xlu2 %341  ;;  %v377_v58 = vrot.slane %v376_v56, 4 }
 0x190   : > { %v343_v59 = vrot.slane %v342_v57, 4 }
 0x191   : > { %v378_v61 = vadd.f32 %v377_v58, %v376_v56 }
 0x192   : > { %v344_v60 = vadd.f32 %v343_v59, %v342_v57 }
 0x193   : > { %v379_v2 = vrot.slane %v378_v61, 2 }
 0x194   : > { %v345_v62 = vrot.slane %v344_v60, 2 }
 0x195   : > { %v380_v15 = vadd.f32 %v379_v2, %v378_v61 }
 0x196   : > { %v392_v63 = vpop.xlane.xlu1 %391  ;;  %v425_v0 = vpop.xlane.xlu0 %424  ;;  %v346_v1 = vadd.f32 %v345_v62, %v344_v60 }
 0x197   : > { %v393_v3 = vrot.slane %v392_v63, 4  ;;  %v359_v4 = vpop.xlane.xlu2 %358  ;;  %v426_v5 = vrot.slane %v425_v0, 4  ;;  %v381_v21 = vrot.slane %v380_v15, 1 }
 0x198   : > { %v360_v8 = vrot.slane %v359_v4, 4  ;;  %v347_v9 = vrot.slane %v346_v1, 1 }
 0x199   : > { %v394_v10 = vadd.f32 %v393_v3, %v392_v63  ;;  %v427_v14 = vadd.f32 %v426_v5, %v425_v0  ;;  %v382_v29 = vadd.f32 %v381_v21, %v380_v15  ;;  %v716_v15 = vld [vmem:[%s990_s3] ss:$0 sm:$0xff] }
 0x19a   : > { %v361_v11 = vadd.f32 %v360_v8, %v359_v4  ;;  %v348_v12 = vadd.f32 %v347_v9, %v346_v1 }
 0x19b   : > { %v395_v13 = vrot.slane %v394_v10, 2  ;;  %v428_v19 = vrot.slane %v427_v14, 2 }
 0x19c   : > { %v362_v16 = vrot.slane %v361_v11, 2  ;;  %659 = vpush %v348_v12 }
 0x19d   : > { %v396_v17 = vadd.f32 %v395_v13, %v394_v10  ;;  %v429_v28 = vadd.f32 %v428_v19, %v427_v14 }
 0x19e   : > { %v363_v18 = vadd.f32 %v362_v16, %v361_v11 }
 0x19f   : > { %v409_v20 = vpop.xlane.xlu2 %408  ;;  %v397_v22 = vrot.slane %v396_v17, 1  ;;  %v430_v32 = vrot.slane %v429_v28, 1 }
 0x1a0   : > { %v410_v23 = vrot.slane %v409_v20, 4  ;;  %v364_v24 = vrot.slane %v363_v18, 1 }
 0x1a1   : > { %v398_v27 = vadd.f32 %v397_v22, %v396_v17  ;;  %v431_v35 = vadd.f32 %v430_v32, %v429_v28 }
 0x1a2   : > { %v411_v25 = vadd.f32 %v410_v23, %v409_v20  ;;  %v365_v26 = vadd.f32 %v364_v24, %v363_v18  ;;  %v717_v18 = vld [vmem:[%s991_s4] ss:$0 sm:$0xff] }
 0x1a4   : > { %v412_v30 = vrot.slane %v411_v25, 2  ;;  %661 = vpush %v365_v26 }
 0x1a5   : > { %663 = vpush %v382_v29 }
 0x1a6   : > { %v413_v31 = vadd.f32 %v412_v30, %v411_v25  ;;  %665 = vpush %v398_v27 }
 0x1a8   : > { %v414_v33 = vrot.slane %v413_v31, 1 }
 0x1aa   : > { %v415_v34 = vadd.f32 %v414_v33, %v413_v31 }
 0x1ac   : > { %667 = vpush %v415_v34 }
 0x1ad   : > { %669 = vpush %v431_v35 }
 0x1cd   : > { %s660_s29 = spop %659 }
 0x1ce   : > { %v350_v37 = vstv %s660_s29 }
 0x1cf   : > { %v351_v44 = vmul.f32 %v350_v37, %v335_v36 }
 0x1d1   : > { %v352_v51 = vadd.f32 %v351_v44, %v320_v46 }
 0x1d5   : > { %s662_s9 = spop %661 }
 0x1d6   : > { %v367_v38 = vstv %s662_s9  ;;  %s664_s12 = spop %663  ;;  %s744_s9 = scalar_lea.hbm %s993_s6, 32 }
 0x1d7   : > { %v384_v43 = vstv %s664_s12  ;;  %v368_v45 = vmul.f32 %v367_v38, %v335_v36  ;;  %s666_s17 = spop %665  ;;  %s640_s12 = sshll.u32 %s242_s11, 4 }
 0x1d8   : > { %v385_v48 = vmul.f32 %v384_v43, %v370_v42  ;;  %v400_v49 = vstv %s666_s17  ;;  %s244_s25 = scalar_lea.vmem [#allocation2], %s640_s12 }
 0x1d9   : > { %v369_v52 = vadd.f32 %v368_v45, %v333_v47  ;;  %v401_v55 = vmul.f32 %v400_v49, %v370_v42  ;;  %s571_s17 = sshll.u32 %s244_s25, 4  ;;  %s572_s17 = int_to_ptr.vmem [resolvable:$true] %s571_s17 }
 0x1da   : > { %v386_v54 = vadd.f32 %v385_v48, %v352_v51 }
 0x1db   : > { %v402_v59 = vadd.f32 %v401_v55, %v369_v52 }
 0x1dd   : > { %s668_s20 = spop %667 }
 0x1de   : > { %v417_v53 = vstv %s668_s20  ;;  %s670_s26 = spop %669  ;;  %s738_s20 = sshra.s32 %s574_s18, 4  ;;  %s739_s20 = int_to_ptr.hbm [resolvable:$true] %s738_s20 }
 0x1df   : > { %v418_v56 = vmul.f32 %v417_v53, %v403_v50  ;;  %v433_v57 = vstv %s670_s26  ;;  %s740_s26 = scalar_lea.hbm %s739_s20, 16  ;;  %p745_p0 = scmp.lt.s32.totalorder %s739_s20, %s993_s6 }
 0x1e0   : > { %v434_v58 = vmul.f32 %v433_v57, %v403_v50  ;;  %p741_p11 = scmp.ne.s32.totalorder %s739_s20, %s740_s26  ;;  %p746_p1 = scmp.lt.s32.totalorder %s744_s9, %s740_s26 }
 0x1e1   : > { %v419_v60 = vadd.f32 %v418_v56, %v386_v54 }
 0x1e2   : > { %v435_v62 = vadd.f32 %v434_v58, %v402_v59  ;;  %p742_p12 = pnand %p741_p11, %p866_p5  ;;  %p747_p2 = por %p746_p1, %p745_p0 }
 0x1e3   : > { %v436_v61 = vmul.f32 %v419_v60, %v419_v60  ;;  %v439_v9 = vperm.slane %v419_v60, 0 }
 0x1e4   : > { %p743_p13 = pneg %p742_p12 }
 0x1e5   : > { %v437_v63 = vsub.f32 %v435_v62, %v436_v61  ;;  %v440_v12 = vsub.f32 %v889_v6, %v439_v9  ;;  %v441_v13 = vsub.f32 %v891_v7, %v439_v9 }
 0x1e6   : > { %p748_p3 = pnand %p747_p2, %p743_p13 }
 0x1e7   : > { %v438_v0 = vmax.f32 %v437_v63, 0.0 }
 0x1e9   : > { %v442_v1 = vadd.f32 1e-05, %v438_v0 }
 0x1eb   : > { %718 = vrsqrt.f32 %v442_v1  ;;  %vm449_vm3 = vweird.f32 %v442_v1 }
 0x1f1   : > { %v719_v2 = vpop.eup %718 }
 0x1f2   : > { %v444_v3 = vmul.f32 %v719_v2, %v442_v1  ;;  %vm450_vm2 = vweird.f32 %v719_v2 }
 0x1f3   : > { %vm451_vm4 = vmor %vm449_vm3, %vm450_vm2 }
 0x1f4   : > { %v445_v4 = vmul.f32 %v719_v2, %v444_v3 }
 0x1f6   : > { %v446_v5 = vmul.f32 0.5, %v445_v4 }
 0x1f8   : > { %v447_v8 = vsub.f32 1.5, %v446_v5 }
 0x1fa   : > { %v448_v10 = vmul.f32 %v719_v2, %v447_v8 }
 0x1fc   : > { %v452_v11 = vsel %vm451_vm4, %v719_v2, %v448_v10 }
 0x1fd   : > { %v453_v14 = vperm.slane %v452_v11, 0 }
 0x1ff   : > { %v454_v16 = vmul.f32 %v453_v14, %v440_v12  ;;  %v455_v17 = vmul.f32 %v453_v14, %v441_v13 }
 0x201   : > { %v460_v19 = vmul.f32 %v716_v15, %v454_v16  ;;  %v461_v20 = vmul.f32 %v716_v15, %v455_v17 }
 0x203   : > { %v931_v21 = vadd.f32 %v717_v18, %v460_v19  ;;  %v933_v22 = vadd.f32 %v717_v18, %v461_v20 }
 0x205   : > { %v936_v6 = vmul.f32 0.70710677, %v931_v21  ;;  %v939_v7 = vmul.f32 0.70710677, %v933_v22 }
 0x207   : > { %v472_v23 = vmul.f32 %v936_v6, %v936_v6  ;;  %v512_v24 = vmul.f32 %v939_v7, %v939_v7 }
 0x209   : > { %v473_v25 = vmin.f32 %v472_v23, 16.0  ;;  %v513_v26 = vmin.f32 %v512_v24, 16.0 }
 0x20b   : > { %v474_v27 = vmul.f32 2.1237322e-06, %v473_v25  ;;  %v485_v28 = vmul.f32 3.8918573e-05, %v473_v25  ;;  %v514_v29 = vmul.f32 2.1237322e-06, %v513_v26 }
 0x20c   : > { %v525_v30 = vmul.f32 3.8918573e-05, %v513_v26 }
 0x20d   : > { %v475_v31 = vadd.f32 0.00028619796, %v474_v27  ;;  %v486_v32 = vadd.f32 0.001143296, %v485_v28  ;;  %v515_v33 = vadd.f32 0.00028619796, %v514_v29 }
 0x20e   : > { %v526_v34 = vadd.f32 0.001143296, %v525_v30 }
 0x20f   : > { %v476_v35 = vmul.f32 %v475_v31, %v473_v25  ;;  %v487_v36 = vmul.f32 %v486_v32, %v473_v25  ;;  %v516_v37 = vmul.f32 %v515_v33, %v513_v26 }
 0x210   : > { %v527_v38 = vmul.f32 %v526_v34, %v513_v26 }
 0x211   : > { %v477_v39 = vadd.f32 0.0036580483, %v476_v35  ;;  %v488_v40 = vadd.f32 0.014752088, %v487_v36  ;;  %v517_v43 = vadd.f32 0.0036580483, %v516_v37 }
 0x212   : > { %v528_v41 = vadd.f32 0.014752088, %v527_v38 }
 0x213   : > { %v489_v42 = vmul.f32 %v488_v40, %v473_v25  ;;  %v478_v45 = vmul.f32 %v477_v39, %v473_v25  ;;  %v518_v49 = vmul.f32 %v517_v43, %v513_v26 }
 0x214   : > { %v529_v44 = vmul.f32 %v528_v41, %v513_v26 }
 0x215   : > { %v490_v46 = vadd.f32 0.112945676, %v489_v42  ;;  %v479_v51 = vadd.f32 0.05243302, %v478_v45  ;;  %v519_v55 = vadd.f32 0.05243302, %v518_v49 }
 0x216   : > { %v530_v47 = vadd.f32 0.112945676, %v529_v44 }
 0x217   : > { %v491_v48 = vmul.f32 %v490_v46, %v473_v25  ;;  %v480_v57 = vmul.f32 %v479_v51, %v473_v25  ;;  %v520_v60 = vmul.f32 %v519_v55, %v513_v26 }
 0x218   : > { %v531_v50 = vmul.f32 %v530_v47, %v513_v26 }
 0x219   : > { %v492_v52 = vadd.f32 0.4994258, %v491_v48  ;;  %v481_v61 = vadd.f32 0.18741608, %v480_v57  ;;  %v521_v62 = vadd.f32 0.18741608, %v520_v60 }
 0x21a   : > { %v532_v53 = vadd.f32 0.4994258, %v531_v50 }
 0x21b   : > { %v493_v54 = vmul.f32 %v492_v52, %v473_v25  ;;  %v482_v0 = vmul.f32 %v481_v61, %v473_v25  ;;  %v522_v3 = vmul.f32 %v521_v62, %v513_v26 }
 0x21c   : > { %v533_v56 = vmul.f32 %v532_v53, %v513_v26 }
 0x21d   : > { %v494_v58 = vadd.f32 1.0, %v493_v54  ;;  %v483_v8 = vadd.f32 1.1283791, %v482_v0  ;;  %v523_v14 = vadd.f32 1.1283791, %v522_v3 }
 0x21e   : > { %v534_v59 = vadd.f32 1.0, %v533_v56 }
 0x21f   : > { %720 = vrcp.f32 %v494_v58  ;;  %v506_v9 = vand.u32 2147483648, %v494_v58  ;;  %v504_v12 = vand.u32 2147483647, %v494_v58  ;;  %vm500_vm7 = vweird.f32 %v494_v58 }
 0x220   : > { %722 = vrcp.f32 %v534_v59  ;;  %v546_v13 = vand.u32 2147483648, %v534_v59  ;;  %v544_v16 = vand.u32 2147483647, %v534_v59  ;;  %vm540_vm9 = vweird.f32 %v534_v59 }
 0x221   : > { %v507_v18 = vor.u32 1.1754944e-38, %v506_v9  ;;  %v484_v20 = vmul.f32 %v483_v8, %v936_v6  ;;  %vm505_vm10 = vcmp.eq.f32.partialorder %v504_v12, 8.507059e+37  ;;  %v524_v26 = vmul.f32 %v523_v14, %v939_v7 }
 0x222   : > { %v547_v24 = vor.u32 1.1754944e-38, %v546_v13  ;;  %vm545_vm12 = vcmp.eq.f32.partialorder %v544_v16, 8.507059e+37  ;;  %v468_v6 = vmul.f32 0.5, %v931_v21  ;;  %v469_v7 = vmul.f32 0.5, %v933_v22 }
 0x225   : > { %v721_v63 = vpop.eup %720 }
 0x226   : > { %v723_v1 = vpop.eup %722  ;;  %v496_v2 = vmul.f32 %v721_v63, %v494_v58  ;;  %vm501_vm5 = vweird.f32 %v721_v63 }
 0x227   : > { %v536_v4 = vmul.f32 %v723_v1, %v534_v59  ;;  %vm541_vm6 = vweird.f32 %v723_v1  ;;  %vm502_vm8 = vmor %vm500_vm7, %vm501_vm5 }
 0x228   : > { %v497_v5 = vsub.f32 1.0, %v496_v2  ;;  %vm542_vm11 = vmor %vm540_vm9, %vm541_vm6 }
 0x229   : > { %v537_v10 = vsub.f32 1.0, %v536_v4 }
 0x22a   : > { %v498_v11 = vmul.f32 %v721_v63, %v497_v5 }
 0x22b   : > { %v538_v15 = vmul.f32 %v723_v1, %v537_v10 }
 0x22c   : > { %v499_v17 = vadd.f32 %v721_v63, %v498_v11 }
 0x22d   : > { %v539_v19 = vadd.f32 %v723_v1, %v538_v15 }
 0x22e   : > { %v503_v23 = vsel %vm502_vm8, %v721_v63, %v499_v17 }
 0x22f   : > { %v508_v25 = vsel %vm505_vm10, %v507_v18, %v503_v23  ;;  %v543_v27 = vsel %vm542_vm11, %v723_v1, %v539_v19 }
 0x230   : > { %v509_v28 = vmul.f32 %v508_v25, %v484_v20  ;;  %v548_v29 = vsel %vm545_vm12, %v547_v24, %v543_v27 }
 0x231   : > { %v549_v30 = vmul.f32 %v548_v29, %v524_v26 }
 0x232   : > { %v645_v31 = vclamps-f32 %v509_v28, 1.0 }
 0x233   : > { %v646_v32 = vclamps-f32 %v549_v30, 1.0 }
 0x234   : > { %v552_v33 = vadd.f32 1.0, %v645_v31 }
 0x235   : > { %v553_v34 = vadd.f32 1.0, %v646_v32 }
 0x236   : > { %v554_v35 = vmul.f32 %v552_v33, %v468_v6 }
 0x237   : > { %v555_v36 = vmul.f32 %v553_v34, %v469_v7 }
 0x238   : > { %556 = vst.msk [vmem:[%s244_s25] sm:$0xff] %vm257_vm0, %v554_v35 }
 0x239   : > { %557 = vst.msk [vmem:[%s244_s25 + $0x8] sm:$0xff] %vm257_vm0, %v555_v36 }
 0x23a   : > { %751 = shalt.err (!%p748_p3)
}
 0x23b   : > { %s791_s11 = smov 128   ;;  %s792_s13 = smov 8  }
 0x23c   : > { %671 = dma.vmem_to_hbm [thread:$0]  (%p866_p5), %s572_s17, 256, %s574_s18, %s559_s19, %s791_s11, %s791_s11, %s792_s13  }
 0x23d PF: > { %p677_p4 = scmp.ge.s32.totalorder %s786_s24, 2  ;;  %s588_s14 = sand.u32 1, %s774_s21  }
 0x23e   : > { %s589_s15 = scalar_lea.sflag [#allocation3], %s588_s14 }
 0x23f   : > { %p674_p7 = pnand %p677_p4, %p870_p6 }
 0x241   : > { %p675_p8 = pneg %p674_p7 }
 0x243   : > { %769 = dma.done.wait (%p675_p8), %s589_s15, 256  }
 0x244   : > { %771 = vsyncadd (%p675_p8), %s589_s15, 4294967040  ;;  %p16_p9 = scmp.ge.s32.totalorder %s853_s27, 4   ;;  %s996_s21 = smov %s778_s22 }
 0x245   : > { %s997_s22 = smov %s782_s23  ;;  %s998_s23 = smov %s864_s30 }
 0x246   : > { %s999_s24 = smov %s853_s27  ;;  %18 = sbr.rel (!%p16_p9) target bundleno = 3 (0x3), region = 79 }
 0x24b   :  { %595 = vsyncpa [#allocation3], 1 }
 0x24c   :  { %597 = vsyncpa [#allocation3 + $0x1], 1 }

</bundles_post_ra>
